<compile_context>
chip_gen: v5e
topology: v5e:2x2
jax: 0.10.0
libtpu: 0.0.40
codegen_flags: <defaults>
</compile_context>

<pallas_src>
import math

import jax
import jax.numpy as jnp
from jax.experimental import pallas as pl
from jax.experimental.pallas import tpu as pltpu

_VMEM = pl.BlockSpec(memory_space=pltpu.MemorySpace.VMEM)
_BN_EPS = 1e-5


# ------------------------- in-kernel building blocks (per-batch 2D values) ---------------------
def _conv_win(xs, w, b, k):
    """Valid 1D conv (stride 1, padding 0), channels-last, one matmul per batch element.
    xs: list of (L, Cin) values; w: (k*Cin, Cout) packed window-major; b: (1, Cout)."""
    outs = []
    for x in xs:
        lout = x.shape[0] - k + 1
        win = jnp.concatenate([x[kk:kk + lout, :] for kk in range(k)], axis=1)   # (Lout, k*Cin)
        outs.append(jnp.dot(win, w, preferred_element_type=jnp.float32) + b)
    return outs


def _tconv_win(xs, w, b, k):
    """nn.ConvTranspose1d (stride 1, padding 0) in gather form: zero-pad by (k-1) rows on each
    side and run a regular conv; the tap flip is folded into w at pack time."""
    padded = []
    for x in xs:
        z = jnp.zeros((k - 1, x.shape[1]), jnp.float32)
        padded.append(jnp.concatenate([z, x, z], axis=0))
    return _conv_win(padded, w, b, k)


def _bn_lrelu_list(xs, g, b, slope):
    """Training-mode BatchNorm1d over (B, C, L) + LeakyReLU(0.2) on a per-batch (L, C) list.
    Per-channel stats over every row of every batch element, biased variance (matches torch)."""
    n = float(sum(x.shape[0] for x in xs))
    tot = xs[0].sum(axis=0, keepdims=True)
    for x in xs[1:]:
        tot = tot + x.sum(axis=0, keepdims=True)
    mean = tot / n
    ss = None
    for x in xs:
        d = x - mean
        s = (d * d).sum(axis=0, keepdims=True)
        ss = s if ss is None else ss + s
    var = ss / n
    scale = g * jax.lax.rsqrt(var + _BN_EPS)
    shift = b - mean * scale
    outs = []
    for x in xs:
        y = x * scale + shift
        if slope is not None:          # slope=None: nn.LeakyReLU(True) == identity, skip select
            y = jnp.where(y >= 0, y, slope * y)
        outs.append(y)
    return outs


def _bn_rows(x, g, b):
    """Training-mode BatchNorm1d on a batch-stacked (B, C) tile (FC-stack BNs). The following
    nn.LeakyReLU(True) has negative_slope == 1.0, i.e. identity, so no activation is applied."""
    n = float(x.shape[0])
    mean = jnp.sum(x, axis=0, keepdims=True) / n
    d = x - mean
    var = jnp.sum(d * d, axis=0, keepdims=True) / n
    return d * (g * jax.lax.rsqrt(var + _BN_EPS)) + b


# -------------------------------------- the fused kernel ---------------------------------------
def _embedding_net_kernel(
        poses_ref, sel_ref,
        ec1w, ec1b, bg1, bb1,
        ec2w, ec2b, bg2, bb2,
        ec3w, ec3b, bg3, bb3,
        ec4w, ec4b,
        el1w, el1b, bg4, bb4,
        el2w, el2b, bg5, bb5,
        el3w, el3b,
        emuw, emub,
        dl1w, dl1b, dg0, db0,
        dl2w, dl2b,
        t1w, t1b, g1, b1,
        t2w, t2b, g2, b2,
        c3w, c3b, c4w, c4b,
        mu_ref, out_ref):
    batch = poses_ref.shape[0]

    # ----------------------- PoseEncoderConv.net (channels-last (L, C) tiles) ------------------
    xs = [poses_ref[b] for b in range(batch)]                       # (T, D)
    xs = _conv_win(xs, ec1w[...], ec1b[...], 3)                     # (T-2, 32)
    xs = _bn_lrelu_list(xs, bg1[...], bb1[...], 0.2)
    xs = _conv_win(xs, ec2w[...], ec2b[...], 3)                     # (T-4, 64)
    xs = _bn_lrelu_list(xs, bg2[...], bb2[...], 0.2)
    # downsampling conv (k=4, stride=2): full stride-1 conv, then even-row selection with a
    # constant selection matrix precomputed at pack time.
    xs = _conv_win(xs, ec3w[...], ec3b[...], 4)                     # (T-7, 64)
    sel = sel_ref[...]
    xs = [jnp.dot(sel, x, preferred_element_type=jnp.float32) for x in xs]    # (L3, 64)
    xs = _bn_lrelu_list(xs, bg3[...], bb3[...], 0.2)
    xs = _conv_win(xs, ec4w[...], ec4b[...], 3)                     # (L4, 32), 32*L4 == 800

    # ------------------ out.flatten(1) + out_net + fc_mu, batch-stacked (B, K) -----------------
    l4 = xs[0].shape[0]
    flats = [jnp.concatenate([x[l:l + 1, :] for l in range(l4)], axis=1) for x in xs]  # (1, 800)
    h = jnp.concatenate(flats, axis=0)                              # (B, 800), l-major lane order
    h = jnp.dot(h, el1w[...], preferred_element_type=jnp.float32) + el1b[...]          # (B, 256)
    h = _bn_rows(h, bg4[...], bb4[...])                             # BN + LeakyReLU(True)=identity
    h = jnp.dot(h, el2w[...], preferred_element_type=jnp.float32) + el2b[...]          # (B, 128)
    h = _bn_rows(h, bg5[...], bb5[...])
    h = jnp.dot(h, el3w[...], preferred_element_type=jnp.float32) + el3b[...]          # (B, 32)
    mu = jnp.dot(h, emuw[...], preferred_element_type=jnp.float32) + emub[...]         # (B, 32)
    mu_ref[...] = mu                                                # poses_feat (z = mu)

    # ------------------------------- PoseDecoderConv.pre_net -----------------------------------
    hp = jnp.dot(mu, dl1w[...], preferred_element_type=jnp.float32) + dl1b[...]        # (B, 128)
    hp = _bn_rows(hp, dg0[...], db0[...])
    # Linear(128, 4T) split per decoder input channel (torch's out.view(B, 4, T)): each channel
    # gives a (B, T) row set; per batch element the 4 rows are stacked and transposed into the
    # channels-last (T, 4) decoder input -- all inside VMEM/vregs, no HBM round-trip.
    rows = [jnp.dot(hp, dl2w[c], preferred_element_type=jnp.float32) + dl2b[c]
            for c in range(4)]                                      # 4 x (B, T)
    xs = []
    for b in range(batch):
        cf = jnp.concatenate([rows[c][b:b + 1, :] for c in range(4)], axis=0)   # (4, T)
        xs.append(jnp.transpose(cf))                                            # (T, 4)

    # --------------------------------- PoseDecoderConv.net -------------------------------------
    xs = _tconv_win(xs, t1w[...], t1b[...], 3)                      # (T+2, 32)
    xs = _bn_lrelu_list(xs, g1[...], b1[...], 0.2)
    xs = _tconv_win(xs, t2w[...], t2b[...], 3)                      # (T+4, 32)
    xs = _bn_lrelu_list(xs, g2[...], b2[...], 0.2)
    xs = _conv_win(xs, c3w[...], c3b[...], 3)                       # (T+2, 32)
    xs = _conv_win(xs, c4w[...], c4b[...], 3)                       # (T, pose_dim)
    for b in range(batch):
        out_ref[b] = xs[b]                                          # == torch out.transpose(1, 2)


# ------------------------------------ pallas_call wrapper --------------------------------------
def _embedding_net_call(q, poses):
    bsz, n_frames, _ = poses.shape
    pose_dim = q['d_c4_w'].shape[1]
    args = (
        poses, q['sel'],
        q['e_c1_w'], q['e_c1_b'], q['e_bn1_g'], q['e_bn1_b'],
        q['e_c2_w'], q['e_c2_b'], q['e_bn2_g'], q['e_bn2_b'],
        q['e_c3_w'], q['e_c3_b'], q['e_bn3_g'], q['e_bn3_b'],
        q['e_c4_w'], q['e_c4_b'],
        q['e_l1_w'], q['e_l1_b'], q['e_bn4_g'], q['e_bn4_b'],
        q['e_l2_w'], q['e_l2_b'], q['e_bn5_g'], q['e_bn5_b'],
        q['e_l3_w'], q['e_l3_b'],
        q['e_mu_w'], q['e_mu_b'],
        q['d_l1_w'], q['d_l1_b'], q['d_bn0_g'], q['d_bn0_b'],
        q['d_l2_w'], q['d_l2_b'],
        q['d_t1_w'], q['d_t1_b'], q['d_bn1_g'], q['d_bn1_b'],
        q['d_t2_w'], q['d_t2_b'], q['d_bn2_g'], q['d_bn2_b'],
        q['d_c3_w'], q['d_c3_b'], q['d_c4_w'], q['d_c4_b'],
    )
    return pl.pallas_call(
        _embedding_net_kernel,
        out_shape=(jax.ShapeDtypeStruct((bsz, 32), jnp.float32),
                   jax.ShapeDtypeStruct((bsz, n_frames, pose_dim), jnp.float32)),
        in_specs=[_VMEM] * len(args),
        out_specs=(_VMEM, _VMEM),
        compiler_params=pltpu.CompilerParams(vmem_limit_bytes=32 * 1024 * 1024),
    )(*args)


# --------------------------------------- parameters --------------------------------------------
def init_params(key, pose_dim, n_frames):
    """Parameters in torch layouts: Conv1d (C_out, C_in, k), ConvTranspose1d (C_in, C_out, k),
    Linear (out, in), BN gamma/beta (C,)."""
    l3 = (n_frames - 8) // 2 + 1
    l4 = l3 - 2
    assert 32 * l4 == 800, "PoseEncoderConv hard-codes Linear(800, 256) (use n_frames=60)"
    assert 34 < n_frames < 128, "PoseDecoderConv pre_net branch"

    keys = iter(jax.random.split(key, 32))

    def u(shape, fan_in):
        bound = 1.0 / math.sqrt(fan_in)
        return jax.random.uniform(next(keys), shape, jnp.float32, -bound, bound)

    def bn(c):
        return jnp.ones((c,), jnp.float32), jnp.zeros((c,), jnp.float32)

    p = {}
    # PoseEncoderConv.net
    p['e_c1_w'], p['e_c1_b'] = u((32, pose_dim, 3), pose_dim * 3), u((32,), pose_dim * 3)
    p['e_bn1_g'], p['e_bn1_b'] = bn(32)
    p['e_c2_w'], p['e_c2_b'] = u((64, 32, 3), 32 * 3), u((64,), 32 * 3)
    p['e_bn2_g'], p['e_bn2_b'] = bn(64)
    p['e_c3_w'], p['e_c3_b'] = u((64, 64, 4), 64 * 4), u((64,), 64 * 4)   # downsample: k=4, s=2
    p['e_bn3_g'], p['e_bn3_b'] = bn(64)
    p['e_c4_w'], p['e_c4_b'] = u((32, 64, 3), 64 * 3), u((32,), 64 * 3)
    # PoseEncoderConv.out_net / fc_mu
    p['e_l1_w'], p['e_l1_b'] = u((256, 800), 800), u((256,), 800)
    p['e_bn4_g'], p['e_bn4_b'] = bn(256)
    p['e_l2_w'], p['e_l2_b'] = u((128, 256), 256), u((128,), 256)
    p['e_bn5_g'], p['e_bn5_b'] = bn(128)
    p['e_l3_w'], p['e_l3_b'] = u((32, 128), 128), u((32,), 128)
    p['e_mu_w'], p['e_mu_b'] = u((32, 32), 32), u((32,), 32)
    # PoseDecoderConv (use_pre_poses=False)
    p['d_l1_w'], p['d_l1_b'] = u((128, 32), 32), u((128,), 32)
    p['d_bn0_g'], p['d_bn0_b'] = bn(128)
    p['d_l2_w'], p['d_l2_b'] = u((n_frames * 4, 128), 128), u((n_frames * 4,), 128)
    p['d_t1_w'], p['d_t1_b'] = u((4, 32, 3), 4 * 3), u((32,), 4 * 3)
    p['d_bn1_g'], p['d_bn1_b'] = bn(32)
    p['d_t2_w'], p['d_t2_b'] = u((32, 32, 3), 32 * 3), u((32,), 32 * 3)
    p['d_bn2_g'], p['d_bn2_b'] = bn(32)
    p['d_c3_w'], p['d_c3_b'] = u((32, 32, 3), 32 * 3), u((32,), 32 * 3)
    p['d_c4_w'], p['d_c4_b'] = u((pose_dim, 32, 3), 32 * 3), u((pose_dim,), 32 * 3)
    return p


def pack_params(p, n_frames):
    """One-time repack of torch-layout parameters into the layouts the fused kernel consumes.
    Folds torch's channel-major flatten, out.view(B, 4, T), tconv tap flip and the stride-2
    row-selection constant into the weights so nothing but matmuls sits on the hot path."""
    def conv_win(w):       # Conv1d (C_out, C_in, k) -> (k*C_in, C_out), window-major rows
        cout, cin, k = w.shape
        return jnp.transpose(w, (2, 1, 0)).reshape(k * cin, cout)

    def tconv_win(w):      # ConvTranspose1d (C_in, C_out, k) -> flipped taps, (k*C_in, C_out)
        cin, cout, k = w.shape
        return jnp.transpose(w[:, :, ::-1], (2, 0, 1)).reshape(k * cin, cout)

    def lin(w):            # Linear (out, in) -> (in, out)
        return jnp.transpose(w)

    def row(v):            # bias / BN param -> (1, C)
        return v.reshape(1, -1)

    q = {}
    q['e_c1_w'], q['e_c1_b'] = conv_win(p['e_c1_w']), row(p['e_c1_b'])
    q['e_bn1_g'], q['e_bn1_b'] = row(p['e_bn1_g']), row(p['e_bn1_b'])
    q['e_c2_w'], q['e_c2_b'] = conv_win(p['e_c2_w']), row(p['e_c2_b'])
    q['e_bn2_g'], q['e_bn2_b'] = row(p['e_bn2_g']), row(p['e_bn2_b'])
    q['e_c3_w'], q['e_c3_b'] = conv_win(p['e_c3_w']), row(p['e_c3_b'])
    q['e_bn3_g'], q['e_bn3_b'] = row(p['e_bn3_g']), row(p['e_bn3_b'])
    q['e_c4_w'], q['e_c4_b'] = conv_win(p['e_c4_w']), row(p['e_c4_b'])
    # even-row selection for the stride-2 conv, precomputed once (27x53 for n_frames=60)
    l_full = n_frames - 7
    l3 = (n_frames - 8) // 2 + 1
    q['sel'] = (jnp.arange(l_full)[None, :] == 2 * jnp.arange(l3)[:, None]).astype(jnp.float32)
    # fold torch's channel-major flatten of the (B, 32, L4) conv output into e_l1: rows are
    # reordered to the kernel's l-major flatten order (flat[l*32 + c] = conv_out[l, c]).
    l4 = l3 - 2
    q['e_l1_w'] = jnp.transpose(jnp.transpose(p['e_l1_w']).reshape(32, l4, 256),
                                (1, 0, 2)).reshape(32 * l4, 256)
    q['e_l1_b'] = row(p['e_l1_b'])
    q['e_bn4_g'], q['e_bn4_b'] = row(p['e_bn4_g']), row(p['e_bn4_b'])
    q['e_l2_w'], q['e_l2_b'] = lin(p['e_l2_w']), row(p['e_l2_b'])
    q['e_bn5_g'], q['e_bn5_b'] = row(p['e_bn5_g']), row(p['e_bn5_b'])
    q['e_l3_w'], q['e_l3_b'] = lin(p['e_l3_w']), row(p['e_l3_b'])
    q['e_mu_w'], q['e_mu_b'] = lin(p['e_mu_w']), row(p['e_mu_b'])
    q['d_l1_w'], q['d_l1_b'] = lin(p['d_l1_w']), row(p['d_l1_b'])
    q['d_bn0_g'], q['d_bn0_b'] = row(p['d_bn0_g']), row(p['d_bn0_b'])
    # split Linear(128, 4T) per decoder input channel (torch's out.view(B, 4, T)):
    # d_l2_w[c] (128, T) maps the pre_net hidden to the length-T channel-c row.
    q['d_l2_w'] = jnp.transpose(p['d_l2_w'].reshape(4, n_frames, 128), (0, 2, 1))
    q['d_l2_b'] = p['d_l2_b'].reshape(4, 1, n_frames)
    q['d_t1_w'], q['d_t1_b'] = tconv_win(p['d_t1_w']), row(p['d_t1_b'])
    q['d_bn1_g'], q['d_bn1_b'] = row(p['d_bn1_g']), row(p['d_bn1_b'])
    q['d_t2_w'], q['d_t2_b'] = tconv_win(p['d_t2_w']), row(p['d_t2_b'])
    q['d_bn2_g'], q['d_bn2_b'] = row(p['d_bn2_g']), row(p['d_bn2_b'])
    q['d_c3_w'], q['d_c3_b'] = conv_win(p['d_c3_w']), row(p['d_c3_b'])
    q['d_c4_w'], q['d_c4_b'] = conv_win(p['d_c4_w']), row(p['d_c4_b'])
    return q


# --------------------------------------- forward pass ------------------------------------------
def embedding_net_forward(packed, pre_poses, poses):
    # use_pre_poses=False in the reference constructor => pre_poses is unused.
    del pre_poses
    poses_feat, out_poses = _embedding_net_call(packed, poses)
    # Match torch EmbeddingNet.forward: (poses_feat, None, None, out_poses); mu/logvar are None.
    return poses_feat, None, None, out_poses


# ------------------------------------------- main ----------------------------------------------
if __name__ == "__main__":
    # n_frames=60 is forced by the hard-coded Linear(800, 256) in PoseEncoderConv.
    B, POSE_DIM, N_FRAMES = 2, 10, 60

    key = jax.random.PRNGKey(0)
    k_param, k_poses, k_pre = jax.random.split(key, 3)
    params = init_params(k_param, POSE_DIM, N_FRAMES)
    packed = pack_params(params, N_FRAMES)

    poses = jax.random.normal(k_poses, (B, N_FRAMES, POSE_DIM), jnp.float32)
    pre_poses = jax.random.normal(k_pre, (B, 4, POSE_DIM), jnp.float32)   # unused (use_pre_poses=False)

    fwd = jax.jit(embedding_net_forward)
    poses_feat, _, _, out_poses = fwd(packed, pre_poses, poses)
    jax.block_until_ready((poses_feat, out_poses))

    assert poses_feat.shape == (B, 32)
    assert out_poses.shape == (B, N_FRAMES, POSE_DIM)
    print("KERNEL_OK")
</pallas_src>

<mosaic_0001>
module attributes {stable_mosaic.version = 11 : i64} {
  func.func @_embedding_net_kernel(%arg0: memref<2x60x10xf32, #tpu.memory_space<vmem>>, %arg1: memref<27x53xf32, #tpu.memory_space<vmem>>, %arg2: memref<30x32xf32, #tpu.memory_space<vmem>>, %arg3: memref<1x32xf32, #tpu.memory_space<vmem>>, %arg4: memref<1x32xf32, #tpu.memory_space<vmem>>, %arg5: memref<1x32xf32, #tpu.memory_space<vmem>>, %arg6: memref<96x64xf32, #tpu.memory_space<vmem>>, %arg7: memref<1x64xf32, #tpu.memory_space<vmem>>, %arg8: memref<1x64xf32, #tpu.memory_space<vmem>>, %arg9: memref<1x64xf32, #tpu.memory_space<vmem>>, %arg10: memref<256x64xf32, #tpu.memory_space<vmem>>, %arg11: memref<1x64xf32, #tpu.memory_space<vmem>>, %arg12: memref<1x64xf32, #tpu.memory_space<vmem>>, %arg13: memref<1x64xf32, #tpu.memory_space<vmem>>, %arg14: memref<192x32xf32, #tpu.memory_space<vmem>>, %arg15: memref<1x32xf32, #tpu.memory_space<vmem>>, %arg16: memref<800x256xf32, #tpu.memory_space<vmem>>, %arg17: memref<1x256xf32, #tpu.memory_space<vmem>>, %arg18: memref<1x256xf32, #tpu.memory_space<vmem>>, %arg19: memref<1x256xf32, #tpu.memory_space<vmem>>, %arg20: memref<256x128xf32, #tpu.memory_space<vmem>>, %arg21: memref<1x128xf32, #tpu.memory_space<vmem>>, %arg22: memref<1x128xf32, #tpu.memory_space<vmem>>, %arg23: memref<1x128xf32, #tpu.memory_space<vmem>>, %arg24: memref<128x32xf32, #tpu.memory_space<vmem>>, %arg25: memref<1x32xf32, #tpu.memory_space<vmem>>, %arg26: memref<32x32xf32, #tpu.memory_space<vmem>>, %arg27: memref<1x32xf32, #tpu.memory_space<vmem>>, %arg28: memref<32x128xf32, #tpu.memory_space<vmem>>, %arg29: memref<1x128xf32, #tpu.memory_space<vmem>>, %arg30: memref<1x128xf32, #tpu.memory_space<vmem>>, %arg31: memref<1x128xf32, #tpu.memory_space<vmem>>, %arg32: memref<4x128x60xf32, #tpu.memory_space<vmem>>, %arg33: memref<4x1x60xf32, #tpu.memory_space<vmem>>, %arg34: memref<12x32xf32, #tpu.memory_space<vmem>>, %arg35: memref<1x32xf32, #tpu.memory_space<vmem>>, %arg36: memref<1x32xf32, #tpu.memory_space<vmem>>, %arg37: memref<1x32xf32, #tpu.memory_space<vmem>>, %arg38: memref<96x32xf32, #tpu.memory_space<vmem>>, %arg39: memref<1x32xf32, #tpu.memory_space<vmem>>, %arg40: memref<1x32xf32, #tpu.memory_space<vmem>>, %arg41: memref<1x32xf32, #tpu.memory_space<vmem>>, %arg42: memref<96x32xf32, #tpu.memory_space<vmem>>, %arg43: memref<1x32xf32, #tpu.memory_space<vmem>>, %arg44: memref<96x10xf32, #tpu.memory_space<vmem>>, %arg45: memref<1x10xf32, #tpu.memory_space<vmem>>, %arg46: memref<2x32xf32, #tpu.memory_space<vmem>>, %arg47: memref<2x60x10xf32, #tpu.memory_space<vmem>>) attributes {dimension_semantics = [], scalar_prefetch = 0 : i64, scratch_operands = 0 : i64, tpu.core_type = #tpu.core_type<tc>} {
    %c0 = arith.constant 0 : index
    %c0_0 = arith.constant 0 : index
    %c0_1 = arith.constant 0 : index
    %0 = vector.load %arg0[%c0, %c0_0, %c0_1] : memref<2x60x10xf32, #tpu.memory_space<vmem>>, vector<1x60x10xf32>
    %1 = vector.shape_cast %0 : vector<1x60x10xf32> to vector<60x10xf32>
    %c1 = arith.constant 1 : index
    %c0_2 = arith.constant 0 : index
    %c0_3 = arith.constant 0 : index
    %2 = vector.load %arg0[%c1, %c0_2, %c0_3] : memref<2x60x10xf32, #tpu.memory_space<vmem>>, vector<1x60x10xf32>
    %3 = vector.shape_cast %2 : vector<1x60x10xf32> to vector<60x10xf32>
    %c0_4 = arith.constant 0 : index
    %c0_5 = arith.constant 0 : index
    %4 = vector.load %arg2[%c0_4, %c0_5] : memref<30x32xf32, #tpu.memory_space<vmem>>, vector<30x32xf32>
    %c0_6 = arith.constant 0 : index
    %c0_7 = arith.constant 0 : index
    %5 = vector.load %arg3[%c0_6, %c0_7] : memref<1x32xf32, #tpu.memory_space<vmem>>, vector<1x32xf32>
    %6 = vector.extract_strided_slice %1 {offsets = [0, 0], sizes = [58, 10], strides = [1, 1]} : vector<60x10xf32> to vector<58x10xf32>
    %7 = vector.extract_strided_slice %1 {offsets = [1, 0], sizes = [58, 10], strides = [1, 1]} : vector<60x10xf32> to vector<58x10xf32>
    %8 = vector.extract_strided_slice %1 {offsets = [2, 0], sizes = [58, 10], strides = [1, 1]} : vector<60x10xf32> to vector<58x10xf32>
    %9 = tpu.concatenate %6, %7, %8 in 1 : vector<58x10xf32>, vector<58x10xf32>, vector<58x10xf32> -> vector<58x30xf32>
    %cst = arith.constant dense<0.000000e+00> : vector<58x32xf32>
    %10 = tpu.matmul %9, %4, %cst {dimension_numbers = #tpu.dot_dimension_numbers<[1], [0], [0], [1], [0, 0, 1, 1], [], []>} : vector<58x30xf32>, vector<30x32xf32>, vector<58x32xf32> -> vector<58x32xf32>
    %11 = vector.broadcast %5 : vector<1x32xf32> to vector<58x32xf32>
    %12 = arith.addf %10, %11 : vector<58x32xf32>
    %13 = vector.extract_strided_slice %3 {offsets = [0, 0], sizes = [58, 10], strides = [1, 1]} : vector<60x10xf32> to vector<58x10xf32>
    %14 = vector.extract_strided_slice %3 {offsets = [1, 0], sizes = [58, 10], strides = [1, 1]} : vector<60x10xf32> to vector<58x10xf32>
    %15 = vector.extract_strided_slice %3 {offsets = [2, 0], sizes = [58, 10], strides = [1, 1]} : vector<60x10xf32> to vector<58x10xf32>
    %16 = tpu.concatenate %13, %14, %15 in 1 : vector<58x10xf32>, vector<58x10xf32>, vector<58x10xf32> -> vector<58x30xf32>
    %cst_8 = arith.constant dense<0.000000e+00> : vector<58x32xf32>
    %17 = tpu.matmul %16, %4, %cst_8 {dimension_numbers = #tpu.dot_dimension_numbers<[1], [0], [0], [1], [0, 0, 1, 1], [], []>} : vector<58x30xf32>, vector<30x32xf32>, vector<58x32xf32> -> vector<58x32xf32>
    %18 = vector.broadcast %5 : vector<1x32xf32> to vector<58x32xf32>
    %19 = arith.addf %17, %18 : vector<58x32xf32>
    %c0_9 = arith.constant 0 : index
    %c0_10 = arith.constant 0 : index
    %20 = vector.load %arg4[%c0_9, %c0_10] : memref<1x32xf32, #tpu.memory_space<vmem>>, vector<1x32xf32>
    %c0_11 = arith.constant 0 : index
    %c0_12 = arith.constant 0 : index
    %21 = vector.load %arg5[%c0_11, %c0_12] : memref<1x32xf32, #tpu.memory_space<vmem>>, vector<1x32xf32>
    %cst_13 = arith.constant dense<0.000000e+00> : vector<32xf32>
    %22 = vector.multi_reduction <add>, %12, %cst_13 [0] : vector<58x32xf32> to vector<32xf32>
    %23 = vector.shape_cast %22 : vector<32xf32> to vector<1x32xf32>
    %cst_14 = arith.constant dense<0.000000e+00> : vector<32xf32>
    %24 = vector.multi_reduction <add>, %19, %cst_14 [0] : vector<58x32xf32> to vector<32xf32>
    %25 = vector.shape_cast %24 : vector<32xf32> to vector<1x32xf32>
    %26 = arith.addf %23, %25 : vector<1x32xf32>
    %cst_15 = arith.constant 1.160000e+02 : f32
    %27 = vector.broadcast %cst_15 : f32 to vector<1x32xf32>
    %28 = arith.divf %26, %27 : vector<1x32xf32>
    %29 = vector.broadcast %28 : vector<1x32xf32> to vector<58x32xf32>
    %30 = arith.subf %12, %29 : vector<58x32xf32>
    %31 = arith.mulf %30, %30 : vector<58x32xf32>
    %cst_16 = arith.constant dense<0.000000e+00> : vector<32xf32>
    %32 = vector.multi_reduction <add>, %31, %cst_16 [0] : vector<58x32xf32> to vector<32xf32>
    %33 = vector.shape_cast %32 : vector<32xf32> to vector<1x32xf32>
    %34 = vector.broadcast %28 : vector<1x32xf32> to vector<58x32xf32>
    %35 = arith.subf %19, %34 : vector<58x32xf32>
    %36 = arith.mulf %35, %35 : vector<58x32xf32>
    %cst_17 = arith.constant dense<0.000000e+00> : vector<32xf32>
    %37 = vector.multi_reduction <add>, %36, %cst_17 [0] : vector<58x32xf32> to vector<32xf32>
    %38 = vector.shape_cast %37 : vector<32xf32> to vector<1x32xf32>
    %39 = arith.addf %33, %38 : vector<1x32xf32>
    %cst_18 = arith.constant 1.160000e+02 : f32
    %40 = vector.broadcast %cst_18 : f32 to vector<1x32xf32>
    %41 = arith.divf %39, %40 : vector<1x32xf32>
    %cst_19 = arith.constant 9.99999974E-6 : f32
    %42 = vector.broadcast %cst_19 : f32 to vector<1x32xf32>
    %43 = arith.addf %41, %42 : vector<1x32xf32>
    %44 = math.rsqrt %43 : vector<1x32xf32>
    %45 = arith.mulf %20, %44 : vector<1x32xf32>
    %46 = arith.mulf %28, %45 : vector<1x32xf32>
    %47 = arith.subf %21, %46 : vector<1x32xf32>
    %48 = vector.broadcast %45 : vector<1x32xf32> to vector<58x32xf32>
    %49 = arith.mulf %12, %48 : vector<58x32xf32>
    %50 = vector.broadcast %47 : vector<1x32xf32> to vector<58x32xf32>
    %51 = arith.addf %49, %50 : vector<58x32xf32>
    %cst_20 = arith.constant 0.000000e+00 : f32
    %52 = vector.broadcast %cst_20 : f32 to vector<58x32xf32>
    %53 = arith.cmpf oge, %51, %52 : vector<58x32xf32>
    %cst_21 = arith.constant 2.000000e-01 : f32
    %54 = vector.broadcast %cst_21 : f32 to vector<58x32xf32>
    %55 = arith.mulf %54, %51 : vector<58x32xf32>
    %56 = arith.select %53, %51, %55 : vector<58x32xi1>, vector<58x32xf32>
    %57 = vector.broadcast %45 : vector<1x32xf32> to vector<58x32xf32>
    %58 = arith.mulf %19, %57 : vector<58x32xf32>
    %59 = vector.broadcast %47 : vector<1x32xf32> to vector<58x32xf32>
    %60 = arith.addf %58, %59 : vector<58x32xf32>
    %cst_22 = arith.constant 0.000000e+00 : f32
    %61 = vector.broadcast %cst_22 : f32 to vector<58x32xf32>
    %62 = arith.cmpf oge, %60, %61 : vector<58x32xf32>
    %cst_23 = arith.constant 2.000000e-01 : f32
    %63 = vector.broadcast %cst_23 : f32 to vector<58x32xf32>
    %64 = arith.mulf %63, %60 : vector<58x32xf32>
    %65 = arith.select %62, %60, %64 : vector<58x32xi1>, vector<58x32xf32>
    %c0_24 = arith.constant 0 : index
    %c0_25 = arith.constant 0 : index
    %66 = vector.load %arg6[%c0_24, %c0_25] : memref<96x64xf32, #tpu.memory_space<vmem>>, vector<96x64xf32>
    %c0_26 = arith.constant 0 : index
    %c0_27 = arith.constant 0 : index
    %67 = vector.load %arg7[%c0_26, %c0_27] : memref<1x64xf32, #tpu.memory_space<vmem>>, vector<1x64xf32>
    %68 = vector.extract_strided_slice %56 {offsets = [0, 0], sizes = [56, 32], strides = [1, 1]} : vector<58x32xf32> to vector<56x32xf32>
    %69 = vector.extract_strided_slice %56 {offsets = [1, 0], sizes = [56, 32], strides = [1, 1]} : vector<58x32xf32> to vector<56x32xf32>
    %70 = vector.extract_strided_slice %56 {offsets = [2, 0], sizes = [56, 32], strides = [1, 1]} : vector<58x32xf32> to vector<56x32xf32>
    %71 = tpu.concatenate %68, %69, %70 in 1 : vector<56x32xf32>, vector<56x32xf32>, vector<56x32xf32> -> vector<56x96xf32>
    %cst_28 = arith.constant dense<0.000000e+00> : vector<56x64xf32>
    %72 = tpu.matmul %71, %66, %cst_28 {dimension_numbers = #tpu.dot_dimension_numbers<[1], [0], [0], [1], [0, 0, 1, 1], [], []>} : vector<56x96xf32>, vector<96x64xf32>, vector<56x64xf32> -> vector<56x64xf32>
    %73 = vector.broadcast %67 : vector<1x64xf32> to vector<56x64xf32>
    %74 = arith.addf %72, %73 : vector<56x64xf32>
    %75 = vector.extract_strided_slice %65 {offsets = [0, 0], sizes = [56, 32], strides = [1, 1]} : vector<58x32xf32> to vector<56x32xf32>
    %76 = vector.extract_strided_slice %65 {offsets = [1, 0], sizes = [56, 32], strides = [1, 1]} : vector<58x32xf32> to vector<56x32xf32>
    %77 = vector.extract_strided_slice %65 {offsets = [2, 0], sizes = [56, 32], strides = [1, 1]} : vector<58x32xf32> to vector<56x32xf32>
    %78 = tpu.concatenate %75, %76, %77 in 1 : vector<56x32xf32>, vector<56x32xf32>, vector<56x32xf32> -> vector<56x96xf32>
    %cst_29 = arith.constant dense<0.000000e+00> : vector<56x64xf32>
    %79 = tpu.matmul %78, %66, %cst_29 {dimension_numbers = #tpu.dot_dimension_numbers<[1], [0], [0], [1], [0, 0, 1, 1], [], []>} : vector<56x96xf32>, vector<96x64xf32>, vector<56x64xf32> -> vector<56x64xf32>
    %80 = vector.broadcast %67 : vector<1x64xf32> to vector<56x64xf32>
    %81 = arith.addf %79, %80 : vector<56x64xf32>
    %c0_30 = arith.constant 0 : index
    %c0_31 = arith.constant 0 : index
    %82 = vector.load %arg8[%c0_30, %c0_31] : memref<1x64xf32, #tpu.memory_space<vmem>>, vector<1x64xf32>
    %c0_32 = arith.constant 0 : index
    %c0_33 = arith.constant 0 : index
    %83 = vector.load %arg9[%c0_32, %c0_33] : memref<1x64xf32, #tpu.memory_space<vmem>>, vector<1x64xf32>
    %cst_34 = arith.constant dense<0.000000e+00> : vector<64xf32>
    %84 = vector.multi_reduction <add>, %74, %cst_34 [0] : vector<56x64xf32> to vector<64xf32>
    %85 = vector.shape_cast %84 : vector<64xf32> to vector<1x64xf32>
    %cst_35 = arith.constant dense<0.000000e+00> : vector<64xf32>
    %86 = vector.multi_reduction <add>, %81, %cst_35 [0] : vector<56x64xf32> to vector<64xf32>
    %87 = vector.shape_cast %86 : vector<64xf32> to vector<1x64xf32>
    %88 = arith.addf %85, %87 : vector<1x64xf32>
    %cst_36 = arith.constant 1.120000e+02 : f32
    %89 = vector.broadcast %cst_36 : f32 to vector<1x64xf32>
    %90 = arith.divf %88, %89 : vector<1x64xf32>
    %91 = vector.broadcast %90 : vector<1x64xf32> to vector<56x64xf32>
    %92 = arith.subf %74, %91 : vector<56x64xf32>
    %93 = arith.mulf %92, %92 : vector<56x64xf32>
    %cst_37 = arith.constant dense<0.000000e+00> : vector<64xf32>
    %94 = vector.multi_reduction <add>, %93, %cst_37 [0] : vector<56x64xf32> to vector<64xf32>
    %95 = vector.shape_cast %94 : vector<64xf32> to vector<1x64xf32>
    %96 = vector.broadcast %90 : vector<1x64xf32> to vector<56x64xf32>
    %97 = arith.subf %81, %96 : vector<56x64xf32>
    %98 = arith.mulf %97, %97 : vector<56x64xf32>
    %cst_38 = arith.constant dense<0.000000e+00> : vector<64xf32>
    %99 = vector.multi_reduction <add>, %98, %cst_38 [0] : vector<56x64xf32> to vector<64xf32>
    %100 = vector.shape_cast %99 : vector<64xf32> to vector<1x64xf32>
    %101 = arith.addf %95, %100 : vector<1x64xf32>
    %cst_39 = arith.constant 1.120000e+02 : f32
    %102 = vector.broadcast %cst_39 : f32 to vector<1x64xf32>
    %103 = arith.divf %101, %102 : vector<1x64xf32>
    %cst_40 = arith.constant 9.99999974E-6 : f32
    %104 = vector.broadcast %cst_40 : f32 to vector<1x64xf32>
    %105 = arith.addf %103, %104 : vector<1x64xf32>
    %106 = math.rsqrt %105 : vector<1x64xf32>
    %107 = arith.mulf %82, %106 : vector<1x64xf32>
    %108 = arith.mulf %90, %107 : vector<1x64xf32>
    %109 = arith.subf %83, %108 : vector<1x64xf32>
    %110 = vector.broadcast %107 : vector<1x64xf32> to vector<56x64xf32>
    %111 = arith.mulf %74, %110 : vector<56x64xf32>
    %112 = vector.broadcast %109 : vector<1x64xf32> to vector<56x64xf32>
    %113 = arith.addf %111, %112 : vector<56x64xf32>
    %cst_41 = arith.constant 0.000000e+00 : f32
    %114 = vector.broadcast %cst_41 : f32 to vector<56x64xf32>
    %115 = arith.cmpf oge, %113, %114 : vector<56x64xf32>
    %cst_42 = arith.constant 2.000000e-01 : f32
    %116 = vector.broadcast %cst_42 : f32 to vector<56x64xf32>
    %117 = arith.mulf %116, %113 : vector<56x64xf32>
    %118 = arith.select %115, %113, %117 : vector<56x64xi1>, vector<56x64xf32>
    %119 = vector.broadcast %107 : vector<1x64xf32> to vector<56x64xf32>
    %120 = arith.mulf %81, %119 : vector<56x64xf32>
    %121 = vector.broadcast %109 : vector<1x64xf32> to vector<56x64xf32>
    %122 = arith.addf %120, %121 : vector<56x64xf32>
    %cst_43 = arith.constant 0.000000e+00 : f32
    %123 = vector.broadcast %cst_43 : f32 to vector<56x64xf32>
    %124 = arith.cmpf oge, %122, %123 : vector<56x64xf32>
    %cst_44 = arith.constant 2.000000e-01 : f32
    %125 = vector.broadcast %cst_44 : f32 to vector<56x64xf32>
    %126 = arith.mulf %125, %122 : vector<56x64xf32>
    %127 = arith.select %124, %122, %126 : vector<56x64xi1>, vector<56x64xf32>
    %c0_45 = arith.constant 0 : index
    %c0_46 = arith.constant 0 : index
    %128 = vector.load %arg10[%c0_45, %c0_46] : memref<256x64xf32, #tpu.memory_space<vmem>>, vector<256x64xf32>
    %c0_47 = arith.constant 0 : index
    %c0_48 = arith.constant 0 : index
    %129 = vector.load %arg11[%c0_47, %c0_48] : memref<1x64xf32, #tpu.memory_space<vmem>>, vector<1x64xf32>
    %130 = vector.extract_strided_slice %118 {offsets = [0, 0], sizes = [53, 64], strides = [1, 1]} : vector<56x64xf32> to vector<53x64xf32>
    %131 = vector.extract_strided_slice %118 {offsets = [1, 0], sizes = [53, 64], strides = [1, 1]} : vector<56x64xf32> to vector<53x64xf32>
    %132 = vector.extract_strided_slice %118 {offsets = [2, 0], sizes = [53, 64], strides = [1, 1]} : vector<56x64xf32> to vector<53x64xf32>
    %133 = vector.extract_strided_slice %118 {offsets = [3, 0], sizes = [53, 64], strides = [1, 1]} : vector<56x64xf32> to vector<53x64xf32>
    %134 = tpu.concatenate %130, %131, %132, %133 in 1 : vector<53x64xf32>, vector<53x64xf32>, vector<53x64xf32>, vector<53x64xf32> -> vector<53x256xf32>
    %cst_49 = arith.constant dense<0.000000e+00> : vector<53x64xf32>
    %135 = tpu.matmul %134, %128, %cst_49 {dimension_numbers = #tpu.dot_dimension_numbers<[1], [0], [0], [1], [0, 0, 1, 1], [], []>} : vector<53x256xf32>, vector<256x64xf32>, vector<53x64xf32> -> vector<53x64xf32>
    %136 = vector.broadcast %129 : vector<1x64xf32> to vector<53x64xf32>
    %137 = arith.addf %135, %136 : vector<53x64xf32>
    %138 = vector.extract_strided_slice %127 {offsets = [0, 0], sizes = [53, 64], strides = [1, 1]} : vector<56x64xf32> to vector<53x64xf32>
    %139 = vector.extract_strided_slice %127 {offsets = [1, 0], sizes = [53, 64], strides = [1, 1]} : vector<56x64xf32> to vector<53x64xf32>
    %140 = vector.extract_strided_slice %127 {offsets = [2, 0], sizes = [53, 64], strides = [1, 1]} : vector<56x64xf32> to vector<53x64xf32>
    %141 = vector.extract_strided_slice %127 {offsets = [3, 0], sizes = [53, 64], strides = [1, 1]} : vector<56x64xf32> to vector<53x64xf32>
    %142 = tpu.concatenate %138, %139, %140, %141 in 1 : vector<53x64xf32>, vector<53x64xf32>, vector<53x64xf32>, vector<53x64xf32> -> vector<53x256xf32>
    %cst_50 = arith.constant dense<0.000000e+00> : vector<53x64xf32>
    %143 = tpu.matmul %142, %128, %cst_50 {dimension_numbers = #tpu.dot_dimension_numbers<[1], [0], [0], [1], [0, 0, 1, 1], [], []>} : vector<53x256xf32>, vector<256x64xf32>, vector<53x64xf32> -> vector<53x64xf32>
    %144 = vector.broadcast %129 : vector<1x64xf32> to vector<53x64xf32>
    %145 = arith.addf %143, %144 : vector<53x64xf32>
    %c0_51 = arith.constant 0 : index
    %c0_52 = arith.constant 0 : index
    %146 = vector.load %arg1[%c0_51, %c0_52] : memref<27x53xf32, #tpu.memory_space<vmem>>, vector<27x53xf32>
    %cst_53 = arith.constant dense<0.000000e+00> : vector<27x64xf32>
    %147 = tpu.matmul %146, %137, %cst_53 {dimension_numbers = #tpu.dot_dimension_numbers<[1], [0], [0], [1], [0, 0, 1, 1], [], []>} : vector<27x53xf32>, vector<53x64xf32>, vector<27x64xf32> -> vector<27x64xf32>
    %cst_54 = arith.constant dense<0.000000e+00> : vector<27x64xf32>
    %148 = tpu.matmul %146, %145, %cst_54 {dimension_numbers = #tpu.dot_dimension_numbers<[1], [0], [0], [1], [0, 0, 1, 1], [], []>} : vector<27x53xf32>, vector<53x64xf32>, vector<27x64xf32> -> vector<27x64xf32>
    %c0_55 = arith.constant 0 : index
    %c0_56 = arith.constant 0 : index
    %149 = vector.load %arg12[%c0_55, %c0_56] : memref<1x64xf32, #tpu.memory_space<vmem>>, vector<1x64xf32>
    %c0_57 = arith.constant 0 : index
    %c0_58 = arith.constant 0 : index
    %150 = vector.load %arg13[%c0_57, %c0_58] : memref<1x64xf32, #tpu.memory_space<vmem>>, vector<1x64xf32>
    %cst_59 = arith.constant dense<0.000000e+00> : vector<64xf32>
    %151 = vector.multi_reduction <add>, %147, %cst_59 [0] : vector<27x64xf32> to vector<64xf32>
    %152 = vector.shape_cast %151 : vector<64xf32> to vector<1x64xf32>
    %cst_60 = arith.constant dense<0.000000e+00> : vector<64xf32>
    %153 = vector.multi_reduction <add>, %148, %cst_60 [0] : vector<27x64xf32> to vector<64xf32>
    %154 = vector.shape_cast %153 : vector<64xf32> to vector<1x64xf32>
    %155 = arith.addf %152, %154 : vector<1x64xf32>
    %cst_61 = arith.constant 5.400000e+01 : f32
    %156 = vector.broadcast %cst_61 : f32 to vector<1x64xf32>
    %157 = arith.divf %155, %156 : vector<1x64xf32>
    %158 = vector.broadcast %157 : vector<1x64xf32> to vector<27x64xf32>
    %159 = arith.subf %147, %158 : vector<27x64xf32>
    %160 = arith.mulf %159, %159 : vector<27x64xf32>
    %cst_62 = arith.constant dense<0.000000e+00> : vector<64xf32>
    %161 = vector.multi_reduction <add>, %160, %cst_62 [0] : vector<27x64xf32> to vector<64xf32>
    %162 = vector.shape_cast %161 : vector<64xf32> to vector<1x64xf32>
    %163 = vector.broadcast %157 : vector<1x64xf32> to vector<27x64xf32>
    %164 = arith.subf %148, %163 : vector<27x64xf32>
    %165 = arith.mulf %164, %164 : vector<27x64xf32>
    %cst_63 = arith.constant dense<0.000000e+00> : vector<64xf32>
    %166 = vector.multi_reduction <add>, %165, %cst_63 [0] : vector<27x64xf32> to vector<64xf32>
    %167 = vector.shape_cast %166 : vector<64xf32> to vector<1x64xf32>
    %168 = arith.addf %162, %167 : vector<1x64xf32>
    %cst_64 = arith.constant 5.400000e+01 : f32
    %169 = vector.broadcast %cst_64 : f32 to vector<1x64xf32>
    %170 = arith.divf %168, %169 : vector<1x64xf32>
    %cst_65 = arith.constant 9.99999974E-6 : f32
    %171 = vector.broadcast %cst_65 : f32 to vector<1x64xf32>
    %172 = arith.addf %170, %171 : vector<1x64xf32>
    %173 = math.rsqrt %172 : vector<1x64xf32>
    %174 = arith.mulf %149, %173 : vector<1x64xf32>
    %175 = arith.mulf %157, %174 : vector<1x64xf32>
    %176 = arith.subf %150, %175 : vector<1x64xf32>
    %177 = vector.broadcast %174 : vector<1x64xf32> to vector<27x64xf32>
    %178 = arith.mulf %147, %177 : vector<27x64xf32>
    %179 = vector.broadcast %176 : vector<1x64xf32> to vector<27x64xf32>
    %180 = arith.addf %178, %179 : vector<27x64xf32>
    %cst_66 = arith.constant 0.000000e+00 : f32
    %181 = vector.broadcast %cst_66 : f32 to vector<27x64xf32>
    %182 = arith.cmpf oge, %180, %181 : vector<27x64xf32>
    %cst_67 = arith.constant 2.000000e-01 : f32
    %183 = vector.broadcast %cst_67 : f32 to vector<27x64xf32>
    %184 = arith.mulf %183, %180 : vector<27x64xf32>
    %185 = arith.select %182, %180, %184 : vector<27x64xi1>, vector<27x64xf32>
    %186 = vector.broadcast %174 : vector<1x64xf32> to vector<27x64xf32>
    %187 = arith.mulf %148, %186 : vector<27x64xf32>
    %188 = vector.broadcast %176 : vector<1x64xf32> to vector<27x64xf32>
    %189 = arith.addf %187, %188 : vector<27x64xf32>
    %cst_68 = arith.constant 0.000000e+00 : f32
    %190 = vector.broadcast %cst_68 : f32 to vector<27x64xf32>
    %191 = arith.cmpf oge, %189, %190 : vector<27x64xf32>
    %cst_69 = arith.constant 2.000000e-01 : f32
    %192 = vector.broadcast %cst_69 : f32 to vector<27x64xf32>
    %193 = arith.mulf %192, %189 : vector<27x64xf32>
    %194 = arith.select %191, %189, %193 : vector<27x64xi1>, vector<27x64xf32>
    %c0_70 = arith.constant 0 : index
    %c0_71 = arith.constant 0 : index
    %195 = vector.load %arg14[%c0_70, %c0_71] : memref<192x32xf32, #tpu.memory_space<vmem>>, vector<192x32xf32>
    %c0_72 = arith.constant 0 : index
    %c0_73 = arith.constant 0 : index
    %196 = vector.load %arg15[%c0_72, %c0_73] : memref<1x32xf32, #tpu.memory_space<vmem>>, vector<1x32xf32>
    %197 = vector.extract_strided_slice %185 {offsets = [0, 0], sizes = [25, 64], strides = [1, 1]} : vector<27x64xf32> to vector<25x64xf32>
    %198 = vector.extract_strided_slice %185 {offsets = [1, 0], sizes = [25, 64], strides = [1, 1]} : vector<27x64xf32> to vector<25x64xf32>
    %199 = vector.extract_strided_slice %185 {offsets = [2, 0], sizes = [25, 64], strides = [1, 1]} : vector<27x64xf32> to vector<25x64xf32>
    %200 = tpu.concatenate %197, %198, %199 in 1 : vector<25x64xf32>, vector<25x64xf32>, vector<25x64xf32> -> vector<25x192xf32>
    %cst_74 = arith.constant dense<0.000000e+00> : vector<25x32xf32>
    %201 = tpu.matmul %200, %195, %cst_74 {dimension_numbers = #tpu.dot_dimension_numbers<[1], [0], [0], [1], [0, 0, 1, 1], [], []>} : vector<25x192xf32>, vector<192x32xf32>, vector<25x32xf32> -> vector<25x32xf32>
    %202 = vector.broadcast %196 : vector<1x32xf32> to vector<25x32xf32>
    %203 = arith.addf %201, %202 : vector<25x32xf32>
    %204 = vector.extract_strided_slice %194 {offsets = [0, 0], sizes = [25, 64], strides = [1, 1]} : vector<27x64xf32> to vector<25x64xf32>
    %205 = vector.extract_strided_slice %194 {offsets = [1, 0], sizes = [25, 64], strides = [1, 1]} : vector<27x64xf32> to vector<25x64xf32>
    %206 = vector.extract_strided_slice %194 {offsets = [2, 0], sizes = [25, 64], strides = [1, 1]} : vector<27x64xf32> to vector<25x64xf32>
    %207 = tpu.concatenate %204, %205, %206 in 1 : vector<25x64xf32>, vector<25x64xf32>, vector<25x64xf32> -> vector<25x192xf32>
    %cst_75 = arith.constant dense<0.000000e+00> : vector<25x32xf32>
    %208 = tpu.matmul %207, %195, %cst_75 {dimension_numbers = #tpu.dot_dimension_numbers<[1], [0], [0], [1], [0, 0, 1, 1], [], []>} : vector<25x192xf32>, vector<192x32xf32>, vector<25x32xf32> -> vector<25x32xf32>
    %209 = vector.broadcast %196 : vector<1x32xf32> to vector<25x32xf32>
    %210 = arith.addf %208, %209 : vector<25x32xf32>
    %211 = vector.extract_strided_slice %203 {offsets = [0, 0], sizes = [1, 32], strides = [1, 1]} : vector<25x32xf32> to vector<1x32xf32>
    %212 = vector.extract_strided_slice %203 {offsets = [1, 0], sizes = [1, 32], strides = [1, 1]} : vector<25x32xf32> to vector<1x32xf32>
    %213 = vector.extract_strided_slice %203 {offsets = [2, 0], sizes = [1, 32], strides = [1, 1]} : vector<25x32xf32> to vector<1x32xf32>
    %214 = vector.extract_strided_slice %203 {offsets = [3, 0], sizes = [1, 32], strides = [1, 1]} : vector<25x32xf32> to vector<1x32xf32>
    %215 = vector.extract_strided_slice %203 {offsets = [4, 0], sizes = [1, 32], strides = [1, 1]} : vector<25x32xf32> to vector<1x32xf32>
    %216 = vector.extract_strided_slice %203 {offsets = [5, 0], sizes = [1, 32], strides = [1, 1]} : vector<25x32xf32> to vector<1x32xf32>
    %217 = vector.extract_strided_slice %203 {offsets = [6, 0], sizes = [1, 32], strides = [1, 1]} : vector<25x32xf32> to vector<1x32xf32>
    %218 = vector.extract_strided_slice %203 {offsets = [7, 0], sizes = [1, 32], strides = [1, 1]} : vector<25x32xf32> to vector<1x32xf32>
    %219 = vector.extract_strided_slice %203 {offsets = [8, 0], sizes = [1, 32], strides = [1, 1]} : vector<25x32xf32> to vector<1x32xf32>
    %220 = vector.extract_strided_slice %203 {offsets = [9, 0], sizes = [1, 32], strides = [1, 1]} : vector<25x32xf32> to vector<1x32xf32>
    %221 = vector.extract_strided_slice %203 {offsets = [10, 0], sizes = [1, 32], strides = [1, 1]} : vector<25x32xf32> to vector<1x32xf32>
    %222 = vector.extract_strided_slice %203 {offsets = [11, 0], sizes = [1, 32], strides = [1, 1]} : vector<25x32xf32> to vector<1x32xf32>
    %223 = vector.extract_strided_slice %203 {offsets = [12, 0], sizes = [1, 32], strides = [1, 1]} : vector<25x32xf32> to vector<1x32xf32>
    %224 = vector.extract_strided_slice %203 {offsets = [13, 0], sizes = [1, 32], strides = [1, 1]} : vector<25x32xf32> to vector<1x32xf32>
    %225 = vector.extract_strided_slice %203 {offsets = [14, 0], sizes = [1, 32], strides = [1, 1]} : vector<25x32xf32> to vector<1x32xf32>
    %226 = vector.extract_strided_slice %203 {offsets = [15, 0], sizes = [1, 32], strides = [1, 1]} : vector<25x32xf32> to vector<1x32xf32>
    %227 = vector.extract_strided_slice %203 {offsets = [16, 0], sizes = [1, 32], strides = [1, 1]} : vector<25x32xf32> to vector<1x32xf32>
    %228 = vector.extract_strided_slice %203 {offsets = [17, 0], sizes = [1, 32], strides = [1, 1]} : vector<25x32xf32> to vector<1x32xf32>
    %229 = vector.extract_strided_slice %203 {offsets = [18, 0], sizes = [1, 32], strides = [1, 1]} : vector<25x32xf32> to vector<1x32xf32>
    %230 = vector.extract_strided_slice %203 {offsets = [19, 0], sizes = [1, 32], strides = [1, 1]} : vector<25x32xf32> to vector<1x32xf32>
    %231 = vector.extract_strided_slice %203 {offsets = [20, 0], sizes = [1, 32], strides = [1, 1]} : vector<25x32xf32> to vector<1x32xf32>
    %232 = vector.extract_strided_slice %203 {offsets = [21, 0], sizes = [1, 32], strides = [1, 1]} : vector<25x32xf32> to vector<1x32xf32>
    %233 = vector.extract_strided_slice %203 {offsets = [22, 0], sizes = [1, 32], strides = [1, 1]} : vector<25x32xf32> to vector<1x32xf32>
    %234 = vector.extract_strided_slice %203 {offsets = [23, 0], sizes = [1, 32], strides = [1, 1]} : vector<25x32xf32> to vector<1x32xf32>
    %235 = vector.extract_strided_slice %203 {offsets = [24, 0], sizes = [1, 32], strides = [1, 1]} : vector<25x32xf32> to vector<1x32xf32>
    %236 = tpu.concatenate %211, %212, %213, %214, %215, %216, %217, %218, %219, %220, %221, %222, %223, %224, %225, %226 in 1 : vector<1x32xf32>, vector<1x32xf32>, vector<1x32xf32>, vector<1x32xf32>, vector<1x32xf32>, vector<1x32xf32>, vector<1x32xf32>, vector<1x32xf32>, vector<1x32xf32>, vector<1x32xf32>, vector<1x32xf32>, vector<1x32xf32>, vector<1x32xf32>, vector<1x32xf32>, vector<1x32xf32>, vector<1x32xf32> -> vector<1x512xf32>
    %237 = tpu.concatenate %227, %228, %229, %230, %231, %232, %233, %234, %235 in 1 : vector<1x32xf32>, vector<1x32xf32>, vector<1x32xf32>, vector<1x32xf32>, vector<1x32xf32>, vector<1x32xf32>, vector<1x32xf32>, vector<1x32xf32>, vector<1x32xf32> -> vector<1x288xf32>
    %238 = tpu.concatenate %236, %237 in 1 : vector<1x512xf32>, vector<1x288xf32> -> vector<1x800xf32>
    %239 = vector.extract_strided_slice %210 {offsets = [0, 0], sizes = [1, 32], strides = [1, 1]} : vector<25x32xf32> to vector<1x32xf32>
    %240 = vector.extract_strided_slice %210 {offsets = [1, 0], sizes = [1, 32], strides = [1, 1]} : vector<25x32xf32> to vector<1x32xf32>
    %241 = vector.extract_strided_slice %210 {offsets = [2, 0], sizes = [1, 32], strides = [1, 1]} : vector<25x32xf32> to vector<1x32xf32>
    %242 = vector.extract_strided_slice %210 {offsets = [3, 0], sizes = [1, 32], strides = [1, 1]} : vector<25x32xf32> to vector<1x32xf32>
    %243 = vector.extract_strided_slice %210 {offsets = [4, 0], sizes = [1, 32], strides = [1, 1]} : vector<25x32xf32> to vector<1x32xf32>
    %244 = vector.extract_strided_slice %210 {offsets = [5, 0], sizes = [1, 32], strides = [1, 1]} : vector<25x32xf32> to vector<1x32xf32>
    %245 = vector.extract_strided_slice %210 {offsets = [6, 0], sizes = [1, 32], strides = [1, 1]} : vector<25x32xf32> to vector<1x32xf32>
    %246 = vector.extract_strided_slice %210 {offsets = [7, 0], sizes = [1, 32], strides = [1, 1]} : vector<25x32xf32> to vector<1x32xf32>
    %247 = vector.extract_strided_slice %210 {offsets = [8, 0], sizes = [1, 32], strides = [1, 1]} : vector<25x32xf32> to vector<1x32xf32>
    %248 = vector.extract_strided_slice %210 {offsets = [9, 0], sizes = [1, 32], strides = [1, 1]} : vector<25x32xf32> to vector<1x32xf32>
    %249 = vector.extract_strided_slice %210 {offsets = [10, 0], sizes = [1, 32], strides = [1, 1]} : vector<25x32xf32> to vector<1x32xf32>
    %250 = vector.extract_strided_slice %210 {offsets = [11, 0], sizes = [1, 32], strides = [1, 1]} : vector<25x32xf32> to vector<1x32xf32>
    %251 = vector.extract_strided_slice %210 {offsets = [12, 0], sizes = [1, 32], strides = [1, 1]} : vector<25x32xf32> to vector<1x32xf32>
    %252 = vector.extract_strided_slice %210 {offsets = [13, 0], sizes = [1, 32], strides = [1, 1]} : vector<25x32xf32> to vector<1x32xf32>
    %253 = vector.extract_strided_slice %210 {offsets = [14, 0], sizes = [1, 32], strides = [1, 1]} : vector<25x32xf32> to vector<1x32xf32>
    %254 = vector.extract_strided_slice %210 {offsets = [15, 0], sizes = [1, 32], strides = [1, 1]} : vector<25x32xf32> to vector<1x32xf32>
    %255 = vector.extract_strided_slice %210 {offsets = [16, 0], sizes = [1, 32], strides = [1, 1]} : vector<25x32xf32> to vector<1x32xf32>
    %256 = vector.extract_strided_slice %210 {offsets = [17, 0], sizes = [1, 32], strides = [1, 1]} : vector<25x32xf32> to vector<1x32xf32>
    %257 = vector.extract_strided_slice %210 {offsets = [18, 0], sizes = [1, 32], strides = [1, 1]} : vector<25x32xf32> to vector<1x32xf32>
    %258 = vector.extract_strided_slice %210 {offsets = [19, 0], sizes = [1, 32], strides = [1, 1]} : vector<25x32xf32> to vector<1x32xf32>
    %259 = vector.extract_strided_slice %210 {offsets = [20, 0], sizes = [1, 32], strides = [1, 1]} : vector<25x32xf32> to vector<1x32xf32>
    %260 = vector.extract_strided_slice %210 {offsets = [21, 0], sizes = [1, 32], strides = [1, 1]} : vector<25x32xf32> to vector<1x32xf32>
    %261 = vector.extract_strided_slice %210 {offsets = [22, 0], sizes = [1, 32], strides = [1, 1]} : vector<25x32xf32> to vector<1x32xf32>
    %262 = vector.extract_strided_slice %210 {offsets = [23, 0], sizes = [1, 32], strides = [1, 1]} : vector<25x32xf32> to vector<1x32xf32>
    %263 = vector.extract_strided_slice %210 {offsets = [24, 0], sizes = [1, 32], strides = [1, 1]} : vector<25x32xf32> to vector<1x32xf32>
    %264 = tpu.concatenate %239, %240, %241, %242, %243, %244, %245, %246, %247, %248, %249, %250, %251, %252, %253, %254 in 1 : vector<1x32xf32>, vector<1x32xf32>, vector<1x32xf32>, vector<1x32xf32>, vector<1x32xf32>, vector<1x32xf32>, vector<1x32xf32>, vector<1x32xf32>, vector<1x32xf32>, vector<1x32xf32>, vector<1x32xf32>, vector<1x32xf32>, vector<1x32xf32>, vector<1x32xf32>, vector<1x32xf32>, vector<1x32xf32> -> vector<1x512xf32>
    %265 = tpu.concatenate %255, %256, %257, %258, %259, %260, %261, %262, %263 in 1 : vector<1x32xf32>, vector<1x32xf32>, vector<1x32xf32>, vector<1x32xf32>, vector<1x32xf32>, vector<1x32xf32>, vector<1x32xf32>, vector<1x32xf32>, vector<1x32xf32> -> vector<1x288xf32>
    %266 = tpu.concatenate %264, %265 in 1 : vector<1x512xf32>, vector<1x288xf32> -> vector<1x800xf32>
    %267 = tpu.concatenate %238, %266 in 0 : vector<1x800xf32>, vector<1x800xf32> -> vector<2x800xf32>
    %c0_76 = arith.constant 0 : index
    %c0_77 = arith.constant 0 : index
    %268 = vector.load %arg16[%c0_76, %c0_77] : memref<800x256xf32, #tpu.memory_space<vmem>>, vector<800x256xf32>
    %cst_78 = arith.constant dense<0.000000e+00> : vector<2x256xf32>
    %269 = tpu.matmul %267, %268, %cst_78 {dimension_numbers = #tpu.dot_dimension_numbers<[1], [0], [0], [1], [0, 0, 1, 1], [], []>} : vector<2x800xf32>, vector<800x256xf32>, vector<2x256xf32> -> vector<2x256xf32>
    %c0_79 = arith.constant 0 : index
    %c0_80 = arith.constant 0 : index
    %270 = vector.load %arg17[%c0_79, %c0_80] : memref<1x256xf32, #tpu.memory_space<vmem>>, vector<1x256xf32>
    %271 = vector.broadcast %270 : vector<1x256xf32> to vector<2x256xf32>
    %272 = arith.addf %269, %271 : vector<2x256xf32>
    %c0_81 = arith.constant 0 : index
    %c0_82 = arith.constant 0 : index
    %273 = vector.load %arg18[%c0_81, %c0_82] : memref<1x256xf32, #tpu.memory_space<vmem>>, vector<1x256xf32>
    %c0_83 = arith.constant 0 : index
    %c0_84 = arith.constant 0 : index
    %274 = vector.load %arg19[%c0_83, %c0_84] : memref<1x256xf32, #tpu.memory_space<vmem>>, vector<1x256xf32>
    %cst_85 = arith.constant dense<0.000000e+00> : vector<256xf32>
    %275 = vector.multi_reduction <add>, %272, %cst_85 [0] : vector<2x256xf32> to vector<256xf32>
    %276 = vector.shape_cast %275 : vector<256xf32> to vector<1x256xf32>
    %cst_86 = arith.constant 2.000000e+00 : f32
    %277 = vector.broadcast %cst_86 : f32 to vector<1x256xf32>
    %278 = arith.divf %276, %277 : vector<1x256xf32>
    %279 = vector.broadcast %278 : vector<1x256xf32> to vector<2x256xf32>
    %280 = arith.subf %272, %279 : vector<2x256xf32>
    %281 = arith.mulf %280, %280 : vector<2x256xf32>
    %cst_87 = arith.constant dense<0.000000e+00> : vector<256xf32>
    %282 = vector.multi_reduction <add>, %281, %cst_87 [0] : vector<2x256xf32> to vector<256xf32>
    %283 = vector.shape_cast %282 : vector<256xf32> to vector<1x256xf32>
    %cst_88 = arith.constant 2.000000e+00 : f32
    %284 = vector.broadcast %cst_88 : f32 to vector<1x256xf32>
    %285 = arith.divf %283, %284 : vector<1x256xf32>
    %cst_89 = arith.constant 9.99999974E-6 : f32
    %286 = vector.broadcast %cst_89 : f32 to vector<1x256xf32>
    %287 = arith.addf %285, %286 : vector<1x256xf32>
    %288 = math.rsqrt %287 : vector<1x256xf32>
    %289 = arith.mulf %273, %288 : vector<1x256xf32>
    %290 = vector.broadcast %289 : vector<1x256xf32> to vector<2x256xf32>
    %291 = arith.mulf %280, %290 : vector<2x256xf32>
    %292 = vector.broadcast %274 : vector<1x256xf32> to vector<2x256xf32>
    %293 = arith.addf %291, %292 : vector<2x256xf32>
    %c0_90 = arith.constant 0 : index
    %c0_91 = arith.constant 0 : index
    %294 = vector.load %arg20[%c0_90, %c0_91] : memref<256x128xf32, #tpu.memory_space<vmem>>, vector<256x128xf32>
    %cst_92 = arith.constant dense<0.000000e+00> : vector<2x128xf32>
    %295 = tpu.matmul %293, %294, %cst_92 {dimension_numbers = #tpu.dot_dimension_numbers<[1], [0], [0], [1], [0, 0, 1, 1], [], []>} : vector<2x256xf32>, vector<256x128xf32>, vector<2x128xf32> -> vector<2x128xf32>
    %c0_93 = arith.constant 0 : index
    %c0_94 = arith.constant 0 : index
    %296 = vector.load %arg21[%c0_93, %c0_94] : memref<1x128xf32, #tpu.memory_space<vmem>>, vector<1x128xf32>
    %297 = vector.broadcast %296 : vector<1x128xf32> to vector<2x128xf32>
    %298 = arith.addf %295, %297 : vector<2x128xf32>
    %c0_95 = arith.constant 0 : index
    %c0_96 = arith.constant 0 : index
    %299 = vector.load %arg22[%c0_95, %c0_96] : memref<1x128xf32, #tpu.memory_space<vmem>>, vector<1x128xf32>
    %c0_97 = arith.constant 0 : index
    %c0_98 = arith.constant 0 : index
    %300 = vector.load %arg23[%c0_97, %c0_98] : memref<1x128xf32, #tpu.memory_space<vmem>>, vector<1x128xf32>
    %cst_99 = arith.constant dense<0.000000e+00> : vector<128xf32>
    %301 = vector.multi_reduction <add>, %298, %cst_99 [0] : vector<2x128xf32> to vector<128xf32>
    %302 = vector.shape_cast %301 : vector<128xf32> to vector<1x128xf32>
    %cst_100 = arith.constant 2.000000e+00 : f32
    %303 = vector.broadcast %cst_100 : f32 to vector<1x128xf32>
    %304 = arith.divf %302, %303 : vector<1x128xf32>
    %305 = vector.broadcast %304 : vector<1x128xf32> to vector<2x128xf32>
    %306 = arith.subf %298, %305 : vector<2x128xf32>
    %307 = arith.mulf %306, %306 : vector<2x128xf32>
    %cst_101 = arith.constant dense<0.000000e+00> : vector<128xf32>
    %308 = vector.multi_reduction <add>, %307, %cst_101 [0] : vector<2x128xf32> to vector<128xf32>
    %309 = vector.shape_cast %308 : vector<128xf32> to vector<1x128xf32>
    %cst_102 = arith.constant 2.000000e+00 : f32
    %310 = vector.broadcast %cst_102 : f32 to vector<1x128xf32>
    %311 = arith.divf %309, %310 : vector<1x128xf32>
    %cst_103 = arith.constant 9.99999974E-6 : f32
    %312 = vector.broadcast %cst_103 : f32 to vector<1x128xf32>
    %313 = arith.addf %311, %312 : vector<1x128xf32>
    %314 = math.rsqrt %313 : vector<1x128xf32>
    %315 = arith.mulf %299, %314 : vector<1x128xf32>
    %316 = vector.broadcast %315 : vector<1x128xf32> to vector<2x128xf32>
    %317 = arith.mulf %306, %316 : vector<2x128xf32>
    %318 = vector.broadcast %300 : vector<1x128xf32> to vector<2x128xf32>
    %319 = arith.addf %317, %318 : vector<2x128xf32>
    %c0_104 = arith.constant 0 : index
    %c0_105 = arith.constant 0 : index
    %320 = vector.load %arg24[%c0_104, %c0_105] : memref<128x32xf32, #tpu.memory_space<vmem>>, vector<128x32xf32>
    %cst_106 = arith.constant dense<0.000000e+00> : vector<2x32xf32>
    %321 = tpu.matmul %319, %320, %cst_106 {dimension_numbers = #tpu.dot_dimension_numbers<[1], [0], [0], [1], [0, 0, 1, 1], [], []>} : vector<2x128xf32>, vector<128x32xf32>, vector<2x32xf32> -> vector<2x32xf32>
    %c0_107 = arith.constant 0 : index
    %c0_108 = arith.constant 0 : index
    %322 = vector.load %arg25[%c0_107, %c0_108] : memref<1x32xf32, #tpu.memory_space<vmem>>, vector<1x32xf32>
    %323 = vector.broadcast %322 : vector<1x32xf32> to vector<2x32xf32>
    %324 = arith.addf %321, %323 : vector<2x32xf32>
    %c0_109 = arith.constant 0 : index
    %c0_110 = arith.constant 0 : index
    %325 = vector.load %arg26[%c0_109, %c0_110] : memref<32x32xf32, #tpu.memory_space<vmem>>, vector<32x32xf32>
    %cst_111 = arith.constant dense<0.000000e+00> : vector<2x32xf32>
    %326 = tpu.matmul %324, %325, %cst_111 {dimension_numbers = #tpu.dot_dimension_numbers<[1], [0], [0], [1], [0, 0, 1, 1], [], []>} : vector<2x32xf32>, vector<32x32xf32>, vector<2x32xf32> -> vector<2x32xf32>
    %c0_112 = arith.constant 0 : index
    %c0_113 = arith.constant 0 : index
    %327 = vector.load %arg27[%c0_112, %c0_113] : memref<1x32xf32, #tpu.memory_space<vmem>>, vector<1x32xf32>
    %328 = vector.broadcast %327 : vector<1x32xf32> to vector<2x32xf32>
    %329 = arith.addf %326, %328 : vector<2x32xf32>
    %c0_114 = arith.constant 0 : index
    %c0_115 = arith.constant 0 : index
    %330 = vector.load %arg46[%c0_114, %c0_115] : memref<2x32xf32, #tpu.memory_space<vmem>>, vector<2x32xf32>
    tpu.vector_store %arg46[%c0_114, %c0_115], %329 {strides = array<i32>} : memref<2x32xf32, #tpu.memory_space<vmem>>, vector<2x32xf32>,
    %c0_116 = arith.constant 0 : index
    %c0_117 = arith.constant 0 : index
    %331 = vector.load %arg28[%c0_116, %c0_117] : memref<32x128xf32, #tpu.memory_space<vmem>>, vector<32x128xf32>
    %cst_118 = arith.constant dense<0.000000e+00> : vector<2x128xf32>
    %332 = tpu.matmul %329, %331, %cst_118 {dimension_numbers = #tpu.dot_dimension_numbers<[1], [0], [0], [1], [0, 0, 1, 1], [], []>} : vector<2x32xf32>, vector<32x128xf32>, vector<2x128xf32> -> vector<2x128xf32>
    %c0_119 = arith.constant 0 : index
    %c0_120 = arith.constant 0 : index
    %333 = vector.load %arg29[%c0_119, %c0_120] : memref<1x128xf32, #tpu.memory_space<vmem>>, vector<1x128xf32>
    %334 = vector.broadcast %333 : vector<1x128xf32> to vector<2x128xf32>
    %335 = arith.addf %332, %334 : vector<2x128xf32>
    %c0_121 = arith.constant 0 : index
    %c0_122 = arith.constant 0 : index
    %336 = vector.load %arg30[%c0_121, %c0_122] : memref<1x128xf32, #tpu.memory_space<vmem>>, vector<1x128xf32>
    %c0_123 = arith.constant 0 : index
    %c0_124 = arith.constant 0 : index
    %337 = vector.load %arg31[%c0_123, %c0_124] : memref<1x128xf32, #tpu.memory_space<vmem>>, vector<1x128xf32>
    %cst_125 = arith.constant dense<0.000000e+00> : vector<128xf32>
    %338 = vector.multi_reduction <add>, %335, %cst_125 [0] : vector<2x128xf32> to vector<128xf32>
    %339 = vector.shape_cast %338 : vector<128xf32> to vector<1x128xf32>
    %cst_126 = arith.constant 2.000000e+00 : f32
    %340 = vector.broadcast %cst_126 : f32 to vector<1x128xf32>
    %341 = arith.divf %339, %340 : vector<1x128xf32>
    %342 = vector.broadcast %341 : vector<1x128xf32> to vector<2x128xf32>
    %343 = arith.subf %335, %342 : vector<2x128xf32>
    %344 = arith.mulf %343, %343 : vector<2x128xf32>
    %cst_127 = arith.constant dense<0.000000e+00> : vector<128xf32>
    %345 = vector.multi_reduction <add>, %344, %cst_127 [0] : vector<2x128xf32> to vector<128xf32>
    %346 = vector.shape_cast %345 : vector<128xf32> to vector<1x128xf32>
    %cst_128 = arith.constant 2.000000e+00 : f32
    %347 = vector.broadcast %cst_128 : f32 to vector<1x128xf32>
    %348 = arith.divf %346, %347 : vector<1x128xf32>
    %cst_129 = arith.constant 9.99999974E-6 : f32
    %349 = vector.broadcast %cst_129 : f32 to vector<1x128xf32>
    %350 = arith.addf %348, %349 : vector<1x128xf32>
    %351 = math.rsqrt %350 : vector<1x128xf32>
    %352 = arith.mulf %336, %351 : vector<1x128xf32>
    %353 = vector.broadcast %352 : vector<1x128xf32> to vector<2x128xf32>
    %354 = arith.mulf %343, %353 : vector<2x128xf32>
    %355 = vector.broadcast %337 : vector<1x128xf32> to vector<2x128xf32>
    %356 = arith.addf %354, %355 : vector<2x128xf32>
    %c0_130 = arith.constant 0 : index
    %c0_131 = arith.constant 0 : index
    %c0_132 = arith.constant 0 : index
    %357 = vector.load %arg32[%c0_130, %c0_131, %c0_132] : memref<4x128x60xf32, #tpu.memory_space<vmem>>, vector<1x128x60xf32>
    %358 = vector.shape_cast %357 : vector<1x128x60xf32> to vector<128x60xf32>
    %cst_133 = arith.constant dense<0.000000e+00> : vector<2x60xf32>
    %359 = tpu.matmul %356, %358, %cst_133 {dimension_numbers = #tpu.dot_dimension_numbers<[1], [0], [0], [1], [0, 0, 1, 1], [], []>} : vector<2x128xf32>, vector<128x60xf32>, vector<2x60xf32> -> vector<2x60xf32>
    %c0_134 = arith.constant 0 : index
    %c0_135 = arith.constant 0 : index
    %c0_136 = arith.constant 0 : index
    %360 = vector.load %arg33[%c0_134, %c0_135, %c0_136] : memref<4x1x60xf32, #tpu.memory_space<vmem>>, vector<1x1x60xf32>
    %361 = vector.shape_cast %360 : vector<1x1x60xf32> to vector<1x60xf32>
    %362 = vector.broadcast %361 : vector<1x60xf32> to vector<2x60xf32>
    %363 = arith.addf %359, %362 : vector<2x60xf32>
    %c1_137 = arith.constant 1 : index
    %c0_138 = arith.constant 0 : index
    %c0_139 = arith.constant 0 : index
    %364 = vector.load %arg32[%c1_137, %c0_138, %c0_139] : memref<4x128x60xf32, #tpu.memory_space<vmem>>, vector<1x128x60xf32>
    %365 = vector.shape_cast %364 : vector<1x128x60xf32> to vector<128x60xf32>
    %cst_140 = arith.constant dense<0.000000e+00> : vector<2x60xf32>
    %366 = tpu.matmul %356, %365, %cst_140 {dimension_numbers = #tpu.dot_dimension_numbers<[1], [0], [0], [1], [0, 0, 1, 1], [], []>} : vector<2x128xf32>, vector<128x60xf32>, vector<2x60xf32> -> vector<2x60xf32>
    %c1_141 = arith.constant 1 : index
    %c0_142 = arith.constant 0 : index
    %c0_143 = arith.constant 0 : index
    %367 = vector.load %arg33[%c1_141, %c0_142, %c0_143] : memref<4x1x60xf32, #tpu.memory_space<vmem>>, vector<1x1x60xf32>
    %368 = vector.shape_cast %367 : vector<1x1x60xf32> to vector<1x60xf32>
    %369 = vector.broadcast %368 : vector<1x60xf32> to vector<2x60xf32>
    %370 = arith.addf %366, %369 : vector<2x60xf32>
    %c2 = arith.constant 2 : index
    %c0_144 = arith.constant 0 : index
    %c0_145 = arith.constant 0 : index
    %371 = vector.load %arg32[%c2, %c0_144, %c0_145] : memref<4x128x60xf32, #tpu.memory_space<vmem>>, vector<1x128x60xf32>
    %372 = vector.shape_cast %371 : vector<1x128x60xf32> to vector<128x60xf32>
    %cst_146 = arith.constant dense<0.000000e+00> : vector<2x60xf32>
    %373 = tpu.matmul %356, %372, %cst_146 {dimension_numbers = #tpu.dot_dimension_numbers<[1], [0], [0], [1], [0, 0, 1, 1], [], []>} : vector<2x128xf32>, vector<128x60xf32>, vector<2x60xf32> -> vector<2x60xf32>
    %c2_147 = arith.constant 2 : index
    %c0_148 = arith.constant 0 : index
    %c0_149 = arith.constant 0 : index
    %374 = vector.load %arg33[%c2_147, %c0_148, %c0_149] : memref<4x1x60xf32, #tpu.memory_space<vmem>>, vector<1x1x60xf32>
    %375 = vector.shape_cast %374 : vector<1x1x60xf32> to vector<1x60xf32>
    %376 = vector.broadcast %375 : vector<1x60xf32> to vector<2x60xf32>
    %377 = arith.addf %373, %376 : vector<2x60xf32>
    %c3 = arith.constant 3 : index
    %c0_150 = arith.constant 0 : index
    %c0_151 = arith.constant 0 : index
    %378 = vector.load %arg32[%c3, %c0_150, %c0_151] : memref<4x128x60xf32, #tpu.memory_space<vmem>>, vector<1x128x60xf32>
    %379 = vector.shape_cast %378 : vector<1x128x60xf32> to vector<128x60xf32>
    %cst_152 = arith.constant dense<0.000000e+00> : vector<2x60xf32>
    %380 = tpu.matmul %356, %379, %cst_152 {dimension_numbers = #tpu.dot_dimension_numbers<[1], [0], [0], [1], [0, 0, 1, 1], [], []>} : vector<2x128xf32>, vector<128x60xf32>, vector<2x60xf32> -> vector<2x60xf32>
    %c3_153 = arith.constant 3 : index
    %c0_154 = arith.constant 0 : index
    %c0_155 = arith.constant 0 : index
    %381 = vector.load %arg33[%c3_153, %c0_154, %c0_155] : memref<4x1x60xf32, #tpu.memory_space<vmem>>, vector<1x1x60xf32>
    %382 = vector.shape_cast %381 : vector<1x1x60xf32> to vector<1x60xf32>
    %383 = vector.broadcast %382 : vector<1x60xf32> to vector<2x60xf32>
    %384 = arith.addf %380, %383 : vector<2x60xf32>
    %385 = vector.extract_strided_slice %363 {offsets = [0, 0], sizes = [1, 60], strides = [1, 1]} : vector<2x60xf32> to vector<1x60xf32>
    %386 = vector.extract_strided_slice %370 {offsets = [0, 0], sizes = [1, 60], strides = [1, 1]} : vector<2x60xf32> to vector<1x60xf32>
    %387 = vector.extract_strided_slice %377 {offsets = [0, 0], sizes = [1, 60], strides = [1, 1]} : vector<2x60xf32> to vector<1x60xf32>
    %388 = vector.extract_strided_slice %384 {offsets = [0, 0], sizes = [1, 60], strides = [1, 1]} : vector<2x60xf32> to vector<1x60xf32>
    %389 = tpu.concatenate %385, %386, %387, %388 in 0 : vector<1x60xf32>, vector<1x60xf32>, vector<1x60xf32>, vector<1x60xf32> -> vector<4x60xf32>
    %390 = tpu.transpose %389, [1, 0] : vector<4x60xf32> -> vector<60x4xf32>
    %391 = vector.extract_strided_slice %363 {offsets = [1, 0], sizes = [1, 60], strides = [1, 1]} : vector<2x60xf32> to vector<1x60xf32>
    %392 = vector.extract_strided_slice %370 {offsets = [1, 0], sizes = [1, 60], strides = [1, 1]} : vector<2x60xf32> to vector<1x60xf32>
    %393 = vector.extract_strided_slice %377 {offsets = [1, 0], sizes = [1, 60], strides = [1, 1]} : vector<2x60xf32> to vector<1x60xf32>
    %394 = vector.extract_strided_slice %384 {offsets = [1, 0], sizes = [1, 60], strides = [1, 1]} : vector<2x60xf32> to vector<1x60xf32>
    %395 = tpu.concatenate %391, %392, %393, %394 in 0 : vector<1x60xf32>, vector<1x60xf32>, vector<1x60xf32>, vector<1x60xf32> -> vector<4x60xf32>
    %396 = tpu.transpose %395, [1, 0] : vector<4x60xf32> -> vector<60x4xf32>
    %c0_156 = arith.constant 0 : index
    %c0_157 = arith.constant 0 : index
    %397 = vector.load %arg34[%c0_156, %c0_157] : memref<12x32xf32, #tpu.memory_space<vmem>>, vector<12x32xf32>
    %c0_158 = arith.constant 0 : index
    %c0_159 = arith.constant 0 : index
    %398 = vector.load %arg35[%c0_158, %c0_159] : memref<1x32xf32, #tpu.memory_space<vmem>>, vector<1x32xf32>
    %cst_160 = arith.constant 0.000000e+00 : f32
    %399 = vector.broadcast %cst_160 : f32 to vector<2x4xf32>
    %400 = tpu.concatenate %399, %390, %399 in 0 : vector<2x4xf32>, vector<60x4xf32>, vector<2x4xf32> -> vector<64x4xf32>
    %cst_161 = arith.constant 0.000000e+00 : f32
    %401 = vector.broadcast %cst_161 : f32 to vector<2x4xf32>
    %402 = tpu.concatenate %401, %396, %401 in 0 : vector<2x4xf32>, vector<60x4xf32>, vector<2x4xf32> -> vector<64x4xf32>
    %403 = vector.extract_strided_slice %400 {offsets = [0, 0], sizes = [62, 4], strides = [1, 1]} : vector<64x4xf32> to vector<62x4xf32>
    %404 = vector.extract_strided_slice %400 {offsets = [1, 0], sizes = [62, 4], strides = [1, 1]} : vector<64x4xf32> to vector<62x4xf32>
    %405 = vector.extract_strided_slice %400 {offsets = [2, 0], sizes = [62, 4], strides = [1, 1]} : vector<64x4xf32> to vector<62x4xf32>
    %406 = tpu.concatenate %403, %404, %405 in 1 : vector<62x4xf32>, vector<62x4xf32>, vector<62x4xf32> -> vector<62x12xf32>
    %cst_162 = arith.constant dense<0.000000e+00> : vector<62x32xf32>
    %407 = tpu.matmul %406, %397, %cst_162 {dimension_numbers = #tpu.dot_dimension_numbers<[1], [0], [0], [1], [0, 0, 1, 1], [], []>} : vector<62x12xf32>, vector<12x32xf32>, vector<62x32xf32> -> vector<62x32xf32>
    %408 = vector.broadcast %398 : vector<1x32xf32> to vector<62x32xf32>
    %409 = arith.addf %407, %408 : vector<62x32xf32>
    %410 = vector.extract_strided_slice %402 {offsets = [0, 0], sizes = [62, 4], strides = [1, 1]} : vector<64x4xf32> to vector<62x4xf32>
    %411 = vector.extract_strided_slice %402 {offsets = [1, 0], sizes = [62, 4], strides = [1, 1]} : vector<64x4xf32> to vector<62x4xf32>
    %412 = vector.extract_strided_slice %402 {offsets = [2, 0], sizes = [62, 4], strides = [1, 1]} : vector<64x4xf32> to vector<62x4xf32>
    %413 = tpu.concatenate %410, %411, %412 in 1 : vector<62x4xf32>, vector<62x4xf32>, vector<62x4xf32> -> vector<62x12xf32>
    %cst_163 = arith.constant dense<0.000000e+00> : vector<62x32xf32>
    %414 = tpu.matmul %413, %397, %cst_163 {dimension_numbers = #tpu.dot_dimension_numbers<[1], [0], [0], [1], [0, 0, 1, 1], [], []>} : vector<62x12xf32>, vector<12x32xf32>, vector<62x32xf32> -> vector<62x32xf32>
    %415 = vector.broadcast %398 : vector<1x32xf32> to vector<62x32xf32>
    %416 = arith.addf %414, %415 : vector<62x32xf32>
    %c0_164 = arith.constant 0 : index
    %c0_165 = arith.constant 0 : index
    %417 = vector.load %arg36[%c0_164, %c0_165] : memref<1x32xf32, #tpu.memory_space<vmem>>, vector<1x32xf32>
    %c0_166 = arith.constant 0 : index
    %c0_167 = arith.constant 0 : index
    %418 = vector.load %arg37[%c0_166, %c0_167] : memref<1x32xf32, #tpu.memory_space<vmem>>, vector<1x32xf32>
    %cst_168 = arith.constant dense<0.000000e+00> : vector<32xf32>
    %419 = vector.multi_reduction <add>, %409, %cst_168 [0] : vector<62x32xf32> to vector<32xf32>
    %420 = vector.shape_cast %419 : vector<32xf32> to vector<1x32xf32>
    %cst_169 = arith.constant dense<0.000000e+00> : vector<32xf32>
    %421 = vector.multi_reduction <add>, %416, %cst_169 [0] : vector<62x32xf32> to vector<32xf32>
    %422 = vector.shape_cast %421 : vector<32xf32> to vector<1x32xf32>
    %423 = arith.addf %420, %422 : vector<1x32xf32>
    %cst_170 = arith.constant 1.240000e+02 : f32
    %424 = vector.broadcast %cst_170 : f32 to vector<1x32xf32>
    %425 = arith.divf %423, %424 : vector<1x32xf32>
    %426 = vector.broadcast %425 : vector<1x32xf32> to vector<62x32xf32>
    %427 = arith.subf %409, %426 : vector<62x32xf32>
    %428 = arith.mulf %427, %427 : vector<62x32xf32>
    %cst_171 = arith.constant dense<0.000000e+00> : vector<32xf32>
    %429 = vector.multi_reduction <add>, %428, %cst_171 [0] : vector<62x32xf32> to vector<32xf32>
    %430 = vector.shape_cast %429 : vector<32xf32> to vector<1x32xf32>
    %431 = vector.broadcast %425 : vector<1x32xf32> to vector<62x32xf32>
    %432 = arith.subf %416, %431 : vector<62x32xf32>
    %433 = arith.mulf %432, %432 : vector<62x32xf32>
    %cst_172 = arith.constant dense<0.000000e+00> : vector<32xf32>
    %434 = vector.multi_reduction <add>, %433, %cst_172 [0] : vector<62x32xf32> to vector<32xf32>
    %435 = vector.shape_cast %434 : vector<32xf32> to vector<1x32xf32>
    %436 = arith.addf %430, %435 : vector<1x32xf32>
    %cst_173 = arith.constant 1.240000e+02 : f32
    %437 = vector.broadcast %cst_173 : f32 to vector<1x32xf32>
    %438 = arith.divf %436, %437 : vector<1x32xf32>
    %cst_174 = arith.constant 9.99999974E-6 : f32
    %439 = vector.broadcast %cst_174 : f32 to vector<1x32xf32>
    %440 = arith.addf %438, %439 : vector<1x32xf32>
    %441 = math.rsqrt %440 : vector<1x32xf32>
    %442 = arith.mulf %417, %441 : vector<1x32xf32>
    %443 = arith.mulf %425, %442 : vector<1x32xf32>
    %444 = arith.subf %418, %443 : vector<1x32xf32>
    %445 = vector.broadcast %442 : vector<1x32xf32> to vector<62x32xf32>
    %446 = arith.mulf %409, %445 : vector<62x32xf32>
    %447 = vector.broadcast %444 : vector<1x32xf32> to vector<62x32xf32>
    %448 = arith.addf %446, %447 : vector<62x32xf32>
    %cst_175 = arith.constant 0.000000e+00 : f32
    %449 = vector.broadcast %cst_175 : f32 to vector<62x32xf32>
    %450 = arith.cmpf oge, %448, %449 : vector<62x32xf32>
    %cst_176 = arith.constant 2.000000e-01 : f32
    %451 = vector.broadcast %cst_176 : f32 to vector<62x32xf32>
    %452 = arith.mulf %451, %448 : vector<62x32xf32>
    %453 = arith.select %450, %448, %452 : vector<62x32xi1>, vector<62x32xf32>
    %454 = vector.broadcast %442 : vector<1x32xf32> to vector<62x32xf32>
    %455 = arith.mulf %416, %454 : vector<62x32xf32>
    %456 = vector.broadcast %444 : vector<1x32xf32> to vector<62x32xf32>
    %457 = arith.addf %455, %456 : vector<62x32xf32>
    %cst_177 = arith.constant 0.000000e+00 : f32
    %458 = vector.broadcast %cst_177 : f32 to vector<62x32xf32>
    %459 = arith.cmpf oge, %457, %458 : vector<62x32xf32>
    %cst_178 = arith.constant 2.000000e-01 : f32
    %460 = vector.broadcast %cst_178 : f32 to vector<62x32xf32>
    %461 = arith.mulf %460, %457 : vector<62x32xf32>
    %462 = arith.select %459, %457, %461 : vector<62x32xi1>, vector<62x32xf32>
    %c0_179 = arith.constant 0 : index
    %c0_180 = arith.constant 0 : index
    %463 = vector.load %arg38[%c0_179, %c0_180] : memref<96x32xf32, #tpu.memory_space<vmem>>, vector<96x32xf32>
    %c0_181 = arith.constant 0 : index
    %c0_182 = arith.constant 0 : index
    %464 = vector.load %arg39[%c0_181, %c0_182] : memref<1x32xf32, #tpu.memory_space<vmem>>, vector<1x32xf32>
    %cst_183 = arith.constant 0.000000e+00 : f32
    %465 = vector.broadcast %cst_183 : f32 to vector<2x32xf32>
    %466 = tpu.concatenate %465, %453, %465 in 0 : vector<2x32xf32>, vector<62x32xf32>, vector<2x32xf32> -> vector<66x32xf32>
    %cst_184 = arith.constant 0.000000e+00 : f32
    %467 = vector.broadcast %cst_184 : f32 to vector<2x32xf32>
    %468 = tpu.concatenate %467, %462, %467 in 0 : vector<2x32xf32>, vector<62x32xf32>, vector<2x32xf32> -> vector<66x32xf32>
    %469 = vector.extract_strided_slice %466 {offsets = [0, 0], sizes = [64, 32], strides = [1, 1]} : vector<66x32xf32> to vector<64x32xf32>
    %470 = vector.extract_strided_slice %466 {offsets = [1, 0], sizes = [64, 32], strides = [1, 1]} : vector<66x32xf32> to vector<64x32xf32>
    %471 = vector.extract_strided_slice %466 {offsets = [2, 0], sizes = [64, 32], strides = [1, 1]} : vector<66x32xf32> to vector<64x32xf32>
    %472 = tpu.concatenate %469, %470, %471 in 1 : vector<64x32xf32>, vector<64x32xf32>, vector<64x32xf32> -> vector<64x96xf32>
    %cst_185 = arith.constant dense<0.000000e+00> : vector<64x32xf32>
    %473 = tpu.matmul %472, %463, %cst_185 {dimension_numbers = #tpu.dot_dimension_numbers<[1], [0], [0], [1], [0, 0, 1, 1], [], []>} : vector<64x96xf32>, vector<96x32xf32>, vector<64x32xf32> -> vector<64x32xf32>
    %474 = vector.broadcast %464 : vector<1x32xf32> to vector<64x32xf32>
    %475 = arith.addf %473, %474 : vector<64x32xf32>
    %476 = vector.extract_strided_slice %468 {offsets = [0, 0], sizes = [64, 32], strides = [1, 1]} : vector<66x32xf32> to vector<64x32xf32>
    %477 = vector.extract_strided_slice %468 {offsets = [1, 0], sizes = [64, 32], strides = [1, 1]} : vector<66x32xf32> to vector<64x32xf32>
    %478 = vector.extract_strided_slice %468 {offsets = [2, 0], sizes = [64, 32], strides = [1, 1]} : vector<66x32xf32> to vector<64x32xf32>
    %479 = tpu.concatenate %476, %477, %478 in 1 : vector<64x32xf32>, vector<64x32xf32>, vector<64x32xf32> -> vector<64x96xf32>
    %cst_186 = arith.constant dense<0.000000e+00> : vector<64x32xf32>
    %480 = tpu.matmul %479, %463, %cst_186 {dimension_numbers = #tpu.dot_dimension_numbers<[1], [0], [0], [1], [0, 0, 1, 1], [], []>} : vector<64x96xf32>, vector<96x32xf32>, vector<64x32xf32> -> vector<64x32xf32>
    %481 = vector.broadcast %464 : vector<1x32xf32> to vector<64x32xf32>
    %482 = arith.addf %480, %481 : vector<64x32xf32>
    %c0_187 = arith.constant 0 : index
    %c0_188 = arith.constant 0 : index
    %483 = vector.load %arg40[%c0_187, %c0_188] : memref<1x32xf32, #tpu.memory_space<vmem>>, vector<1x32xf32>
    %c0_189 = arith.constant 0 : index
    %c0_190 = arith.constant 0 : index
    %484 = vector.load %arg41[%c0_189, %c0_190] : memref<1x32xf32, #tpu.memory_space<vmem>>, vector<1x32xf32>
    %cst_191 = arith.constant dense<0.000000e+00> : vector<32xf32>
    %485 = vector.multi_reduction <add>, %475, %cst_191 [0] : vector<64x32xf32> to vector<32xf32>
    %486 = vector.shape_cast %485 : vector<32xf32> to vector<1x32xf32>
    %cst_192 = arith.constant dense<0.000000e+00> : vector<32xf32>
    %487 = vector.multi_reduction <add>, %482, %cst_192 [0] : vector<64x32xf32> to vector<32xf32>
    %488 = vector.shape_cast %487 : vector<32xf32> to vector<1x32xf32>
    %489 = arith.addf %486, %488 : vector<1x32xf32>
    %cst_193 = arith.constant 1.280000e+02 : f32
    %490 = vector.broadcast %cst_193 : f32 to vector<1x32xf32>
    %491 = arith.divf %489, %490 : vector<1x32xf32>
    %492 = vector.broadcast %491 : vector<1x32xf32> to vector<64x32xf32>
    %493 = arith.subf %475, %492 : vector<64x32xf32>
    %494 = arith.mulf %493, %493 : vector<64x32xf32>
    %cst_194 = arith.constant dense<0.000000e+00> : vector<32xf32>
    %495 = vector.multi_reduction <add>, %494, %cst_194 [0] : vector<64x32xf32> to vector<32xf32>
    %496 = vector.shape_cast %495 : vector<32xf32> to vector<1x32xf32>
    %497 = vector.broadcast %491 : vector<1x32xf32> to vector<64x32xf32>
    %498 = arith.subf %482, %497 : vector<64x32xf32>
    %499 = arith.mulf %498, %498 : vector<64x32xf32>
    %cst_195 = arith.constant dense<0.000000e+00> : vector<32xf32>
    %500 = vector.multi_reduction <add>, %499, %cst_195 [0] : vector<64x32xf32> to vector<32xf32>
    %501 = vector.shape_cast %500 : vector<32xf32> to vector<1x32xf32>
    %502 = arith.addf %496, %501 : vector<1x32xf32>
    %cst_196 = arith.constant 1.280000e+02 : f32
    %503 = vector.broadcast %cst_196 : f32 to vector<1x32xf32>
    %504 = arith.divf %502, %503 : vector<1x32xf32>
    %cst_197 = arith.constant 9.99999974E-6 : f32
    %505 = vector.broadcast %cst_197 : f32 to vector<1x32xf32>
    %506 = arith.addf %504, %505 : vector<1x32xf32>
    %507 = math.rsqrt %506 : vector<1x32xf32>
    %508 = arith.mulf %483, %507 : vector<1x32xf32>
    %509 = arith.mulf %491, %508 : vector<1x32xf32>
    %510 = arith.subf %484, %509 : vector<1x32xf32>
    %511 = vector.broadcast %508 : vector<1x32xf32> to vector<64x32xf32>
    %512 = arith.mulf %475, %511 : vector<64x32xf32>
    %513 = vector.broadcast %510 : vector<1x32xf32> to vector<64x32xf32>
    %514 = arith.addf %512, %513 : vector<64x32xf32>
    %cst_198 = arith.constant 0.000000e+00 : f32
    %515 = vector.broadcast %cst_198 : f32 to vector<64x32xf32>
    %516 = arith.cmpf oge, %514, %515 : vector<64x32xf32>
    %cst_199 = arith.constant 2.000000e-01 : f32
    %517 = vector.broadcast %cst_199 : f32 to vector<64x32xf32>
    %518 = arith.mulf %517, %514 : vector<64x32xf32>
    %519 = arith.select %516, %514, %518 : vector<64x32xi1>, vector<64x32xf32>
    %520 = vector.broadcast %508 : vector<1x32xf32> to vector<64x32xf32>
    %521 = arith.mulf %482, %520 : vector<64x32xf32>
    %522 = vector.broadcast %510 : vector<1x32xf32> to vector<64x32xf32>
    %523 = arith.addf %521, %522 : vector<64x32xf32>
    %cst_200 = arith.constant 0.000000e+00 : f32
    %524 = vector.broadcast %cst_200 : f32 to vector<64x32xf32>
    %525 = arith.cmpf oge, %523, %524 : vector<64x32xf32>
    %cst_201 = arith.constant 2.000000e-01 : f32
    %526 = vector.broadcast %cst_201 : f32 to vector<64x32xf32>
    %527 = arith.mulf %526, %523 : vector<64x32xf32>
    %528 = arith.select %525, %523, %527 : vector<64x32xi1>, vector<64x32xf32>
    %c0_202 = arith.constant 0 : index
    %c0_203 = arith.constant 0 : index
    %529 = vector.load %arg42[%c0_202, %c0_203] : memref<96x32xf32, #tpu.memory_space<vmem>>, vector<96x32xf32>
    %c0_204 = arith.constant 0 : index
    %c0_205 = arith.constant 0 : index
    %530 = vector.load %arg43[%c0_204, %c0_205] : memref<1x32xf32, #tpu.memory_space<vmem>>, vector<1x32xf32>
    %531 = vector.extract_strided_slice %519 {offsets = [0, 0], sizes = [62, 32], strides = [1, 1]} : vector<64x32xf32> to vector<62x32xf32>
    %532 = vector.extract_strided_slice %519 {offsets = [1, 0], sizes = [62, 32], strides = [1, 1]} : vector<64x32xf32> to vector<62x32xf32>
    %533 = vector.extract_strided_slice %519 {offsets = [2, 0], sizes = [62, 32], strides = [1, 1]} : vector<64x32xf32> to vector<62x32xf32>
    %534 = tpu.concatenate %531, %532, %533 in 1 : vector<62x32xf32>, vector<62x32xf32>, vector<62x32xf32> -> vector<62x96xf32>
    %cst_206 = arith.constant dense<0.000000e+00> : vector<62x32xf32>
    %535 = tpu.matmul %534, %529, %cst_206 {dimension_numbers = #tpu.dot_dimension_numbers<[1], [0], [0], [1], [0, 0, 1, 1], [], []>} : vector<62x96xf32>, vector<96x32xf32>, vector<62x32xf32> -> vector<62x32xf32>
    %536 = vector.broadcast %530 : vector<1x32xf32> to vector<62x32xf32>
    %537 = arith.addf %535, %536 : vector<62x32xf32>
    %538 = vector.extract_strided_slice %528 {offsets = [0, 0], sizes = [62, 32], strides = [1, 1]} : vector<64x32xf32> to vector<62x32xf32>
    %539 = vector.extract_strided_slice %528 {offsets = [1, 0], sizes = [62, 32], strides = [1, 1]} : vector<64x32xf32> to vector<62x32xf32>
    %540 = vector.extract_strided_slice %528 {offsets = [2, 0], sizes = [62, 32], strides = [1, 1]} : vector<64x32xf32> to vector<62x32xf32>
    %541 = tpu.concatenate %538, %539, %540 in 1 : vector<62x32xf32>, vector<62x32xf32>, vector<62x32xf32> -> vector<62x96xf32>
    %cst_207 = arith.constant dense<0.000000e+00> : vector<62x32xf32>
    %542 = tpu.matmul %541, %529, %cst_207 {dimension_numbers = #tpu.dot_dimension_numbers<[1], [0], [0], [1], [0, 0, 1, 1], [], []>} : vector<62x96xf32>, vector<96x32xf32>, vector<62x32xf32> -> vector<62x32xf32>
    %543 = vector.broadcast %530 : vector<1x32xf32> to vector<62x32xf32>
    %544 = arith.addf %542, %543 : vector<62x32xf32>
    %c0_208 = arith.constant 0 : index
    %c0_209 = arith.constant 0 : index
    %545 = vector.load %arg44[%c0_208, %c0_209] : memref<96x10xf32, #tpu.memory_space<vmem>>, vector<96x10xf32>
    %c0_210 = arith.constant 0 : index
    %c0_211 = arith.constant 0 : index
    %546 = vector.load %arg45[%c0_210, %c0_211] : memref<1x10xf32, #tpu.memory_space<vmem>>, vector<1x10xf32>
    %547 = vector.extract_strided_slice %537 {offsets = [0, 0], sizes = [60, 32], strides = [1, 1]} : vector<62x32xf32> to vector<60x32xf32>
    %548 = vector.extract_strided_slice %537 {offsets = [1, 0], sizes = [60, 32], strides = [1, 1]} : vector<62x32xf32> to vector<60x32xf32>
    %549 = vector.extract_strided_slice %537 {offsets = [2, 0], sizes = [60, 32], strides = [1, 1]} : vector<62x32xf32> to vector<60x32xf32>
    %550 = tpu.concatenate %547, %548, %549 in 1 : vector<60x32xf32>, vector<60x32xf32>, vector<60x32xf32> -> vector<60x96xf32>
    %cst_212 = arith.constant dense<0.000000e+00> : vector<60x10xf32>
    %551 = tpu.matmul %550, %545, %cst_212 {dimension_numbers = #tpu.dot_dimension_numbers<[1], [0], [0], [1], [0, 0, 1, 1], [], []>} : vector<60x96xf32>, vector<96x10xf32>, vector<60x10xf32> -> vector<60x10xf32>
    %552 = vector.broadcast %546 : vector<1x10xf32> to vector<60x10xf32>
    %553 = arith.addf %551, %552 : vector<60x10xf32>
    %554 = vector.extract_strided_slice %544 {offsets = [0, 0], sizes = [60, 32], strides = [1, 1]} : vector<62x32xf32> to vector<60x32xf32>
    %555 = vector.extract_strided_slice %544 {offsets = [1, 0], sizes = [60, 32], strides = [1, 1]} : vector<62x32xf32> to vector<60x32xf32>
    %556 = vector.extract_strided_slice %544 {offsets = [2, 0], sizes = [60, 32], strides = [1, 1]} : vector<62x32xf32> to vector<60x32xf32>
    %557 = tpu.concatenate %554, %555, %556 in 1 : vector<60x32xf32>, vector<60x32xf32>, vector<60x32xf32> -> vector<60x96xf32>
    %cst_213 = arith.constant dense<0.000000e+00> : vector<60x10xf32>
    %558 = tpu.matmul %557, %545, %cst_213 {dimension_numbers = #tpu.dot_dimension_numbers<[1], [0], [0], [1], [0, 0, 1, 1], [], []>} : vector<60x96xf32>, vector<96x10xf32>, vector<60x10xf32> -> vector<60x10xf32>
    %559 = vector.broadcast %546 : vector<1x10xf32> to vector<60x10xf32>
    %560 = arith.addf %558, %559 : vector<60x10xf32>
    %c0_214 = arith.constant 0 : index
    %c0_215 = arith.constant 0 : index
    %c0_216 = arith.constant 0 : index
    %561 = vector.load %arg47[%c0_214, %c0_215, %c0_216] : memref<2x60x10xf32, #tpu.memory_space<vmem>>, vector<1x60x10xf32>
    %562 = vector.shape_cast %561 : vector<1x60x10xf32> to vector<60x10xf32>
    %563 = vector.shape_cast %553 : vector<60x10xf32> to vector<1x60x10xf32>
    tpu.vector_store %arg47[%c0_214, %c0_215, %c0_216], %563 {strides = array<i32>} : memref<2x60x10xf32, #tpu.memory_space<vmem>>, vector<1x60x10xf32>,
    %c1_217 = arith.constant 1 : index
    %c0_218 = arith.constant 0 : index
    %c0_219 = arith.constant 0 : index
    %564 = vector.load %arg47[%c1_217, %c0_218, %c0_219] : memref<2x60x10xf32, #tpu.memory_space<vmem>>, vector<1x60x10xf32>
    %565 = vector.shape_cast %564 : vector<1x60x10xf32> to vector<60x10xf32>
    %566 = vector.shape_cast %560 : vector<60x10xf32> to vector<1x60x10xf32>
    tpu.vector_store %arg47[%c1_217, %c0_218, %c0_219], %566 {strides = array<i32>} : memref<2x60x10xf32, #tpu.memory_space<vmem>>, vector<1x60x10xf32>,
    return
  }
}

</mosaic_0001>

<bundles_post_ra>
// kernel: embedding_net_forward.1
= control target key start
LH: loop header
LB: loop body
LE: loop exit
PB: predicated region body
PF: predicated region fallthrough
CT: control target
= control target key end

     0   :  { %s6089_s6 = smov 1   ;;  %s6090_s10 = smov 2   ;;  %s9212_s0 = inlined_call_operand.smem [shape: u32[48], index: -1, kind: input, shape index: {}] }
   0x1   :  { %s6162_s5 = sld [smem:[%s9212_s0]]   ;;  %s6091_s14 = smov 3  }
   0x2   :  { %s6167_s9 = sld [smem:[%s9212_s0 + %s6089_s6]]   ;;  %s6092_s18 = smov 4  }
   0x3   :  { %s6172_s13 = sld [smem:[%s9212_s0 + %s6090_s10]]   ;;  %s6093_s22 = smov 5  }
   0x4   :  { %s6177_s17 = sld [smem:[%s9212_s0 + %s6091_s14]]   ;;  %s6094_s26 = smov 6  }
   0x5   :  { %s6182_s21 = sld [smem:[%s9212_s0 + %s6092_s18]]   ;;  %s6095_s30 = smov 7  }
   0x6   :  { %s6187_s25 = sld [smem:[%s9212_s0 + %s6093_s22]]   ;;  %s6096_s4 = smov 8  }
   0x7   :  { %s6192_s29 = sld [smem:[%s9212_s0 + %s6094_s26]]   ;;  %s6097_s10 = smov 9  }
   0x8   :  { %s6197_s3 = sld [smem:[%s9212_s0 + %s6095_s30]]   ;;  %s6098_s15 = smov 10  }
   0x9   :  { %s6202_s8 = sld [smem:[%s9212_s0 + %s6096_s4]]   ;;  %s6099_s20 = smov 11  }
   0xa   :  { %s6207_s14 = sld [smem:[%s9212_s0 + %s6097_s10]]   ;;  %s6100_s26 = smov 12  }
   0xb   :  { %s6212_s19 = sld [smem:[%s9212_s0 + %s6098_s15]]   ;;  %s6101_s1 = smov 13  }
   0xc   :  { %s6217_s24 = sld [smem:[%s9212_s0 + %s6099_s20]]   ;;  %s6102_s7 = smov 14  }
   0xd   :  { %s6222_s30 = sld [smem:[%s9212_s0 + %s6100_s26]]   ;;  %s6103_s15 = smov 15  }
   0xe   :  { %s6227_s6 = sld [smem:[%s9212_s0 + %s6101_s1]]   ;;  %s6104_s22 = smov 16  }
   0xf   :  { %s6232_s12 = sld [smem:[%s9212_s0 + %s6102_s7]]   ;;  %s6105_s28 = smov 17  }
  0x10   :  { %s6237_s20 = sld [smem:[%s9212_s0 + %s6103_s15]]   ;;  %s6106_s7 = smov 18  }
  0x11   :  { %s6242_s27 = sld [smem:[%s9212_s0 + %s6104_s22]]   ;;  %s6107_s15 = smov 19  }
  0x12   :  { %s6247_s4 = sld [smem:[%s9212_s0 + %s6105_s28]]   ;;  %s6108_s22 = smov 20  }
  0x13   :  { %9222 = sst [smem:[#allocation8_spill]] %s6222_s30  ;;  %s6109_s28 = smov 21  }
  0x14   :  { %9223 = sst [smem:[#allocation9_spill]] %s6227_s6 }
  0x15   :  { %s6252_s6 = sld [smem:[%s9212_s0 + %s6106_s7]]   ;;  %s6110_s7 = smov 22  }
  0x16   :  { %9224 = sst [smem:[#allocation10_spill]] %s6237_s20 }
  0x17   :  { %s6257_s20 = sld [smem:[%s9212_s0 + %s6107_s15]]   ;;  %s6111_s15 = smov 23  }
  0x18   :  { %9225 = sst [smem:[#allocation11_spill]] %s6247_s4 }
  0x19   :  { %s6262_s30 = sld [smem:[%s9212_s0 + %s6108_s22]]   ;;  %s6112_s22 = smov 24  }
  0x1a   :  { %s6267_s4 = sld [smem:[%s9212_s0 + %s6109_s28]]   ;;  %s6113_s28 = smov 25  }
  0x1b   :  { %9226 = sst [smem:[#allocation12_spill]] %s6252_s6 }
  0x1c   :  { %s6272_s6 = sld [smem:[%s9212_s0 + %s6110_s7]]   ;;  %s6114_s7 = smov 26  }
  0x1d   :  { %9227 = sst [smem:[#allocation13_spill]] %s6257_s20 }
  0x1e   :  { %s6277_s20 = sld [smem:[%s9212_s0 + %s6111_s15]]   ;;  %s6115_s15 = smov 27  }
  0x1f   :  { %9228 = sst [smem:[#allocation14_spill]] %s6262_s30 }
  0x20   :  { %9229 = sst [smem:[#allocation15_spill]] %s6267_s4 }
  0x21   :  { %s6282_s30 = sld [smem:[%s9212_s0 + %s6112_s22]]   ;;  %s6116_s22 = smov 28  }
  0x22   :  { %9230 = sst [smem:[#allocation16_spill]] %s6272_s6 }
  0x23   :  { %s6287_s4 = sld [smem:[%s9212_s0 + %s6113_s28]]   ;;  %s6117_s28 = smov 29  }
  0x24   :  { %9231 = sst [smem:[#allocation17_spill]] %s6277_s20 }
  0x25   :  { %s6292_s6 = sld [smem:[%s9212_s0 + %s6114_s7]]   ;;  %s6118_s7 = smov 30  }
  0x26   :  { %s6297_s20 = sld [smem:[%s9212_s0 + %s6115_s15]]   ;;  %s6119_s15 = smov 31  }
  0x27   :  { %9232 = sst [smem:[#allocation18_spill]] %s6282_s30 }
  0x28   :  { %s6302_s30 = sld [smem:[%s9212_s0 + %s6116_s22]]   ;;  %s6120_s22 = smov 32  }
  0x29   :  { %9233 = sst [smem:[#allocation19_spill]] %s6287_s4 }
  0x2a   :  { %s6307_s4 = sld [smem:[%s9212_s0 + %s6117_s28]]   ;;  %s6121_s28 = smov 33  }
  0x2b   :  { %9234 = sst [smem:[#allocation20_spill]] %s6292_s6 }
  0x2c   :  { %9235 = sst [smem:[#allocation21_spill]] %s6297_s20 }
  0x2d   :  { %s6312_s6 = sld [smem:[%s9212_s0 + %s6118_s7]]   ;;  %s6122_s7 = smov 34  }
  0x2e   :  { %9236 = sst [smem:[#allocation22_spill]] %s6302_s30 }
  0x2f   :  { %s6317_s20 = sld [smem:[%s9212_s0 + %s6119_s15]]   ;;  %s6123_s15 = smov 35  }
  0x30   :  { %9237 = sst [smem:[#allocation23_spill]] %s6307_s4 }
  0x31   :  { %s6322_s30 = sld [smem:[%s9212_s0 + %s6120_s22]]   ;;  %s6124_s22 = smov 36  }
  0x32   :  { %s6327_s4 = sld [smem:[%s9212_s0 + %s6121_s28]]   ;;  %s6125_s28 = smov 37  }
  0x33   :  { %9238 = sst [smem:[#allocation24_spill]] %s6312_s6 }
  0x34   :  { %s6332_s6 = sld [smem:[%s9212_s0 + %s6122_s7]]   ;;  %s6126_s7 = smov 38  }
  0x35   :  { %9239 = sst [smem:[#allocation25_spill]] %s6317_s20 }
  0x36   :  { %s6337_s20 = sld [smem:[%s9212_s0 + %s6123_s15]]   ;;  %s6127_s15 = smov 39  }
  0x37   :  { %9240 = sst [smem:[#allocation26_spill]] %s6322_s30 }
  0x38   :  { %9241 = sst [smem:[#allocation27_spill]] %s6327_s4 }
  0x39   :  { %s6342_s30 = sld [smem:[%s9212_s0 + %s6124_s22]]   ;;  %s6128_s22 = smov 40  }
  0x3a   :  { %9242 = sst [smem:[#allocation28_spill]] %s6332_s6 }
  0x3b   :  { %s6347_s4 = sld [smem:[%s9212_s0 + %s6125_s28]]   ;;  %s6129_s28 = smov 41  }
  0x3c   :  { %9243 = sst [smem:[#allocation29_spill]] %s6337_s20 }
  0x3d   :  { %s6352_s6 = sld [smem:[%s9212_s0 + %s6126_s7]]   ;;  %s6130_s7 = smov 42  }
  0x3e   :  { %s6357_s20 = sld [smem:[%s9212_s0 + %s6127_s15]]   ;;  %s6131_s15 = smov 43  }
  0x3f   :  { %9244 = sst [smem:[#allocation30_spill]] %s6342_s30 }
  0x40   :  { %s6362_s30 = sld [smem:[%s9212_s0 + %s6128_s22]]   ;;  %s6132_s22 = smov 44  }
  0x41   :  { %9245 = sst [smem:[#allocation31_spill]] %s6347_s4 }
  0x42   :  { %s6367_s4 = sld [smem:[%s9212_s0 + %s6129_s28]]   ;;  %s6133_s28 = smov 45  }
  0x43   :  { %9246 = sst [smem:[#allocation32_spill]] %s6352_s6 }
  0x44   :  { %9247 = sst [smem:[#allocation33_spill]] %s6357_s20 }
  0x45   :  { %s6372_s6 = sld [smem:[%s9212_s0 + %s6130_s7]]   ;;  %s6134_s7 = smov 46  }
  0x46   :  { %9248 = sst [smem:[#allocation34_spill]] %s6362_s30 }
  0x47   :  { %s6377_s20 = sld [smem:[%s9212_s0 + %s6131_s15]]   ;;  %s6135_s15 = smov 47  }
  0x48   :  { %9249 = sst [smem:[#allocation35_spill]] %s6367_s4 }
  0x49   :  { %s6382_s30 = sld [smem:[%s9212_s0 + %s6132_s22]]  }
  0x4a   :  { %s6387_s4 = sld [smem:[%s9212_s0 + %s6133_s28]]  }
  0x4b   :  { %9250 = sst [smem:[#allocation36_spill]] %s6372_s6 }
  0x4c   :  { %s6392_s6 = sld [smem:[%s9212_s0 + %s6134_s7]]  }
  0x4d   :  { %9251 = sst [smem:[#allocation37_spill]] %s6377_s20 }
  0x4e   :  { %s6397_s20 = sld [smem:[%s9212_s0 + %s6135_s15]]  }
  0x4f   :  { %101 = vsyncpa [#allocation3], 0 }
  0x50   :  { %102 = vsyncpa [#allocation4], 0  ;;  %s139_s22 = sshll.u32 %s6242_s27, 4  ;;  %s6136_s23 = smov [#allocation2]   ;;  %s140_s22 = int_to_ptr.hbm [resolvable:$true] %s139_s22 }
  0x51   :  { %s141_s26 = sshll.u32 %s6136_s23, 4  ;;  %s6037_s28 = sshra.s32 %s140_s22, 4  ;;  %s142_s26 = int_to_ptr.vmem [resolvable:$true] %s141_s26  ;;  %s6038_s28 = int_to_ptr.hbm [resolvable:$true] %s6037_s28 }
  0x52   :  { %s6039_s1 = scalar_lea.hbm %s6038_s28, 1600  ;;  %s6041_s2 = scalar_lea.hbm %s6242_s27, 1600 }
  0x53   :  { %p6040_p0 = scmp.ne.s32.totalorder %s6038_s28, %s6039_s1  ;;  %p6042_p1 = scmp.lt.s32.totalorder %s6038_s28, %s6242_s27 }
  0x54   :  { %p6043_p2 = scmp.lt.s32.totalorder %s6041_s2, %s6039_s1 }
  0x56   :  { %p6044_p3 = por %p6043_p2, %p6042_p1 }
  0x58   :  { %p6045_p4 = pnand %p6044_p3, %p6040_p0 }
  0x5a   :  { %6048 = shalt.err (!%p6045_p4)
}
  0x5b   :  { %s6137_s0 = smov 256   ;;  %s6138_s7 = smov 16  }
  0x5c   :  { %147 = dma.hbm_to_vmem [thread:$0]  %s140_s22, 25600, %s142_s26, [#allocation3], %s6137_s0, %s6137_s0, %s6138_s7  }
  0x5d   :  { %6085 = dma.done.wait [#allocation3], 25600  }
  0x5e   :  { %6086 = vsyncadd [#allocation3], 4294941696  ;;  %v6403_v0 = vld [vmem:[%s6162_s5] sm:$0xff]  ;;  %v6406_v1 = vld [vmem:[%s6162_s5 + $0x8] sm:$0xff]  ;;  %vm280_vm0 = vcmask 1045504   ;;  %vm240_vm1 = vcmask 1046528  }
  0x5f   :  { %v281_v2 = vrot.slane %v6403_v0, 2  ;;  %v282_v3 = vrot.slane %v6406_v1, 2  ;;  %v241_v4 = vrot.slane %v6403_v0, 1  ;;  %v242_v5 = vrot.slane %v6406_v1, 1  ;;  %v6413_v6 = vld [vmem:[%s6162_s5 + $0x40] sm:$0xff]  ;;  %v6416_v7 = vld [vmem:[%s6162_s5 + $0x48] sm:$0xff] }
  0x60   :  { %s6139_s27 = smov 20   ;;  %s6140_s10 = smov 10   ;;  %v457_v10 = vrot.slane %v6413_v6, 2  ;;  %v458_v11 = vrot.slane %v6416_v7, 2  ;;  %v418_v12 = vrot.slane %v6413_v6, 1  ;;  %v6426_v13 = vld [vmem:[%s6162_s5 + $0x10] sm:$0xff] }
  0x61   :  { %v283_v8 = vsel %vm280_vm0, %v281_v2, %v282_v3  ;;  %v243_v9 = vsel %vm240_vm1, %v241_v4, %v242_v5  ;;  %v419_v14 = vrot.slane %v6416_v7, 1  ;;  %v244_v15 = vrot.slane %v6426_v13, 1  ;;  %v6431_v16 = vld [vmem:[%s6162_s5 + $0x50] sm:$0xff]  ;;  %v6447_v26 = vld [vmem:[%s6162_s5 + $0x18] sm:$0xff]  ;;  %v6462_v34 = vld [vmem:[%s6162_s5 + $0x60] sm:$0xff]  ;;  %s9262_s11 = sld [smem:[#allocation16_spill]] }
  0x62   :  { %296 = vrot.lane.b32.xlu1 %v283_v8, %s6139_s27  ;;  %256 = vrot.lane.b32.xlu0 %v243_v9, %s6140_s10  ;;  %v459_v18 = vsel %vm280_vm0, %v457_v10, %v458_v11  ;;  %v421_v20 = vrot.slane %v6431_v16, 1  ;;  %v460_v21 = vrot.slane %v6431_v16, 2  ;;  %v284_v22 = vrot.slane %v6426_v13, 2  ;;  %v6450_v27 = vld [vmem:[%s6162_s5 + $0x58] sm:$0xff]  ;;  %v6465_v35 = vld [vmem:[%s6162_s5 + $0x20] sm:$0xff]  ;;  %s9263_s15 = sld [smem:[#allocation17_spill]] }
  0x63   :  { %v245_v17 = vsel %vm240_vm1, %v242_v5, %v244_v15  ;;  %v420_v19 = vsel %vm240_vm1, %v418_v12, %v419_v14  ;;  %v246_v28 = vrot.slane %v6447_v26, 1  ;;  %v286_v29 = vrot.slane %v6447_v26, 2  ;;  %v6477_v42 = vld [vmem:[%s6162_s5 + $0x28] sm:$0xff]  ;;  %v6501_v56 = vld [vmem:[%s6162_s5 + $0x30] sm:$0xff]  ;;  %v230_v59 = vld [vmem:[%s6172_s13 + $0x18] sm:$0x3f] }
  0x64   :  { %258 = vrot.lane.b32.xlu2 %v245_v17, %s6140_s10  ;;  %v422_v23 = vsel %vm240_vm1, %v419_v14, %v421_v20  ;;  %v461_v24 = vsel %vm280_vm0, %v458_v11, %v460_v21  ;;  %v285_v25 = vsel %vm280_vm0, %v282_v3, %v284_v22  ;;  %v423_v30 = vrot.slane %v6450_v27, 1  ;;  %v6489_v49 = vld [vmem:[%s6162_s5 + $0x68] sm:$0xff]  ;;  %v6504_v57 = vld [vmem:[%s6162_s5 + $0x70] sm:$0xff]  ;;  %5574 = vmatpush.msk.msra.mxu0 %vm280_vm0, %v230_v59  ;;  %v6521_v5 = vld [vmem:[%s6162_s5 + $0x78] sm:$0xf]  ;;  %s9264_s16 = sld [smem:[#allocation22_spill]] }
  0x65   :  { %v247_v31 = vsel %vm240_vm1, %v244_v15, %v246_v28  ;;  %v287_v32 = vsel %vm280_vm0, %v284_v22, %v286_v29  ;;  %v462_v36 = vrot.slane %v6450_v27, 2  ;;  %v425_v37 = vrot.slane %v6462_v34, 1  ;;  %v229_v60 = vld [vmem:[%s6172_s13 + $0x10] sm:$0xff]  ;;  %5583 = vmatpush.msk.msra.mxu1 %vm280_vm0, %v230_v59  ;;  %v228_v2 = vld [vmem:[%s6172_s13 + $0x8] sm:$0xff]  ;;  %v6524_v8 = vld [vmem:[%s6162_s5 + $0x38] sm:$0xf] }
  0x66   :  { %v424_v33 = vsel %vm240_vm1, %v421_v20, %v423_v30  ;;  %v248_v38 = vrot.slane %v6465_v35, 1  ;;  %v288_v43 = vrot.slane %v6465_v35, 2  ;;  %v250_v44 = vrot.slane %v6477_v42, 1  ;;  %382 = vmatpush.msra.mxu0 %v229_v60  ;;  %s6142_s5 = smov 32   ;;  %s9265_s18 = sld [smem:[#allocation19_spill]] }
  0x67   :  { %v463_v39 = vsel %vm280_vm0, %v460_v21, %v462_v36  ;;  %v426_v40 = vsel %vm240_vm1, %v423_v30, %v425_v37  ;;  %v464_v45 = vrot.slane %v6462_v34, 2  ;;  %v427_v50 = vrot.slane %v6489_v49, 1  ;;  %549 = vmatpush.msra.mxu1 %v229_v60  ;;  %v227_v21 = vld [vmem:[%s6172_s13] sm:$0xff]  ;;  %s6143_s13 = smov 64   ;;  %s9266_s22 = sld [smem:[#allocation21_spill]] }
  0x68   :  { %v249_v41 = vsel %vm240_vm1, %v246_v28, %v248_v38  ;;  %v289_v46 = vsel %vm280_vm0, %v286_v29, %v288_v43  ;;  %v251_v47 = vsel %vm240_vm1, %v248_v38, %v250_v44  ;;  %v466_v51 = vrot.slane %v6489_v49, 2  ;;  %383 = vmatpush.msra.mxu0 %v228_v2  ;;  %s9267_s23 = sld [smem:[#allocation23_spill]]  ;;  %s6148_s0 = smov 4  }
  0x69   :  { %v465_v48 = vsel %vm280_vm0, %v462_v36, %v464_v45  ;;  %v290_v52 = vrot.slane %v6477_v42, 2  ;;  %v428_v53 = vsel %vm240_vm1, %v425_v37, %v427_v50  ;;  %v252_v58 = vrot.slane %v6501_v56, 1  ;;  %550 = vmatpush.msra.mxu1 %v228_v2  ;;  %s9268_s26 = sld [smem:[#allocation26_spill]]  ;;  %s6149_s7 = smov 8  }
  0x6a   :  { %472 = vrot.lane.b32.xlu1 %v459_v18, %s6139_s27  ;;  %433 = vrot.lane.b32.xlu0 %v420_v19, %s6140_s10  ;;  %v467_v54 = vsel %vm280_vm0, %v464_v45, %v466_v51  ;;  %v292_v61 = vrot.slane %v6501_v56, 2  ;;  %v429_v62 = vrot.slane %v6504_v57, 1  ;;  %v468_v9 = vrot.slane %v6504_v57, 2  ;;  %s9269_s28 = sld [smem:[#allocation24_spill]] }
  0x6b   :  { %v291_v55 = vsel %vm280_vm0, %v288_v43, %v290_v52  ;;  %v253_v63 = vsel %vm240_vm1, %v250_v44, %v252_v58  ;;  %v431_v10 = vrot.slane %v6521_v5, 1  ;;  %v254_v11 = vrot.slane %v6524_v8, 1  ;;  %384 = vmatpush.msra.mxu0 %v227_v21  ;;  %551 = vmatpush.msra.mxu1 %v227_v21  ;;  %s9270_s1 = sld [smem:[#allocation25_spill]] }
  0x6c   :  { %435 = vrot.lane.b32.xlu2 %v422_v23, %s6140_s10  ;;  %v293_v3 = vsel %vm280_vm0, %v290_v52, %v292_v61  ;;  %v430_v4 = vsel %vm240_vm1, %v427_v50, %v429_v62  ;;  %v469_v12 = vsel %vm280_vm0, %v466_v51, %v468_v9  ;;  %v294_v17 = vrot.slane %v6524_v8, 2  ;;  %s9271_s2 = sld [smem:[#allocation27_spill]] }
  0x6d   :  { %v432_v14 = vsel %vm240_vm1, %v429_v62, %v431_v10  ;;  %v255_v15 = vsel %vm240_vm1, %v252_v58, %v254_v11  ;;  %v470_v18 = vrot.slane %v6521_v5, 2  ;;  %vm320_vm2 = vcmask 80896  }
  0x6e   :  { %v295_v19 = vsel %vm280_vm0, %v292_v61, %v294_v17  ;;  %vm329_vm3 = vcmask 162816   ;;  %vm341_vm4 = vcmask 244736   ;;  %vm579_vm5 = vcmask 261120  }
  0x6f   :  { %v471_v20 = vsel %vm280_vm0, %v468_v9, %v470_v18  ;;  %vm593_vm6 = vcmask 254976  }
  0x72   :  { %474 = vrot.lane.b32.xlu1 %v461_v24, %s6139_s27  ;;  %298 = vrot.lane.b32.xlu0 %v285_v25, %s6139_s27 }
  0x74   :  { %260 = vrot.lane.b32.xlu2 %v247_v31, %s6140_s10 }
  0x7a   :  { %300 = vrot.lane.b32.xlu1 %v287_v32, %s6139_s27  ;;  %437 = vrot.lane.b32.xlu0 %v424_v33, %s6140_s10 }
  0x7c   :  { %476 = vrot.lane.b32.xlu2 %v463_v39, %s6139_s27 }
  0x82   :  { %439 = vrot.lane.b32.xlu1 %v426_v40, %s6140_s10  ;;  %262 = vrot.lane.b32.xlu0 %v249_v41, %s6140_s10 }
  0x84   :  { %302 = vrot.lane.b32.xlu2 %v289_v46, %s6139_s27 }
  0x8a   :  { %264 = vrot.lane.b32.xlu1 %v251_v47, %s6140_s10  ;;  %478 = vrot.lane.b32.xlu0 %v465_v48, %s6139_s27 }
  0x8c   :  { %441 = vrot.lane.b32.xlu2 %v428_v53, %s6140_s10 }
  0x92   :  { %480 = vrot.lane.b32.xlu1 %v467_v54, %s6139_s27  ;;  %304 = vrot.lane.b32.xlu0 %v291_v55, %s6139_s27 }
  0x94   :  { %266 = vrot.lane.b32.xlu2 %v253_v63, %s6140_s10 }
  0x9a   :  { %306 = vrot.lane.b32.xlu1 %v293_v3, %s6139_s27  ;;  %443 = vrot.lane.b32.xlu0 %v430_v4, %s6140_s10 }
  0x9c   :  { %482 = vrot.lane.b32.xlu2 %v469_v12, %s6139_s27 }
  0xa2   :  { %445 = vrot.lane.b32.xlu1 %v432_v14, %s6140_s10  ;;  %268 = vrot.lane.b32.xlu0 %v255_v15, %s6140_s10 }
  0xa4   :  { %308 = vrot.lane.b32.xlu2 %v295_v19, %s6139_s27 }
  0xaa   :  { %270 = vrot.lane.b32.xlu1 %v254_v11, %s6140_s10  ;;  %484 = vrot.lane.b32.xlu0 %v471_v20, %s6139_s27 }
  0xac   :  { %447 = vrot.lane.b32.xlu2 %v431_v10, %s6140_s10  ;;  %s9273_s10 = sld [smem:[#allocation29_spill]] }
  0xb2   :  { %486 = vrot.lane.b32.xlu1 %v470_v18, %s6139_s27  ;;  %310 = vrot.lane.b32.xlu0 %v294_v17, %s6139_s27  ;;  %s9272_s27 = sld [smem:[#allocation28_spill]] }
  0xbe   :  { %v259_v22 = vpop.permute.xlu2 %258 }
  0xc6   :  { %v436_v23 = vpop.permute.xlu2 %435 }
  0xc7   :  { %v497_v38 = vsel %vm320_vm2, %v6416_v7, %v436_v23 }
  0xce   :  { %v261_v30 = vpop.permute.xlu2 %260 }
  0xd4   :  { %v297_v24 = vpop.permute.xlu1 %296  ;;  %v257_v25 = vpop.permute.xlu0 %256 }
  0xd5   :  { %v321_v28 = vsel %vm320_vm2, %v6403_v0, %v257_v25  ;;  %v322_v0 = vsel %vm320_vm2, %v6406_v1, %v259_v22 }
  0xd6   :  { %v330_v29 = vsel %vm329_vm3, %v321_v28, %v297_v24  ;;  %v477_v37 = vpop.permute.xlu2 %476 }
  0xd7   :  { %5575 = vmatmul.msk.f32.vlgmr.msra.gmra.mxu0 %vm341_vm4, %v330_v29 }
  0xdc   :  { %v473_v31 = vpop.permute.xlu1 %472  ;;  %v434_v32 = vpop.permute.xlu0 %433 }
  0xdd   :  { %v496_v33 = vsel %vm320_vm2, %v6413_v6, %v434_v32  ;;  %v323_v6 = vsel %vm320_vm2, %v6426_v13, %v261_v30 }
  0xde   :  { %v504_v36 = vsel %vm329_vm3, %v496_v33, %v473_v31  ;;  %v303_v44 = vpop.permute.xlu2 %302 }
  0xdf   :  { %5584 = vmatmul.msk.f32.vlgmr.msra.gmra.mxu1 %vm341_vm4, %v504_v36  ;;  %v5989_v36 = vld [vmem:[%s6177_s17] ss:$0 sm:$0xff]  ;;  %s9253_s17 = sld [smem:[#allocation9_spill]] }
  0xe4   :  { %v475_v39 = vpop.permute.xlu1 %474  ;;  %v299_v40 = vpop.permute.xlu0 %298 }
  0xe5   :  { %v331_v41 = vsel %vm329_vm3, %v322_v0, %v299_v40  ;;  %v505_v43 = vsel %vm329_vm3, %v497_v38, %v475_v39 }
  0xe6   :  { %5576 = vmatmul.msk.f32.gmra.mxu0 %vm341_vm4, %v331_v41  ;;  %v442_v13 = vpop.permute.xlu2 %441 }
  0xe7   :  { %5585 = vmatmul.msk.f32.gmra.mxu1 %vm341_vm4, %v505_v43  ;;  %v500_v59 = vsel %vm320_vm2, %v6462_v34, %v442_v13 }
  0xec   :  { %v301_v45 = vpop.permute.xlu1 %300  ;;  %v438_v46 = vpop.permute.xlu0 %437 }
  0xed   :  { %v498_v7 = vsel %vm320_vm2, %v6431_v16, %v438_v46  ;;  %v332_v1 = vsel %vm329_vm3, %v323_v6, %v301_v45 }
  0xee   :  { %5577 = vmatmul.msk.f32.gmra.mxu0 %vm341_vm4, %v332_v1  ;;  %v506_v47 = vsel %vm329_vm3, %v498_v7, %v477_v37  ;;  %v267_v58 = vpop.permute.xlu2 %266 }
  0xef   :  { %5586 = vmatmul.msk.f32.gmra.mxu1 %vm341_vm4, %v506_v47  ;;  %v326_v2 = vsel %vm320_vm2, %v6477_v42, %v267_v58 }
  0xf4   :  { %v440_v48 = vpop.permute.xlu1 %439  ;;  %v263_v50 = vpop.permute.xlu0 %262 }
  0xf5   :  { %v324_v51 = vsel %vm320_vm2, %v6447_v26, %v263_v50  ;;  %v499_v16 = vsel %vm320_vm2, %v6450_v27, %v440_v48 }
  0xf6   :  { %v333_v52 = vsel %vm329_vm3, %v324_v51, %v303_v44  ;;  %v483_v27 = vpop.permute.xlu2 %482 }
  0xf7   :  { %5578 = vmatmul.msk.f32.gmra.mxu0 %vm341_vm4, %v333_v52 }
  0xfc   :  { %v265_v53 = vpop.permute.xlu1 %264  ;;  %v479_v54 = vpop.permute.xlu0 %478 }
  0xfd   :  { %v507_v55 = vsel %vm329_vm3, %v499_v16, %v479_v54  ;;  %v325_v26 = vsel %vm320_vm2, %v6465_v35, %v265_v53 }
  0xfe   :  { %5587 = vmatmul.msk.f32.gmra.mxu1 %vm341_vm4, %v507_v55  ;;  %v309_v10 = vpop.permute.xlu2 %308  ;;  %v6141_v55 = vmov 116.0  }
  0xff   :  { %6007 = vrcp.f32 %v6141_v55 }
 0x104   :  { %v481_v60 = vpop.permute.xlu1 %480  ;;  %v305_v61 = vpop.permute.xlu0 %304 }
 0x105   :  { %v334_v62 = vsel %vm329_vm3, %v325_v26, %v305_v61  ;;  %v508_v63 = vsel %vm329_vm3, %v500_v59, %v481_v60 }
 0x106   :  { %5579 = vmatmul.msk.f32.gmra.mxu0 %vm341_vm4, %v334_v62  ;;  %5588 = vmatmul.msk.f32.gmra.mxu1 %vm341_vm4, %v508_v63  ;;  %v448_v19 = vpop.permute.xlu2 %447 }
 0x107   :  { %v503_v20 = vsel %vm320_vm2, %v6521_v5, %v448_v19 }
 0x10c   :  { %v307_v3 = vpop.permute.xlu1 %306  ;;  %v444_v4 = vpop.permute.xlu0 %443 }
 0x10d   :  { %v501_v34 = vsel %vm320_vm2, %v6489_v49, %v444_v4  ;;  %v335_v35 = vsel %vm329_vm3, %v326_v2, %v307_v3 }
 0x10e   :  { %5580 = vmatmul.msk.f32.gmra.mxu0 %vm341_vm4, %v335_v35  ;;  %v509_v9 = vsel %vm329_vm3, %v501_v34, %v483_v27 }
 0x10f   :  { %5589 = vmatmul.msk.f32.gmra.mxu1 %vm341_vm4, %v509_v9 }
 0x114   :  { %v446_v11 = vpop.permute.xlu1 %445  ;;  %v269_v12 = vpop.permute.xlu0 %268 }
 0x115   :  { %v327_v14 = vsel %vm320_vm2, %v6501_v56, %v269_v12  ;;  %v502_v49 = vsel %vm320_vm2, %v6504_v57, %v446_v11 }
 0x116   :  { %v336_v42 = vsel %vm329_vm3, %v327_v14, %v309_v10  ;;  %v6008_v10 = vpop.eup %6007 }
 0x117   :  { %5581 = vmatmul.msk.f32.gmra.mxu0 %vm341_vm4, %v336_v42  ;;  %vm629_vm7 = vweird.f32 %v6008_v10 }
 0x11c   :  { %v271_v15 = vpop.permute.xlu1 %270  ;;  %v485_v17 = vpop.permute.xlu0 %484 }
 0x11d   :  { %v510_v18 = vsel %vm329_vm3, %v502_v49, %v485_v17  ;;  %v328_v56 = vsel %vm320_vm2, %v6524_v8, %v271_v15 }
 0x11e   :  { %5590 = vmatmul.msk.f32.gmra.mxu1 %vm341_vm4, %v510_v18 }
 0x124   :  { %v487_v21 = vpop.permute.xlu1 %486  ;;  %v311_v22 = vpop.permute.xlu0 %310 }
 0x125   :  { %v337_v23 = vsel %vm329_vm3, %v328_v56, %v311_v22  ;;  %v511_v57 = vsel %vm329_vm3, %v503_v20, %v487_v21  ;;  %v625_v56 = vmul.f32 116.0, %v6008_v10 }
 0x126   :  { %5582 = vmatmul.msk.f32.gmra.mxu0 %vm341_vm4, %v337_v23  ;;  %5591 = vmatmul.msk.f32.gmra.mxu1 %vm341_vm4, %v511_v57 }
 0x154   :  { %v386_v24 = vpop.f32.mrf.mxu0 }
 0x155   :  { %v6617_v40 = vadd.f32 %v5989_v36, %v386_v24 }
 0x157   :  { %v580_v1 = vsel %vm579_vm5, %v6617_v40, 0.0 }
 0x15c   :  { %v553_v25 = vpop.f32.mrf.mxu1 }
 0x15d   :  { %v6619_v41 = vadd.f32 %v5989_v36, %v553_v25 }
 0x15f   :  { %v602_v47 = vsel %vm579_vm5, %v6619_v41, 0.0 }
 0x163   :  { %v389_v28 = vpop.f32.mrf.mxu0 }
 0x164   :  { %v556_v29 = vpop.f32.mrf.mxu1  ;;  %v6613_v38 = vadd.f32 %v5989_v36, %v389_v28  ;;  %v626_v28 = vsub.f32 1.0, %v625_v56 }
 0x165   :  { %v6615_v39 = vadd.f32 %v5989_v36, %v556_v29 }
 0x166   :  { %v581_v44 = vsel %vm579_vm5, %v6613_v38, 0.0 }
 0x167   :  { %v603_v45 = vsel %vm579_vm5, %v6615_v39, 0.0  ;;  %v582_v52 = vadd.f32 %v581_v44, %v580_v1 }
 0x168   :  { %v604_v16 = vadd.f32 %v603_v45, %v602_v47 }
 0x16b   :  { %v392_v30 = vpop.f32.mrf.mxu0 }
 0x16c   :  { %v559_v5 = vpop.f32.mrf.mxu1  ;;  %v6621_v43 = vadd.f32 %v5989_v36, %v392_v30 }
 0x16d   :  { %v6623_v6 = vadd.f32 %v5989_v36, %v559_v5 }
 0x16e   :  { %v583_v48 = vsel %vm579_vm5, %v6621_v43, 0.0 }
 0x16f   :  { %v605_v50 = vsel %vm579_vm5, %v6623_v6, 0.0  ;;  %v584_v61 = vadd.f32 %v583_v48, %v582_v52 }
 0x170   :  { %v606_v62 = vadd.f32 %v605_v50, %v604_v16 }
 0x174   :  { %v395_v31 = vpop.f32.mrf.mxu0 }
 0x175   :  { %v6629_v46 = vadd.f32 %v5989_v36, %v395_v31 }
 0x177   :  { %v585_v58 = vsel %vm579_vm5, %v6629_v46, 0.0 }
 0x178   :  { %v586_v4 = vadd.f32 %v585_v58, %v584_v61 }
 0x17b   :  { %v562_v32 = vpop.f32.mrf.mxu1 }
 0x17c   :  { %v6631_v7 = vadd.f32 %v5989_v36, %v562_v32  ;;  %v627_v32 = vmul.f32 %v6008_v10, %v626_v28 }
 0x17e   :  { %v607_v59 = vsel %vm579_vm5, %v6631_v7, 0.0 }
 0x17f   :  { %v608_v34 = vadd.f32 %v607_v59, %v606_v62 }
 0x183   :  { %v398_v8 = vpop.f32.mrf.mxu0  ;;  %v565_v33 = vpop.f32.mrf.mxu1 }
 0x184   :  { %v6641_v51 = vadd.f32 %v5989_v36, %v398_v8  ;;  %v6643_v13 = vadd.f32 %v5989_v36, %v565_v33 }
 0x186   :  { %v587_v63 = vsel %vm579_vm5, %v6641_v51, 0.0  ;;  %v609_v27 = vsel %vm579_vm5, %v6643_v13, 0.0 }
 0x187   :  { %v588_v11 = vadd.f32 %v587_v63, %v586_v4  ;;  %v610_v12 = vadd.f32 %v609_v27, %v608_v34 }
 0x18b   :  { %v401_v37 = vpop.f32.mrf.mxu0 }
 0x18c   :  { %v568_v0 = vpop.f32.mrf.mxu1  ;;  %v6649_v26 = vadd.f32 %v5989_v36, %v401_v37 }
 0x18d   :  { %v6651_v60 = vadd.f32 %v5989_v36, %v568_v0  ;;  %v628_v0 = vadd.f32 %v6008_v10, %v627_v32 }
 0x18e   :  { %v589_v35 = vsel %vm579_vm5, %v6649_v26, 0.0 }
 0x18f   :  { %v611_v9 = vsel %vm579_vm5, %v6651_v60, 0.0  ;;  %v590_v49 = vadd.f32 %v589_v35, %v588_v11  ;;  %v6677_v48 = vsel %vm629_vm7, %v6008_v10, %v628_v0 }
 0x190   :  { %v612_v15 = vadd.f32 %v611_v9, %v610_v12 }
 0x194   :  { %v404_v53 = vpop.f32.mrf.mxu0 }
 0x195   :  { %v6657_v2 = vadd.f32 %v5989_v36, %v404_v53 }
 0x197   :  { %v591_v14 = vsel %vm579_vm5, %v6657_v2, 0.0 }
 0x198   :  { %v592_v21 = vadd.f32 %v591_v14, %v590_v49 }
 0x19b   :  { %v571_v54 = vpop.f32.mrf.mxu1 }
 0x19c   :  { %v6659_v3 = vadd.f32 %v5989_v36, %v571_v54 }
 0x19e   :  { %v613_v42 = vsel %vm579_vm5, %v6659_v3, 0.0 }
 0x19f   :  { %v614_v22 = vadd.f32 %v613_v42, %v612_v15 }
 0x1a3   :  { %v407_v17 = vpop.f32.mrf.mxu0  ;;  %v574_v18 = vpop.f32.mrf.mxu1 }
 0x1a4   :  { %v6669_v19 = vadd.f32 %v5989_v36, %v407_v17  ;;  %v6671_v20 = vadd.f32 %v5989_v36, %v574_v18 }
 0x1a6   :  { %v594_v23 = vsel %vm593_vm6, %v6669_v19, 0.0  ;;  %v615_v57 = vsel %vm593_vm6, %v6671_v20, 0.0 }
 0x1a7   :  { %v595_v24 = vadd.f32 %v594_v23, %v592_v21  ;;  %v616_v25 = vadd.f32 %v615_v57, %v614_v22 }
 0x1a9   :  { %v596_v29 = vrot.slane %v595_v24, 4  ;;  %v617_v30 = vrot.slane %v616_v25, 4 }
 0x1ab   :  { %v597_v5 = vadd.f32 %v596_v29, %v595_v24  ;;  %v618_v31 = vadd.f32 %v617_v30, %v616_v25 }
 0x1ad   :  { %v598_v8 = vrot.slane %v597_v5, 2  ;;  %v619_v33 = vrot.slane %v618_v31, 2 }
 0x1af   :  { %v599_v36 = vadd.f32 %v598_v8, %v597_v5  ;;  %v620_v37 = vadd.f32 %v619_v33, %v618_v31 }
 0x1b1   :  { %v600_v44 = vrot.slane %v599_v36, 1  ;;  %v621_v45 = vrot.slane %v620_v37, 1 }
 0x1b3   :  { %v601_v1 = vadd.f32 %v600_v44, %v599_v36  ;;  %v622_v47 = vadd.f32 %v621_v45, %v620_v37 }
 0x1b5   :  { %v623_v50 = vadd.f32 %v622_v47, %v601_v1 }
 0x1b7   :  { %v6680_v52 = vmul.f32 %v6677_v48, %v623_v50 }
 0x1b9   :  { %v632_v16 = vsub.f32 %v6617_v40, %v6680_v52  ;;  %v633_v53 = vsub.f32 %v6613_v38, %v6680_v52  ;;  %v634_v54 = vsub.f32 %v6621_v43, %v6680_v52  ;;  %v635_v55 = vsub.f32 %v6629_v46, %v6680_v52 }
 0x1ba   :  { %v636_v58 = vsub.f32 %v6641_v51, %v6680_v52  ;;  %v637_v63 = vsub.f32 %v6649_v26, %v6680_v52  ;;  %v638_v35 = vsub.f32 %v6657_v2, %v6680_v52  ;;  %v669_v12 = vsub.f32 %v6619_v41, %v6680_v52 }
 0x1bb   :  { %v640_v59 = vmul.f32 %v632_v16, %v632_v16  ;;  %v641_v61 = vmul.f32 %v633_v53, %v633_v53  ;;  %v642_v62 = vmul.f32 %v634_v54, %v634_v54  ;;  %v643_v27 = vmul.f32 %v635_v55, %v635_v55 }
 0x1bc   :  { %v644_v9 = vmul.f32 %v636_v58, %v636_v58  ;;  %v670_v14 = vsub.f32 %v6615_v39, %v6680_v52  ;;  %v671_v42 = vsub.f32 %v6623_v6, %v6680_v52  ;;  %v639_v49 = vsub.f32 %v6669_v19, %v6680_v52 }
 0x1bd   :  { %v648_v4 = vsel %vm579_vm5, %v640_v59, 0.0  ;;  %v649_v34 = vsel %vm579_vm5, %v641_v61, 0.0  ;;  %v651_v11 = vsel %vm579_vm5, %v642_v62, 0.0  ;;  %v672_v17 = vsub.f32 %v6631_v7, %v6680_v52 }
 0x1be   :  { %v650_v10 = vadd.f32 %v649_v34, %v648_v4  ;;  %v645_v18 = vmul.f32 %v637_v63, %v637_v63  ;;  %v653_v56 = vsel %vm579_vm5, %v643_v27, 0.0  ;;  %v677_v21 = vmul.f32 %v669_v12, %v669_v12 }
 0x1bf   :  { %v678_v22 = vmul.f32 %v670_v14, %v670_v14  ;;  %v673_v57 = vsub.f32 %v6643_v13, %v6680_v52  ;;  %v679_v24 = vmul.f32 %v671_v42, %v671_v42  ;;  %v646_v25 = vmul.f32 %v638_v35, %v638_v35 }
 0x1c0   :  { %v652_v15 = vadd.f32 %v651_v11, %v650_v10  ;;  %v655_v28 = vsel %vm579_vm5, %v644_v9, 0.0  ;;  %v685_v29 = vsel %vm579_vm5, %v677_v21, 0.0  ;;  %v674_v5 = vsub.f32 %v6651_v60, %v6680_v52 }
 0x1c1   :  { %v680_v31 = vmul.f32 %v672_v17, %v672_v17  ;;  %v686_v32 = vsel %vm579_vm5, %v678_v22, 0.0  ;;  %v647_v8 = vmul.f32 %v639_v49, %v639_v49  ;;  %v657_v33 = vsel %vm579_vm5, %v645_v18, 0.0 }
 0x1c2   :  { %v654_v23 = vadd.f32 %v653_v56, %v652_v15  ;;  %v687_v36 = vadd.f32 %v686_v32, %v685_v29  ;;  %v675_v0 = vsub.f32 %v6659_v3, %v6680_v52  ;;  %v681_v44 = vmul.f32 %v673_v57, %v673_v57 }
 0x1c3   :  { %v688_v45 = vsel %vm579_vm5, %v679_v24, 0.0  ;;  %v659_v1 = vsel %vm579_vm5, %v646_v25, 0.0  ;;  %v676_v16 = vsub.f32 %v6671_v20, %v6680_v52  ;;  %v682_v53 = vmul.f32 %v674_v5, %v674_v5 }
 0x1c4   :  { %v656_v30 = vadd.f32 %v655_v28, %v654_v23  ;;  %v689_v47 = vadd.f32 %v688_v45, %v687_v36  ;;  %v690_v54 = vsel %vm579_vm5, %v680_v31, 0.0  ;;  %v661_v55 = vsel %vm593_vm6, %v647_v8, 0.0  ;;  %v577_v8 = vld [vmem:[%s6182_s21] sm:$0x1]  ;;  %s9254_s21 = sld [smem:[#allocation10_spill]] }
 0x1c5   :  { %v683_v61 = vmul.f32 %v675_v0, %v675_v0  ;;  %v692_v62 = vsel %vm579_vm5, %v681_v44, 0.0  ;;  %v684_v4 = vmul.f32 %v676_v16, %v676_v16  ;;  %v694_v34 = vsel %vm579_vm5, %v682_v53, 0.0  ;;  %v578_v0 = vld [vmem:[%s6187_s25] sm:$0x1]  ;;  %s6146_s25 = smov 96  }
 0x1c6   :  { %v658_v37 = vadd.f32 %v657_v33, %v656_v30  ;;  %v691_v58 = vadd.f32 %v690_v54, %v689_v47 }
 0x1c7   :  { %v696_v10 = vsel %vm579_vm5, %v683_v61, 0.0  ;;  %v698_v14 = vsel %vm593_vm6, %v684_v4, 0.0 }
 0x1c8   :  { %v660_v50 = vadd.f32 %v659_v1, %v658_v37  ;;  %v693_v63 = vadd.f32 %v692_v62, %v691_v58 }
 0x1ca   :  { %v662_v59 = vadd.f32 %v661_v55, %v660_v50  ;;  %v695_v35 = vadd.f32 %v694_v34, %v693_v63 }
 0x1cc   :  { %v663_v27 = vrot.slane %v662_v59, 4  ;;  %v697_v11 = vadd.f32 %v696_v10, %v695_v35 }
 0x1ce   :  { %v664_v9 = vadd.f32 %v663_v27, %v662_v59  ;;  %v699_v42 = vadd.f32 %v698_v14, %v697_v11 }
 0x1d0   :  { %v665_v12 = vrot.slane %v664_v9, 2  ;;  %v700_v15 = vrot.slane %v699_v42, 4 }
 0x1d2   :  { %v666_v49 = vadd.f32 %v665_v12, %v664_v9  ;;  %v701_v17 = vadd.f32 %v700_v15, %v699_v42 }
 0x1d4   :  { %v667_v18 = vrot.slane %v666_v49, 1  ;;  %v702_v56 = vrot.slane %v701_v17, 2 }
 0x1d6   :  { %v703_v21 = vadd.f32 %v702_v56, %v701_v17  ;;  %v668_v22 = vadd.f32 %v667_v18, %v666_v49 }
 0x1d8   :  { %v704_v23 = vrot.slane %v703_v21, 1 }
 0x1da   :  { %v705_v57 = vadd.f32 %v704_v23, %v703_v21 }
 0x1dc   :  { %v706_v24 = vadd.f32 %v705_v57, %v668_v22 }
 0x1de   :  { %v707_v25 = vmul.f32 %v706_v24, %v6677_v48 }
 0x1e0   :  { %v708_v28 = vadd.f32 1e-05, %v707_v25 }
 0x1e2   :  { %6009 = vrsqrt.f32 %v708_v28  ;;  %vm715_vm9 = vweird.f32 %v708_v28 }
 0x1e8   :  { %v6010_v29 = vpop.eup %6009 }
 0x1e9   :  { %v710_v30 = vmul.f32 %v6010_v29, %v708_v28  ;;  %vm716_vm8 = vweird.f32 %v6010_v29 }
 0x1ea   :  { %vm717_vm10 = vmor %vm715_vm9, %vm716_vm8 }
 0x1eb   :  { %v711_v5 = vmul.f32 %v6010_v29, %v710_v30 }
 0x1ed   :  { %v712_v31 = vmul.f32 0.5, %v711_v5 }
 0x1ef   :  { %v713_v32 = vsub.f32 1.5, %v712_v31 }
 0x1f1   :  { %v714_v33 = vmul.f32 %v6010_v29, %v713_v32 }
 0x1f3   :  { %v718_v36 = vsel %vm717_vm10, %v6010_v29, %v714_v33 }
 0x1f4   :  { %v719_v37 = vmul.f32 %v718_v36, %v577_v8 }
 0x1f6   :  { %v720_v44 = vmul.f32 %v719_v37, %v6680_v52  ;;  %v6734_v45 = vperm.slane %v719_v37, 0 }
 0x1f8   :  { %v721_v48 = vsub.f32 %v578_v0, %v720_v44  ;;  %v775_v1 = vmul.f32 %v6734_v45, %v6671_v20  ;;  %v768_v50 = vmul.f32 %v6734_v45, %v6619_v41  ;;  %v769_v16 = vmul.f32 %v6734_v45, %v6615_v39 }
 0x1f9   :  { %v725_v53 = vmul.f32 %v6734_v45, %v6617_v40  ;;  %v726_v52 = vmul.f32 %v6734_v45, %v6613_v38  ;;  %v727_v54 = vmul.f32 %v6734_v45, %v6621_v43  ;;  %v770_v20 = vmul.f32 %v6734_v45, %v6623_v6 }
 0x1fa   :  { %v6738_v47 = vperm.slane %v721_v48, 0  ;;  %v728_v17 = vmul.f32 %v6734_v45, %v6629_v46  ;;  %v771_v30 = vmul.f32 %v6734_v45, %v6631_v7  ;;  %v772_v0 = vmul.f32 %v6734_v45, %v6643_v13 }
 0x1fb   :  { %v729_v48 = vmul.f32 %v6734_v45, %v6641_v51 }
 0x1fc   :  { %v6753_v55 = vadd.f32 %v775_v1, %v6738_v47  ;;  %v776_v41 = vadd.f32 %v768_v50, %v6738_v47  ;;  %v777_v58 = vadd.f32 %v769_v16, %v6738_v47  ;;  %v736_v39 = vadd.f32 %v6738_v47, %v725_v53 }
 0x1fd   :  { %v737_v40 = vadd.f32 %v6738_v47, %v726_v52  ;;  %v738_v59 = vadd.f32 %v6738_v47, %v727_v54  ;;  %v778_v38 = vadd.f32 %v770_v20, %v6738_v47  ;;  %v739_v23 = vadd.f32 %v6738_v47, %v728_v17 }
 0x1fe   :  { %vm784_vm11 = vcmp.ge.f32.partialorder %v776_v41, 0.0  ;;  %vm785_vm12 = vcmp.ge.f32.partialorder %v777_v58, 0.0  ;;  %v792_v43 = vmul.f32 0.2, %v776_v41  ;;  %v793_v61 = vmul.f32 0.2, %v777_v58 }
 0x1ff   :  { %vm744_vm13 = vcmp.ge.f32.partialorder %v736_v39, 0.0  ;;  %vm745_vm14 = vcmp.ge.f32.partialorder %v737_v40, 0.0  ;;  %v752_v6 = vmul.f32 0.2, %v736_v39  ;;  %v753_v62 = vmul.f32 0.2, %v737_v40 }
 0x200   :  { %v6761_v63 = vsel %vm784_vm11, %v776_v41, %v792_v43  ;;  %v6763_v27 = vsel %vm785_vm12, %v777_v58, %v793_v61  ;;  %vm746_vm15 = vcmp.ge.f32.partialorder %v738_v59, 0.0  ;;  %v754_v4 = vmul.f32 0.2, %v738_v59 }
 0x201   :  { %v987_v34 = vrot.slane %v6761_v63, 1  ;;  %v988_v35 = vrot.slane %v6763_v27, 1  ;;  %v6767_v9 = vsel %vm744_vm13, %v736_v39, %v752_v6  ;;  %v6769_v10 = vsel %vm745_vm14, %v737_v40, %v753_v62 }
 0x202   :  { %v865_v11 = vrot.slane %v6767_v9, 2  ;;  %v866_v12 = vrot.slane %v6769_v10, 2  ;;  %v829_v14 = vrot.slane %v6767_v9, 1  ;;  %v830_v42 = vrot.slane %v6769_v10, 1 }
 0x203   :  { %v989_v49 = vsel %vm240_vm1, %v987_v34, %v988_v35  ;;  %vm786_vm3 = vcmp.ge.f32.partialorder %v778_v38, 0.0  ;;  %v794_v15 = vmul.f32 0.2, %v778_v38  ;;  %v6782_v21 = vsel %vm746_vm15, %v738_v59, %v754_v4 }
 0x204   :  { %1002 = vrot.lane.b32.xlu0 %v989_v49, %s6142_s5  ;;  %v867_v18 = vsel %vm280_vm0, %v865_v11, %v866_v12  ;;  %v831_v56 = vsel %vm240_vm1, %v829_v14, %v830_v42  ;;  %v832_v46 = vrot.slane %v6782_v21, 1  ;;  %v1023_v24 = vrot.slane %v6761_v63, 2 }
 0x205   :  { %880 = vrot.lane.b32.xlu1 %v867_v18, %s6143_s13  ;;  %844 = vrot.lane.b32.xlu2 %v831_v56, %s6142_s5  ;;  %v6786_v22 = vsel %vm786_vm3, %v778_v38, %v794_v15  ;;  %v1024_v25 = vrot.slane %v6763_v27, 2  ;;  %v755_v28 = vmul.f32 0.2, %v739_v23  ;;  %vm747_vm4 = vcmp.ge.f32.partialorder %v739_v23, 0.0 }
 0x206   :  { %v990_v57 = vrot.slane %v6786_v22, 1  ;;  %v833_v29 = vsel %vm240_vm1, %v830_v42, %v832_v46  ;;  %v779_v8 = vadd.f32 %v771_v30, %v6738_v47  ;;  %v1026_v33 = vrot.slane %v6786_v22, 2 }
 0x207   :  { %v1025_v31 = vsel %vm280_vm0, %v1023_v24, %v1024_v25  ;;  %v6801_v32 = vsel %vm747_vm4, %v739_v23, %v755_v28  ;;  %v868_v7 = vrot.slane %v6782_v21, 2  ;;  %v780_v16 = vadd.f32 %v772_v0, %v6738_v47 }
 0x208   :  { %v991_v5 = vsel %vm240_vm1, %v988_v35, %v990_v57  ;;  %v834_v36 = vrot.slane %v6801_v32, 1  ;;  %v795_v37 = vmul.f32 0.2, %v779_v8  ;;  %vm787_vm7 = vcmp.ge.f32.partialorder %v779_v8, 0.0 }
 0x209   :  { %v1027_v44 = vsel %vm280_vm0, %v1024_v25, %v1026_v33  ;;  %v869_v50 = vsel %vm280_vm0, %v866_v12, %v868_v7  ;;  %v732_v53 = vmul.f32 %v6734_v45, %v6669_v19  ;;  %v740_v52 = vadd.f32 %v6738_v47, %v729_v48 }
 0x20a   :  { %v835_v1 = vsel %vm240_vm1, %v832_v46, %v834_v36  ;;  %v6820_v13 = vsel %vm787_vm7, %v779_v8, %v795_v37  ;;  %v870_v54 = vrot.slane %v6801_v32, 2  ;;  %v796_v58 = vmul.f32 0.2, %v780_v16 }
 0x20b   :  { %v6824_v51 = vadd.f32 %v6738_v47, %v732_v53  ;;  %v1028_v20 = vrot.slane %v6820_v13, 2  ;;  %v992_v41 = vrot.slane %v6820_v13, 1  ;;  %vm788_vm8 = vcmp.ge.f32.partialorder %v780_v16, 0.0 }
 0x20c   :  { %846 = vrot.lane.b32.xlu0 %v833_v29, %s6142_s5  ;;  %v756_v19 = vmul.f32 0.2, %v740_v52  ;;  %vm748_vm9 = vcmp.ge.f32.partialorder %v740_v52, 0.0  ;;  %v730_v39 = vmul.f32 %v6734_v45, %v6649_v26  ;;  %v871_v40 = vsel %vm280_vm0, %v868_v7, %v870_v54 }
 0x20d   :  { %1004 = vrot.lane.b32.xlu1 %v991_v5, %s6142_s5  ;;  %1038 = vrot.lane.b32.xlu2 %v1025_v31, %s6143_s13  ;;  %v773_v59 = vmul.f32 %v6734_v45, %v6651_v60  ;;  %v1029_v38 = vsel %vm280_vm0, %v1026_v33, %v1028_v20  ;;  %v993_v43 = vsel %vm240_vm1, %v990_v57, %v992_v41  ;;  %vm791_vm14 = vcmp.ge.f32.partialorder %v6753_v55, 0.0 }
 0x20e   :  { %v6837_v61 = vsel %vm788_vm8, %v780_v16, %v796_v58  ;;  %v741_v6 = vadd.f32 %v6738_v47, %v730_v39  ;;  %v6842_v26 = vsel %vm748_vm9, %v740_v52, %v756_v19  ;;  %v731_v14 = vmul.f32 %v6734_v45, %v6657_v2  ;;  %v819_v58 = vld [vmem:[%s6192_s29 + $0x58] sm:$0xff]  ;;  %v818_v19 = vld [vmem:[%s6192_s29 + $0x50] sm:$0xff] }
 0x20f   :  { %v781_v62 = vadd.f32 %v773_v59, %v6738_v47  ;;  %v994_v60 = vrot.slane %v6837_v61, 1  ;;  %v872_v4 = vrot.slane %v6842_v26, 2  ;;  %v836_v34 = vrot.slane %v6842_v26, 1  ;;  %945 = vmatpush.msra.mxu2 %v819_v58  ;;  %1098 = vmatpush.msra.mxu3 %v819_v58  ;;  %v816_v59 = vld [vmem:[%s6192_s29 + $0x40] sm:$0xff] }
 0x210   :  { %v757_v35 = vmul.f32 0.2, %v741_v6  ;;  %vm749_vm10 = vcmp.ge.f32.partialorder %v741_v6, 0.0  ;;  %v742_v18 = vadd.f32 %v6738_v47, %v731_v14  ;;  %v1030_v23 = vrot.slane %v6837_v61, 2 }
 0x211   :  { %v797_v11 = vmul.f32 0.2, %v781_v62  ;;  %vm789_vm11 = vcmp.ge.f32.partialorder %v781_v62, 0.0  ;;  %v995_v12 = vsel %vm240_vm1, %v992_v41, %v994_v60  ;;  %v873_v42 = vsel %vm280_vm0, %v870_v54, %v872_v4  ;;  %946 = vmatpush.msra.mxu2 %v818_v19  ;;  %1099 = vmatpush.msra.mxu3 %v818_v19 }
 0x212   :  { %v837_v49 = vsel %vm240_vm1, %v834_v36, %v836_v34  ;;  %v6854_v15 = vsel %vm749_vm10, %v741_v6, %v757_v35  ;;  %v758_v46 = vmul.f32 0.2, %v742_v18  ;;  %vm750_vm12 = vcmp.ge.f32.partialorder %v742_v18, 0.0  ;;  %v814_v6 = vld [vmem:[%s6192_s29 + $0x30] sm:$0xff] }
 0x213   :  { %v6858_v17 = vsel %vm789_vm11, %v781_v62, %v797_v11  ;;  %v838_v56 = vrot.slane %v6854_v15, 1  ;;  %v774_v24 = vmul.f32 %v6734_v45, %v6659_v3  ;;  %v1031_v28 = vsel %vm280_vm0, %v1028_v20, %v1030_v23  ;;  %v813_v62 = vld [vmem:[%s6192_s29 + $0x28] sm:$0xff]  ;;  %v810_v35 = vld [vmem:[%s6192_s29 + $0x10] sm:$0xff] }
 0x214   :  { %1040 = vrot.lane.b32.xlu0 %v1027_v44, %s6143_s13  ;;  %v996_v2 = vrot.slane %v6858_v17, 1  ;;  %v6872_v29 = vsel %vm750_vm12, %v742_v18, %v758_v46  ;;  %v1032_v5 = vrot.slane %v6858_v17, 2  ;;  %v874_v3 = vrot.slane %v6854_v15, 2  ;;  %v809_v11 = vld [vmem:[%s6192_s29 + $0x8] sm:$0xff] }
 0x215   :  { %848 = vrot.lane.b32.xlu1 %v835_v1, %s6142_s5  ;;  %882 = vrot.lane.b32.xlu2 %v869_v50, %s6143_s13  ;;  %v839_v57 = vsel %vm240_vm1, %v836_v34, %v838_v56  ;;  %v782_v30 = vadd.f32 %v774_v24, %v6738_v47  ;;  %v840_v31 = vrot.slane %v6872_v29, 1  ;;  %v876_v7 = vrot.slane %v6872_v29, 2  ;;  %v811_v34 = vld [vmem:[%s6192_s29 + $0x18] sm:$0xff] }
 0x216   :  { %v997_v25 = vsel %vm240_vm1, %v994_v60, %v996_v2  ;;  %v1033_v8 = vsel %vm280_vm0, %v1030_v23, %v1032_v5  ;;  %v875_v36 = vsel %vm280_vm0, %v872_v4, %v874_v3  ;;  %v799_v44 = vmul.f32 0.2, %v6753_v55  ;;  %v812_v4 = vld [vmem:[%s6192_s29 + $0x20] sm:$0xff] }
 0x217   :  { %v798_v45 = vmul.f32 0.2, %v782_v30  ;;  %vm790_vm13 = vcmp.ge.f32.partialorder %v782_v30, 0.0  ;;  %v841_v33 = vsel %vm240_vm1, %v838_v56, %v840_v31  ;;  %v759_v48 = vmul.f32 0.2, %v6824_v51 }
 0x218   :  { %vm751_vm15 = vcmp.ge.f32.partialorder %v6824_v51, 0.0  ;;  %v877_v1 = vsel %vm280_vm0, %v874_v3, %v876_v7  ;;  %v807_v53 = vsel %vm791_vm14, %v6753_v55, %v799_v44  ;;  %v817_v55 = vld [vmem:[%s6192_s29 + $0x48] sm:$0xff]  ;;  %vm908_vm3 = vcmask 523264  }
 0x219   :  { %v6884_v47 = vsel %vm790_vm13, %v782_v30, %v798_v45  ;;  %v767_v52 = vsel %vm751_vm15, %v6824_v51, %v759_v48  ;;  %v1000_v54 = vrot.slane %v807_v53, 1  ;;  %947 = vmatpush.msra.mxu2 %v817_v55  ;;  %1100 = vmatpush.msra.mxu3 %v817_v55  ;;  %vm919_vm4 = vcmask 785408  }
 0x21a   :  { %v1034_v37 = vrot.slane %v6884_v47, 2  ;;  %v998_v0 = vrot.slane %v6884_v47, 1  ;;  %v878_v20 = vrot.slane %v767_v52, 2  ;;  %v842_v41 = vrot.slane %v767_v52, 1 }
 0x21b   :  { %948 = vmatpush.msra.mxu2 %v816_v59  ;;  %1101 = vmatpush.msra.mxu3 %v816_v59  ;;  %vm1433_vm11 = vcmask 1044480  }
 0x21c   :  { %884 = vrot.lane.b32.xlu0 %v871_v40, %s6143_s13  ;;  %v1035_v50 = vsel %vm280_vm0, %v1032_v5, %v1034_v37  ;;  %v999_v16 = vsel %vm240_vm1, %v996_v2, %v998_v0  ;;  %v1001_v39 = vsel %vm240_vm1, %v998_v0, %v1000_v54  ;;  %v879_v51 = vsel %vm280_vm0, %v876_v7, %v878_v20 }
 0x21d   :  { %1042 = vrot.lane.b32.xlu1 %v1029_v38, %s6143_s13  ;;  %1006 = vrot.lane.b32.xlu2 %v993_v43, %s6142_s5  ;;  %v843_v40 = vsel %vm240_vm1, %v840_v31, %v842_v41  ;;  %v815_v38 = vld [vmem:[%s6192_s29 + $0x38] sm:$0xff]  ;;  %v1036_v43 = vrot.slane %v807_v53, 2 }
 0x21e   :  { %949 = vmatpush.msra.mxu2 %v815_v38  ;;  %1102 = vmatpush.msra.mxu3 %v815_v38 }
 0x21f   :  { %v1037_v60 = vsel %vm280_vm0, %v1034_v37, %v1036_v43 }
 0x220   :  { %950 = vmatpush.msra.mxu2 %v814_v6  ;;  %1103 = vmatpush.msra.mxu3 %v814_v6 }
 0x222   :  { %951 = vmatpush.msra.mxu2 %v813_v62  ;;  %1104 = vmatpush.msra.mxu3 %v813_v62 }
 0x224   :  { %1008 = vrot.lane.b32.xlu0 %v995_v12, %s6142_s5  ;;  %952 = vmatpush.msra.mxu2 %v812_v4  ;;  %v808_v12 = vld [vmem:[%s6192_s29] sm:$0xff]  ;;  %s9255_s29 = sld [smem:[#allocation11_spill]] }
 0x225   :  { %886 = vrot.lane.b32.xlu1 %v873_v42, %s6143_s13  ;;  %850 = vrot.lane.b32.xlu2 %v837_v49, %s6142_s5 }
 0x226   :  { %1105 = vmatpush.msra.mxu3 %v812_v4  ;;  %953 = vmatpush.msra.mxu2 %v811_v34 }
 0x228   :  { %1106 = vmatpush.msra.mxu3 %v811_v34  ;;  %954 = vmatpush.msra.mxu2 %v810_v35 }
 0x22a   :  { %1107 = vmatpush.msra.mxu3 %v810_v35  ;;  %955 = vmatpush.msra.mxu2 %v809_v11 }
 0x22c   :  { %852 = vrot.lane.b32.xlu0 %v839_v57, %s6142_s5  ;;  %1108 = vmatpush.msra.mxu3 %v809_v11 }
 0x22d   :  { %1010 = vrot.lane.b32.xlu1 %v997_v25, %s6142_s5  ;;  %1044 = vrot.lane.b32.xlu2 %v1031_v28, %s6143_s13 }
 0x22e   :  { %956 = vmatpush.msra.mxu2 %v808_v12  ;;  %1109 = vmatpush.msra.mxu3 %v808_v12 }
 0x234   :  { %1046 = vrot.lane.b32.xlu0 %v1033_v8, %s6143_s13 }
 0x235   :  { %854 = vrot.lane.b32.xlu1 %v841_v33, %s6142_s5  ;;  %888 = vrot.lane.b32.xlu2 %v875_v36, %s6143_s13 }
 0x23c   :  { %890 = vrot.lane.b32.xlu0 %v877_v1, %s6143_s13 }
 0x23d   :  { %1048 = vrot.lane.b32.xlu1 %v1035_v50, %s6143_s13  ;;  %1012 = vrot.lane.b32.xlu2 %v999_v16, %s6142_s5 }
 0x244   :  { %1014 = vrot.lane.b32.xlu0 %v1001_v39, %s6142_s5 }
 0x245   :  { %892 = vrot.lane.b32.xlu1 %v879_v51, %s6143_s13  ;;  %856 = vrot.lane.b32.xlu2 %v843_v40, %s6142_s5 }
 0x24d   :  { %1050 = vrot.lane.b32.xlu2 %v1037_v60, %s6143_s13 }
 0x25f   :  { %v845_v14 = vpop.permute.xlu2 %844 }
 0x260   :  { %v901_v56 = vsel %vm579_vm5, %v6767_v9, %v845_v14 }
 0x267   :  { %v1039_v42 = vpop.permute.xlu2 %1038 }
 0x26f   :  { %v883_v49 = vpop.permute.xlu2 %882 }
 0x276   :  { %v1003_v18 = vpop.permute.xlu0 %1002 }
 0x277   :  { %v1059_v2 = vsel %vm579_vm5, %v6761_v63, %v1003_v18  ;;  %v881_v23 = vpop.permute.xlu1 %880  ;;  %v1007_v24 = vpop.permute.xlu2 %1006 }
 0x278   :  { %v909_v46 = vsel %vm908_vm3, %v901_v56, %v881_v23  ;;  %v1066_v57 = vsel %vm908_vm3, %v1059_v2, %v1039_v42 }
 0x279   :  { %5592 = vmatmul.msk.f32.vlgmr.msra.gmra.mxu2 %vm919_vm4, %v909_v46  ;;  %5599 = vmatmul.msk.f32.vlgmr.msra.gmra.mxu3 %vm919_vm4, %v1066_v57 }
 0x27e   :  { %v847_v25 = vpop.permute.xlu0 %846 }
 0x27f   :  { %v902_v28 = vsel %vm579_vm5, %v6769_v10, %v847_v25  ;;  %v1005_v30 = vpop.permute.xlu1 %1004  ;;  %v851_v63 = vpop.permute.xlu2 %850  ;;  %v1061_v10 = vsel %vm579_vm5, %v6786_v22, %v1007_v24 }
 0x280   :  { %v910_v9 = vsel %vm908_vm3, %v902_v28, %v883_v49  ;;  %v1060_v5 = vsel %vm579_vm5, %v6763_v27, %v1005_v30  ;;  %v904_v44 = vsel %vm579_vm5, %v6801_v32, %v851_v63  ;;  %v5990_v49 = vld [vmem:[%s6197_s3] ss:$0 sm:$0xff]  ;;  %s9256_s3 = sld [smem:[#allocation14_spill]] }
 0x281   :  { %5593 = vmatmul.msk.f32.gmra.mxu2 %vm919_vm4, %v910_v9 }
 0x286   :  { %v1041_v31 = vpop.permute.xlu0 %1040 }
 0x287   :  { %v849_v3 = vpop.permute.xlu1 %848  ;;  %v1067_v45 = vsel %vm908_vm3, %v1060_v5, %v1041_v31  ;;  %v1045_v36 = vpop.permute.xlu2 %1044 }
 0x288   :  { %5600 = vmatmul.msk.f32.gmra.mxu3 %vm919_vm4, %v1067_v45  ;;  %v903_v8 = vsel %vm579_vm5, %v6782_v21, %v849_v3  ;;  %v6144_v3 = vmov 112.0  }
 0x289   :  { %6011 = vrcp.f32 %v6144_v3 }
 0x28e   :  { %v885_v33 = vpop.permute.xlu0 %884 }
 0x28f   :  { %v1043_v7 = vpop.permute.xlu1 %1042  ;;  %v911_v37 = vsel %vm908_vm3, %v903_v8, %v885_v33  ;;  %v889_v50 = vpop.permute.xlu2 %888 }
 0x290   :  { %5594 = vmatmul.msk.f32.gmra.mxu2 %vm919_vm4, %v911_v37  ;;  %v1068_v27 = vsel %vm908_vm3, %v1061_v10, %v1043_v7 }
 0x291   :  { %5601 = vmatmul.msk.f32.gmra.mxu3 %vm919_vm4, %v1068_v27 }
 0x296   :  { %v1009_v0 = vpop.permute.xlu0 %1008 }
 0x297   :  { %v1062_v21 = vsel %vm579_vm5, %v6820_v13, %v1009_v0  ;;  %v887_v48 = vpop.permute.xlu1 %886  ;;  %v1013_v13 = vpop.permute.xlu2 %1012 }
 0x298   :  { %v912_v22 = vsel %vm908_vm3, %v904_v44, %v887_v48  ;;  %v1069_v1 = vsel %vm908_vm3, %v1062_v21, %v1045_v36  ;;  %v1064_v55 = vsel %vm579_vm5, %v6858_v17, %v1013_v13 }
 0x299   :  { %5595 = vmatmul.msk.f32.gmra.mxu2 %vm919_vm4, %v912_v22  ;;  %5602 = vmatmul.msk.f32.gmra.mxu3 %vm919_vm4, %v1069_v1 }
 0x29e   :  { %v853_v16 = vpop.permute.xlu0 %852 }
 0x29f   :  { %v905_v53 = vsel %vm579_vm5, %v6842_v26, %v853_v16  ;;  %v1011_v52 = vpop.permute.xlu1 %1010  ;;  %v857_v19 = vpop.permute.xlu2 %856 }
 0x2a0   :  { %v913_v32 = vsel %vm908_vm3, %v905_v53, %v889_v50  ;;  %v1063_v54 = vsel %vm579_vm5, %v6837_v61, %v1011_v52  ;;  %v907_v38 = vsel %vm579_vm5, %v6872_v29, %v857_v19  ;;  %v6012_v50 = vpop.eup %6011 }
 0x2a1   :  { %5596 = vmatmul.msk.f32.gmra.mxu2 %vm919_vm4, %v913_v32  ;;  %vm1178_vm7 = vweird.f32 %v6012_v50 }
 0x2a6   :  { %v1047_v20 = vpop.permute.xlu0 %1046 }
 0x2a7   :  { %v855_v41 = vpop.permute.xlu1 %854  ;;  %v1070_v58 = vsel %vm908_vm3, %v1063_v54, %v1047_v20  ;;  %v1051_v43 = vpop.permute.xlu2 %1050 }
 0x2a8   :  { %5603 = vmatmul.msk.f32.gmra.mxu3 %vm919_vm4, %v1070_v58  ;;  %v906_v39 = vsel %vm579_vm5, %v6854_v15, %v855_v41 }
 0x2ae   :  { %v891_v26 = vpop.permute.xlu0 %890 }
 0x2af   :  { %v1049_v51 = vpop.permute.xlu1 %1048  ;;  %v914_v40 = vsel %vm908_vm3, %v906_v39, %v891_v26  ;;  %v1174_v39 = vmul.f32 112.0, %v6012_v50 }
 0x2b0   :  { %5597 = vmatmul.msk.f32.gmra.mxu2 %vm919_vm4, %v914_v40  ;;  %v1071_v61 = vsel %vm908_vm3, %v1064_v55, %v1049_v51 }
 0x2b1   :  { %5604 = vmatmul.msk.f32.gmra.mxu3 %vm919_vm4, %v1071_v61 }
 0x2b6   :  { %v1015_v59 = vpop.permute.xlu0 %1014 }
 0x2b7   :  { %v1065_v15 = vsel %vm579_vm5, %v6884_v47, %v1015_v59  ;;  %v893_v6 = vpop.permute.xlu1 %892 }
 0x2b8   :  { %v915_v17 = vsel %vm908_vm3, %v907_v38, %v893_v6  ;;  %v1072_v62 = vsel %vm908_vm3, %v1065_v15, %v1051_v43  ;;  %v1175_v38 = vsub.f32 1.0, %v1174_v39 }
 0x2b9   :  { %5598 = vmatmul.msk.f32.gmra.mxu2 %vm919_vm4, %v915_v17  ;;  %5605 = vmatmul.msk.f32.gmra.mxu3 %vm919_vm4, %v1072_v62 }
 0x2ba   :  { %v1176_v62 = vmul.f32 %v6012_v50, %v1175_v38 }
 0x2fc   :  { %v958_v60 = vpop.f32.mrf.mxu2  ;;  %v1111_v4 = vpop.f32.mrf.mxu3 }
 0x2fd   :  { %v6982_v2 = vadd.f32 %v5990_v49, %v958_v60  ;;  %v6984_v23 = vadd.f32 %v5990_v49, %v1111_v4 }
 0x2ff   :  { %v1134_v63 = vsel %vm908_vm3, %v6982_v2, 0.0  ;;  %v1153_v5 = vsel %vm908_vm3, %v6984_v23, 0.0 }
 0x304   :  { %v961_v34 = vpop.f32.mrf.mxu2 }
 0x305   :  { %v6978_v18 = vadd.f32 %v5990_v49, %v961_v34 }
 0x307   :  { %v1135_v24 = vsel %vm908_vm3, %v6978_v18, 0.0 }
 0x308   :  { %v1136_v36 = vadd.f32 %v1135_v24, %v1134_v63 }
 0x30b   :  { %v1114_v35 = vpop.f32.mrf.mxu3 }
 0x30c   :  { %v6980_v56 = vadd.f32 %v5990_v49, %v1114_v35 }
 0x30e   :  { %v1154_v25 = vsel %vm908_vm3, %v6980_v56, 0.0 }
 0x30f   :  { %v1155_v7 = vadd.f32 %v1154_v25, %v1153_v5 }
 0x313   :  { %v964_v11 = vpop.f32.mrf.mxu2 }
 0x314   :  { %v1117_v29 = vpop.f32.mrf.mxu3  ;;  %v6986_v46 = vadd.f32 %v5990_v49, %v964_v11  ;;  %v1177_v11 = vadd.f32 %v6012_v50, %v1176_v62 }
 0x315   :  { %v6988_v57 = vadd.f32 %v5990_v49, %v1117_v29 }
 0x316   :  { %v1137_v45 = vsel %vm908_vm3, %v6986_v46, 0.0 }
 0x317   :  { %v1156_v8 = vsel %vm908_vm3, %v6988_v57, 0.0  ;;  %v1138_v21 = vadd.f32 %v1137_v45, %v1136_v36 }
 0x318   :  { %v1157_v48 = vadd.f32 %v1156_v8, %v1155_v7 }
 0x31c   :  { %v967_v12 = vpop.f32.mrf.mxu2  ;;  %v1120_v14 = vpop.f32.mrf.mxu3 }
 0x31d   :  { %v6994_v28 = vadd.f32 %v5990_v49, %v967_v12  ;;  %v6996_v30 = vadd.f32 %v5990_v49, %v1120_v14 }
 0x31f   :  { %v1139_v37 = vsel %vm908_vm3, %v6994_v28, 0.0  ;;  %v1158_v27 = vsel %vm908_vm3, %v6996_v30, 0.0 }
 0x320   :  { %v1140_v16 = vadd.f32 %v1139_v37, %v1138_v21  ;;  %v1159_v53 = vadd.f32 %v1158_v27, %v1157_v48 }
 0x324   :  { %v970_v42 = vpop.f32.mrf.mxu2 }
 0x325   :  { %v7006_v33 = vadd.f32 %v5990_v49, %v970_v42 }
 0x327   :  { %v1141_v22 = vsel %vm908_vm3, %v7006_v33, 0.0 }
 0x328   :  { %v1142_v13 = vadd.f32 %v1141_v22, %v1140_v16 }
 0x32b   :  { %v1123_v47 = vpop.f32.mrf.mxu3 }
 0x32c   :  { %v7008_v10 = vadd.f32 %v5990_v49, %v1123_v47  ;;  %v7034_v47 = vsel %vm1178_vm7, %v6012_v50, %v1177_v11 }
 0x32e   :  { %v1160_v1 = vsel %vm908_vm3, %v7008_v10, 0.0 }
 0x32f   :  { %v1161_v54 = vadd.f32 %v1160_v1, %v1159_v53 }
 0x333   :  { %v973_v9 = vpop.f32.mrf.mxu2 }
 0x334   :  { %v1126_v31 = vpop.f32.mrf.mxu3  ;;  %v7014_v0 = vadd.f32 %v5990_v49, %v973_v9 }
 0x335   :  { %v7016_v44 = vadd.f32 %v5990_v49, %v1126_v31 }
 0x336   :  { %v1143_v52 = vsel %vm908_vm3, %v7014_v0, 0.0 }
 0x337   :  { %v1162_v32 = vsel %vm908_vm3, %v7016_v44, 0.0  ;;  %v1144_v26 = vadd.f32 %v1143_v52, %v1142_v13 }
 0x338   :  { %v1163_v55 = vadd.f32 %v1162_v32, %v1161_v54 }
 0x33c   :  { %v976_v20 = vpop.f32.mrf.mxu2  ;;  %v1129_v41 = vpop.f32.mrf.mxu3 }
 0x33d   :  { %v7026_v58 = vadd.f32 %v5990_v49, %v976_v20  ;;  %v7028_v19 = vadd.f32 %v5990_v49, %v1129_v41 }
 0x33f   :  { %v1145_v51 = vsel %vm908_vm3, %v7026_v58, 0.0  ;;  %v1164_v40 = vsel %vm908_vm3, %v7028_v19, 0.0 }
 0x340   :  { %v1146_v61 = vadd.f32 %v1145_v51, %v1144_v26  ;;  %v1165_v59 = vadd.f32 %v1164_v40, %v1163_v55 }
 0x342   :  { %v1147_v43 = vrot.slane %v1146_v61, 4  ;;  %v1166_v15 = vrot.slane %v1165_v59, 4 }
 0x344   :  { %v1148_v6 = vadd.f32 %v1147_v43, %v1146_v61  ;;  %v1167_v17 = vadd.f32 %v1166_v15, %v1165_v59 }
 0x346   :  { %v1149_v60 = vrot.slane %v1148_v6, 2  ;;  %v1168_v4 = vrot.slane %v1167_v17, 2 }
 0x348   :  { %v1150_v34 = vadd.f32 %v1149_v60, %v1148_v6  ;;  %v1169_v35 = vadd.f32 %v1168_v4, %v1167_v17 }
 0x34a   :  { %v1151_v29 = vrot.slane %v1150_v34, 1  ;;  %v1170_v12 = vrot.slane %v1169_v35, 1 }
 0x34c   :  { %v1152_v14 = vadd.f32 %v1151_v29, %v1150_v34  ;;  %v1171_v42 = vadd.f32 %v1170_v12, %v1169_v35 }
 0x34e   :  { %v1172_v49 = vadd.f32 %v1171_v42, %v1152_v14 }
 0x350   :  { %v7037_v24 = vmul.f32 %v7034_v47, %v1172_v49 }
 0x352   :  { %v1181_v25 = vsub.f32 %v6982_v2, %v7037_v24  ;;  %v1182_v9 = vsub.f32 %v6978_v18, %v7037_v24  ;;  %v1183_v63 = vsub.f32 %v6986_v46, %v7037_v24  ;;  %v1184_v5 = vsub.f32 %v6994_v28, %v7037_v24 }
 0x353   :  { %v1185_v31 = vsub.f32 %v7006_v33, %v7037_v24  ;;  %v1214_v36 = vsub.f32 %v6984_v23, %v7037_v24  ;;  %v1215_v7 = vsub.f32 %v6980_v56, %v7037_v24  ;;  %v1186_v37 = vsub.f32 %v7014_v0, %v7037_v24 }
 0x354   :  { %v1188_v3 = vmul.f32 %v1181_v25, %v1181_v25  ;;  %v1189_v45 = vmul.f32 %v1182_v9, %v1182_v9  ;;  %v1190_v8 = vmul.f32 %v1183_v63, %v1183_v63  ;;  %v1191_v27 = vmul.f32 %v1184_v5, %v1184_v5 }
 0x355   :  { %v1187_v22 = vsub.f32 %v7026_v58, %v7037_v24  ;;  %v1192_v50 = vmul.f32 %v1185_v31, %v1185_v31  ;;  %v1216_v53 = vsub.f32 %v6988_v57, %v7037_v24  ;;  %v1217_v52 = vsub.f32 %v6996_v30, %v7037_v24 }
 0x356   :  { %v1195_v21 = vsel %vm908_vm3, %v1188_v3, 0.0  ;;  %v1196_v48 = vsel %vm908_vm3, %v1189_v45, 0.0  ;;  %v1198_v16 = vsel %vm908_vm3, %v1190_v8, 0.0  ;;  %v1218_v13 = vsub.f32 %v7008_v10, %v7037_v24 }
 0x357   :  { %v1197_v1 = vadd.f32 %v1196_v48, %v1195_v21  ;;  %v1221_v54 = vmul.f32 %v1214_v36, %v1214_v36  ;;  %v1222_v20 = vmul.f32 %v1215_v7, %v1215_v7  ;;  %v1193_v41 = vmul.f32 %v1186_v37, %v1186_v37 }
 0x358   :  { %v1200_v39 = vsel %vm908_vm3, %v1191_v27, 0.0  ;;  %v1219_v26 = vsub.f32 %v7016_v44, %v7037_v24  ;;  %v1223_v55 = vmul.f32 %v1216_v53, %v1216_v53  ;;  %v1224_v40 = vmul.f32 %v1217_v52, %v1217_v52 }
 0x359   :  { %v1199_v32 = vadd.f32 %v1198_v16, %v1197_v1  ;;  %v1228_v61 = vsel %vm908_vm3, %v1221_v54, 0.0  ;;  %v1229_v59 = vsel %vm908_vm3, %v1222_v20, 0.0  ;;  %v1194_v38 = vmul.f32 %v1187_v22, %v1187_v22 }
 0x35a   :  { %v1202_v43 = vsel %vm908_vm3, %v1192_v50, 0.0  ;;  %v1230_v15 = vadd.f32 %v1229_v59, %v1228_v61  ;;  %v1220_v17 = vsub.f32 %v7028_v19, %v7037_v24  ;;  %v1225_v62 = vmul.f32 %v1218_v13, %v1218_v13  ;;  %v1133_v61 = vld [vmem:[%s6207_s14] sm:$0x1]  ;;  %s9258_s14 = sld [smem:[#allocation13_spill]] }
 0x35b   :  { %v1201_v51 = vadd.f32 %v1200_v39, %v1199_v32  ;;  %v1231_v60 = vsel %vm908_vm3, %v1223_v55, 0.0  ;;  %v1204_v4 = vsel %vm908_vm3, %v1193_v41, 0.0  ;;  %v1226_v11 = vmul.f32 %v1219_v26, %v1219_v26  ;;  %v1132_v26 = vld [vmem:[%s6202_s8] sm:$0x1]  ;;  %s9257_s8 = sld [smem:[#allocation12_spill]] }
 0x35c   :  { %v1232_v34 = vadd.f32 %v1231_v60, %v1230_v15  ;;  %v1233_v29 = vsel %vm908_vm3, %v1224_v40, 0.0  ;;  %v1206_v12 = vsel %vm908_vm3, %v1194_v38, 0.0  ;;  %v1227_v49 = vmul.f32 %v1220_v17, %v1220_v17 }
 0x35d   :  { %v1203_v6 = vadd.f32 %v1202_v43, %v1201_v51  ;;  %v1235_v25 = vsel %vm908_vm3, %v1225_v62, 0.0  ;;  %v1237_v5 = vsel %vm908_vm3, %v1226_v11, 0.0 }
 0x35e   :  { %v1234_v14 = vadd.f32 %v1233_v29, %v1232_v34  ;;  %v1239_v45 = vsel %vm908_vm3, %v1227_v49, 0.0 }
 0x35f   :  { %v1205_v35 = vadd.f32 %v1204_v4, %v1203_v6 }
 0x360   :  { %v1236_v9 = vadd.f32 %v1235_v25, %v1234_v14 }
 0x361   :  { %v1207_v42 = vadd.f32 %v1206_v12, %v1205_v35 }
 0x362   :  { %v1238_v31 = vadd.f32 %v1237_v5, %v1236_v9 }
 0x363   :  { %v1208_v63 = vrot.slane %v1207_v42, 4 }
 0x364   :  { %v1240_v8 = vadd.f32 %v1239_v45, %v1238_v31 }
 0x365   :  { %v1209_v3 = vadd.f32 %v1208_v63, %v1207_v42 }
 0x366   :  { %v1241_v7 = vrot.slane %v1240_v8, 4 }
 0x367   :  { %v1210_v36 = vrot.slane %v1209_v3, 2 }
 0x368   :  { %v1242_v27 = vadd.f32 %v1241_v7, %v1240_v8 }
 0x369   :  { %v1211_v37 = vadd.f32 %v1210_v36, %v1209_v3 }
 0x36a   :  { %v1243_v48 = vrot.slane %v1242_v27, 2 }
 0x36b   :  { %v1212_v21 = vrot.slane %v1211_v37, 1 }
 0x36c   :  { %v1244_v22 = vadd.f32 %v1243_v48, %v1242_v27 }
 0x36d   :  { %v1213_v1 = vadd.f32 %v1212_v21, %v1211_v37 }
 0x36e   :  { %v1245_v50 = vrot.slane %v1244_v22, 1 }
 0x370   :  { %v1246_v16 = vadd.f32 %v1245_v50, %v1244_v22 }
 0x372   :  { %v1247_v53 = vadd.f32 %v1246_v16, %v1213_v1 }
 0x374   :  { %v1248_v52 = vmul.f32 %v1247_v53, %v7034_v47 }
 0x376   :  { %v1249_v32 = vadd.f32 1e-05, %v1248_v52 }
 0x378   :  { %6013 = vrsqrt.f32 %v1249_v32  ;;  %vm1256_vm9 = vweird.f32 %v1249_v32 }
 0x37e   :  { %v6014_v13 = vpop.eup %6013 }
 0x37f   :  { %v1251_v54 = vmul.f32 %v6014_v13, %v1249_v32  ;;  %vm1257_vm8 = vweird.f32 %v6014_v13 }
 0x380   :  { %vm1258_vm10 = vmor %vm1256_vm9, %vm1257_vm8 }
 0x381   :  { %v1252_v20 = vmul.f32 %v6014_v13, %v1251_v54 }
 0x383   :  { %v1253_v41 = vmul.f32 0.5, %v1252_v20 }
 0x385   :  { %v1254_v39 = vsub.f32 1.5, %v1253_v41 }
 0x387   :  { %v1255_v55 = vmul.f32 %v6014_v13, %v1254_v39 }
 0x389   :  { %v1259_v51 = vsel %vm1258_vm10, %v6014_v13, %v1255_v55 }
 0x38a   :  { %v1260_v40 = vmul.f32 %v1259_v51, %v1132_v26 }
 0x38c   :  { %v1261_v59 = vmul.f32 %v1260_v40, %v7037_v24  ;;  %v1264_v38 = vperm.slane %v1260_v40, 0 }
 0x38e   :  { %v1262_v43 = vsub.f32 %v1133_v61, %v1261_v59  ;;  %v1310_v47 = vmul.f32 %v1264_v38, %v7028_v19  ;;  %v1304_v15 = vmul.f32 %v1264_v38, %v6984_v23  ;;  %v1305_v6 = vmul.f32 %v1264_v38, %v6980_v56 }
 0x38f   :  { %v1306_v17 = vmul.f32 %v1264_v38, %v6988_v57  ;;  %v1267_v60 = vmul.f32 %v1264_v38, %v6978_v18  ;;  %v1268_v4 = vmul.f32 %v1264_v38, %v6986_v46  ;;  %v1266_v34 = vmul.f32 %v1264_v38, %v6982_v2 }
 0x390   :  { %v7089_v62 = vperm.slane %v1262_v43, 0  ;;  %v1269_v24 = vmul.f32 %v1264_v38, %v6994_v28  ;;  %v1307_v35 = vmul.f32 %v1264_v38, %v6996_v30  ;;  %v1270_v19 = vmul.f32 %v1264_v38, %v7006_v33 }
 0x391   :  { %v1308_v23 = vmul.f32 %v1264_v38, %v7008_v10  ;;  %v7102_v18 = vmul.f32 %v1264_v38, %v7014_v0  ;;  %v7108_v30 = vmul.f32 %v1264_v38, %v7016_v44  ;;  %v7114_v10 = vmul.f32 %v1264_v38, %v7026_v58 }
 0x392   :  { %v1311_v56 = vadd.f32 %v1304_v15, %v7089_v62  ;;  %v1312_v57 = vadd.f32 %v1305_v6, %v7089_v62  ;;  %v1313_v11 = vadd.f32 %v1306_v17, %v7089_v62  ;;  %v1277_v46 = vadd.f32 %v7089_v62, %v1267_v60 }
 0x393   :  { %v1278_v2 = vadd.f32 %v7089_v62, %v1268_v4  ;;  %v1276_v28 = vadd.f32 %v7089_v62, %v1266_v34  ;;  %v7111_v33 = vadd.f32 %v1310_v47, %v7089_v62  ;;  %v1279_v12 = vadd.f32 %v7089_v62, %v1269_v24  ;;  %v1354_v34 = vld [vmem:[%s6212_s19 + $0x78] sm:$0xff]  ;;  %v1353_v24 = vld [vmem:[%s6212_s19 + $0x70] sm:$0xff] }
 0x394   :  { %vm1318_vm12 = vcmp.ge.f32.partialorder %v1311_v56, 0.0  ;;  %vm1319_vm13 = vcmp.ge.f32.partialorder %v1312_v57, 0.0  ;;  %vm1320_vm14 = vcmp.ge.f32.partialorder %v1313_v11, 0.0  ;;  %v1325_v0 = vmul.f32 0.2, %v1311_v56  ;;  %1485 = vmatpush.msrb.mxu0 %v1354_v34  ;;  %1670 = vmatpush.msrb.mxu2 %v1354_v34 }
 0x395   :  { %v1326_v29 = vmul.f32 0.2, %v1312_v57  ;;  %v1327_v14 = vmul.f32 0.2, %v1313_v11  ;;  %vm1284_vm15 = vcmp.ge.f32.partialorder %v1277_v46, 0.0  ;;  %vm1285_vm7 = vcmp.ge.f32.partialorder %v1278_v2, 0.0 }
 0x396   :  { %v1291_v42 = vmul.f32 0.2, %v1277_v46  ;;  %v7117_v49 = vsel %vm1318_vm12, %v1311_v56, %v1325_v0  ;;  %v1292_v25 = vmul.f32 0.2, %v1278_v2  ;;  %vm1283_vm8 = vcmp.ge.f32.partialorder %v1276_v28, 0.0  ;;  %1486 = vmatpush.msrb.mxu0 %v1353_v24  ;;  %1671 = vmatpush.msrb.mxu2 %v1353_v24 }
 0x397   :  { %v7119_v44 = vsel %vm1319_vm13, %v1312_v57, %v1326_v29  ;;  %v7121_v9 = vsel %vm1320_vm14, %v1313_v11, %v1327_v14  ;;  %v1622_v63 = vrot.slane %v7117_v49, 3  ;;  %v1290_v27 = vmul.f32 0.2, %v1276_v28  ;;  %v7182_v11 = vld [vmem:[%s6212_s19 + $0xf0] sm:$0xff] }
 0x398   :  { %v1569_v58 = vrot.slane %v7119_v44, 1  ;;  %v1623_v5 = vrot.slane %v7119_v44, 3  ;;  %v1571_v31 = vrot.slane %v7121_v9, 1  ;;  %v7127_v3 = vsel %vm1284_vm15, %v1277_v46, %v1291_v42 }
 0x399   :  { %v7129_v45 = vsel %vm1285_vm7, %v1278_v2, %v1292_v25  ;;  %v1625_v8 = vrot.slane %v7121_v9, 3  ;;  %v1380_v7 = vrot.slane %v7127_v3, 1  ;;  %v1568_v22 = vrot.slane %v7117_v49, 1 }
 0x39a   :  { %v1624_v36 = vsel %vm1433_vm11, %v1622_v63, %v1623_v5  ;;  %v1382_v37 = vrot.slane %v7129_v45, 1  ;;  %v1572_v21 = vsel %vm240_vm1, %v1569_v58, %v1571_v31  ;;  %vm1286_vm9 = vcmp.ge.f32.partialorder %v1279_v12, 0.0 }
 0x39b   :  { %v1626_v48 = vsel %vm1433_vm11, %v1623_v5, %v1625_v8  ;;  %v5839_v1 = vpack.i.bf16 %v1572_v21, %v1624_v36  ;;  %v7140_v16 = vsel %vm1283_vm8, %v1276_v28, %v1290_v27  ;;  %v1293_v53 = vmul.f32 0.2, %v1279_v12 }
 0x39c   :  { %v1383_v50 = vsel %vm240_vm1, %v1380_v7, %v1382_v37  ;;  %v1379_v32 = vrot.slane %v7140_v16, 1  ;;  %v1570_v13 = vsel %vm240_vm1, %v1568_v22, %v1569_v58  ;;  %v1314_v54 = vadd.f32 %v1307_v35, %v7089_v62  ;;  %v7173_v35 = vld [vmem:[%s6212_s19 + $0xf8] sm:$0xff] }
 0x39d   :  { %v5844_v52 = vpack.i.bf16 %v1626_v48, %v1383_v50  ;;  %5840 = vrot.lane.b32.xlu1 %v5839_v1, %s6143_s13  ;;  %v7146_v20 = vsel %vm1286_vm9, %v1279_v12, %v1293_v53  ;;  %v1437_v41 = vrot.slane %v7129_v45, 3  ;;  %v1280_v39 = vadd.f32 %v7089_v62, %v1270_v19  ;;  %1708 = vmatpush.msrb.mxu3 %v7173_v35 }
 0x39e   :  { %v1315_v26 = vadd.f32 %v1308_v23, %v7089_v62  ;;  %v1381_v55 = vsel %vm240_vm1, %v1379_v32, %v1380_v7  ;;  %vm1321_vm10 = vcmp.ge.f32.partialorder %v1314_v54, 0.0  ;;  %v1328_v51 = vmul.f32 0.2, %v1314_v54  ;;  %5753 = vmatpush.msrb.mxu1 %v7173_v35 }
 0x39f   :  { %5845 = vrot.lane.b32.xlu2 %v5844_v52, %s6143_s13  ;;  %v1439_v40 = vrot.slane %v7146_v20, 3  ;;  %vm1324_vm12 = vcmp.ge.f32.partialorder %v7111_v33, 0.0  ;;  %v5834_v61 = vpack.i.bf16 %v1381_v55, %v1570_v13  ;;  %vm1287_vm13 = vcmp.ge.f32.partialorder %v1280_v39, 0.0  ;;  %1709 = vmatpush.msrb.mxu3 %v7182_v11 }
 0x3a0   :  { %v1294_v59 = vmul.f32 0.2, %v1280_v39  ;;  %vm1322_vm14 = vcmp.ge.f32.partialorder %v1315_v26, 0.0  ;;  %v7155_v38 = vsel %vm1321_vm10, %v1314_v54, %v1328_v51  ;;  %v1329_v47 = vmul.f32 0.2, %v1315_v26  ;;  %5754 = vmatpush.msrb.mxu1 %v7182_v11 }
 0x3a1   :  { %v1440_v43 = vsel %vm1433_vm11, %v1437_v41, %v1439_v40  ;;  %v1384_v15 = vrot.slane %v7146_v20, 1  ;;  %5835 = vrot.lane.b32.xlu0 %v5834_v61, %s6143_s13  ;;  %v1627_v6 = vrot.slane %v7155_v38, 3  ;;  %v1573_v60 = vrot.slane %v7155_v38, 1 }
 0x3a2   :  { %v7165_v17 = vsel %vm1287_vm13, %v1280_v39, %v1294_v59  ;;  %v1281_v4 = vadd.f32 %v7089_v62, %v7102_v18  ;;  %v7175_v19 = vsel %vm1322_vm14, %v1315_v26, %v1329_v47  ;;  %v1316_v57 = vadd.f32 %v7108_v30, %v7089_v62 }
 0x3a3   :  { %v1386_v23 = vrot.slane %v7165_v17, 1  ;;  %v1385_v56 = vsel %vm240_vm1, %v1382_v37, %v1384_v15  ;;  %v1628_v46 = vsel %vm1433_vm11, %v1625_v8, %v1627_v6  ;;  %v1575_v18 = vrot.slane %v7175_v19, 1 }
 0x3a4   :  { %v1574_v2 = vsel %vm240_vm1, %v1571_v31, %v1573_v60  ;;  %vm1288_vm15 = vcmp.ge.f32.partialorder %v1281_v4, 0.0  ;;  %v1331_v28 = vmul.f32 0.2, %v7111_v33  ;;  %v5854_v0 = vpack.i.bf16 %v1440_v43, %v1628_v46  ;;  %v7254_v46 = vld [vmem:[%s6212_s19 + $0xe0] sm:$0xff] }
 0x3a5   :  { %v1387_v30 = vsel %vm240_vm1, %v1384_v15, %v1386_v23  ;;  %v1295_v29 = vmul.f32 0.2, %v1281_v4  ;;  %v1576_v12 = vsel %vm240_vm1, %v1573_v60, %v1575_v18  ;;  %v5849_v14 = vpack.i.bf16 %v1385_v56, %v1574_v2  ;;  %v7250_v56 = vld [vmem:[%s6212_s19 + $0xe8] sm:$0xff]  ;;  %v1349_v2 = vld [vmem:[%s6212_s19 + $0x50] sm:$0xff] }
 0x3a6   :  { %vm1323_vm7 = vcmp.ge.f32.partialorder %v1316_v57, 0.0  ;;  %v1330_v42 = vmul.f32 0.2, %v1316_v57  ;;  %5855 = vrot.lane.b32.xlu1 %v5854_v0, %s6143_s13  ;;  %v5859_v25 = vpack.i.bf16 %v1387_v30, %v1576_v12  ;;  %v1441_v63 = vrot.slane %v7165_v17, 3  ;;  %1710 = vmatpush.msrb.mxu3 %v7250_v56  ;;  %v1348_v0 = vld [vmem:[%s6212_s19 + $0x48] sm:$0xff]  ;;  %v1363_v12 = vld [vmem:[%s6212_s19 + $0xc0] sm:$0xff] }
 0x3a7   :  { %v7196_v58 = vsel %vm1288_vm15, %v1281_v4, %v1295_v29  ;;  %v1282_v5 = vadd.f32 %v7089_v62, %v7114_v10  ;;  %v1629_v7 = vrot.slane %v7175_v19, 3  ;;  %v7214_v10 = vsel %vm1324_vm12, %v7111_v33, %v1331_v28  ;;  %5755 = vmatpush.msrb.mxu1 %v7250_v56  ;;  %v7266_v28 = vld [vmem:[%s6212_s19 + $0xd0] sm:$0xff]  ;;  %v7274_v30 = vld [vmem:[%s6212_s19 + $0xc8] sm:$0xff]  ;;  %v1347_v29 = vld [vmem:[%s6212_s19 + $0x40] sm:$0xff] }
 0x3a8   :  { %v7201_v31 = vsel %vm1323_vm7, %v1316_v57, %v1330_v42  ;;  %v1388_v8 = vrot.slane %v7196_v58, 1  ;;  %v1443_v36 = vrot.slane %v7196_v58, 3  ;;  %5860 = vrot.lane.b32.xlu2 %v5859_v25, %s6143_s13  ;;  %v1442_v52 = vsel %vm1433_vm11, %v1439_v40, %v1441_v63  ;;  %v1351_v57 = vld [vmem:[%s6212_s19 + $0x60] sm:$0xff]  ;;  %1711 = vmatpush.msrb.mxu3 %v7254_v46  ;;  %v1362_v42 = vld [vmem:[%s6212_s19 + $0xb8] sm:$0xff]  ;;  %v1345_v25 = vld [vmem:[%s6212_s19 + $0x30] sm:$0xff] }
 0x3a9   :  { %v1577_v37 = vrot.slane %v7201_v31, 1  ;;  %v1631_v27 = vrot.slane %v7201_v31, 3  ;;  %vm1289_vm8 = vcmp.ge.f32.partialorder %v1282_v5, 0.0  ;;  %5850 = vrot.lane.b32.xlu0 %v5849_v14, %s6143_s13  ;;  %v1296_v62 = vmul.f32 0.2, %v1282_v5  ;;  %5756 = vmatpush.msrb.mxu1 %v7254_v46  ;;  %v1346_v14 = vld [vmem:[%s6212_s19 + $0x38] sm:$0xff] }
 0x3aa   :  { %v1389_v21 = vsel %vm240_vm1, %v1386_v23, %v1388_v8  ;;  %v1444_v22 = vsel %vm1433_vm11, %v1441_v63, %v1443_v36  ;;  %v1630_v32 = vsel %vm1433_vm11, %v1627_v6, %v1629_v7  ;;  %v1633_v33 = vrot.slane %v7214_v10, 3  ;;  %v1352_v23 = vld [vmem:[%s6212_s19 + $0x68] sm:$0xff]  ;;  %v1361_v63 = vld [vmem:[%s6212_s19 + $0xb0] sm:$0xff] }
 0x3ab   :  { %v1578_v48 = vsel %vm240_vm1, %v1575_v18, %v1577_v37  ;;  %v1632_v1 = vsel %vm1433_vm11, %v1629_v7, %v1631_v27  ;;  %v7219_v50 = vsel %vm1289_vm8, %v1282_v5, %v1296_v62  ;;  %v5864_v39 = vpack.i.bf16 %v1442_v52, %v1630_v32  ;;  %1487 = vmatpush.msrb.mxu0 %v1352_v23  ;;  %v1350_v18 = vld [vmem:[%s6212_s19 + $0x58] sm:$0xff]  ;;  %v1344_v5 = vld [vmem:[%s6212_s19 + $0x28] sm:$0xff]  ;;  %v1359_v7 = vld [vmem:[%s6212_s19 + $0xa0] sm:$0xff] }
 0x3ac   :  { %v5869_v53 = vpack.i.bf16 %v1389_v21, %v1578_v48  ;;  %v1445_v13 = vrot.slane %v7219_v50, 3  ;;  %v5874_v54 = vpack.i.bf16 %v1444_v22, %v1632_v1  ;;  %v1390_v26 = vrot.slane %v7219_v50, 1  ;;  %1672 = vmatpush.msrb.mxu2 %v1352_v23  ;;  %v1341_v21 = vld [vmem:[%s6212_s19 + $0x10] sm:$0xff]  ;;  %v1340_v48 = vld [vmem:[%s6212_s19 + $0x8] sm:$0xff]  ;;  %v1339_v1 = vld [vmem:[%s6212_s19] sm:$0xff] }
 0x3ad   :  { %v1579_v55 = vrot.slane %v7214_v10, 1  ;;  %v1634_v40 = vsel %vm1433_vm11, %v1631_v27, %v1633_v33  ;;  %v1435_v47 = vrot.slane %v7127_v3, 3  ;;  %v1434_v15 = vrot.slane %v7140_v16, 3  ;;  %1488 = vmatpush.msrb.mxu0 %v1351_v57  ;;  %v1358_v27 = vld [vmem:[%s6212_s19 + $0x98] sm:$0xff]  ;;  %v1357_v62 = vld [vmem:[%s6212_s19 + $0x90] sm:$0xff]  ;;  %v1356_v22 = vld [vmem:[%s6212_s19 + $0x88] sm:$0xff] }
 0x3ae   :  { %5870 = vrot.lane.b32.xlu1 %v5869_v53, %s6143_s13  ;;  %v1446_v51 = vsel %vm1433_vm11, %v1443_v36, %v1445_v13  ;;  %v1391_v59 = vsel %vm240_vm1, %v1388_v8, %v1390_v26  ;;  %1673 = vmatpush.msrb.mxu2 %v1351_v57  ;;  %v1360_v8 = vld [vmem:[%s6212_s19 + $0xa8] sm:$0xff]  ;;  %v1343_v36 = vld [vmem:[%s6212_s19 + $0x20] sm:$0xff]  ;;  %v1602_v52 = vrot.slane %v7117_v49, 2  ;;  %v1603_v32 = vrot.slane %v7119_v44, 2 }
 0x3af   :  { %v5884_v61 = vpack.i.bf16 %v1446_v51, %v1634_v40  ;;  %v1580_v43 = vsel %vm240_vm1, %v1577_v37, %v1579_v55  ;;  %v5889_v6 = vpack.i.bf16 %v1390_v26, %v1579_v55  ;;  %v1436_v4 = vsel %vm1433_vm11, %v1434_v15, %v1435_v47  ;;  %1489 = vmatpush.msrb.mxu0 %v1350_v18  ;;  %v1342_v37 = vld [vmem:[%s6212_s19 + $0x18] sm:$0xff]  ;;  %v1355_v53 = vld [vmem:[%s6212_s19 + $0x80] sm:$0xff] }
 0x3b0   :  { %5875 = vrot.lane.b32.xlu2 %v5874_v54, %s6143_s13  ;;  %v5879_v60 = vpack.i.bf16 %v1391_v59, %v1580_v43  ;;  %v5894_v34 = vpack.i.bf16 %v1436_v4, %v1445_v13  ;;  %v1438_v24 = vsel %vm1433_vm11, %v1435_v47, %v1437_v41  ;;  %v7260_v41 = vld [vmem:[%s6212_s19 + $0xd8] sm:$0xff]  ;;  %1674 = vmatpush.msrb.mxu2 %v1350_v18  ;;  %v1416_v51 = vrot.slane %v7129_v45, 2  ;;  %s9259_s19 = sld [smem:[#allocation15_spill]] }
 0x3b1   :  { %5865 = vrot.lane.b32.xlu0 %v5864_v39, %s6143_s13  ;;  %1712 = vmatpush.msrb.mxu3 %v7260_v41  ;;  %v1604_v13 = vsel %vm280_vm0, %v1602_v52, %v1603_v32  ;;  %v1605_v40 = vrot.slane %v7121_v9, 2  ;;  %v1418_v47 = vrot.slane %v7146_v20, 2  ;;  %vm1834_vm9 = vcmask 518144  }
 0x3b2   :  { %5757 = vmatpush.msrb.mxu1 %v7260_v41  ;;  %1490 = vmatpush.msrb.mxu0 %v1349_v2 }
 0x3b3   :  { %1675 = vmatpush.msrb.mxu2 %v1349_v2  ;;  %1713 = vmatpush.msrb.mxu3 %v7266_v28 }
 0x3b4   :  { %5758 = vmatpush.msrb.mxu1 %v7266_v28  ;;  %1491 = vmatpush.msrb.mxu0 %v1348_v0 }
 0x3b5   :  { %1676 = vmatpush.msrb.mxu2 %v1348_v0  ;;  %1714 = vmatpush.msrb.mxu3 %v7274_v30 }
 0x3b6   :  { %5885 = vrot.lane.b32.xlu1 %v5884_v61, %s6143_s13  ;;  %5759 = vmatpush.msrb.mxu1 %v7274_v30 }
 0x3b7   :  { %1492 = vmatpush.msrb.mxu0 %v1347_v29  ;;  %1677 = vmatpush.msrb.mxu2 %v1347_v29 }
 0x3b8   :  { %5890 = vrot.lane.b32.xlu2 %v5889_v6, %s6143_s13  ;;  %1715 = vmatpush.msrb.mxu3 %v1363_v12 }
 0x3b9   :  { %5880 = vrot.lane.b32.xlu0 %v5879_v60, %s6143_s13  ;;  %5760 = vmatpush.msrb.mxu1 %v1363_v12  ;;  %v1606_v60 = vsel %vm280_vm0, %v1603_v32, %v1605_v40  ;;  %v1611_v32 = vrot.slane %v7201_v31, 2 }
 0x3ba   :  { %1493 = vmatpush.msrb.mxu0 %v1346_v14  ;;  %1678 = vmatpush.msrb.mxu2 %v1346_v14 }
 0x3bb   :  { %1716 = vmatpush.msrb.mxu3 %v1362_v42  ;;  %5761 = vmatpush.msrb.mxu1 %v1362_v42 }
 0x3bc   :  { %1494 = vmatpush.msrb.mxu0 %v1345_v25  ;;  %1679 = vmatpush.msrb.mxu2 %v1345_v25 }
 0x3bd   :  { %1717 = vmatpush.msrb.mxu3 %v1361_v63  ;;  %5762 = vmatpush.msrb.mxu1 %v1361_v63 }
 0x3be   :  { %5895 = vrot.lane.b32.xlu1 %v5894_v34, %s6143_s13  ;;  %1495 = vmatpush.msrb.mxu0 %v1344_v5 }
 0x3bf   :  { %1680 = vmatpush.msrb.mxu2 %v1344_v5  ;;  %1718 = vmatpush.msrb.mxu3 %v1360_v8  ;;  %v1609_v5 = vrot.slane %v7175_v19, 2 }
 0x3c0   :  { %1449 = vrot.lane.b32.xlu2 %v1438_v24, %s6143_s13  ;;  %5763 = vmatpush.msrb.mxu1 %v1360_v8  ;;  %v1419_v24 = vsel %vm280_vm0, %v1416_v51, %v1418_v47 }
 0x3c1   :  { %1647 = vrot.lane.b32.xlu0 %v1633_v33, %s6143_s13  ;;  %1496 = vmatpush.msrb.mxu0 %v1343_v36 }
 0x3c2   :  { %1681 = vmatpush.msrb.mxu2 %v1343_v36  ;;  %1719 = vmatpush.msrb.mxu3 %v1359_v7 }
 0x3c3   :  { %5764 = vmatpush.msrb.mxu1 %v1359_v7  ;;  %1497 = vmatpush.msrb.mxu0 %v1342_v37 }
 0x3c4   :  { %1682 = vmatpush.msrb.mxu2 %v1342_v37  ;;  %1720 = vmatpush.msrb.mxu3 %v1358_v27 }
 0x3c5   :  { %5765 = vmatpush.msrb.mxu1 %v1358_v27  ;;  %1498 = vmatpush.msrb.mxu0 %v1341_v21 }
 0x3c6   :  { %1683 = vmatpush.msrb.mxu2 %v1341_v21  ;;  %1721 = vmatpush.msrb.mxu3 %v1357_v62 }
 0x3c7   :  { %5766 = vmatpush.msrb.mxu1 %v1357_v62  ;;  %1499 = vmatpush.msrb.mxu0 %v1340_v48 }
 0x3c8   :  { %1684 = vmatpush.msrb.mxu2 %v1340_v48  ;;  %1722 = vmatpush.msrb.mxu3 %v1356_v22 }
 0x3c9   :  { %5767 = vmatpush.msrb.mxu1 %v1356_v22  ;;  %1500 = vmatpush.msrb.mxu0 %v1339_v1 }
 0x3ca   :  { %1685 = vmatpush.msrb.mxu2 %v1339_v1  ;;  %1723 = vmatpush.msrb.mxu3 %v1355_v53 }
 0x3cb   :  { %5768 = vmatpush.msrb.mxu1 %v1355_v53  ;;  %1523 = vmatpush.msra.mxu0 %v7173_v35 }
 0x3cd   :  { %1524 = vmatpush.msra.mxu0 %v7182_v11 }
 0x3cf   :  { %1525 = vmatpush.msra.mxu0 %v7250_v56 }
 0x3d1   :  { %1526 = vmatpush.msra.mxu0 %v7254_v46  ;;  %v1607_v46 = vrot.slane %v7155_v38, 2 }
 0x3d3   :  { %1527 = vmatpush.msra.mxu0 %v7260_v41  ;;  %v1608_v0 = vsel %vm280_vm0, %v1605_v40, %v1607_v46  ;;  %v1610_v21 = vsel %vm280_vm0, %v1607_v46, %v1609_v5 }
 0x3d5   :  { %1528 = vmatpush.msra.mxu0 %v7266_v28  ;;  %v1420_v28 = vrot.slane %v7165_v17, 2 }
 0x3d7   :  { %1529 = vmatpush.msra.mxu0 %v7274_v30 }
 0x3d9   :  { %1530 = vmatpush.msra.mxu0 %v1363_v12 }
 0x3db   :  { %1531 = vmatpush.msra.mxu0 %v1362_v42 }
 0x3dd   :  { %1532 = vmatpush.msra.mxu0 %v1361_v63  ;;  %v1421_v63 = vsel %vm280_vm0, %v1418_v47, %v1420_v28 }
 0x3df   :  { %1533 = vmatpush.msra.mxu0 %v1360_v8 }
 0x3e1   :  { %1534 = vmatpush.msra.mxu0 %v1359_v7 }
 0x3e3   :  { %1535 = vmatpush.msra.mxu0 %v1358_v27  ;;  %v1422_v27 = vrot.slane %v7196_v58, 2 }
 0x3e5   :  { %1536 = vmatpush.msra.mxu0 %v1357_v62  ;;  %v1423_v52 = vsel %vm280_vm0, %v1420_v28, %v1422_v27  ;;  %v1413_v28 = vrot.slane %v7140_v16, 2 }
 0x3e7   :  { %1537 = vmatpush.msra.mxu0 %v1356_v22 }
 0x3e9   :  { %1538 = vmatpush.msra.mxu0 %v1355_v53 }
 0x3f9   :  { %v5846_v54 = vpop.permute.xlu2 %5845 }
 0x3fa   :  { %v5848_v61 = vunpack.i.h.bf16 %v5846_v54  ;;  %v5847_v4 = vunpack.i.l.bf16 %v5846_v54  ;;  %v1612_v54 = vsel %vm280_vm0, %v1609_v5, %v1611_v32 }
 0x3fc   :  { %v1664_v23 = vsel %vm908_vm3, %v1606_v60, %v5848_v61  ;;  %v1469_v41 = vsel %vm908_vm3, %v7127_v3, %v5847_v4 }
 0x402   :  { %v5861_v57 = vpop.permute.xlu2 %5860 }
 0x403   :  { %v5863_v62 = vunpack.i.h.bf16 %v5861_v57  ;;  %v5862_v1 = vunpack.i.l.bf16 %v5861_v57 }
 0x40a   :  { %v5876_v7 = vpop.permute.xlu2 %5875 }
 0x40b   :  { %v5878_v48 = vunpack.i.h.bf16 %v5876_v7 }
 0x40f   :  { %v5841_v35 = vpop.permute.xlu1 %5840 }
 0x410   :  { %v5842_v11 = vunpack.i.l.bf16 %v5841_v35  ;;  %v5843_v34 = vunpack.i.h.bf16 %v5841_v35  ;;  %v5877_v35 = vunpack.i.l.bf16 %v5876_v7 }
 0x412   :  { %v1663_v33 = vsel %vm908_vm3, %v1604_v13, %v5842_v11  ;;  %v1657_v2 = vsel %vm908_vm3, %v7119_v44, %v5843_v34  ;;  %v1479_v11 = vsel %vm908_vm3, %v1423_v52, %v5878_v48  ;;  %v1659_v13 = vsel %vm908_vm3, %v7155_v38, %v5862_v1 }
 0x413   :  { %v5836_v39 = vpop.permute.xlu0 %5835  ;;  %1724 = vmatmul.f32.vlgmr.msrb.gmra.mxu3 %v1663_v33  ;;  %v1424_v33 = vrot.slane %v7219_v50, 2 }
 0x414   :  { %v5838_v26 = vunpack.i.h.bf16 %v5836_v39  ;;  %v5837_v55 = vunpack.i.l.bf16 %v5836_v39 }
 0x416   :  { %v1468_v59 = vsel %vm908_vm3, %v7140_v16, %v5838_v26  ;;  %v1656_v43 = vsel %vm908_vm3, %v7117_v49, %v5837_v55  ;;  %v1667_v55 = vsel %vm908_vm3, %v1612_v54, %v5877_v35 }
 0x417   :  { %1501 = vmatmul.f32.vlgmr.msrb.gmra.mxu0 %v1468_v59  ;;  %1686 = vmatmul.f32.vlgmr.msrb.gmra.mxu2 %v1656_v43  ;;  %v1613_v59 = vrot.slane %v7214_v10, 2 }
 0x418   :  { %v5856_v15 = vpop.permute.xlu1 %5855 }
 0x419   :  { %v5858_v6 = vunpack.i.h.bf16 %v5856_v15  ;;  %v5857_v18 = vunpack.i.l.bf16 %v5856_v15  ;;  %v1614_v60 = vsel %vm280_vm0, %v1611_v32, %v1613_v59 }
 0x41b   :  { %v5851_v56 = vpop.permute.xlu0 %5850  ;;  %v1477_v49 = vsel %vm908_vm3, %v1419_v24, %v5858_v6  ;;  %1727 = vmatmul.f32.gmra.mxu3 %v1664_v23  ;;  %v1665_v29 = vsel %vm908_vm3, %v1608_v0, %v5857_v18  ;;  %v1414_v0 = vrot.slane %v7127_v3, 2 }
 0x41c   :  { %1545 = vmatmul.f32.vlgmr.msrb.gmra.mxu1 %v1477_v49  ;;  %v5853_v30 = vunpack.i.h.bf16 %v5851_v56  ;;  %v5852_v12 = vunpack.i.l.bf16 %v5851_v56  ;;  %v5891_v49 = vpop.permute.xlu2 %5890 }
 0x41d   :  { %v5893_v46 = vunpack.i.h.bf16 %v5891_v49 }
 0x41e   :  { %v1470_v44 = vsel %vm908_vm3, %v7129_v45, %v5853_v30  ;;  %v1658_v37 = vsel %vm908_vm3, %v7121_v9, %v5852_v12  ;;  %v1471_v9 = vsel %vm908_vm3, %v7146_v20, %v5863_v62  ;;  %v1425_v20 = vsel %vm280_vm0, %v1422_v27, %v1424_v33 }
 0x41f   :  { %1504 = vmatmul.f32.gmra.mxu0 %v1469_v41  ;;  %1689 = vmatmul.f32.gmra.mxu2 %v1657_v2  ;;  %v5892_v41 = vunpack.i.l.bf16 %v5891_v49  ;;  %v1474_v2 = vsel %vm908_vm3, %v7219_v50, %v5893_v46  ;;  %v1417_v50 = vsel %vm280_vm0, %v1414_v0, %v1416_v51 }
 0x420   :  { %v5871_v14 = vpop.permute.xlu1 %5870 }
 0x421   :  { %v5873_v39 = vunpack.i.h.bf16 %v5871_v14  ;;  %v5872_v40 = vunpack.i.l.bf16 %v5871_v14 }
 0x423   :  { %v5866_v42 = vpop.permute.xlu0 %5865  ;;  %1730 = vmatmul.f32.gmra.mxu3 %v1665_v29  ;;  %v1472_v38 = vsel %vm908_vm3, %v7165_v17, %v5873_v39  ;;  %v1660_v6 = vsel %vm908_vm3, %v7175_v19, %v5872_v40 }
 0x424   :  { %v5868_v25 = vunpack.i.h.bf16 %v5866_v42  ;;  %v5867_v8 = vunpack.i.l.bf16 %v5866_v42  ;;  %v1450_v12 = vpop.permute.xlu2 %1449 }
 0x425   :  { %v1476_v14 = vsel %vm908_vm3, %v1417_v50, %v1450_v12 }
 0x426   :  { %v1478_v36 = vsel %vm908_vm3, %v1421_v63, %v5868_v25  ;;  %v1666_v22 = vsel %vm908_vm3, %v1610_v21, %v5867_v8 }
 0x427   :  { %1507 = vmatmul.f32.gmra.mxu0 %v1470_v44  ;;  %1548 = vmatmul.f32.gmra.mxu1 %v1478_v36 }
 0x428   :  { %1692 = vmatmul.f32.gmra.mxu2 %v1658_v37  ;;  %v5886_v53 = vpop.permute.xlu1 %5885 }
 0x429   :  { %v5888_v26 = vunpack.i.h.bf16 %v5886_v53  ;;  %v5887_v43 = vunpack.i.l.bf16 %v5886_v53  ;;  %v5991_v53 = vld [vmem:[%s6217_s24] ss:$0 sm:$0xff]  ;;  %s9260_s24 = sld [smem:[#allocation18_spill]] }
 0x42b   :  { %1733 = vmatmul.f32.gmra.mxu3 %v1666_v22  ;;  %v5881_v61 = vpop.permute.xlu0 %5880  ;;  %v1480_v47 = vsel %vm908_vm3, %v1425_v20, %v5888_v26  ;;  %v1668_v24 = vsel %vm908_vm3, %v1614_v60, %v5887_v43 }
 0x42c   :  { %v5883_v4 = vunpack.i.h.bf16 %v5881_v61  ;;  %v5882_v23 = vunpack.i.l.bf16 %v5881_v61 }
 0x42e   :  { %v1473_v17 = vsel %vm908_vm3, %v7196_v58, %v5883_v4  ;;  %v1661_v19 = vsel %vm908_vm3, %v7201_v31, %v5882_v23  ;;  %v1662_v58 = vsel %vm908_vm3, %v7214_v10, %v5892_v41  ;;  %v1415_v31 = vsel %vm280_vm0, %v1413_v28, %v1414_v0 }
 0x42f   :  { %1510 = vmatmul.f32.gmra.mxu0 %v1471_v9  ;;  %1551 = vmatmul.f32.gmra.mxu1 %v1479_v11 }
 0x430   :  { %1695 = vmatmul.f32.gmra.mxu2 %v1659_v13  ;;  %v5896_v15 = vpop.permute.xlu1 %5895 }
 0x431   :  { %v5897_v34 = vunpack.i.l.bf16 %v5896_v15  ;;  %v5898_v30 = vunpack.i.h.bf16 %v5896_v15 }
 0x433   :  { %1736 = vmatmul.f32.gmra.mxu3 %v1667_v55  ;;  %v1481_v56 = vsel %vm908_vm3, %v1424_v33, %v5897_v34  ;;  %v1648_v57 = vpop.permute.xlu0 %1647  ;;  %v1475_v29 = vsel %vm908_vm3, %v1415_v31, %v5898_v30  ;;  %v1747_v30 = vld [vmem:[%s6167_s9 + $0x8] sm:$0xff]  ;;  %v1748_v31 = vld [vmem:[%s6167_s9 + $0x10] sm:$0xff] }
 0x434   :  { %v1669_v18 = vsel %vm908_vm3, %v1613_v59, %v1648_v57 }
 0x437   :  { %1513 = vmatmul.f32.gmra.mxu0 %v1472_v38  ;;  %1554 = vmatmul.f32.gmra.mxu1 %v1480_v47 }
 0x438   :  { %1698 = vmatmul.f32.gmra.mxu2 %v1660_v6 }
 0x43b   :  { %1739 = vmatmul.f32.gmra.mxu3 %v1668_v24 }
 0x43f   :  { %1516 = vmatmul.f32.gmra.mxu0 %v1473_v17  ;;  %1557 = vmatmul.f32.gmra.mxu1 %v1481_v56 }
 0x440   :  { %1701 = vmatmul.f32.gmra.mxu2 %v1661_v19 }
 0x443   :  { %1742 = vmatmul.f32.gmra.mxu3 %v1669_v18 }
 0x447   :  { %1519 = vmatmul.f32.gmra.mxu0 %v1474_v2 }
 0x448   :  { %1704 = vmatmul.f32.gmra.mxu2 %v1662_v58  ;;  %v1746_v58 = vld [vmem:[%s6167_s9] sm:$0xff] }
 0x44f   :  { %1539 = vmatmul.f32.vlgmr.msra.gmra.mxu0 %v1475_v29  ;;  %v1749_v29 = vld [vmem:[%s6167_s9 + $0x18] sm:$0x7]  ;;  %s9252_s9 = sld [smem:[#allocation8_spill]] }
 0x457   :  { %1542 = vmatmul.f32.gmra.mxu0 %v1476_v14 }
 0x494   :  { %v1502_v10 = vpop.f32.mrf.mxu0 }
 0x495   :  { %v1503_v19 = vadd.f32 %v5991_v53, %v1502_v10 }
 0x496   :  { %v7375_v42 = vpop.f32.mrf.mxu3 }
 0x499   :  { %v1546_v3 = vpop.f32.mrf.mxu1 }
 0x49a   :  { %v1687_v16 = vpop.f32.mrf.mxu2 }
 0x49b   :  { %v1688_v18 = vadd.f32 %v5991_v53, %v1687_v16  ;;  %v6145_v16 = vmov 54.0  }
 0x49c   :  { %v1505_v25 = vpop.f32.mrf.mxu0  ;;  %6015 = vrcp.f32 %v6145_v16 }
 0x49d   :  { %v1506_v17 = vadd.f32 %v5991_v53, %v1505_v25  ;;  %v1726_v0 = vadd.f32 %v7375_v42, %v1688_v18 }
 0x49e   :  { %v1728_v63 = vpop.f32.mrf.mxu3 }
 0x4a2   :  { %v1690_v5 = vpop.f32.mrf.mxu2 }
 0x4a3   :  { %v1691_v56 = vadd.f32 %v5991_v53, %v1690_v5 }
 0x4a4   :  { %v1508_v8 = vpop.f32.mrf.mxu0  ;;  %v1549_v36 = vpop.f32.mrf.mxu1 }
 0x4a5   :  { %v1509_v55 = vadd.f32 %v5991_v53, %v1508_v8  ;;  %v1729_v28 = vadd.f32 %v1728_v63, %v1691_v56 }
 0x4a6   :  { %v1731_v44 = vpop.f32.mrf.mxu3 }
 0x4a7   :  { %v1547_v60 = vadd.f32 %v1546_v3, %v1509_v55 }
 0x4ab   :  { %v1693_v7 = vpop.f32.mrf.mxu2 }
 0x4ac   :  { %v1511_v37 = vpop.f32.mrf.mxu0  ;;  %v1552_v27 = vpop.f32.mrf.mxu1  ;;  %v1694_v24 = vadd.f32 %v5991_v53, %v1693_v7 }
 0x4ad   :  { %v1512_v39 = vadd.f32 %v5991_v53, %v1511_v37 }
 0x4ae   :  { %v1734_v45 = vpop.f32.mrf.mxu3  ;;  %v1732_v41 = vadd.f32 %v1731_v44, %v1694_v24 }
 0x4af   :  { %v1550_v38 = vadd.f32 %v1549_v36, %v1512_v39  ;;  %v6016_v36 = vpop.eup %6015 }
 0x4b0   :  { %vm1862_vm10 = vweird.f32 %v6016_v36 }
 0x4b3   :  { %v1696_v51 = vpop.f32.mrf.mxu2 }
 0x4b4   :  { %v1514_v21 = vpop.f32.mrf.mxu0  ;;  %v1555_v22 = vpop.f32.mrf.mxu1  ;;  %v1697_v4 = vadd.f32 %v5991_v53, %v1696_v51 }
 0x4b5   :  { %v1515_v33 = vadd.f32 %v5991_v53, %v1514_v21 }
 0x4b6   :  { %v1737_v62 = vpop.f32.mrf.mxu3  ;;  %v1735_v49 = vadd.f32 %v1734_v45, %v1697_v4 }
 0x4b7   :  { %v1553_v40 = vadd.f32 %v1552_v27, %v1515_v33 }
 0x4bb   :  { %v1699_v48 = vpop.f32.mrf.mxu2 }
 0x4bc   :  { %v1517_v1 = vpop.f32.mrf.mxu0  ;;  %v1558_v13 = vpop.f32.mrf.mxu1  ;;  %v1700_v15 = vadd.f32 %v5991_v53, %v1699_v48  ;;  %v1858_v48 = vmul.f32 54.0, %v6016_v36 }
 0x4bd   :  { %v1518_v9 = vadd.f32 %v5991_v53, %v1517_v1 }
 0x4be   :  { %v1740_v32 = vpop.f32.mrf.mxu3  ;;  %v1738_v23 = vadd.f32 %v1737_v62, %v1700_v15 }
 0x4bf   :  { %v1556_v26 = vadd.f32 %v1555_v22, %v1518_v9  ;;  %v1859_v9 = vsub.f32 1.0, %v1858_v48 }
 0x4c1   :  { %v1860_v39 = vmul.f32 %v6016_v36, %v1859_v9 }
 0x4c3   :  { %v1702_v52 = vpop.f32.mrf.mxu2 }
 0x4c4   :  { %v1520_v35 = vpop.f32.mrf.mxu0  ;;  %v1703_v20 = vadd.f32 %v5991_v53, %v1702_v52 }
 0x4c5   :  { %v1521_v11 = vadd.f32 %v5991_v53, %v1520_v35 }
 0x4c6   :  { %v1743_v47 = vpop.f32.mrf.mxu3  ;;  %v1741_v34 = vadd.f32 %v1740_v32, %v1703_v20 }
 0x4c7   :  { %v1559_v54 = vadd.f32 %v1558_v13, %v1521_v11 }
 0x4c9   :  { %5606 = vmatpush.msk.msrb.mxu0 %vm1433_vm11, %v1559_v54 }
 0x4cb   :  { %v1705_v61 = vpop.f32.mrf.mxu2  ;;  %1776 = vmatpush.msrb.mxu0 %v1556_v26 }
 0x4cc   :  { %v1706_v59 = vadd.f32 %v5991_v53, %v1705_v61  ;;  %v1540_v43 = vpop.f32.mrf.mxu0  ;;  %v1861_v61 = vadd.f32 %v6016_v36, %v1860_v39  ;;  %v1991_v39 = vld [vmem:[%s6232_s12 + $0xb0] sm:$0xff] }
 0x4cd   :  { %1777 = vmatpush.msrb.mxu0 %v1553_v40  ;;  %v1541_v2 = vadd.f32 %v1540_v43, %v1503_v19 }
 0x4ce   :  { %v1744_v6 = vadd.f32 %v1743_v47, %v1706_v59 }
 0x4cf   :  { %1778 = vmatpush.msrb.mxu0 %v1550_v38  ;;  %v1863_v38 = vsel %vm1862_vm10, %v6016_v36, %v1861_v61  ;;  %v1988_v61 = vld [vmem:[%s6232_s12 + $0x98] sm:$0xff] }
 0x4d0   :  { %5611 = vmatpush.msk.msra.mxu1 %vm1433_vm11, %v1744_v6  ;;  %vm1750_vm11 = vcmask 433152  }
 0x4d1   :  { %1779 = vmatpush.msrb.mxu0 %v1547_v60 }
 0x4d2   :  { %1808 = vmatpush.msra.mxu1 %v1741_v34 }
 0x4d4   :  { %1809 = vmatpush.msra.mxu1 %v1738_v23  ;;  %v1543_v57 = vpop.f32.mrf.mxu0 }
 0x4d5   :  { %v1544_v46 = vadd.f32 %v1543_v57, %v1506_v17 }
 0x4d6   :  { %1810 = vmatpush.msra.mxu1 %v1735_v49 }
 0x4d7   :  { %1780 = vmatpush.msrb.mxu0 %v1544_v46 }
 0x4d8   :  { %1811 = vmatpush.msra.mxu1 %v1732_v41 }
 0x4d9   :  { %1781 = vmatpush.msrb.mxu0 %v1541_v2 }
 0x4da   :  { %1812 = vmatpush.msra.mxu1 %v1729_v28  ;;  %5607 = vmatmul.msk.f32.vlgmr.msrb.gmra.mxu0 %vm1750_vm11, %v1746_v58 }
 0x4dc   :  { %1813 = vmatpush.msra.mxu1 %v1726_v0 }
 0x4dd   :  { %5612 = vmatmul.msk.f32.vlgmr.msra.gmra.mxu1 %vm1750_vm11, %v1746_v58 }
 0x4e2   :  { %5608 = vmatmul.msk.f32.gmra.mxu0 %vm1750_vm11, %v1747_v30 }
 0x4e5   :  { %5613 = vmatmul.msk.f32.gmra.mxu1 %vm1750_vm11, %v1747_v30 }
 0x4ea   :  { %5609 = vmatmul.msk.f32.gmra.mxu0 %vm1750_vm11, %v1748_v31 }
 0x4ed   :  { %5614 = vmatmul.msk.f32.gmra.mxu1 %vm1750_vm11, %v1748_v31 }
 0x4f2   :  { %5610 = vmatmul.msk.f32.gmra.mxu0 %vm1750_vm11, %v1749_v29 }
 0x4f5   :  { %5615 = vmatmul.msk.f32.gmra.mxu1 %vm1750_vm11, %v1749_v29 }
 0x557   :  { %v7393_v12 = vpop.f32.mrf.mxu0 }
 0x558   :  { %v1829_v63 = vsel %vm908_vm3, %v7393_v12, 0.0 }
 0x55a   :  { %v7395_v50 = vpop.f32.mrf.mxu1 }
 0x55b   :  { %v1843_v7 = vsel %vm908_vm3, %v7395_v50, 0.0 }
 0x55f   :  { %v7397_v14 = vpop.f32.mrf.mxu0 }
 0x560   :  { %v1830_v25 = vsel %vm908_vm3, %v7397_v14, 0.0 }
 0x561   :  { %v1831_v8 = vadd.f32 %v1830_v25, %v1829_v63 }
 0x562   :  { %v7399_v10 = vpop.f32.mrf.mxu1 }
 0x563   :  { %v1844_v44 = vsel %vm908_vm3, %v7399_v10, 0.0 }
 0x564   :  { %v1845_v51 = vadd.f32 %v1844_v44, %v1843_v7 }
 0x567   :  { %v7401_v42 = vpop.f32.mrf.mxu0 }
 0x568   :  { %v1832_v5 = vsel %vm908_vm3, %v7401_v42, 0.0 }
 0x569   :  { %v1833_v37 = vadd.f32 %v1832_v5, %v1831_v8 }
 0x56a   :  { %v7405_v3 = vpop.f32.mrf.mxu1 }
 0x56b   :  { %v1846_v45 = vsel %vm908_vm3, %v7405_v3, 0.0 }
 0x56c   :  { %v1847_v22 = vadd.f32 %v1846_v45, %v1845_v51 }
 0x56f   :  { %v7417_v27 = vpop.f32.mrf.mxu0 }
 0x570   :  { %v1835_v21 = vsel %vm1834_vm9, %v7417_v27, 0.0 }
 0x571   :  { %v1836_v62 = vadd.f32 %v1835_v21, %v1833_v37 }
 0x572   :  { %v7421_v1 = vpop.f32.mrf.mxu1 }
 0x573   :  { %v1837_v53 = vrot.slane %v1836_v62, 4  ;;  %v1848_v52 = vsel %vm1834_vm9, %v7421_v1, 0.0 }
 0x574   :  { %v1849_v32 = vadd.f32 %v1848_v52, %v1847_v22 }
 0x575   :  { %v1838_v35 = vadd.f32 %v1837_v53, %v1836_v62 }
 0x576   :  { %v1850_v11 = vrot.slane %v1849_v32, 4 }
 0x577   :  { %v1839_v13 = vrot.slane %v1838_v35, 2 }
 0x578   :  { %v1851_v33 = vadd.f32 %v1850_v11, %v1849_v32 }
 0x579   :  { %v1840_v54 = vadd.f32 %v1839_v13, %v1838_v35 }
 0x57a   :  { %v1852_v26 = vrot.slane %v1851_v33, 2 }
 0x57b   :  { %v1841_v55 = vrot.slane %v1840_v54, 1 }
 0x57c   :  { %v1853_v40 = vadd.f32 %v1852_v26, %v1851_v33 }
 0x57d   :  { %v1842_v59 = vadd.f32 %v1841_v55, %v1840_v54  ;;  %v1992_v54 = vld [vmem:[%s6232_s12 + $0xb8] sm:$0xff]  ;;  %v1990_v55 = vld [vmem:[%s6232_s12 + $0xa8] sm:$0xff] }
 0x57e   :  { %v1854_v20 = vrot.slane %v1853_v40, 1  ;;  %2076 = vmatpush.msra.mxu3 %v1992_v54  ;;  %2176 = vmatpush.msrb.mxu1 %v1992_v54 }
 0x580   :  { %v1855_v43 = vadd.f32 %v1854_v20, %v1853_v40  ;;  %2077 = vmatpush.msra.mxu3 %v1991_v39  ;;  %2177 = vmatpush.msrb.mxu1 %v1991_v39  ;;  %v1989_v40 = vld [vmem:[%s6232_s12 + $0xa0] sm:$0xff]  ;;  %v1987_v20 = vld [vmem:[%s6232_s12 + $0x90] sm:$0xff] }
 0x582   :  { %v1856_v47 = vadd.f32 %v1855_v43, %v1842_v59  ;;  %2078 = vmatpush.msra.mxu3 %v1990_v55  ;;  %2178 = vmatpush.msrb.mxu1 %v1990_v55  ;;  %v1986_v43 = vld [vmem:[%s6232_s12 + $0x88] sm:$0xff] }
 0x584   :  { %v7425_v15 = vmul.f32 %v1863_v38, %v1856_v47  ;;  %2079 = vmatpush.msra.mxu3 %v1989_v40  ;;  %2179 = vmatpush.msrb.mxu1 %v1989_v40  ;;  %v1985_v47 = vld [vmem:[%s6232_s12 + $0x80] sm:$0xff] }
 0x586   :  { %v1865_v6 = vsub.f32 %v7393_v12, %v7425_v15  ;;  %v1866_v60 = vsub.f32 %v7397_v14, %v7425_v15  ;;  %v1867_v4 = vsub.f32 %v7401_v42, %v7425_v15  ;;  %v1868_v34 = vsub.f32 %v7417_v27, %v7425_v15  ;;  %2080 = vmatpush.msra.mxu3 %v1988_v61 }
 0x587   :  { %v1886_v24 = vsub.f32 %v7395_v50, %v7425_v15  ;;  %v1887_v23 = vsub.f32 %v7399_v10, %v7425_v15  ;;  %v1888_v17 = vsub.f32 %v7405_v3, %v7425_v15  ;;  %v1889_v56 = vsub.f32 %v7421_v1, %v7425_v15  ;;  %2180 = vmatpush.msrb.mxu1 %v1988_v61 }
 0x588   :  { %v1869_v49 = vmul.f32 %v1865_v6, %v1865_v6  ;;  %v1870_v57 = vmul.f32 %v1866_v60, %v1866_v60  ;;  %v1871_v19 = vmul.f32 %v1867_v4, %v1867_v4  ;;  %v1872_v2 = vmul.f32 %v1868_v34, %v1868_v34  ;;  %2081 = vmatpush.msra.mxu3 %v1987_v20  ;;  %v1827_v34 = vld [vmem:[%s9252_s9] sm:$0x1]  ;;  %s9274_s9 = sld [smem:[#allocation30_spill]] }
 0x589   :  { %v1890_v46 = vmul.f32 %v1886_v24, %v1886_v24  ;;  %v1891_v18 = vmul.f32 %v1887_v23, %v1887_v23  ;;  %v1892_v41 = vmul.f32 %v1888_v17, %v1888_v17  ;;  %v1893_v30 = vmul.f32 %v1889_v56, %v1889_v56  ;;  %2181 = vmatpush.msrb.mxu1 %v1987_v20  ;;  %v1828_v56 = vld [vmem:[%s9253_s17] sm:$0x1]  ;;  %s9275_s17 = sld [smem:[#allocation31_spill]] }
 0x58a   :  { %v1873_v58 = vsel %vm908_vm3, %v1869_v49, 0.0  ;;  %v1874_v28 = vsel %vm908_vm3, %v1870_v57, 0.0  ;;  %v1876_v16 = vsel %vm908_vm3, %v1871_v19, 0.0  ;;  %v1878_v8 = vsel %vm1834_vm9, %v1872_v2, 0.0  ;;  %2082 = vmatpush.msra.mxu3 %v1986_v43 }
 0x58b   :  { %v1875_v0 = vadd.f32 %v1874_v28, %v1873_v58  ;;  %v1894_v31 = vsel %vm908_vm3, %v1890_v46, 0.0  ;;  %v1895_v29 = vsel %vm908_vm3, %v1891_v18, 0.0  ;;  %v1897_v5 = vsel %vm908_vm3, %v1892_v41, 0.0  ;;  %2182 = vmatpush.msrb.mxu1 %v1986_v43 }
 0x58c   :  { %v1896_v25 = vadd.f32 %v1895_v29, %v1894_v31  ;;  %v1899_v7 = vsel %vm1834_vm9, %v1893_v30, 0.0  ;;  %2083 = vmatpush.msra.mxu3 %v1985_v47 }
 0x58d   :  { %v1877_v63 = vadd.f32 %v1876_v16, %v1875_v0  ;;  %2183 = vmatpush.msrb.mxu1 %v1985_v47 }
 0x58e   :  { %v1898_v44 = vadd.f32 %v1897_v5, %v1896_v25 }
 0x58f   :  { %v1879_v36 = vadd.f32 %v1878_v8, %v1877_v63 }
 0x590   :  { %v1900_v37 = vadd.f32 %v1899_v7, %v1898_v44  ;;  %v1984_v44 = vld [vmem:[%s6232_s12 + $0x78] sm:$0xff] }
 0x591   :  { %v1880_v45 = vrot.slane %v1879_v36, 4  ;;  %2039 = vmatpush.msra.mxu2 %v1984_v44  ;;  %2139 = vmatpush.msra.mxu0 %v1984_v44 }
 0x592   :  { %v1901_v51 = vrot.slane %v1900_v37, 4 }
 0x593   :  { %v1881_v21 = vadd.f32 %v1880_v45, %v1879_v36 }
 0x594   :  { %v1902_v62 = vadd.f32 %v1901_v51, %v1900_v37  ;;  %v1983_v51 = vld [vmem:[%s6232_s12 + $0x70] sm:$0xff] }
 0x595   :  { %v1882_v48 = vrot.slane %v1881_v21, 2  ;;  %2040 = vmatpush.msra.mxu2 %v1983_v51  ;;  %2140 = vmatpush.msra.mxu0 %v1983_v51  ;;  %v7565_v51 = vld [vmem:[%s9254_s21] ss:$0 sm:$0xff]  ;;  %s9276_s21 = sld [smem:[#allocation32_spill]] }
 0x596   :  { %v1903_v22 = vrot.slane %v1902_v62, 2 }
 0x597   :  { %v1883_v53 = vadd.f32 %v1882_v48, %v1881_v21 }
 0x598   :  { %v1904_v52 = vadd.f32 %v1903_v22, %v1902_v62 }
 0x599   :  { %v1884_v32 = vrot.slane %v1883_v53, 1 }
 0x59a   :  { %v1905_v35 = vrot.slane %v1904_v52, 1 }
 0x59b   :  { %v1885_v9 = vadd.f32 %v1884_v32, %v1883_v53 }
 0x59c   :  { %v1906_v11 = vadd.f32 %v1905_v35, %v1904_v52  ;;  %v1982_v35 = vld [vmem:[%s6232_s12 + $0x68] sm:$0xff] }
 0x59d   :  { %2041 = vmatpush.msra.mxu2 %v1982_v35  ;;  %2141 = vmatpush.msra.mxu0 %v1982_v35 }
 0x59e   :  { %v1907_v13 = vadd.f32 %v1906_v11, %v1885_v9 }
 0x5a0   :  { %v1908_v33 = vmul.f32 %v1907_v13, %v1863_v38 }
 0x5a2   :  { %v1909_v26 = vadd.f32 1e-05, %v1908_v33 }
 0x5a4   :  { %6017 = vrsqrt.f32 %v1909_v26  ;;  %vm1916_vm13 = vweird.f32 %v1909_v26 }
 0x5aa   :  { %v6018_v59 = vpop.eup %6017 }
 0x5ab   :  { %v1911_v38 = vmul.f32 %v6018_v59, %v1909_v26  ;;  %vm1917_vm12 = vweird.f32 %v6018_v59 }
 0x5ac   :  { %vm1918_vm14 = vmor %vm1916_vm13, %vm1917_vm12 }
 0x5ad   :  { %v1912_v6 = vmul.f32 %v6018_v59, %v1911_v38 }
 0x5af   :  { %v1913_v60 = vmul.f32 0.5, %v1912_v6 }
 0x5b1   :  { %v1914_v4 = vsub.f32 1.5, %v1913_v60 }
 0x5b3   :  { %v1915_v24 = vmul.f32 %v6018_v59, %v1914_v4 }
 0x5b5   :  { %v1919_v23 = vsel %vm1918_vm14, %v6018_v59, %v1915_v24  ;;  %vm2416_vm14 = vcmask 1040384  }
 0x5b6   :  { %v1920_v17 = vmul.f32 %v1919_v23, %v1827_v34 }
 0x5b8   :  { %v1921_v49 = vmul.f32 %v1920_v17, %v7425_v15  ;;  %v1924_v57 = vperm.slane %v1920_v17, 0 }
 0x5ba   :  { %v1922_v19 = vsub.f32 %v1828_v56, %v1921_v49  ;;  %v1952_v46 = vmul.f32 %v1924_v57, %v7421_v1  ;;  %v1949_v41 = vmul.f32 %v1924_v57, %v7395_v50  ;;  %v1950_v2 = vmul.f32 %v1924_v57, %v7399_v10 }
 0x5bb   :  { %v1927_v58 = vmul.f32 %v1924_v57, %v7397_v14  ;;  %v1928_v28 = vmul.f32 %v1924_v57, %v7401_v42  ;;  %v1926_v0 = vmul.f32 %v1924_v57, %v7393_v12  ;;  %v1951_v30 = vmul.f32 %v1924_v57, %v7405_v3 }
 0x5bc   :  { %v1931_v18 = vperm.slane %v1922_v19, 0  ;;  %v1929_v31 = vmul.f32 %v1924_v57, %v7417_v27 }
 0x5be   :  { %v1956_v15 = vadd.f32 %v1952_v46, %v1931_v18  ;;  %v1953_v29 = vadd.f32 %v1949_v41, %v1931_v18  ;;  %v1954_v16 = vadd.f32 %v1950_v2, %v1931_v18  ;;  %v1934_v25 = vadd.f32 %v1931_v18, %v1927_v58  ;;  %v1981_v46 = vld [vmem:[%s6232_s12 + $0x60] sm:$0xff]  ;;  %v1979_v41 = vld [vmem:[%s6232_s12 + $0x50] sm:$0xff]  ;;  %v1978_v2 = vld [vmem:[%s6232_s12 + $0x48] sm:$0xff] }
 0x5bf   :  { %v1935_v1 = vadd.f32 %v1931_v18, %v1928_v28  ;;  %v1933_v63 = vadd.f32 %v1931_v18, %v1926_v0  ;;  %v1955_v50 = vadd.f32 %v1951_v30, %v1931_v18  ;;  %v1936_v5 = vadd.f32 %v1931_v18, %v1929_v31  ;;  %v1980_v18 = vld [vmem:[%s6232_s12 + $0x58] sm:$0xff]  ;;  %2042 = vmatpush.msra.mxu2 %v1981_v46  ;;  %v1977_v58 = vld [vmem:[%s6232_s12 + $0x40] sm:$0xff]  ;;  %v1975_v0 = vld [vmem:[%s6232_s12 + $0x30] sm:$0xff] }
 0x5c0   :  { %v1964_v10 = vmul.f32 0.2, %v1956_v15  ;;  %vm1957_vm15 = vcmp.ge.f32.partialorder %v1953_v29, 0.0  ;;  %vm1958_vm7 = vcmp.ge.f32.partialorder %v1954_v16, 0.0  ;;  %v1961_v14 = vmul.f32 0.2, %v1953_v29  ;;  %2142 = vmatpush.msra.mxu0 %v1981_v46 }
 0x5c1   :  { %v1962_v42 = vmul.f32 0.2, %v1954_v16  ;;  %vm1938_vm8 = vcmp.ge.f32.partialorder %v1934_v25, 0.0  ;;  %vm1939_vm11 = vcmp.ge.f32.partialorder %v1935_v1, 0.0  ;;  %v1942_v12 = vmul.f32 0.2, %v1934_v25  ;;  %2043 = vmatpush.msra.mxu2 %v1980_v18 }
 0x5c2   :  { %v7470_v3 = vsel %vm1957_vm15, %v1953_v29, %v1961_v14  ;;  %v1943_v27 = vmul.f32 0.2, %v1935_v1  ;;  %vm1937_vm9 = vcmp.ge.f32.partialorder %v1933_v63, 0.0  ;;  %v1941_v8 = vmul.f32 0.2, %v1933_v63  ;;  %2143 = vmatpush.msra.mxu0 %v1980_v18  ;;  %v1976_v28 = vld [vmem:[%s6232_s12 + $0x38] sm:$0xff] }
 0x5c3   :  { %v7473_v36 = vsel %vm1958_vm7, %v1954_v16, %v1962_v42  ;;  %v2120_v7 = vrot.slane %v7470_v3, 2  ;;  %v2101_v37 = vrot.slane %v7470_v3, 1  ;;  %v7477_v45 = vsel %vm1938_vm8, %v1934_v25, %v1942_v12  ;;  %2044 = vmatpush.msra.mxu2 %v1979_v41  ;;  %v1974_v30 = vld [vmem:[%s6232_s12 + $0x28] sm:$0xff]  ;;  %v1973_v31 = vld [vmem:[%s6232_s12 + $0x20] sm:$0xff]  ;;  %v1971_v29 = vld [vmem:[%s6232_s12 + $0x10] sm:$0xff] }
 0x5c4   :  { %v2121_v21 = vrot.slane %v7473_v36, 2  ;;  %v2102_v62 = vrot.slane %v7473_v36, 1  ;;  %v7483_v48 = vsel %vm1939_vm11, %v1935_v1, %v1943_v27  ;;  %v1999_v22 = vrot.slane %v7477_v45, 1  ;;  %2144 = vmatpush.msra.mxu0 %v1979_v41  ;;  %v1970_v16 = vld [vmem:[%s6232_s12 + $0x8] sm:$0xff]  ;;  %v1969_v25 = vld [vmem:[%s6232_s12] sm:$0xff] }
 0x5c5   :  { %v2001_v53 = vrot.slane %v7483_v48, 1  ;;  %v7487_v52 = vsel %vm1937_vm9, %v1933_v63, %v1941_v8  ;;  %v2018_v32 = vrot.slane %v7477_v45, 2  ;;  %vm1959_vm10 = vcmp.ge.f32.partialorder %v1955_v50, 0.0  ;;  %2045 = vmatpush.msra.mxu2 %v1978_v2 }
 0x5c6   :  { %v2122_v9 = vsel %vm280_vm0, %v2120_v7, %v2121_v21  ;;  %v2103_v11 = vsel %vm240_vm1, %v2101_v37, %v2102_v62  ;;  %v2017_v13 = vrot.slane %v7487_v52, 2  ;;  %v1998_v33 = vrot.slane %v7487_v52, 1  ;;  %2145 = vmatpush.msra.mxu0 %v1978_v2 }
 0x5c7   :  { %5620 = vmatmul.msk.f32.vlgmr.msrb.gmra.mxu1 %vm908_vm3, %v2122_v9  ;;  %2108 = vrot.lane.b32.xlu1 %v2103_v11, %s6143_s13  ;;  %v2002_v54 = vsel %vm240_vm1, %v1999_v22, %v2001_v53  ;;  %v1963_v39 = vmul.f32 0.2, %v1955_v50  ;;  %vm1940_vm12 = vcmp.ge.f32.partialorder %v1936_v5, 0.0  ;;  %v1944_v26 = vmul.f32 0.2, %v1936_v5 }
 0x5c8   :  { %2007 = vrot.lane.b32.xlu2 %v2002_v54, %s6143_s13  ;;  %v2019_v55 = vsel %vm280_vm0, %v2017_v13, %v2018_v32  ;;  %v2000_v40 = vsel %vm240_vm1, %v1998_v33, %v1999_v22  ;;  %vm1960_vm13 = vcmp.ge.f32.partialorder %v1956_v15, 0.0  ;;  %v2020_v60 = vrot.slane %v7483_v48, 2  ;;  %2046 = vmatpush.msra.mxu2 %v1977_v58 }
 0x5c9   :  { %5616 = vmatmul.msk.f32.vlgmr.msra.gmra.mxu3 %vm908_vm3, %v2019_v55  ;;  %2005 = vrot.lane.b32.xlu0 %v2000_v40, %s6143_s13  ;;  %v7504_v61 = vsel %vm1959_vm10, %v1955_v50, %v1963_v39  ;;  %v7506_v20 = vsel %vm1940_vm12, %v1936_v5, %v1944_v26  ;;  %v7508_v59 = vsel %vm1960_vm13, %v1956_v15, %v1964_v10  ;;  %v1972_v15 = vld [vmem:[%s6232_s12 + $0x18] sm:$0xff]  ;;  %vm2915_vm15 = vcmask 1041408   ;;  %s9261_s12 = sld [smem:[#allocation20_spill]] }
 0x5ca   :  { %v2123_v43 = vrot.slane %v7504_v61, 2  ;;  %v2003_v38 = vrot.slane %v7506_v20, 1  ;;  %v2104_v47 = vrot.slane %v7504_v61, 1  ;;  %v2106_v6 = vrot.slane %v7508_v59, 1  ;;  %2146 = vmatpush.msra.mxu0 %v1977_v58  ;;  %2047 = vmatpush.msra.mxu2 %v1976_v28 }
 0x5cb   :  { %v2021_v23 = vsel %vm280_vm0, %v2018_v32, %v2020_v60  ;;  %v2125_v56 = vrot.slane %v7508_v59, 2  ;;  %v2022_v49 = vrot.slane %v7506_v20, 2 }
 0x5cc   :  { %v2124_v4 = vsel %vm280_vm0, %v2121_v21, %v2123_v43  ;;  %v2004_v34 = vsel %vm240_vm1, %v2001_v53, %v2003_v38  ;;  %v2107_v24 = vsel %vm240_vm1, %v2104_v47, %v2106_v6  ;;  %v2105_v17 = vsel %vm240_vm1, %v2102_v62, %v2104_v47  ;;  %2147 = vmatpush.msra.mxu0 %v1976_v28 }
 0x5cd   :  { %v2126_v57 = vsel %vm280_vm0, %v2123_v43, %v2125_v56  ;;  %v2023_v19 = vsel %vm280_vm0, %v2020_v60, %v2022_v49  ;;  %2048 = vmatpush.msra.mxu2 %v1975_v0 }
 0x5ce   :  { %2148 = vmatpush.msra.mxu0 %v1975_v0 }
 0x5cf   :  { %5621 = vmatmul.msk.f32.gmra.mxu1 %vm908_vm3, %v2124_v4  ;;  %2009 = vrot.lane.b32.xlu1 %v2004_v34, %s6143_s13 }
 0x5d0   :  { %2112 = vrot.lane.b32.xlu2 %v2107_v24, %s6143_s13  ;;  %2049 = vmatpush.msra.mxu2 %v1974_v30 }
 0x5d1   :  { %5617 = vmatmul.msk.f32.gmra.mxu3 %vm908_vm3, %v2021_v23  ;;  %2110 = vrot.lane.b32.xlu0 %v2105_v17, %s6143_s13 }
 0x5d2   :  { %2149 = vmatpush.msra.mxu0 %v1974_v30  ;;  %2050 = vmatpush.msra.mxu2 %v1973_v31 }
 0x5d4   :  { %2150 = vmatpush.msra.mxu0 %v1973_v31  ;;  %2051 = vmatpush.msra.mxu2 %v1972_v15 }
 0x5d6   :  { %2151 = vmatpush.msra.mxu0 %v1972_v15  ;;  %2052 = vmatpush.msra.mxu2 %v1971_v29 }
 0x5d7   :  { %5622 = vmatmul.msk.f32.gmra.mxu1 %vm908_vm3, %v2126_v57  ;;  %2114 = vrot.lane.b32.xlu1 %v2106_v6, %s6143_s13 }
 0x5d8   :  { %2152 = vmatpush.msra.mxu0 %v1971_v29  ;;  %2053 = vmatpush.msra.mxu2 %v1970_v16 }
 0x5d9   :  { %5618 = vmatmul.msk.f32.gmra.mxu3 %vm908_vm3, %v2023_v19  ;;  %2011 = vrot.lane.b32.xlu0 %v2003_v38, %s6143_s13 }
 0x5da   :  { %2153 = vmatpush.msra.mxu0 %v1970_v16  ;;  %2054 = vmatpush.msra.mxu2 %v1969_v25 }
 0x5dc   :  { %2154 = vmatpush.msra.mxu0 %v1969_v25 }
 0x5df   :  { %5623 = vmatmul.msk.f32.gmra.mxu1 %vm908_vm3, %v2125_v56 }
 0x5e1   :  { %5619 = vmatmul.msk.f32.gmra.mxu3 %vm908_vm3, %v2022_v49 }
 0x622   :  { %v2008_v10 = vpop.permute.xlu2 %2007 }
 0x623   :  { %v2025_v42 = vsel %vm908_vm3, %v7477_v45, %v2008_v10 }
 0x62a   :  { %v2113_v8 = vpop.permute.xlu2 %2112 }
 0x62b   :  { %v2129_v44 = vsel %vm908_vm3, %v7504_v61, %v2113_v8 }
 0x639   :  { %v2109_v1 = vpop.permute.xlu1 %2108 }
 0x63a   :  { %v2127_v63 = vsel %vm908_vm3, %v7470_v3, %v2109_v1 }
 0x63b   :  { %v2006_v50 = vpop.permute.xlu0 %2005  ;;  %2155 = vmatmul.f32.vlgmr.msra.gmra.mxu0 %v2127_v63  ;;  %v2454_v63 = vld [vmem:[#allocation2 + $0xf0] sm:$0xff] }
 0x63c   :  { %v2024_v5 = vsel %vm908_vm3, %v7487_v52, %v2006_v50  ;;  %v2452_v50 = vld [vmem:[#allocation2 + $0xe0] sm:$0xff]  ;;  %2633 = vmatpush.msrb.mxu2 %v2454_v63  ;;  %v2470_v63 = vld [vmem:[#allocation2 + $0x170] sm:$0xff] }
 0x63d   :  { %2055 = vmatmul.f32.vlgmr.msra.gmra.mxu2 %v2024_v5 }
 0x63e   :  { %2634 = vmatpush.msrb.mxu2 %v2452_v50  ;;  %v2516_v50 = vld [vmem:[#allocation2 + $0x2e0] sm:$0xff] }
 0x641   :  { %v2010_v27 = vpop.permute.xlu1 %2009 }
 0x642   :  { %v2026_v3 = vsel %vm908_vm3, %v7483_v48, %v2010_v27  ;;  %v2484_v27 = vld [vmem:[#allocation2 + $0x1e0] sm:$0xff] }
 0x643   :  { %v2111_v14 = vpop.permute.xlu0 %2110 }
 0x644   :  { %v2128_v12 = vsel %vm908_vm3, %v7473_v36, %v2111_v14  ;;  %v2185_v62 = vpop.f32.mrf.mxu1  ;;  %v2486_v14 = vld [vmem:[#allocation2 + $0x1f0] sm:$0xff] }
 0x645   :  { %2058 = vmatmul.f32.gmra.mxu2 %v2025_v42  ;;  %2158 = vmatmul.f32.gmra.mxu0 %v2128_v12  ;;  %v2450_v12 = vld [vmem:[#allocation2 + $0xd0] sm:$0xff] }
 0x646   :  { %2653 = vmatpush.msrb.mxu3 %v2486_v14  ;;  %2635 = vmatpush.msrb.mxu2 %v2450_v12  ;;  %v2468_v14 = vld [vmem:[#allocation2 + $0x160] sm:$0xff]  ;;  %v2538_v12 = vld [vmem:[#allocation2 + $0x390] sm:$0xff] }
 0x648   :  { %2654 = vmatpush.msrb.mxu3 %v2484_v27  ;;  %v2426_v27 = vld [vmem:[#allocation2 + $0x10] sm:$0xff] }
 0x649   :  { %v2115_v7 = vpop.permute.xlu1 %2114 }
 0x64a   :  { %v2130_v36 = vsel %vm908_vm3, %v7508_v59, %v2115_v7 }
 0x64b   :  { %v2012_v37 = vpop.permute.xlu0 %2011 }
 0x64c   :  { %v2027_v45 = vsel %vm908_vm3, %v7506_v20, %v2012_v37  ;;  %v2085_v22 = vpop.f32.mrf.mxu3  ;;  %v2188_v55 = vpop.f32.mrf.mxu1  ;;  %v2550_v37 = vld [vmem:[#allocation2 + $0x3f0] sm:$0xff] }
 0x64d   :  { %2061 = vmatmul.f32.gmra.mxu2 %v2026_v3  ;;  %2161 = vmatmul.f32.gmra.mxu0 %v2129_v44  ;;  %v2482_v44 = vld [vmem:[#allocation2 + $0x1d0] sm:$0xff] }
 0x64e   :  { %2693 = vmatpush.msra.mxu1 %v2550_v37  ;;  %2655 = vmatpush.msrb.mxu3 %v2482_v44  ;;  %v2536_v44 = vld [vmem:[#allocation2 + $0x380] sm:$0xff] }
 0x64f   :  { %v2464_v37 = vld [vmem:[#allocation2 + $0x140] sm:$0xff] }
 0x654   :  { %v2088_v59 = vpop.f32.mrf.mxu3  ;;  %v2191_v17 = vpop.f32.mrf.mxu1 }
 0x655   :  { %2064 = vmatmul.f32.gmra.mxu2 %v2027_v45  ;;  %2164 = vmatmul.f32.gmra.mxu0 %v2130_v36 }
 0x65c   :  { %v2091_v19 = vpop.f32.mrf.mxu3 }
 0x6b8   :  { %v2156_v21 = vpop.f32.mrf.mxu0 }
 0x6b9   :  { %v2157_v48 = vadd.f32 %v7565_v51, %v2156_v21  ;;  %v2448_v21 = vld [vmem:[#allocation2 + $0xc0] sm:$0xff] }
 0x6ba   :  { %2636 = vmatpush.msrb.mxu2 %v2448_v21  ;;  %v2582_v21 = vld [vmem:[#allocation2 + $0x4f0] sm:$0xff] }
 0x6bb   :  { %v7568_v53 = vadd.f32 %v2185_v62, %v2157_v48  ;;  %v2480_v48 = vld [vmem:[#allocation2 + $0x1c0] sm:$0xff] }
 0x6bc   :  { %2656 = vmatpush.msrb.mxu3 %v2480_v48  ;;  %v2508_v48 = vld [vmem:[#allocation2 + $0x2a0] sm:$0xff] }
 0x6bd   :  { %v2305_v11 = vrot.slane %v7568_v53, 3  ;;  %v2301_v13 = vrot.slane %v7568_v53, 2  ;;  %v2297_v26 = vrot.slane %v7568_v53, 1  ;;  %v2311_v4 = vrot.slane %v7568_v53, 5 }
 0x6be   :  { %v2315_v34 = vrot.slane %v7568_v53, 6  ;;  %v2319_v58 = vrot.slane %v7568_v53, 7 }
 0x6c0   :  { %v2056_v52 = vpop.f32.mrf.mxu2 }
 0x6c1   :  { %v2057_v32 = vadd.f32 %v7565_v51, %v2056_v52  ;;  %v2446_v52 = vld [vmem:[#allocation2 + $0xb0] sm:$0xff] }
 0x6c2   :  { %v2159_v35 = vpop.f32.mrf.mxu0  ;;  %2637 = vmatpush.msrb.mxu2 %v2446_v52  ;;  %v2580_v52 = vld [vmem:[#allocation2 + $0x4e0] sm:$0xff] }
 0x6c3   :  { %v7571_v9 = vadd.f32 %v2085_v22, %v2057_v32  ;;  %v2160_v2 = vadd.f32 %v7565_v51, %v2159_v35  ;;  %v2548_v22 = vld [vmem:[#allocation2 + $0x3e0] sm:$0xff]  ;;  %v2478_v32 = vld [vmem:[#allocation2 + $0x1b0] sm:$0xff] }
 0x6c4   :  { %v2546_v35 = vld [vmem:[#allocation2 + $0x3d0] sm:$0xff]  ;;  %2694 = vmatpush.msra.mxu1 %v2548_v22  ;;  %2657 = vmatpush.msrb.mxu3 %v2478_v32  ;;  %v2532_v22 = vld [vmem:[#allocation2 + $0x360] sm:$0xff] }
 0x6c5   :  { %v2206_v33 = vrot.slane %v7571_v9, 3  ;;  %v2202_v54 = vrot.slane %v7571_v9, 2  ;;  %v2198_v39 = vrot.slane %v7571_v9, 1  ;;  %v2212_v47 = vrot.slane %v7571_v9, 5  ;;  %v2460_v32 = vld [vmem:[#allocation2 + $0x120] sm:$0xff] }
 0x6c6   :  { %v2216_v6 = vrot.slane %v7571_v9, 6  ;;  %v2220_v41 = vrot.slane %v7571_v9, 7  ;;  %v7604_v1 = vadd.f32 %v2188_v55, %v2160_v2  ;;  %2695 = vmatpush.msra.mxu1 %v2546_v35  ;;  %v2506_v35 = vld [vmem:[#allocation2 + $0x290] sm:$0xff] }
 0x6c7   :  { %v5909_v40 = vpack.i.bf16 %v2206_v33, %v2305_v11  ;;  %v5904_v61 = vpack.i.bf16 %v2202_v54, %v2301_v13  ;;  %v5899_v20 = vpack.i.bf16 %v2198_v39, %v2297_v26  ;;  %v5914_v24 = vpack.i.bf16 %v2212_v47, %v2311_v4  ;;  %v2444_v33 = vld [vmem:[#allocation2 + $0xa0] sm:$0xff] }
 0x6c8   :  { %v2059_v43 = vpop.f32.mrf.mxu2  ;;  %v5919_v23 = vpack.i.bf16 %v2216_v6, %v2315_v34  ;;  %v5924_v29 = vpack.i.bf16 %v2220_v41, %v2319_v58  ;;  %v2342_v8 = vrot.slane %v7604_v1, 6  ;;  %v2324_v3 = vrot.slane %v7604_v1, 1  ;;  %v2476_v39 = vld [vmem:[#allocation2 + $0x1a0] sm:$0xff]  ;;  %2638 = vmatpush.msrb.mxu2 %v2444_v33  ;;  %v2474_v6 = vld [vmem:[#allocation2 + $0x190] sm:$0xff] }
 0x6c9   :  { %5910 = vrot.lane.b32.xlu1 %v5909_v40, %s6146_s25  ;;  %5905 = vrot.lane.b32.xlu0 %v5904_v61, %s6143_s13  ;;  %v2060_v46 = vadd.f32 %v7565_v51, %v2059_v43  ;;  %v2544_v26 = vld [vmem:[#allocation2 + $0x3c0] sm:$0xff]  ;;  %v2328_v55 = vrot.slane %v7604_v1, 2  ;;  %v2332_v40 = vrot.slane %v7604_v1, 3  ;;  %v2442_v61 = vld [vmem:[#allocation2 + $0x90] sm:$0xff] }
 0x6ca   :  { %5900 = vrot.lane.b32.xlu2 %v5899_v20, %s6142_s5  ;;  %v2162_v38 = vpop.f32.mrf.mxu0  ;;  %v2338_v20 = vrot.slane %v7604_v1, 5  ;;  %2658 = vmatpush.msrb.mxu3 %v2476_v39  ;;  %v2458_v33 = vld [vmem:[#allocation2 + $0x110] sm:$0xff]  ;;  %v2528_v39 = vld [vmem:[#allocation2 + $0x340] sm:$0xff] }
 0x6cb   :  { %v2163_v60 = vadd.f32 %v7565_v51, %v2162_v38  ;;  %v7602_v15 = vadd.f32 %v2088_v59, %v2060_v46  ;;  %v2440_v38 = vld [vmem:[#allocation2 + $0x80] sm:$0xff]  ;;  %2696 = vmatpush.msra.mxu1 %v2544_v26  ;;  %2639 = vmatpush.msrb.mxu2 %v2442_v61  ;;  %v2526_v61 = vld [vmem:[#allocation2 + $0x330] sm:$0xff] }
 0x6cc   :  { %2659 = vmatpush.msrb.mxu3 %v2474_v6  ;;  %v2576_v26 = vld [vmem:[#allocation2 + $0x4c0] sm:$0xff] }
 0x6cd   :  { %v7587_v49 = vadd.f32 %v2191_v17, %v2163_v60  ;;  %v2243_v5 = vrot.slane %v7602_v15, 6  ;;  %v2225_v10 = vrot.slane %v7602_v15, 1  ;;  %v2229_v11 = vrot.slane %v7602_v15, 2  ;;  %v2438_v60 = vld [vmem:[#allocation2 + $0x70] sm:$0xff]  ;;  %2640 = vmatpush.msrb.mxu2 %v2440_v38  ;;  %v2524_v38 = vld [vmem:[#allocation2 + $0x320] sm:$0xff] }
 0x6ce   :  { %v2233_v13 = vrot.slane %v7602_v15, 3  ;;  %v2239_v54 = vrot.slane %v7602_v15, 5  ;;  %v2612_v6 = vld [vmem:[#allocation2 + $0x5e0] sm:$0xff] }
 0x6cf   :  { %v2367_v0 = vrot.slane %v7587_v49, 2  ;;  %v2363_v31 = vrot.slane %v7587_v49, 1  ;;  %v2371_v7 = vrot.slane %v7587_v49, 3  ;;  %v5949_v45 = vpack.i.bf16 %v2243_v5, %v2342_v8  ;;  %2641 = vmatpush.msrb.mxu2 %v2438_v60  ;;  %v2540_v5 = vld [vmem:[#allocation2 + $0x3a0] sm:$0xff]  ;;  %v2466_v8 = vld [vmem:[#allocation2 + $0x150] sm:$0xff] }
 0x6d0   :  { %v2062_v56 = vpop.f32.mrf.mxu2  ;;  %v5954_v36 = vpack.i.bf16 %v2225_v10, %v2324_v3  ;;  %v5964_v59 = vpack.i.bf16 %v2229_v11, %v2328_v55  ;;  %v5969_v43 = vpack.i.bf16 %v2233_v13, %v2332_v40  ;;  %v5944_v47 = vpack.i.bf16 %v2239_v54, %v2338_v20  ;;  %v2428_v10 = vld [vmem:[#allocation2 + $0x20] sm:$0xff]  ;;  %v2530_v11 = vld [vmem:[#allocation2 + $0x350] sm:$0xff] }
 0x6d1   :  { %v2063_v57 = vadd.f32 %v7565_v51, %v2062_v56  ;;  %5915 = vrot.lane.b32.xlu1 %v5914_v24, %s6142_s5  ;;  %5920 = vrot.lane.b32.xlu0 %v5919_v23, %s6143_s13  ;;  %v2436_v24 = vld [vmem:[#allocation2 + $0x60] sm:$0xff]  ;;  %v2247_v23 = vrot.slane %v7602_v15, 7  ;;  %v2381_v17 = vrot.slane %v7587_v49, 6  ;;  %v2385_v56 = vrot.slane %v7587_v49, 7  ;;  %v2578_v13 = vld [vmem:[#allocation2 + $0x4d0] sm:$0xff] }
 0x6d2   :  { %2642 = vmatpush.msrb.mxu2 %v2436_v24  ;;  %v2512_v3 = vld [vmem:[#allocation2 + $0x2c0] sm:$0xff]  ;;  %v2502_v40 = vld [vmem:[#allocation2 + $0x270] sm:$0xff] }
 0x6d3   :  { %v7593_v18 = vadd.f32 %v2091_v19, %v2063_v57  ;;  %v2434_v57 = vld [vmem:[#allocation2 + $0x50] sm:$0xff]  ;;  %v2346_v19 = vrot.slane %v7604_v1, 7  ;;  %v2504_v54 = vld [vmem:[#allocation2 + $0x280] sm:$0xff] }
 0x6d4   :  { %2643 = vmatpush.msrb.mxu2 %v2434_v57  ;;  %v2456_v55 = vld [vmem:[#allocation2 + $0x100] sm:$0xff]  ;;  %v2574_v20 = vld [vmem:[#allocation2 + $0x4b0] sm:$0xff] }
 0x6d5   :  { %v2268_v28 = vrot.slane %v7593_v18, 2  ;;  %v2264_v30 = vrot.slane %v7593_v18, 1  ;;  %v2272_v42 = vrot.slane %v7593_v18, 3  ;;  %v2282_v4 = vrot.slane %v7593_v18, 6  ;;  %v2498_v60 = vld [vmem:[#allocation2 + $0x250] sm:$0xff]  ;;  %v2608_v57 = vld [vmem:[#allocation2 + $0x5c0] sm:$0xff] }
 0x6d6   :  { %v2286_v34 = vrot.slane %v7593_v18, 7  ;;  %v5959_v2 = vpack.i.bf16 %v2247_v23, %v2346_v19  ;;  %v2278_v58 = vrot.slane %v7593_v18, 5  ;;  %v2610_v24 = vld [vmem:[#allocation2 + $0x5d0] sm:$0xff]  ;;  %v2496_v23 = vld [vmem:[#allocation2 + $0x240] sm:$0xff]  ;;  %v2455_v19 = vld [vmem:[#allocation2 + $0xf8] sm:$0xff] }
 0x6d7   :  { %v5934_v16 = vpack.i.bf16 %v2268_v28, %v2367_v0  ;;  %v5929_v25 = vpack.i.bf16 %v2264_v30, %v2363_v31  ;;  %v5939_v62 = vpack.i.bf16 %v2272_v42, %v2371_v7  ;;  %v5979_v46 = vpack.i.bf16 %v2282_v4, %v2381_v17  ;;  %v2432_v30 = vld [vmem:[#allocation2 + $0x40] sm:$0xff]  ;;  %v2514_v42 = vld [vmem:[#allocation2 + $0x2d0] sm:$0xff] }
 0x6d8   :  { %v5984_v41 = vpack.i.bf16 %v2286_v34, %v2385_v56  ;;  %v2377_v28 = vrot.slane %v7587_v49, 5  ;;  %v2472_v31 = vld [vmem:[#allocation2 + $0x180] sm:$0xff]  ;;  %2644 = vmatpush.msrb.mxu2 %v2432_v30  ;;  %v2522_v4 = vld [vmem:[#allocation2 + $0x310] sm:$0xff] }
 0x6d9   :  { %5925 = vrot.lane.b32.xlu1 %v5924_v29, %s6146_s25  ;;  %5935 = vrot.lane.b32.xlu0 %v5934_v16, %s6143_s13  ;;  %v2518_v29 = vld [vmem:[#allocation2 + $0x2f0] sm:$0xff]  ;;  %v2424_v7 = vld [vmem:[#allocation2] sm:$0xff] }
 0x6da   :  { %5930 = vrot.lane.b32.xlu2 %v5929_v25, %s6142_s5  ;;  %v5974_v0 = vpack.i.bf16 %v2278_v58, %v2377_v28  ;;  %2660 = vmatpush.msrb.mxu3 %v2472_v31  ;;  %v2542_v16 = vld [vmem:[#allocation2 + $0x3b0] sm:$0xff]  ;;  %v2520_v17 = vld [vmem:[#allocation2 + $0x300] sm:$0xff]  ;;  %v2453_v58 = vld [vmem:[#allocation2 + $0xe8] sm:$0xff] }
 0x6db   :  { %v2430_v25 = vld [vmem:[#allocation2 + $0x30] sm:$0xff]  ;;  %2673 = vmatpush.msrb.mxu0 %v2518_v29  ;;  %2697 = vmatpush.msra.mxu1 %v2542_v16  ;;  %v2568_v56 = vld [vmem:[#allocation2 + $0x480] sm:$0xff]  ;;  %v2451_v31 = vld [vmem:[#allocation2 + $0xd8] sm:$0xff] }
 0x6dc   :  { %2645 = vmatpush.msrb.mxu2 %v2430_v25  ;;  %2661 = vmatpush.msrb.mxu3 %v2470_v63  ;;  %v2570_v34 = vld [vmem:[#allocation2 + $0x490] sm:$0xff]  ;;  %v2492_v28 = vld [vmem:[#allocation2 + $0x220] sm:$0xff]  ;;  %v2449_v63 = vld [vmem:[#allocation2 + $0xc8] sm:$0xff] }
 0x6dd   :  { %2674 = vmatpush.msrb.mxu0 %v2516_v50  ;;  %2698 = vmatpush.msra.mxu1 %v2540_v5  ;;  %v2604_v30 = vld [vmem:[#allocation2 + $0x5a0] sm:$0xff]  ;;  %v2490_v29 = vld [vmem:[#allocation2 + $0x210] sm:$0xff] }
 0x6de   :  { %2646 = vmatpush.msrb.mxu2 %v2428_v10  ;;  %2662 = vmatpush.msrb.mxu3 %v2468_v14  ;;  %v2562_v16 = vld [vmem:[#allocation2 + $0x450] sm:$0xff]  ;;  %v2488_v50 = vld [vmem:[#allocation2 + $0x200] sm:$0xff]  ;;  %v2447_v14 = vld [vmem:[#allocation2 + $0xb8] sm:$0xff] }
 0x6df   :  { %2675 = vmatpush.msrb.mxu0 %v2514_v42  ;;  %2699 = vmatpush.msra.mxu1 %v2538_v12  ;;  %v2602_v25 = vld [vmem:[#allocation2 + $0x590] sm:$0xff]  ;;  %v2560_v5 = vld [vmem:[#allocation2 + $0x440] sm:$0xff]  ;;  %v2487_v42 = vld [vmem:[#allocation2 + $0x1f8] sm:$0xff] }
 0x6e0   :  { %2647 = vmatpush.msrb.mxu2 %v2426_v27  ;;  %2663 = vmatpush.msrb.mxu3 %v2466_v8  ;;  %v2600_v10 = vld [vmem:[#allocation2 + $0x580] sm:$0xff]  ;;  %v2558_v12 = vld [vmem:[#allocation2 + $0x430] sm:$0xff]  ;;  %v2445_v8 = vld [vmem:[#allocation2 + $0xa8] sm:$0xff] }
 0x6e1   :  { %5950 = vrot.lane.b32.xlu0 %v5949_v45, %s6143_s13  ;;  %5955 = vrot.lane.b32.xlu1 %v5954_v36, %s6142_s5  ;;  %v2510_v45 = vld [vmem:[#allocation2 + $0x2b0] sm:$0xff] }
 0x6e2   :  { %5940 = vrot.lane.b32.xlu2 %v5939_v62, %s6146_s25  ;;  %v2534_v36 = vld [vmem:[#allocation2 + $0x370] sm:$0xff]  ;;  %2676 = vmatpush.msrb.mxu0 %v2512_v3  ;;  %v2485_v3 = vld [vmem:[#allocation2 + $0x1e8] sm:$0xff] }
 0x6e3   :  { %2700 = vmatpush.msra.mxu1 %v2536_v44  ;;  %v2462_v62 = vld [vmem:[#allocation2 + $0x130] sm:$0xff]  ;;  %2648 = vmatpush.msrb.mxu2 %v2424_v7  ;;  %v2556_v44 = vld [vmem:[#allocation2 + $0x420] sm:$0xff] }
 0x6e4   :  { %2664 = vmatpush.msrb.mxu3 %v2464_v37  ;;  %2677 = vmatpush.msrb.mxu0 %v2510_v45  ;;  %v2598_v27 = vld [vmem:[#allocation2 + $0x570] sm:$0xff]  ;;  %v2596_v7 = vld [vmem:[#allocation2 + $0x560] sm:$0xff]  ;;  %v2443_v37 = vld [vmem:[#allocation2 + $0x98] sm:$0xff] }
 0x6e5   :  { %2701 = vmatpush.msra.mxu1 %v2534_v36  ;;  %2713 = vmatpush.msra.mxu2 %v2582_v21  ;;  %v2483_v45 = vld [vmem:[#allocation2 + $0x1d8] sm:$0xff]  ;;  %v2554_v36 = vld [vmem:[#allocation2 + $0x410] sm:$0xff] }
 0x6e6   :  { %2665 = vmatpush.msrb.mxu3 %v2462_v62  ;;  %2678 = vmatpush.msrb.mxu0 %v2508_v48  ;;  %v2594_v21 = vld [vmem:[#allocation2 + $0x550] sm:$0xff]  ;;  %v2441_v48 = vld [vmem:[#allocation2 + $0x88] sm:$0xff] }
 0x6e7   :  { %2702 = vmatpush.msra.mxu1 %v2532_v22  ;;  %2714 = vmatpush.msra.mxu2 %v2580_v52  ;;  %v2481_v22 = vld [vmem:[#allocation2 + $0x1c8] sm:$0xff]  ;;  %v2552_v52 = vld [vmem:[#allocation2 + $0x400] sm:$0xff] }
 0x6e8   :  { %2666 = vmatpush.msrb.mxu3 %v2460_v32  ;;  %2679 = vmatpush.msrb.mxu0 %v2506_v35  ;;  %v2592_v32 = vld [vmem:[#allocation2 + $0x540] sm:$0xff]  ;;  %v2439_v35 = vld [vmem:[#allocation2 + $0x78] sm:$0xff] }
 0x6e9   :  { %5965 = vrot.lane.b32.xlu0 %v5964_v59, %s6143_s13  ;;  %5970 = vrot.lane.b32.xlu1 %v5969_v43, %s6146_s25  ;;  %v2614_v59 = vld [vmem:[#allocation2 + $0x5f0] sm:$0xff]  ;;  %v2500_v43 = vld [vmem:[#allocation2 + $0x260] sm:$0xff] }
 0x6ea   :  { %5945 = vrot.lane.b32.xlu2 %v5944_v47, %s6142_s5  ;;  %2703 = vmatpush.msra.mxu1 %v2530_v11  ;;  %v2572_v47 = vld [vmem:[#allocation2 + $0x4a0] sm:$0xff]  ;;  %v2479_v11 = vld [vmem:[#allocation2 + $0x1b8] sm:$0xff] }
 0x6eb   :  { %2715 = vmatpush.msra.mxu2 %v2578_v13  ;;  %2667 = vmatpush.msrb.mxu3 %v2458_v33  ;;  %v2590_v13 = vld [vmem:[#allocation2 + $0x530] sm:$0xff]  ;;  %v2437_v33 = vld [vmem:[#allocation2 + $0x68] sm:$0xff] }
 0x6ec   :  { %2680 = vmatpush.msrb.mxu0 %v2504_v54  ;;  %2704 = vmatpush.msra.mxu1 %v2528_v39  ;;  %v2477_v54 = vld [vmem:[#allocation2 + $0x1a8] sm:$0xff]  ;;  %v2588_v39 = vld [vmem:[#allocation2 + $0x520] sm:$0xff] }
 0x6ed   :  { %2716 = vmatpush.msra.mxu2 %v2576_v26  ;;  %2668 = vmatpush.msrb.mxu3 %v2456_v55  ;;  %v2435_v26 = vld [vmem:[#allocation2 + $0x58] sm:$0xff] }
 0x6ee   :  { %2681 = vmatpush.msrb.mxu0 %v2502_v40  ;;  %2705 = vmatpush.msra.mxu1 %v2526_v61  ;;  %v2475_v55 = vld [vmem:[#allocation2 + $0x198] sm:$0xff]  ;;  %v2586_v40 = vld [vmem:[#allocation2 + $0x510] sm:$0xff] }
 0x6ef   :  { %2717 = vmatpush.msra.mxu2 %v2574_v20  ;;  %2733 = vmatpush.msra.mxu3 %v2614_v59  ;;  %v2433_v20 = vld [vmem:[#allocation2 + $0x48] sm:$0xff] }
 0x6f0   :  { %2682 = vmatpush.msrb.mxu0 %v2500_v43  ;;  %2706 = vmatpush.msra.mxu1 %v2524_v38  ;;  %v2473_v59 = vld [vmem:[#allocation2 + $0x188] sm:$0xff]  ;;  %v2584_v43 = vld [vmem:[#allocation2 + $0x500] sm:$0xff]  ;;  %v2431_v38 = vld [vmem:[#allocation2 + $0x38] sm:$0xff] }
 0x6f1   :  { %5980 = vrot.lane.b32.xlu0 %v5979_v46, %s6143_s13  ;;  %5985 = vrot.lane.b32.xlu1 %v5984_v41, %s6146_s25  ;;  %v2494_v46 = vld [vmem:[#allocation2 + $0x230] sm:$0xff] }
 0x6f2   :  { %5960 = vrot.lane.b32.xlu2 %v5959_v2, %s6146_s25  ;;  %2718 = vmatpush.msra.mxu2 %v2572_v47  ;;  %v2566_v41 = vld [vmem:[#allocation2 + $0x470] sm:$0xff]  ;;  %v2471_v47 = vld [vmem:[#allocation2 + $0x178] sm:$0xff]  ;;  %s9277_s25 = sld [smem:[#allocation33_spill]] }
 0x6f3   :  { %2734 = vmatpush.msra.mxu3 %v2612_v6  ;;  %2683 = vmatpush.msrb.mxu0 %v2498_v60  ;;  %v2606_v2 = vld [vmem:[#allocation2 + $0x5b0] sm:$0xff]  ;;  %v2429_v6 = vld [vmem:[#allocation2 + $0x28] sm:$0xff] }
 0x6f4   :  { %2707 = vmatpush.msra.mxu1 %v2522_v4  ;;  %2719 = vmatpush.msra.mxu2 %v2570_v34  ;;  %v2469_v34 = vld [vmem:[#allocation2 + $0x168] sm:$0xff] }
 0x6f5   :  { %2735 = vmatpush.msra.mxu3 %v2610_v24  ;;  %2684 = vmatpush.msrb.mxu0 %v2496_v23  ;;  %v2427_v24 = vld [vmem:[#allocation2 + $0x18] sm:$0xff] }
 0x6f6   :  { %2708 = vmatpush.msra.mxu1 %v2520_v17  ;;  %2720 = vmatpush.msra.mxu2 %v2568_v56  ;;  %v2467_v23 = vld [vmem:[#allocation2 + $0x158] sm:$0xff] }
 0x6f7   :  { %2736 = vmatpush.msra.mxu3 %v2608_v57  ;;  %2685 = vmatpush.msrb.mxu0 %v2494_v46 }
 0x6f8   :  { %2773 = vmatpush.msrb.mxu1 %v2455_v19  ;;  %2721 = vmatpush.msra.mxu2 %v2566_v41  ;;  %v2425_v41 = vld [vmem:[#allocation2 + $0x8] sm:$0xff] }
 0x6f9   :  { %2737 = vmatpush.msra.mxu3 %v2606_v2  ;;  %2686 = vmatpush.msrb.mxu0 %v2492_v28  ;;  %v2465_v2 = vld [vmem:[#allocation2 + $0x148] sm:$0xff] }
 0x6fa   :  { %5975 = vrot.lane.b32.xlu2 %v5974_v0, %s6142_s5  ;;  %v2564_v0 = vld [vmem:[#allocation2 + $0x460] sm:$0xff]  ;;  %2774 = vmatpush.msrb.mxu1 %v2453_v58 }
 0x6fb   :  { %2722 = vmatpush.msra.mxu2 %v2564_v0  ;;  %2738 = vmatpush.msra.mxu3 %v2604_v30 }
 0x6fc   :  { %2775 = vmatpush.msrb.mxu1 %v2451_v31  ;;  %2687 = vmatpush.msrb.mxu0 %v2490_v29 }
 0x6fd   :  { %2723 = vmatpush.msra.mxu2 %v2562_v16  ;;  %2739 = vmatpush.msra.mxu3 %v2602_v25 }
 0x6fe   :  { %2776 = vmatpush.msrb.mxu1 %v2449_v63  ;;  %2688 = vmatpush.msrb.mxu0 %v2488_v50  ;;  %v2463_v63 = vld [vmem:[#allocation2 + $0x138] sm:$0xff] }
 0x6ff   :  { %2724 = vmatpush.msra.mxu2 %v2560_v5  ;;  %2740 = vmatpush.msra.mxu3 %v2600_v10  ;;  %v2622_v5 = vld [vmem:[#allocation2 + $0x630] sm:$0xff] }
 0x700   :  { %2777 = vmatpush.msrb.mxu1 %v2447_v14  ;;  %2793 = vmatpush.msra.mxu0 %v2487_v42  ;;  %v2461_v14 = vld [vmem:[#allocation2 + $0x128] sm:$0xff] }
 0x701   :  { %2725 = vmatpush.msra.mxu2 %v2558_v12  ;;  %2741 = vmatpush.msra.mxu3 %v2598_v27  ;;  %v2620_v27 = vld [vmem:[#allocation2 + $0x620] sm:$0xff] }
 0x702   :  { %2778 = vmatpush.msrb.mxu1 %v2445_v8  ;;  %2794 = vmatpush.msra.mxu0 %v2485_v3  ;;  %v2459_v8 = vld [vmem:[#allocation2 + $0x118] sm:$0xff]  ;;  %v2457_v3 = vld [vmem:[#allocation2 + $0x108] sm:$0xff] }
 0x703   :  { %2726 = vmatpush.msra.mxu2 %v2556_v44  ;;  %2742 = vmatpush.msra.mxu3 %v2596_v7  ;;  %v2618_v44 = vld [vmem:[#allocation2 + $0x610] sm:$0xff] }
 0x704   :  { %2779 = vmatpush.msrb.mxu1 %v2443_v37  ;;  %2795 = vmatpush.msra.mxu0 %v2483_v45  ;;  %v2616_v45 = vld [vmem:[#allocation2 + $0x600] sm:$0xff] }
 0x705   :  { %2727 = vmatpush.msra.mxu2 %v2554_v36  ;;  %2743 = vmatpush.msra.mxu3 %v2594_v21  ;;  %v2309_v36 = vrot.slane %v7568_v53, 4 }
 0x706   :  { %2780 = vmatpush.msrb.mxu1 %v2441_v48  ;;  %2796 = vmatpush.msra.mxu0 %v2481_v22  ;;  %v2210_v22 = vrot.slane %v7571_v9, 4 }
 0x707   :  { %2728 = vmatpush.msra.mxu2 %v2552_v52  ;;  %2744 = vmatpush.msra.mxu3 %v2592_v32 }
 0x708   :  { %2781 = vmatpush.msrb.mxu1 %v2439_v35  ;;  %2797 = vmatpush.msra.mxu0 %v2479_v11 }
 0x709   :  { %2745 = vmatpush.msra.mxu3 %v2590_v13 }
 0x70a   :  { %2782 = vmatpush.msrb.mxu1 %v2437_v33  ;;  %2798 = vmatpush.msra.mxu0 %v2477_v54 }
 0x70b   :  { %2746 = vmatpush.msra.mxu3 %v2588_v39 }
 0x70c   :  { %2783 = vmatpush.msrb.mxu1 %v2435_v26  ;;  %2799 = vmatpush.msra.mxu0 %v2475_v55  ;;  %v2165_v55 = vpop.f32.mrf.mxu0 }
 0x70d   :  { %2747 = vmatpush.msra.mxu3 %v2586_v40 }
 0x70e   :  { %2784 = vmatpush.msrb.mxu1 %v2433_v20  ;;  %2800 = vmatpush.msra.mxu0 %v2473_v59 }
 0x70f   :  { %2748 = vmatpush.msra.mxu3 %v2584_v43 }
 0x710   :  { %2785 = vmatpush.msrb.mxu1 %v2431_v38  ;;  %2801 = vmatpush.msra.mxu0 %v2471_v47  ;;  %v2065_v47 = vpop.f32.mrf.mxu2 }
 0x712   :  { %2786 = vmatpush.msrb.mxu1 %v2429_v6  ;;  %2802 = vmatpush.msra.mxu0 %v2469_v34 }
 0x714   :  { %2787 = vmatpush.msrb.mxu1 %v2427_v24  ;;  %2803 = vmatpush.msra.mxu0 %v2467_v23  ;;  %v2166_v24 = vadd.f32 %v7565_v51, %v2165_v55 }
 0x716   :  { %2788 = vmatpush.msrb.mxu1 %v2425_v41  ;;  %2804 = vmatpush.msra.mxu0 %v2465_v2  ;;  %v2519_v2 = vld [vmem:[#allocation2 + $0x2f8] sm:$0xff] }
 0x718   :  { %2805 = vmatpush.msra.mxu0 %v2463_v63 }
 0x71a   :  { %2806 = vmatpush.msra.mxu0 %v2461_v14 }
 0x71c   :  { %2807 = vmatpush.msra.mxu0 %v2459_v8 }
 0x71e   :  { %2808 = vmatpush.msra.mxu0 %v2457_v3 }
 0x724   :  { %v5901_v62 = vpop.permute.xlu2 %5900 }
 0x725   :  { %v5903_v60 = vunpack.i.h.bf16 %v5901_v62  ;;  %v5902_v4 = vunpack.i.l.bf16 %v5901_v62 }
 0x727   :  { %v2251_v58 = vsel %vm579_vm5, %v7571_v9, %v5903_v60  ;;  %v2350_v28 = vsel %vm579_vm5, %v7568_v53, %v5902_v4 }
 0x734   :  { %v7639_v61 = vpop.permute.xlu2 %5930 }
 0x735   :  { %v5933_v62 = vunpack.i.h.bf16 %v7639_v61  ;;  %v5932_v48 = vunpack.i.l.bf16 %v7639_v61 }
 0x737   :  { %v2290_v40 = vsel %vm579_vm5, %v7593_v18, %v5933_v62  ;;  %v2389_v9 = vsel %vm579_vm5, %v7587_v49, %v5932_v48  ;;  %v2513_v62 = vld [vmem:[#allocation2 + $0x2c8] sm:$0xff] }
 0x73b   :  { %v5911_v17 = vpop.permute.xlu1 %5910  ;;  %v5906_v56 = vpop.permute.xlu0 %5905 }
 0x73c   :  { %v5912_v57 = vunpack.i.l.bf16 %v5911_v17  ;;  %v5908_v19 = vunpack.i.h.bf16 %v5906_v56  ;;  %v5907_v46 = vunpack.i.l.bf16 %v5906_v56  ;;  %v5913_v0 = vunpack.i.h.bf16 %v5911_v17  ;;  %v7645_v30 = vpop.permute.xlu2 %5940  ;;  %v2551_v56 = vld [vmem:[#allocation2 + $0x3f8] sm:$0xff] }
 0x73d   :  { %v5942_v61 = vunpack.i.l.bf16 %v7645_v30  ;;  %v5943_v6 = vunpack.i.h.bf16 %v7645_v30 }
 0x73e   :  { %v2252_v31 = vsel %vm908_vm3, %v2251_v58, %v5908_v19  ;;  %v2351_v29 = vsel %vm908_vm3, %v2350_v28, %v5907_v46  ;;  %v2194_v58 = vpop.f32.mrf.mxu1  ;;  %v2066_v28 = vadd.f32 %v7565_v51, %v2065_v47 }
 0x73f   :  { %v2352_v16 = vsel %vm919_vm4, %v2351_v29, %v5912_v57  ;;  %v2253_v50 = vsel %vm919_vm4, %v2252_v31, %v5913_v0  ;;  %v2549_v31 = vld [vmem:[#allocation2 + $0x3e8] sm:$0xff]  ;;  %v2237_v29 = vrot.slane %v7602_v15, 4 }
 0x740   :  { %v2402_v25 = vrot.slane %v2352_v16, 7  ;;  %v2336_v16 = vrot.slane %v7604_v1, 4 }
 0x742   :  { %v7652_v10 = vsel %vm2416_vm14, %v2253_v50, %v2402_v25  ;;  %v2517_v50 = vld [vmem:[#allocation2 + $0x2e8] sm:$0xff] }
 0x743   :  { %v5916_v42 = vpop.permute.xlu1 %5915  ;;  %v5921_v12 = vpop.permute.xlu0 %5920  ;;  %2649 = vmatmul.f32.vlgmr.msrb.gmra.mxu2 %v7652_v10 }
 0x744   :  { %2765 = vmatpush.msrb.mxu2 %v2622_v5  ;;  %v5917_v7 = vunpack.i.l.bf16 %v5916_v42  ;;  %v5918_v37 = vunpack.i.h.bf16 %v5916_v42  ;;  %v5946_v21 = vpop.permute.xlu2 %5945  ;;  %v5922_v52 = vunpack.i.l.bf16 %v5921_v12  ;;  %v5923_v11 = vunpack.i.h.bf16 %v5921_v12  ;;  %v2547_v42 = vld [vmem:[#allocation2 + $0x3d8] sm:$0xff]  ;;  %v2094_v12 = vpop.f32.mrf.mxu3 }
 0x745   :  { %v5948_v57 = vunpack.i.h.bf16 %v5946_v21  ;;  %v5947_v19 = vunpack.i.l.bf16 %v5946_v21  ;;  %v2195_v5 = vadd.f32 %v2194_v58, %v2166_v24 }
 0x746   :  { %2766 = vmatpush.msrb.mxu2 %v2620_v27  ;;  %v2353_v32 = vsel %vm579_vm5, %v2309_v36, %v5917_v7  ;;  %v2254_v35 = vsel %vm579_vm5, %v2210_v22, %v5918_v37  ;;  %v2095_v7 = vadd.f32 %v2094_v12, %v2066_v28  ;;  %v2545_v36 = vld [vmem:[#allocation2 + $0x3c8] sm:$0xff]  ;;  %v2503_v28 = vld [vmem:[#allocation2 + $0x278] sm:$0xff] }
 0x747   :  { %v2354_v20 = vsel %vm908_vm3, %v2353_v32, %v5922_v52  ;;  %v2255_v60 = vsel %vm908_vm3, %v2254_v35, %v5923_v11  ;;  %v2260_v27 = vsel %vm579_vm5, %v2237_v29, %v5948_v57  ;;  %v2359_v8 = vsel %vm579_vm5, %v2336_v16, %v5947_v19  ;;  %v2505_v57 = vld [vmem:[#allocation2 + $0x288] sm:$0xff]  ;;  %v2615_v29 = vld [vmem:[#allocation2 + $0x5f8] sm:$0xff] }
 0x748   :  { %2767 = vmatpush.msrb.mxu2 %v2618_v44  ;;  %v2515_v44 = vld [vmem:[#allocation2 + $0x2d8] sm:$0xff]  ;;  %v2408_v22 = vrot.slane %v2195_v5, 7  ;;  %v2276_v16 = vrot.slane %v7593_v18, 4 }
 0x749   :  { %v2535_v5 = vld [vmem:[#allocation2 + $0x378] sm:$0xff] }
 0x74a   :  { %2768 = vmatpush.msrb.mxu2 %v2616_v45 }
 0x74b   :  { %v5926_v13 = vpop.permute.xlu1 %5925  ;;  %v5936_v33 = vpop.permute.xlu0 %5935 }
 0x74c   :  { %v5928_v54 = vunpack.i.h.bf16 %v5926_v13  ;;  %v5927_v39 = vunpack.i.l.bf16 %v5926_v13  ;;  %v5938_v53 = vunpack.i.h.bf16 %v5936_v33  ;;  %v5937_v26 = vunpack.i.l.bf16 %v5936_v33  ;;  %v5961_v0 = vpop.permute.xlu2 %5960  ;;  %v2511_v13 = vld [vmem:[#allocation2 + $0x2b8] sm:$0xff] }
 0x74d   :  { %v5962_v3 = vunpack.i.l.bf16 %v5961_v0  ;;  %v5963_v21 = vunpack.i.h.bf16 %v5961_v0  ;;  %v2583_v33 = vld [vmem:[#allocation2 + $0x4f8] sm:$0xff] }
 0x74e   :  { %v2355_v59 = vsel %vm919_vm4, %v2354_v20, %v5927_v39  ;;  %v2291_v43 = vsel %vm908_vm3, %v2290_v40, %v5938_v53  ;;  %v2390_v38 = vsel %vm908_vm3, %v2389_v9, %v5937_v26  ;;  %v2256_v23 = vsel %vm919_vm4, %v2255_v60, %v5928_v54  ;;  %v2543_v53 = vld [vmem:[#allocation2 + $0x3b8] sm:$0xff]  ;;  %v2509_v40 = vld [vmem:[#allocation2 + $0x2a8] sm:$0xff] }
 0x74f   :  { %v2403_v4 = vrot.slane %v2355_v59, 7  ;;  %v2391_v34 = vsel %vm919_vm4, %v2390_v38, %v5942_v61  ;;  %v2292_v41 = vsel %vm919_vm4, %v2291_v43, %v5943_v6  ;;  %v7697_v39 = vsel %vm2416_vm14, %v2095_v7, %v2408_v22  ;;  %v2581_v9 = vld [vmem:[#allocation2 + $0x4e8] sm:$0xff]  ;;  %v2507_v60 = vld [vmem:[#allocation2 + $0x298] sm:$0xff] }
 0x750   :  { %v2406_v17 = vrot.slane %v2391_v34, 7  ;;  %v2541_v43 = vld [vmem:[#allocation2 + $0x3a8] sm:$0xff]  ;;  %v2499_v7 = vld [vmem:[#allocation2 + $0x258] sm:$0xff] }
 0x751   :  { %v7676_v46 = vsel %vm2416_vm14, %v2256_v23, %v2403_v4  ;;  %v2579_v4 = vld [vmem:[#allocation2 + $0x4d8] sm:$0xff]  ;;  %v2569_v22 = vld [vmem:[#allocation2 + $0x488] sm:$0xff] }
 0x752   :  { %2669 = vmatmul.f32.vlgmr.msrb.gmra.mxu3 %v7676_v46  ;;  %v7682_v30 = vsel %vm2416_vm14, %v2292_v41, %v2406_v17  ;;  %v2539_v17 = vld [vmem:[#allocation2 + $0x398] sm:$0xff] }
 0x753   :  { %v5956_v25 = vpop.permute.xlu1 %5955  ;;  %v5951_v63 = vpop.permute.xlu0 %5950  ;;  %2729 = vmatmul.f32.vlgmr.msra.gmra.mxu2 %v7682_v30  ;;  %2833 = vmatpush.msrb.mxu3 %v2551_v56 }
 0x754   :  { %v5953_v14 = vunpack.i.h.bf16 %v5951_v63  ;;  %v5952_v51 = vunpack.i.l.bf16 %v5951_v63  ;;  %2813 = vmatpush.msra.mxu2 %v2519_v2  ;;  %v5958_v32 = vunpack.i.h.bf16 %v5956_v25  ;;  %v5957_v35 = vunpack.i.l.bf16 %v5956_v25  ;;  %v5976_v34 = vpop.permute.xlu2 %5975 }
 0x755   :  { %2834 = vmatpush.msrb.mxu3 %v2549_v31  ;;  %v5978_v41 = vunpack.i.h.bf16 %v5976_v34  ;;  %v5977_v2 = vunpack.i.l.bf16 %v5976_v34  ;;  %v2575_v31 = vld [vmem:[#allocation2 + $0x4b8] sm:$0xff]  ;;  %v2375_v25 = vrot.slane %v7587_v49, 4 }
 0x756   :  { %v2261_v37 = vsel %vm908_vm3, %v2260_v27, %v5953_v14  ;;  %v2360_v45 = vsel %vm908_vm3, %v2359_v8, %v5952_v51  ;;  %2814 = vmatpush.msra.mxu2 %v2517_v50  ;;  %v2257_v38 = vsel %vm579_vm5, %v7602_v15, %v5958_v32  ;;  %v2356_v47 = vsel %vm579_vm5, %v7604_v1, %v5957_v35  ;;  %v2577_v15 = vld [vmem:[#allocation2 + $0x4c8] sm:$0xff]  ;;  %v2559_v34 = vld [vmem:[#allocation2 + $0x438] sm:$0xff] }
 0x757   :  { %2835 = vmatpush.msrb.mxu3 %v2547_v42  ;;  %v2361_v48 = vsel %vm919_vm4, %v2360_v45, %v5962_v3  ;;  %v2262_v11 = vsel %vm919_vm4, %v2261_v37, %v5963_v21  ;;  %v2537_v1 = vld [vmem:[#allocation2 + $0x388] sm:$0xff]  ;;  %v2293_v3 = vsel %vm579_vm5, %v2276_v16, %v5978_v41  ;;  %v2392_v18 = vsel %vm579_vm5, %v2375_v25, %v5977_v2  ;;  %v2531_v21 = vld [vmem:[#allocation2 + $0x358] sm:$0xff] }
 0x758   :  { %2815 = vmatpush.msra.mxu2 %v2515_v44  ;;  %v2405_v52 = vrot.slane %v2361_v48, 7  ;;  %v2501_v14 = vld [vmem:[#allocation2 + $0x268] sm:$0xff] }
 0x759   :  { %2836 = vmatpush.msrb.mxu3 %v2545_v36  ;;  %v2573_v27 = vld [vmem:[#allocation2 + $0x4a8] sm:$0xff]  ;;  %v2571_v36 = vld [vmem:[#allocation2 + $0x498] sm:$0xff] }
 0x75a   :  { %2816 = vmatpush.msra.mxu2 %v2513_v62  ;;  %v7694_v54 = vsel %vm2416_vm14, %v2262_v11, %v2405_v52  ;;  %v2613_v8 = vld [vmem:[#allocation2 + $0x5e8] sm:$0xff] }
 0x75b   :  { %v5971_v26 = vpop.permute.xlu1 %5970  ;;  %v5966_v55 = vpop.permute.xlu0 %5965  ;;  %2709 = vmatmul.f32.vlgmr.msra.gmra.mxu1 %v7694_v54  ;;  %5624 = vmatmul.msk.f32.vlgmr.msrb.gmra.mxu2 %vm579_vm5, %v7697_v39  ;;  %v2533_v44 = vld [vmem:[#allocation2 + $0x368] sm:$0xff] }
 0x75c   :  { %v5972_v61 = vunpack.i.l.bf16 %v5971_v26  ;;  %v5968_v20 = vunpack.i.h.bf16 %v5966_v55  ;;  %v5967_v59 = vunpack.i.l.bf16 %v5966_v55  ;;  %2817 = vmatpush.msra.mxu2 %v2511_v13  ;;  %2853 = vmatpush.msra.mxu1 %v2583_v33  ;;  %v5973_v6 = vunpack.i.h.bf16 %v5971_v26  ;;  %v2497_v62 = vld [vmem:[#allocation2 + $0x248] sm:$0xff]  ;;  %v2495_v33 = vld [vmem:[#allocation2 + $0x238] sm:$0xff] }
 0x75d   :  { %2837 = vmatpush.msrb.mxu3 %v2543_v53  ;;  %v2609_v52 = vld [vmem:[#allocation2 + $0x5c8] sm:$0xff]  ;;  %v2567_v53 = vld [vmem:[#allocation2 + $0x478] sm:$0xff] }
 0x75e   :  { %v2258_v24 = vsel %vm908_vm3, %v2257_v38, %v5968_v20  ;;  %v2357_v23 = vsel %vm908_vm3, %v2356_v47, %v5967_v59  ;;  %2818 = vmatpush.msra.mxu2 %v2509_v40  ;;  %2854 = vmatpush.msra.mxu1 %v2581_v9  ;;  %v2529_v35 = vld [vmem:[#allocation2 + $0x348] sm:$0xff]  ;;  %v2607_v26 = vld [vmem:[#allocation2 + $0x5b8] sm:$0xff] }
 0x75f   :  { %v2358_v56 = vsel %vm919_vm4, %v2357_v23, %v5972_v61  ;;  %2838 = vmatpush.msrb.mxu3 %v2541_v43  ;;  %v2259_v58 = vsel %vm919_vm4, %v2258_v24, %v5973_v6  ;;  %v2527_v55 = vld [vmem:[#allocation2 + $0x338] sm:$0xff]  ;;  %v2493_v40 = vld [vmem:[#allocation2 + $0x228] sm:$0xff] }
 0x760   :  { %v2404_v19 = vrot.slane %v2358_v56, 7  ;;  %2819 = vmatpush.msra.mxu2 %v2507_v60  ;;  %2855 = vmatpush.msra.mxu1 %v2579_v4  ;;  %v2565_v9 = vld [vmem:[#allocation2 + $0x468] sm:$0xff]  ;;  %v2491_v59 = vld [vmem:[#allocation2 + $0x218] sm:$0xff] }
 0x761   :  { %2839 = vmatpush.msrb.mxu3 %v2539_v17  ;;  %v2605_v61 = vld [vmem:[#allocation2 + $0x5a8] sm:$0xff]  ;;  %v2563_v43 = vld [vmem:[#allocation2 + $0x458] sm:$0xff] }
 0x762   :  { %2820 = vmatpush.msra.mxu2 %v2505_v57  ;;  %2856 = vmatpush.msra.mxu1 %v2577_v15  ;;  %v7711_v0 = vsel %vm2416_vm14, %v2259_v58, %v2404_v19  ;;  %v2525_v20 = vld [vmem:[#allocation2 + $0x328] sm:$0xff]  ;;  %v2603_v38 = vld [vmem:[#allocation2 + $0x598] sm:$0xff] }
 0x763   :  { %2840 = vmatpush.msrb.mxu3 %v2537_v1  ;;  %v5986_v63 = vpop.permute.xlu1 %5985  ;;  %v5981_v50 = vpop.permute.xlu0 %5980  ;;  %2689 = vmatmul.f32.vlgmr.msrb.gmra.mxu0 %v7711_v0  ;;  %v2523_v47 = vld [vmem:[#allocation2 + $0x318] sm:$0xff]  ;;  %v2489_v6 = vld [vmem:[#allocation2 + $0x208] sm:$0xff] }
 0x764   :  { %v5987_v51 = vunpack.i.l.bf16 %v5986_v63  ;;  %v5983_v42 = vunpack.i.h.bf16 %v5981_v50  ;;  %v5982_v12 = vunpack.i.l.bf16 %v5981_v50  ;;  %2789 = vmatmul.f32.vlgmr.msrb.gmra.mxu1 %v7652_v10  ;;  %2821 = vmatpush.msra.mxu2 %v2503_v28  ;;  %v5988_v49 = vunpack.i.h.bf16 %v5986_v63  ;;  %v2611_v10 = vld [vmem:[#allocation2 + $0x5d8] sm:$0xff]  ;;  %v2601_v60 = vld [vmem:[#allocation2 + $0x588] sm:$0xff] }
 0x765   :  { %2857 = vmatpush.msra.mxu1 %v2575_v31  ;;  %2873 = vmatpush.msrb.mxu0 %v2615_v29  ;;  %v2521_v4 = vld [vmem:[#allocation2 + $0x308] sm:$0xff]  ;;  %v2599_v24 = vld [vmem:[#allocation2 + $0x578] sm:$0xff]  ;;  %v2624_v29 = vld [vmem:[%s9255_s29] sm:$0x3]  ;;  %s9278_s29 = sld [smem:[#allocation34_spill]] }
 0x766   :  { %v2294_v37 = vsel %vm908_vm3, %v2293_v3, %v5983_v42  ;;  %v2393_v45 = vsel %vm908_vm3, %v2392_v18, %v5982_v12  ;;  %2841 = vmatpush.msrb.mxu3 %v2535_v5  ;;  %2822 = vmatpush.msra.mxu2 %v2501_v14  ;;  %v2623_v23 = vld [vmem:[#allocation2 + $0x638] sm:$0xff]  ;;  %v2557_v17 = vld [vmem:[#allocation2 + $0x428] sm:$0xff]  ;;  %v2626_v25 = vperm.slane %v2624_v29, 0 }
 0x767   :  { %2858 = vmatpush.msra.mxu1 %v2573_v27  ;;  %2874 = vmatpush.msrb.mxu0 %v2613_v8  ;;  %v2394_v48 = vsel %vm919_vm4, %v2393_v45, %v5987_v51  ;;  %v2295_v11 = vsel %vm919_vm4, %v2294_v37, %v5988_v49  ;;  %v2597_v56 = vld [vmem:[#allocation2 + $0x568] sm:$0xff]  ;;  %v2555_v15 = vld [vmem:[#allocation2 + $0x418] sm:$0xff]  ;;  %v6147_v51 = vmov 2.0  }
 0x768   :  { %2842 = vmatpush.msrb.mxu3 %v2533_v44  ;;  %2823 = vmatpush.msra.mxu2 %v2499_v7  ;;  %v2407_v32 = vrot.slane %v2394_v48, 7  ;;  %v2621_v57 = vld [vmem:[#allocation2 + $0x628] sm:$0xff]  ;;  %v2595_v19 = vld [vmem:[#allocation2 + $0x558] sm:$0xff]  ;;  %6019 = vrcp.f32 %v6147_v51  ;;  %v2627_v7 = vperm.slane %v2624_v29, 1 }
 0x769   :  { %2859 = vmatpush.msra.mxu1 %v2571_v36  ;;  %2875 = vmatpush.msrb.mxu0 %v2611_v10  ;;  %v2619_v1 = vld [vmem:[#allocation2 + $0x618] sm:$0xff]  ;;  %v2553_v41 = vld [vmem:[#allocation2 + $0x408] sm:$0xff] }
 0x76a   :  { %2843 = vmatpush.msrb.mxu3 %v2531_v21  ;;  %2824 = vmatpush.msra.mxu2 %v2497_v62  ;;  %v7724_v13 = vsel %vm2416_vm14, %v2295_v11, %v2407_v32  ;;  %v2593_v2 = vld [vmem:[#allocation2 + $0x548] sm:$0xff]  ;;  %v3016_v29 = vld [vmem:[%s9256_s3 + $0x78] sm:$0xff] }
 0x76b   :  { %2860 = vmatpush.msra.mxu1 %v2569_v22  ;;  %2876 = vmatpush.msrb.mxu0 %v2609_v52  ;;  %v2617_v58 = vld [vmem:[#allocation2 + $0x608] sm:$0xff] }
 0x76c   :  { %2844 = vmatpush.msrb.mxu3 %v2529_v35  ;;  %2809 = vmatmul.f32.vlgmr.msra.gmra.mxu0 %v7676_v46  ;;  %v2561_v46 = vld [vmem:[#allocation2 + $0x448] sm:$0xff] }
 0x76d   :  { %2749 = vmatmul.f32.vlgmr.msra.gmra.mxu3 %v7724_v13  ;;  %2825 = vmatpush.msra.mxu2 %v2495_v33  ;;  %v2589_v28 = vld [vmem:[#allocation2 + $0x528] sm:$0xff] }
 0x76e   :  { %2861 = vmatpush.msra.mxu1 %v2567_v53  ;;  %2877 = vmatpush.msrb.mxu0 %v2607_v26  ;;  %v2585_v31 = vld [vmem:[#allocation2 + $0x508] sm:$0xff]  ;;  %v6020_v27 = vpop.eup %6019 }
 0x76f   :  { %2845 = vmatpush.msrb.mxu3 %v2527_v55  ;;  %2826 = vmatpush.msra.mxu2 %v2493_v40  ;;  %v2931_v3 = vmul.f32 2.0, %v6020_v27  ;;  %vm2935_vm7 = vweird.f32 %v6020_v27  ;;  %v3014_v51 = vld [vmem:[%s9256_s3 + $0x68] sm:$0xff] }
 0x770   :  { %2862 = vmatpush.msra.mxu1 %v2565_v9  ;;  %2878 = vmatpush.msrb.mxu0 %v2605_v61 }
 0x771   :  { %2846 = vmatpush.msrb.mxu3 %v2525_v20  ;;  %2827 = vmatpush.msra.mxu2 %v2491_v59  ;;  %v2932_v36 = vsub.f32 1.0, %v2931_v3 }
 0x772   :  { %2863 = vmatpush.msra.mxu1 %v2563_v43  ;;  %2879 = vmatpush.msrb.mxu0 %v2603_v38 }
 0x773   :  { %2847 = vmatpush.msrb.mxu3 %v2523_v47  ;;  %2828 = vmatpush.msra.mxu2 %v2489_v6  ;;  %v2933_v22 = vmul.f32 %v6020_v27, %v2932_v36  ;;  %v3010_v36 = vld [vmem:[%s9256_s3 + $0x48] sm:$0xff] }
 0x774   :  { %2864 = vmatpush.msra.mxu1 %v2561_v46  ;;  %2880 = vmatpush.msrb.mxu0 %v2601_v60 }
 0x775   :  { %2829 = vmatmul.f32.vlgmr.msra.gmra.mxu2 %v7711_v0  ;;  %2848 = vmatpush.msrb.mxu3 %v2521_v4  ;;  %v2587_v0 = vld [vmem:[#allocation2 + $0x518] sm:$0xff]  ;;  %v2934_v33 = vadd.f32 %v6020_v27, %v2933_v22 }
 0x776   :  { %2849 = vmatmul.f32.vlgmr.msrb.gmra.mxu3 %v7694_v54  ;;  %2865 = vmatpush.msra.mxu1 %v2559_v34  ;;  %v2591_v54 = vld [vmem:[#allocation2 + $0x538] sm:$0xff] }
 0x777   :  { %2881 = vmatpush.msrb.mxu0 %v2599_v24  ;;  %2905 = vmatpush.msrb.mxu2 %v2623_v23  ;;  %v7736_v9 = vsel %vm2935_vm7, %v6020_v27, %v2934_v33  ;;  %v3013_v27 = vld [vmem:[%s9256_s3 + $0x60] sm:$0xff]  ;;  %v3008_v22 = vld [vmem:[%s9256_s3 + $0x38] sm:$0xff] }
 0x778   :  { %2866 = vmatpush.msra.mxu1 %v2557_v17  ;;  %3037 = vmatpush.msra.mxu3 %v3016_v29  ;;  %v2914_v29 = vld [vmem:[%s9258_s14] sm:$0x3]  ;;  %s9281_s14 = sld [smem:[#allocation37_spill]] }
 0x779   :  { %2882 = vmatpush.msrb.mxu0 %v2597_v56  ;;  %2906 = vmatpush.msrb.mxu2 %v2621_v57 }
 0x77a   :  { %2867 = vmatpush.msra.mxu1 %v2555_v15 }
 0x77b   :  { %2883 = vmatpush.msrb.mxu0 %v2595_v19  ;;  %2907 = vmatpush.msrb.mxu2 %v2619_v1 }
 0x77c   :  { %2868 = vmatpush.msra.mxu1 %v2553_v41 }
 0x77d   :  { %2884 = vmatpush.msrb.mxu0 %v2593_v2  ;;  %2908 = vmatpush.msrb.mxu2 %v2617_v58 }
 0x77e   :  { %2869 = vmatmul.f32.vlgmr.msra.gmra.mxu1 %v7682_v30  ;;  %5625 = vmatmul.msk.f32.vlgmr.msrb.gmra.mxu2 %vm579_vm5, %v7697_v39 }
 0x77f   :  { %2885 = vmatpush.msrb.mxu0 %v2591_v54 }
 0x781   :  { %2886 = vmatpush.msrb.mxu0 %v2589_v28 }
 0x783   :  { %2887 = vmatpush.msrb.mxu0 %v2587_v0 }
 0x785   :  { %2888 = vmatpush.msrb.mxu0 %v2585_v31 }
 0x786   :  { %2889 = vmatmul.f32.vlgmr.msrb.gmra.mxu0 %v7724_v13 }
 0x7c6   :  { %v2650_v16 = vpop.f32.mrf.mxu2 }
 0x7c7   :  { %v2651_v50 = vadd.f32 %v2650_v16, %v2626_v25  ;;  %v3032_v16 = vld [vmem:[%s9256_s3 + $0xf8] sm:$0xff] }
 0x7c8   :  { %3057 = vmatpush.msra.mxu2 %v3032_v16 }
 0x7d5   :  { %v2670_v63 = vpop.f32.mrf.mxu3 }
 0x7d6   :  { %v2671_v14 = vadd.f32 %v2670_v63, %v2651_v50  ;;  %v2730_v30 = vpop.f32.mrf.mxu2  ;;  %v3015_v50 = vld [vmem:[%s9256_s3 + $0x70] sm:$0xff] }
 0x7d7   :  { %3038 = vmatpush.msra.mxu3 %v3015_v50  ;;  %v2995_v50 = vperm.slane %v2914_v29, 0 }
 0x7d8   :  { %v2710_v42 = vpop.f32.mrf.mxu1 }
 0x7d9   :  { %3039 = vmatpush.msra.mxu3 %v3014_v51 }
 0x7db   :  { %3040 = vmatpush.msra.mxu3 %v3013_v27 }
 0x7de   :  { %v2770_v18 = vpop.f32.mrf.mxu2 }
 0x7e0   :  { %v2690_v5 = vpop.f32.mrf.mxu0 }
 0x7e1   :  { %v2691_v39 = vadd.f32 %v2690_v5, %v2671_v14  ;;  %v2790_v37 = vpop.f32.mrf.mxu1  ;;  %v3031_v5 = vld [vmem:[%s9256_s3 + $0xf0] sm:$0xff] }
 0x7e2   :  { %v2791_v62 = vadd.f32 %v2790_v37, %v2627_v7  ;;  %3058 = vmatpush.msra.mxu2 %v3031_v5  ;;  %v3011_v7 = vld [vmem:[%s9256_s3 + $0x50] sm:$0xff]  ;;  %v2996_v5 = vperm.slane %v2914_v29, 1 }
 0x7e3   :  { %v2711_v12 = vadd.f32 %v2710_v42, %v2691_v39  ;;  %v3030_v39 = vld [vmem:[%s9256_s3 + $0xe8] sm:$0xff]  ;;  %v3027_v37 = vld [vmem:[%s9256_s3 + $0xd0] sm:$0xff] }
 0x7e4   :  { %3059 = vmatpush.msra.mxu2 %v3030_v39 }
 0x7e5   :  { %v2731_v8 = vadd.f32 %v2730_v30, %v2711_v12 }
 0x7e9   :  { %v2810_v10 = vpop.f32.mrf.mxu0 }
 0x7ea   :  { %v2811_v52 = vadd.f32 %v2810_v10, %v2791_v62  ;;  %v3026_v10 = vld [vmem:[%s9256_s3 + $0xc8] sm:$0xff]  ;;  %v3025_v62 = vld [vmem:[%s9256_s3 + $0xc0] sm:$0xff] }
 0x7f0   :  { %v2750_v49 = vpop.f32.mrf.mxu3 }
 0x7f1   :  { %v2751_v44 = vadd.f32 %v2750_v49, %v2731_v8  ;;  %v3029_v8 = vld [vmem:[%s9256_s3 + $0xe0] sm:$0xff]  ;;  %v3028_v49 = vld [vmem:[%s9256_s3 + $0xd8] sm:$0xff] }
 0x7f2   :  { %3060 = vmatpush.msra.mxu2 %v3029_v8 }
 0x7f3   :  { %v2771_v45 = vadd.f32 %v2770_v18, %v2751_v44  ;;  %v3012_v18 = vld [vmem:[%s9256_s3 + $0x58] sm:$0xff] }
 0x7f4   :  { %3041 = vmatpush.msra.mxu3 %v3012_v18  ;;  %3061 = vmatpush.msra.mxu2 %v3028_v49 }
 0x7f5   :  { %v2916_v21 = vsel %vm2915_vm15, %v2771_v45, 0.0 }
 0x7f6   :  { %v2917_v48 = vrot.slane %v2916_v21, 4  ;;  %3042 = vmatpush.msra.mxu3 %v3011_v7  ;;  %3062 = vmatpush.msra.mxu2 %v3027_v37 }
 0x7f8   :  { %v2918_v32 = vadd.f32 %v2917_v48, %v2916_v21  ;;  %v2830_v35 = vpop.f32.mrf.mxu2  ;;  %3043 = vmatpush.msra.mxu3 %v3010_v36  ;;  %3063 = vmatpush.msra.mxu2 %v3026_v10  ;;  %v3009_v21 = vld [vmem:[%s9256_s3 + $0x40] sm:$0xff]  ;;  %v3132_v36 = vld [vmem:[%s9260_s24 + $0x78] sm:$0xff] }
 0x7f9   :  { %v2831_v13 = vadd.f32 %v2830_v35, %v2811_v52  ;;  %v2850_v53 = vpop.f32.mrf.mxu3  ;;  %v3024_v52 = vld [vmem:[%s9256_s3 + $0xb8] sm:$0xff]  ;;  %3137 = vmatpush.msrb.mxu1 %v3132_v36 }
 0x7fa   :  { %v2919_v11 = vrot.slane %v2918_v32, 2  ;;  %3044 = vmatpush.msra.mxu3 %v3009_v21  ;;  %3064 = vmatpush.msra.mxu2 %v3025_v62  ;;  %v3131_v21 = vld [vmem:[%s9260_s24 + $0x70] sm:$0xff] }
 0x7fb   :  { %v2851_v40 = vadd.f32 %v2850_v53, %v2831_v13  ;;  %v2870_v20 = vpop.f32.mrf.mxu1  ;;  %v3023_v13 = vld [vmem:[%s9256_s3 + $0xb0] sm:$0xff]  ;;  %v3006_v53 = vld [vmem:[%s9256_s3 + $0x28] sm:$0xff]  ;;  %3138 = vmatpush.msrb.mxu1 %v3131_v21  ;;  %v3275_v21 = vld [vmem:[%s9268_s26 + $0x78] sm:$0xff] }
 0x7fc   :  { %v2920_v26 = vadd.f32 %v2919_v11, %v2918_v32  ;;  %v3007_v11 = vld [vmem:[%s9256_s3 + $0x30] sm:$0xff]  ;;  %3045 = vmatpush.msra.mxu3 %v3008_v22  ;;  %3065 = vmatpush.msra.mxu2 %v3024_v52  ;;  %v3129_v52 = vld [vmem:[%s9260_s24 + $0x60] sm:$0xff] }
 0x7fd   :  { %v2871_v43 = vadd.f32 %v2870_v20, %v2851_v40  ;;  %v3005_v40 = vld [vmem:[%s9256_s3 + $0x20] sm:$0xff]  ;;  %v3004_v20 = vld [vmem:[%s9256_s3 + $0x18] sm:$0xff] }
 0x7fe   :  { %v2921_v55 = vrot.slane %v2920_v26, 1  ;;  %3046 = vmatpush.msra.mxu3 %v3007_v11  ;;  %3066 = vmatpush.msra.mxu2 %v3023_v13  ;;  %v3127_v13 = vld [vmem:[%s9260_s24 + $0x50] sm:$0xff] }
 0x800   :  { %v2922_v61 = vadd.f32 %v2921_v55, %v2920_v26  ;;  %v3022_v26 = vld [vmem:[%s9256_s3 + $0xa8] sm:$0xff]  ;;  %3047 = vmatpush.msra.mxu3 %v3006_v53 }
 0x801   :  { %v2910_v46 = vpop.f32.mrf.mxu2  ;;  %3067 = vmatpush.msra.mxu2 %v3022_v26  ;;  %v3126_v53 = vld [vmem:[%s9260_s24 + $0x48] sm:$0xff] }
 0x802   :  { %v2937_v59 = vmul.f32 %v7736_v9, %v2922_v61  ;;  %v3021_v61 = vld [vmem:[%s9256_s3 + $0xa0] sm:$0xff]  ;;  %3048 = vmatpush.msra.mxu3 %v3005_v40 }
 0x803   :  { %v2890_v38 = vpop.f32.mrf.mxu0  ;;  %3068 = vmatpush.msra.mxu2 %v3021_v61  ;;  %v3124_v61 = vld [vmem:[%s9260_s24 + $0x38] sm:$0xff] }
 0x804   :  { %v7739_v47 = vsub.f32 %v2771_v45, %v2937_v59  ;;  %v2891_v6 = vadd.f32 %v2890_v38, %v2871_v43  ;;  %v3020_v59 = vld [vmem:[%s9256_s3 + $0x98] sm:$0xff]  ;;  %v3003_v38 = vld [vmem:[%s9256_s3 + $0x10] sm:$0xff]  ;;  %3049 = vmatpush.msra.mxu3 %v3004_v20 }
 0x805   :  { %3069 = vmatpush.msra.mxu2 %v3020_v59  ;;  %v3123_v20 = vld [vmem:[%s9260_s24 + $0x30] sm:$0xff] }
 0x806   :  { %v2941_v60 = vmul.f32 %v7739_v47, %v7739_v47  ;;  %v2911_v4 = vadd.f32 %v2910_v46, %v2891_v6  ;;  %v3019_v6 = vld [vmem:[%s9256_s3 + $0x90] sm:$0xff]  ;;  %3050 = vmatpush.msra.mxu3 %v3003_v38  ;;  %v3122_v38 = vld [vmem:[%s9260_s24 + $0x28] sm:$0xff] }
 0x807   :  { %3070 = vmatpush.msra.mxu2 %v3019_v6  ;;  %v3159_v6 = vld [vmem:[%s9261_s12 + $0x10] sm:$0xff] }
 0x808   :  { %v2943_v34 = vsel %vm2915_vm15, %v2941_v60, 0.0  ;;  %v2923_v24 = vsel %vm2915_vm15, %v2911_v4, 0.0  ;;  %v3002_v60 = vld [vmem:[%s9256_s3 + $0x8] sm:$0xff] }
 0x809   :  { %v2944_v23 = vrot.slane %v2943_v34, 4  ;;  %v2924_v17 = vrot.slane %v2923_v24, 4  ;;  %3051 = vmatpush.msra.mxu3 %v3002_v60  ;;  %v3121_v60 = vld [vmem:[%s9260_s24 + $0x20] sm:$0xff] }
 0x80b   :  { %v2945_v56 = vadd.f32 %v2944_v23, %v2943_v34  ;;  %v2925_v57 = vadd.f32 %v2924_v17, %v2923_v24  ;;  %v3001_v23 = vld [vmem:[%s9256_s3] sm:$0xff] }
 0x80c   :  { %v3017_v17 = vld [vmem:[%s9256_s3 + $0x80] sm:$0xff]  ;;  %3052 = vmatpush.msra.mxu3 %v3001_v23  ;;  %v3118_v23 = vld [vmem:[%s9260_s24 + $0x8] sm:$0xff] }
 0x80d   :  { %v2946_v15 = vrot.slane %v2945_v56, 2  ;;  %v2926_v19 = vrot.slane %v2925_v57, 2 }
 0x80f   :  { %v2947_v1 = vadd.f32 %v2946_v15, %v2945_v56  ;;  %v2927_v41 = vadd.f32 %v2926_v19, %v2925_v57 }
 0x811   :  { %v2928_v2 = vrot.slane %v2927_v41, 1  ;;  %v2948_v58 = vrot.slane %v2947_v1, 1 }
 0x813   :  { %v2929_v54 = vadd.f32 %v2928_v2, %v2927_v41  ;;  %v2949_v0 = vadd.f32 %v2948_v58, %v2947_v1  ;;  %v2913_v58 = vld [vmem:[%s9257_s8] sm:$0x3]  ;;  %s9280_s8 = sld [smem:[#allocation36_spill]] }
 0x815   :  { %v2938_v28 = vmul.f32 %v7736_v9, %v2929_v54  ;;  %v2957_v63 = vmul.f32 %v2949_v0, %v7736_v9 }
 0x817   :  { %v7746_v31 = vsub.f32 %v2911_v4, %v2938_v28  ;;  %v7758_v42 = vadd.f32 1e-05, %v2957_v63  ;;  %v3018_v4 = vld [vmem:[%s9256_s3 + $0x88] sm:$0xff]  ;;  %s9279_s3 = sld [smem:[#allocation35_spill]] }
 0x818   :  { %3071 = vmatpush.msra.mxu2 %v3018_v4 }
 0x819   :  { %v2942_v25 = vmul.f32 %v7746_v31, %v7746_v31  ;;  %6021 = vrsqrt.f32 %v7758_v42  ;;  %vm2967_vm12 = vweird.f32 %v7758_v42 }
 0x81a   :  { %3072 = vmatpush.msra.mxu2 %v3017_v17  ;;  %v3117_v17 = vld [vmem:[%s9260_s24] sm:$0xff] }
 0x81b   :  { %v2950_v14 = vsel %vm2915_vm15, %v2942_v25, 0.0 }
 0x81c   :  { %v2951_v30 = vrot.slane %v2950_v14, 4 }
 0x81e   :  { %v2952_v12 = vadd.f32 %v2951_v30, %v2950_v14 }
 0x81f   :  { %v6022_v32 = vpop.eup %6021 }
 0x820   :  { %v2953_v3 = vrot.slane %v2952_v12, 2  ;;  %v2962_v55 = vmul.f32 %v6022_v32, %v7758_v42  ;;  %vm2968_vm11 = vweird.f32 %v6022_v32  ;;  %v5993_v42 = vld [vmem:[%s9259_s19] ss:$0 sm:$0xff] }
 0x821   :  { %vm2969_vm13 = vmor %vm2967_vm12, %vm2968_vm11  ;;  %vm3437_vm12 = vcmask 1042432  }
 0x822   :  { %v2954_v44 = vadd.f32 %v2953_v3, %v2952_v12  ;;  %v2963_v43 = vmul.f32 %v6022_v32, %v2962_v55  ;;  %v3125_v55 = vld [vmem:[%s9260_s24 + $0x40] sm:$0xff] }
 0x824   :  { %v2955_v45 = vrot.slane %v2954_v44, 1  ;;  %v2964_v34 = vmul.f32 0.5, %v2963_v43  ;;  %v3160_v43 = vld [vmem:[%s9261_s12 + $0x18] sm:$0xff] }
 0x825   :  { %3180 = vmatpush.msra.mxu0 %v3160_v43  ;;  %v5657_v43 = vld [vmem:[%s9268_s26 + $0x160] sm:$0xff] }
 0x826   :  { %v2956_v48 = vadd.f32 %v2955_v45, %v2954_v44  ;;  %v2965_v57 = vsub.f32 1.5, %v2964_v34  ;;  %v3120_v34 = vld [vmem:[%s9260_s24 + $0x18] sm:$0xff] }
 0x827   :  { %3181 = vmatpush.msra.mxu0 %v3159_v6  ;;  %v5674_v6 = vld [vmem:[%s9268_s26 + $0x1e0] sm:$0xff] }
 0x828   :  { %v2958_v35 = vmul.f32 %v2956_v48, %v7736_v9  ;;  %v2966_v1 = vmul.f32 %v6022_v32, %v2965_v57  ;;  %v3130_v48 = vld [vmem:[%s9260_s24 + $0x68] sm:$0xff] }
 0x829   :  { %3139 = vmatpush.msrb.mxu1 %v3130_v48  ;;  %v5660_v48 = vld [vmem:[%s9268_s26 + $0x178] sm:$0xff] }
 0x82a   :  { %v2960_v33 = vadd.f32 1e-05, %v2958_v35  ;;  %v2970_v28 = vsel %vm2969_vm13, %v6022_v32, %v2966_v1  ;;  %v3128_v35 = vld [vmem:[%s9260_s24 + $0x58] sm:$0xff]  ;;  %vm3671_vm13 = vcmask 64512  }
 0x82b   :  { %3140 = vmatpush.msrb.mxu1 %v3129_v52 }
 0x82c   :  { %6023 = vrsqrt.f32 %v2960_v33  ;;  %vm2977_vm9 = vweird.f32 %v2960_v33 }
 0x82d   :  { %3141 = vmatpush.msrb.mxu1 %v3128_v35  ;;  %v5642_v35 = vld [vmem:[%s9268_s26 + $0xf0] sm:$0xff] }
 0x82f   :  { %3142 = vmatpush.msrb.mxu1 %v3127_v13  ;;  %v5676_v13 = vld [vmem:[%s9268_s26 + $0x1f0] sm:$0xff] }
 0x831   :  { %3143 = vmatpush.msrb.mxu1 %v3126_v53  ;;  %v3273_v53 = vld [vmem:[%s9268_s26 + $0x68] sm:$0xff] }
 0x832   :  { %v6024_v46 = vpop.eup %6023 }
 0x833   :  { %v2972_v24 = vmul.f32 %v6024_v46, %v2960_v33  ;;  %vm2978_vm8 = vweird.f32 %v6024_v46  ;;  %3144 = vmatpush.msrb.mxu1 %v3125_v55  ;;  %v5658_v55 = vld [vmem:[%s9268_s26 + $0x168] sm:$0xff] }
 0x834   :  { %vm2979_vm10 = vmor %vm2977_vm9, %vm2978_vm8 }
 0x835   :  { %v2973_v56 = vmul.f32 %v6024_v46, %v2972_v24  ;;  %3145 = vmatpush.msrb.mxu1 %v3124_v61  ;;  %v3119_v24 = vld [vmem:[%s9260_s24 + $0x10] sm:$0xff] }
 0x837   :  { %v2974_v15 = vmul.f32 0.5, %v2973_v56  ;;  %3146 = vmatpush.msrb.mxu1 %v3123_v20  ;;  %v3272_v20 = vld [vmem:[%s9268_s26 + $0x60] sm:$0xff] }
 0x839   :  { %v2975_v19 = vsub.f32 1.5, %v2974_v15  ;;  %3147 = vmatpush.msrb.mxu1 %v3122_v38 }
 0x83b   :  { %v2976_v41 = vmul.f32 %v6024_v46, %v2975_v19  ;;  %3148 = vmatpush.msrb.mxu1 %v3121_v60  ;;  %v5639_v60 = vld [vmem:[%s9268_s26 + $0xd8] sm:$0xff] }
 0x83d   :  { %v2980_v2 = vsel %vm2979_vm10, %v6024_v46, %v2976_v41  ;;  %3149 = vmatpush.msrb.mxu1 %v3120_v34  ;;  %v3077_v41 = vld [vmem:[%s9262_s11] sm:$0x1] }
 0x83e   :  { %v2983_v54 = vrot.slane %v2980_v2, 7 }
 0x83f   :  { %3150 = vmatpush.msrb.mxu1 %v3119_v24  ;;  %v5673_v24 = vld [vmem:[%s9268_s26 + $0x1d8] sm:$0xff] }
 0x840   :  { %v2984_v0 = vsel %vm2416_vm14, %v2970_v28, %v2983_v54 }
 0x841   :  { %v2986_v16 = vmul.f32 %v2984_v0, %v2913_v58  ;;  %3151 = vmatpush.msrb.mxu1 %v3118_v23  ;;  %v5994_v0 = vld [vmem:[%s9263_s15] ss:$0 sm:$0xff]  ;;  %v3270_v23 = vld [vmem:[%s9268_s26 + $0x50] sm:$0xff] }
 0x843   :  { %v2989_v25 = vperm.slane %v2986_v16, 1  ;;  %v2988_v63 = vperm.slane %v2986_v16, 0  ;;  %3152 = vmatpush.msrb.mxu1 %v3117_v17  ;;  %v5638_v17 = vld [vmem:[%s9268_s26 + $0xd0] sm:$0xff] }
 0x845   :  { %v2993_v14 = vmul.f32 %v2989_v25, %v7746_v31  ;;  %v2992_v30 = vmul.f32 %v2988_v63, %v7739_v47  ;;  %v3158_v25 = vld [vmem:[%s9261_s12 + $0x8] sm:$0xff]  ;;  %v3157_v63 = vld [vmem:[%s9261_s12] sm:$0xff]  ;;  %s6077_s12 = scalar_lea.hbm %s6392_s6, 2 }
 0x846   :  { %3182 = vmatpush.msra.mxu0 %v3158_v25  ;;  %v3267_v25 = vld [vmem:[%s9268_s26 + $0x38] sm:$0xff] }
 0x847   :  { %v2999_v51 = vadd.f32 %v2995_v50, %v2992_v30  ;;  %v3000_v39 = vadd.f32 %v2996_v5, %v2993_v14  ;;  %v3192_v50 = vld [vmem:[%s9264_s16 + $0x18] sm:$0xff]  ;;  %v3191_v5 = vld [vmem:[%s9264_s16 + $0x10] sm:$0xff]  ;;  %v5995_v14 = vld [vmem:[%s9265_s18] ss:$0 sm:$0xff] }
 0x848   :  { %3183 = vmatpush.msra.mxu0 %v3157_v63  ;;  %3212 = vmatpush.msrb.mxu3 %v3192_v50  ;;  %v5635_v63 = vld [vmem:[%s9268_s26 + $0xb8] sm:$0xff] }
 0x849   :  { %3053 = vmatmul.f32.vlgmr.msra.gmra.mxu3 %v2999_v51  ;;  %3073 = vmatmul.f32.vlgmr.msra.gmra.mxu2 %v3000_v39  ;;  %v3190_v39 = vld [vmem:[%s9264_s16 + $0x8] sm:$0xff]  ;;  %v5652_v50 = vld [vmem:[%s9268_s26 + $0x138] sm:$0xff] }
 0x84a   :  { %3213 = vmatpush.msrb.mxu3 %v3191_v5  ;;  %3280 = vmatpush.msrb.mxu0 %v3275_v21  ;;  %v5669_v5 = vld [vmem:[%s9268_s26 + $0x1b8] sm:$0xff]  ;;  %v5630_v21 = vld [vmem:[%s9268_s26 + $0x90] sm:$0xff] }
 0x84c   :  { %3214 = vmatpush.msrb.mxu3 %v3190_v39  ;;  %v5651_v39 = vld [vmem:[%s9268_s26 + $0x130] sm:$0xff] }
 0x8cc   :  { %v3054_v12 = vpop.f32.mrf.mxu3  ;;  %v3074_v8 = vpop.f32.mrf.mxu2 }
 0x8cd   :  { %v3055_v27 = vadd.f32 %v5993_v42, %v3054_v12  ;;  %v3189_v42 = vld [vmem:[%s9264_s16] sm:$0xff] }
 0x8ce   :  { %3215 = vmatpush.msrb.mxu3 %v3189_v42  ;;  %v5996_v12 = vld [vmem:[%s9266_s22] ss:$0 sm:$0xff]  ;;  %v5668_v42 = vld [vmem:[%s9268_s26 + $0x1b0] sm:$0xff] }
 0x8cf   :  { %v3075_v3 = vadd.f32 %v3074_v8, %v3055_v27 }
 0x8d0   :  { %3364 = vmatpush.msra.mxu3 %v5660_v48  ;;  %v5664_v48 = vld [vmem:[%s9268_s26 + $0x190] sm:$0xff] }
 0x8d1   :  { %v3079_v18 = vsel %vm2915_vm15, %v3075_v3, 0.0 }
 0x8d2   :  { %v3080_v49 = vrot.slane %v3079_v18, 4 }
 0x8d4   :  { %v3081_v44 = vadd.f32 %v3080_v49, %v3079_v18 }
 0x8d6   :  { %v3082_v31 = vrot.slane %v3081_v44, 2 }
 0x8d8   :  { %v3083_v7 = vadd.f32 %v3082_v31, %v3081_v44 }
 0x8da   :  { %v3084_v47 = vrot.slane %v3083_v7, 1 }
 0x8dc   :  { %v3085_v37 = vadd.f32 %v3084_v47, %v3083_v7 }
 0x8de   :  { %v3086_v45 = vmul.f32 %v3085_v37, %v7736_v9 }
 0x8e0   :  { %v3087_v10 = vsub.f32 %v3075_v3, %v3086_v45  ;;  %v5997_v3 = vld [vmem:[%s9267_s23] ss:$0 sm:$0xff] }
 0x8e2   :  { %v3088_v62 = vmul.f32 %v3087_v10, %v3087_v10 }
 0x8e4   :  { %v3089_v22 = vsel %vm2915_vm15, %v3088_v62, 0.0  ;;  %v5643_v62 = vld [vmem:[%s9268_s26 + $0xf8] sm:$0xff] }
 0x8e5   :  { %v3090_v32 = vrot.slane %v3089_v22, 4  ;;  %3322 = vmatpush.msrb.mxu2 %v5643_v62  ;;  %v5647_v62 = vld [vmem:[%s9268_s26 + $0x110] sm:$0xff] }
 0x8e7   :  { %v3091_v11 = vadd.f32 %v3090_v32, %v3089_v22  ;;  %v5677_v22 = vld [vmem:[%s9268_s26 + $0x1f8] sm:$0xff]  ;;  %v3274_v32 = vld [vmem:[%s9268_s26 + $0x70] sm:$0xff]  ;;  %3323 = vmatpush.msrb.mxu2 %v5642_v35  ;;  %v5646_v35 = vld [vmem:[%s9268_s26 + $0x108] sm:$0xff] }
 0x8e8   :  { %3406 = vmatpush.msra.mxu1 %v5677_v22  ;;  %3281 = vmatpush.msrb.mxu0 %v3274_v32  ;;  %v3261_v22 = vld [vmem:[%s9268_s26 + $0x8] sm:$0xff] }
 0x8e9   :  { %v3092_v33 = vrot.slane %v3091_v11, 2  ;;  %v5629_v32 = vld [vmem:[%s9268_s26 + $0x88] sm:$0xff] }
 0x8ea   :  { %3407 = vmatpush.msra.mxu1 %v5676_v13  ;;  %3282 = vmatpush.msrb.mxu0 %v3273_v53  ;;  %v3260_v13 = vld [vmem:[%s9268_s26] sm:$0xff] }
 0x8eb   :  { %v3093_v26 = vadd.f32 %v3092_v33, %v3091_v11  ;;  %v5659_v11 = vld [vmem:[%s9268_s26 + $0x170] sm:$0xff] }
 0x8ec   :  { %3365 = vmatpush.msra.mxu3 %v5659_v11  ;;  %3283 = vmatpush.msrb.mxu0 %v3272_v20  ;;  %v5663_v11 = vld [vmem:[%s9268_s26 + $0x188] sm:$0xff] }
 0x8ed   :  { %v3094_v40 = vrot.slane %v3093_v26, 1 }
 0x8ee   :  { %3366 = vmatpush.msra.mxu3 %v5658_v55  ;;  %v5662_v55 = vld [vmem:[%s9268_s26 + $0x180] sm:$0xff] }
 0x8ef   :  { %v3095_v59 = vadd.f32 %v3094_v40, %v3093_v26  ;;  %v5641_v26 = vld [vmem:[%s9268_s26 + $0xe8] sm:$0xff] }
 0x8f0   :  { %3324 = vmatpush.msrb.mxu2 %v5641_v26  ;;  %v5675_v40 = vld [vmem:[%s9268_s26 + $0x1e8] sm:$0xff]  ;;  %3367 = vmatpush.msra.mxu3 %v5657_v43  ;;  %v5645_v26 = vld [vmem:[%s9268_s26 + $0x100] sm:$0xff] }
 0x8f1   :  { %v3096_v46 = vmul.f32 %v3095_v59, %v7736_v9  ;;  %3408 = vmatpush.msra.mxu1 %v5675_v40  ;;  %v5640_v59 = vld [vmem:[%s9268_s26 + $0xe0] sm:$0xff] }
 0x8f2   :  { %3325 = vmatpush.msrb.mxu2 %v5640_v59  ;;  %v3220_v43 = vld [vmem:[%s9269_s28] sm:$0x1] }
 0x8f3   :  { %v3097_v4 = vadd.f32 1e-05, %v3096_v46  ;;  %3409 = vmatpush.msra.mxu1 %v5674_v6  ;;  %v3271_v46 = vld [vmem:[%s9268_s26 + $0x58] sm:$0xff] }
 0x8f4   :  { %3284 = vmatpush.msrb.mxu0 %v3271_v46  ;;  %3326 = vmatpush.msrb.mxu2 %v5639_v60 }
 0x8f5   :  { %6025 = vrsqrt.f32 %v3097_v4  ;;  %vm3104_vm8 = vweird.f32 %v3097_v4  ;;  %3410 = vmatpush.msra.mxu1 %v5673_v24 }
 0x8f6   :  { %3285 = vmatpush.msrb.mxu0 %v3270_v23  ;;  %3327 = vmatpush.msrb.mxu2 %v5638_v17  ;;  %v5999_v23 = vld [vmem:[%s9271_s2] ss:$0 sm:$0xff] }
 0x8fb   :  { %v6026_v56 = vpop.eup %6025 }
 0x8fc   :  { %v3099_v57 = vmul.f32 %v6026_v56, %v3097_v4  ;;  %vm3105_vm7 = vweird.f32 %v6026_v56  ;;  %v5656_v4 = vld [vmem:[%s9268_s26 + $0x158] sm:$0xff] }
 0x8fd   :  { %vm3106_vm11 = vmor %vm3104_vm8, %vm3105_vm7  ;;  %3368 = vmatpush.msra.mxu3 %v5656_v4  ;;  %v5998_v4 = vld [vmem:[%s9270_s1] ss:$0 sm:$0xff]  ;;  %vm3662_vm7 = vcmask 31744   ;;  %vm3683_vm8 = vcmask 97280  }
 0x8fe   :  { %v3100_v15 = vmul.f32 %v6026_v56, %v3099_v57 }
 0x900   :  { %v3101_v19 = vmul.f32 0.5, %v3100_v15  ;;  %v5672_v15 = vld [vmem:[%s9268_s26 + $0x1d0] sm:$0xff] }
 0x901   :  { %3411 = vmatpush.msra.mxu1 %v5672_v15  ;;  %v6001_v15 = vld [vmem:[%s9271_s2 + $0x1] ss:$0 sm:$0xff] }
 0x902   :  { %v3102_v1 = vsub.f32 1.5, %v3101_v19  ;;  %v3269_v19 = vld [vmem:[%s9268_s26 + $0x48] sm:$0xff] }
 0x903   :  { %3286 = vmatpush.msrb.mxu0 %v3269_v19 }
 0x904   :  { %v3103_v2 = vmul.f32 %v6026_v56, %v3102_v1  ;;  %v5637_v1 = vld [vmem:[%s9268_s26 + $0xc8] sm:$0xff] }
 0x905   :  { %3328 = vmatpush.msrb.mxu2 %v5637_v1  ;;  %v6002_v1 = vld [vmem:[%s9271_s2 + $0x2] ss:$0 sm:$0xff] }
 0x906   :  { %v3107_v58 = vsel %vm3106_vm11, %v6026_v56, %v3103_v2  ;;  %v5655_v56 = vld [vmem:[%s9268_s26 + $0x150] sm:$0xff]  ;;  %vm3929_vm11 = vcmask 259072  }
 0x907   :  { %v3108_v54 = vmul.f32 %v3107_v58, %v3077_v41  ;;  %3369 = vmatpush.msra.mxu3 %v5655_v56  ;;  %v5654_v41 = vld [vmem:[%s9268_s26 + $0x148] sm:$0xff] }
 0x908   :  { %v5671_v58 = vld [vmem:[%s9268_s26 + $0x1c8] sm:$0xff] }
 0x909   :  { %v3110_v28 = vperm.slane %v3108_v54, 0  ;;  %3370 = vmatpush.msra.mxu3 %v5654_v41  ;;  %3412 = vmatpush.msra.mxu1 %v5671_v58  ;;  %v3268_v54 = vld [vmem:[%s9268_s26 + $0x40] sm:$0xff] }
 0x90a   :  { %3287 = vmatpush.msrb.mxu0 %v3268_v54 }
 0x90b   :  { %v3112_v29 = vmul.f32 %v3110_v28, %v3087_v10  ;;  %v5636_v28 = vld [vmem:[%s9268_s26 + $0xc0] sm:$0xff] }
 0x90c   :  { %3329 = vmatpush.msrb.mxu2 %v5636_v28  ;;  %3288 = vmatpush.msrb.mxu0 %v3267_v25 }
 0x90d   :  { %v3116_v16 = vadd.f32 %v5994_v0, %v3112_v29  ;;  %v5653_v0 = vld [vmem:[%s9268_s26 + $0x140] sm:$0xff] }
 0x90e   :  { %3371 = vmatpush.msra.mxu3 %v5653_v0  ;;  %3330 = vmatpush.msrb.mxu2 %v5635_v63 }
 0x90f   :  { %3153 = vmatmul.f32.vlgmr.msrb.gmra.mxu1 %v3116_v16  ;;  %v5670_v16 = vld [vmem:[%s9268_s26 + $0x1c0] sm:$0xff] }
 0x910   :  { %3413 = vmatpush.msra.mxu1 %v5670_v16  ;;  %3372 = vmatpush.msra.mxu3 %v5652_v50 }
 0x912   :  { %3414 = vmatpush.msra.mxu1 %v5669_v5  ;;  %3373 = vmatpush.msra.mxu3 %v5651_v39 }
 0x914   :  { %3415 = vmatpush.msra.mxu1 %v5668_v42 }
 0x98c   :  { %v3154_v30 = vpop.f32.mrf.mxu1 }
 0x98d   :  { %v3155_v51 = vadd.f32 %v5995_v14, %v3154_v30  ;;  %v3266_v14 = vld [vmem:[%s9268_s26 + $0x30] sm:$0xff] }
 0x98e   :  { %3289 = vmatpush.msrb.mxu0 %v3266_v14 }
 0x98f   :  { %5626 = vmatmul.msk.f32.vlgmr.msra.gmra.mxu0 %vm579_vm5, %v3155_v51  ;;  %v5634_v51 = vld [vmem:[%s9268_s26 + $0xb0] sm:$0xff] }
 0x990   :  { %3331 = vmatpush.msrb.mxu2 %v5634_v51 }
 0xa0c   :  { %v3185_v27 = vpop.f32.mrf.mxu0 }
 0xa0d   :  { %v3186_v8 = vadd.f32 %v5996_v12, %v3185_v27  ;;  %v3265_v12 = vld [vmem:[%s9268_s26 + $0x28] sm:$0xff] }
 0xa0e   :  { %v5633_v27 = vld [vmem:[%s9268_s26 + $0xa8] sm:$0xff]  ;;  %3290 = vmatpush.msrb.mxu0 %v3265_v12 }
 0xa0f   :  { %3188 = vst.msk [vmem:[#allocation5] sm:$0x3] %vm593_vm6, %v3186_v8  ;;  %5627 = vmatmul.msk.f32.vlgmr.msrb.gmra.mxu3 %vm579_vm5, %v3186_v8  ;;  %3332 = vmatpush.msrb.mxu2 %v5633_v27 }
 0xa92   :  { %v3217_v18 = vpop.f32.mrf.mxu3 }
 0xa93   :  { %v3218_v49 = vadd.f32 %v5997_v3, %v3217_v18  ;;  %v5650_v3 = vld [vmem:[%s9268_s26 + $0x128] sm:$0xff] }
 0xa94   :  { %v5667_v18 = vld [vmem:[%s9268_s26 + $0x1a8] sm:$0xff]  ;;  %3374 = vmatpush.msra.mxu3 %v5650_v3 }
 0xa95   :  { %v3222_v44 = vsel %vm2915_vm15, %v3218_v49, 0.0  ;;  %3416 = vmatpush.msra.mxu1 %v5667_v18 }
 0xa96   :  { %v3223_v31 = vrot.slane %v3222_v44, 4 }
 0xa98   :  { %v3224_v7 = vadd.f32 %v3223_v31, %v3222_v44  ;;  %v5632_v44 = vld [vmem:[%s9268_s26 + $0xa0] sm:$0xff] }
 0xa99   :  { %3333 = vmatpush.msrb.mxu2 %v5632_v44 }
 0xa9a   :  { %v3225_v47 = vrot.slane %v3224_v7, 2 }
 0xa9c   :  { %v3226_v37 = vadd.f32 %v3225_v47, %v3224_v7  ;;  %v5649_v7 = vld [vmem:[%s9268_s26 + $0x120] sm:$0xff] }
 0xa9d   :  { %v5666_v47 = vld [vmem:[%s9268_s26 + $0x1a0] sm:$0xff]  ;;  %3375 = vmatpush.msra.mxu3 %v5649_v7 }
 0xa9e   :  { %v3227_v45 = vrot.slane %v3226_v37, 1  ;;  %3417 = vmatpush.msra.mxu1 %v5666_v47 }
 0xaa0   :  { %v3228_v36 = vadd.f32 %v3227_v45, %v3226_v37  ;;  %v5631_v37 = vld [vmem:[%s9268_s26 + $0x98] sm:$0xff] }
 0xaa1   :  { %v5648_v45 = vld [vmem:[%s9268_s26 + $0x118] sm:$0xff]  ;;  %3334 = vmatpush.msrb.mxu2 %v5631_v37 }
 0xaa2   :  { %v3229_v10 = vmul.f32 %v3228_v36, %v7736_v9  ;;  %v5665_v36 = vld [vmem:[%s9268_s26 + $0x198] sm:$0xff]  ;;  %3376 = vmatpush.msra.mxu3 %v5648_v45 }
 0xaa3   :  { %3418 = vmatpush.msra.mxu1 %v5665_v36  ;;  %3335 = vmatpush.msrb.mxu2 %v5630_v21 }
 0xaa4   :  { %v7838_v52 = vsub.f32 %v3218_v49, %v3229_v10  ;;  %v3264_v49 = vld [vmem:[%s9268_s26 + $0x20] sm:$0xff]  ;;  %v3262_v10 = vld [vmem:[%s9268_s26 + $0x10] sm:$0xff]  ;;  %3377 = vmatpush.msra.mxu3 %v5647_v62 }
 0xaa5   :  { %3291 = vmatpush.msrb.mxu0 %v3264_v49  ;;  %3419 = vmatpush.msra.mxu1 %v5664_v48 }
 0xaa6   :  { %v3231_v33 = vmul.f32 %v7838_v52, %v7838_v52  ;;  %3336 = vmatpush.msrb.mxu2 %v5629_v32  ;;  %3378 = vmatpush.msra.mxu3 %v5646_v35 }
 0xaa7   :  { %3420 = vmatpush.msra.mxu1 %v5663_v11 }
 0xaa8   :  { %v3232_v61 = vsel %vm2915_vm15, %v3231_v33, 0.0  ;;  %v5628_v33 = vld [vmem:[%s9268_s26 + $0x80] sm:$0xff]  ;;  %3379 = vmatpush.msra.mxu3 %v5645_v26 }
 0xaa9   :  { %v3233_v38 = vrot.slane %v3232_v61, 4  ;;  %3337 = vmatpush.msrb.mxu2 %v5628_v33  ;;  %3421 = vmatpush.msra.mxu1 %v5662_v55 }
 0xaab   :  { %v3234_v34 = vadd.f32 %v3233_v38, %v3232_v61 }
 0xaad   :  { %v3235_v57 = vrot.slane %v3234_v34, 2 }
 0xaaf   :  { %v3236_v2 = vadd.f32 %v3235_v57, %v3234_v34  ;;  %v6000_v57 = vld [vmem:[%s9271_s2 + $0x3] ss:$0 sm:$0xff] }
 0xab1   :  { %v3237_v29 = vrot.slane %v3236_v2, 1 }
 0xab3   :  { %v3238_v30 = vadd.f32 %v3237_v29, %v3236_v2 }
 0xab5   :  { %v3239_v8 = vmul.f32 %v3238_v30, %v7736_v9  ;;  %v3263_v9 = vld [vmem:[%s9268_s26 + $0x18] sm:$0xff] }
 0xab6   :  { %3292 = vmatpush.msrb.mxu0 %v3263_v9 }
 0xab7   :  { %v3240_v31 = vadd.f32 1e-05, %v3239_v8 }
 0xab8   :  { %3293 = vmatpush.msrb.mxu0 %v3262_v10 }
 0xab9   :  { %6027 = vrsqrt.f32 %v3240_v31  ;;  %vm3247_vm9 = vweird.f32 %v3240_v31 }
 0xaba   :  { %3294 = vmatpush.msrb.mxu0 %v3261_v22 }
 0xabc   :  { %3295 = vmatpush.msrb.mxu0 %v3260_v13 }
 0xabf   :  { %v6028_v53 = vpop.eup %6027 }
 0xac0   :  { %v3242_v40 = vmul.f32 %v6028_v53, %v3240_v31  ;;  %vm3248_vm6 = vweird.f32 %v6028_v53 }
 0xac1   :  { %vm3249_vm10 = vmor %vm3247_vm9, %vm3248_vm6 }
 0xac2   :  { %v3243_v61 = vmul.f32 %v6028_v53, %v3242_v40 }
 0xac4   :  { %v3244_v20 = vmul.f32 0.5, %v3243_v61 }
 0xac6   :  { %v3245_v59 = vsub.f32 1.5, %v3244_v20 }
 0xac8   :  { %v3246_v38 = vmul.f32 %v6028_v53, %v3245_v59 }
 0xaca   :  { %v3250_v6 = vsel %vm3249_vm10, %v6028_v53, %v3246_v38 }
 0xacb   :  { %v3251_v46 = vmul.f32 %v3250_v6, %v3220_v43 }
 0xacd   :  { %v3253_v60 = vperm.slane %v3251_v46, 0 }
 0xacf   :  { %v3255_v34 = vmul.f32 %v3253_v60, %v7838_v52 }
 0xad1   :  { %v3259_v24 = vadd.f32 %v5998_v4, %v3255_v34 }
 0xad3   :  { %3296 = vmatmul.f32.vlgmr.msrb.gmra.mxu0 %v3259_v24  ;;  %3338 = vmatmul.f32.vlgmr.msrb.gmra.mxu2 %v3259_v24 }
 0xad4   :  { %3380 = vmatmul.f32.vlgmr.msra.gmra.mxu3 %v3259_v24  ;;  %3422 = vmatmul.f32.vlgmr.msra.gmra.mxu1 %v3259_v24 }
 0xb50   :  { %v3297_v17 = vpop.f32.mrf.mxu0 }
 0xb51   :  { %v3298_v56 = vadd.f32 %v5999_v23, %v3297_v17  ;;  %v3423_v19 = vpop.f32.mrf.mxu1 }
 0xb52   :  { %v3424_v58 = vadd.f32 %v6000_v57, %v3423_v19 }
 0xb53   :  { %v3472_v2 = vrot.slane %v3298_v56, 1 }
 0xb54   :  { %v3433_v63 = vrot.slane %v3424_v58, 5  ;;  %v3476_v50 = vrot.slane %v3424_v58, 6 }
 0xb56   :  { %v3339_v41 = vpop.f32.mrf.mxu2 }
 0xb57   :  { %v3340_v54 = vadd.f32 %v6001_v15, %v3339_v41  ;;  %v3381_v28 = vpop.f32.mrf.mxu3 }
 0xb58   :  { %v3382_v0 = vadd.f32 %v6002_v1, %v3381_v28 }
 0xb59   :  { %v3427_v29 = vrot.slane %v3340_v54, 7  ;;  %v3478_v52 = vsel %vm2416_vm14, %v3472_v2, %v3340_v54 }
 0xb5a   :  { %v3430_v16 = vrot.slane %v3382_v0, 6  ;;  %v3474_v25 = vrot.slane %v3382_v0, 7 }
 0xb5b   :  { %v3435_v5 = vsel %vm2416_vm14, %v3298_v56, %v3427_v29  ;;  %vm3708_vm14 = vcmask 1043456  }
 0xb5c   :  { %v3479_v14 = vsel %vm2915_vm15, %v3478_v52, %v3474_v25  ;;  %v3436_v30 = vsel %vm2915_vm15, %v3435_v5, %v3430_v16 }
 0xb5d   :  { %v3480_v51 = vsel %vm3437_vm12, %v3479_v14, %v3476_v50  ;;  %v3438_v39 = vsel %vm3437_vm12, %v3436_v30, %v3433_v63 }
 0xb5e   :  { %3481 = vxpose.xlu2.b32.start.end [1/1] (short) (narrow) %v3480_v51, 64  ;;  %3439 = vxpose.xlu0.b32.start.end [1/1] (short) (narrow) %v3438_v39, 64 }
 0xbf7   :  { %v3497_v42 = vpop.trf.xlu2 }
 0xbf8   :  { %v3557_v12 = vrot.slane %v3497_v42, 6 }
 0xbfa   :  { %v7916_v8 = vsel %vm2915_vm15, 0.0, %v3557_v12 }
 0xbfb   :  { %v3755_v44 = vrot.slane %v7916_v8, 1  ;;  %v3794_v10 = vrot.slane %v7916_v8, 2 }
 0xbff   :  { %v3498_v27 = vpop.trf.xlu2 }
 0xc00   :  { %v3558_v3 = vrot.slane %v3498_v27, 6 }
 0xc02   :  { %v7919_v18 = vsel %vm2915_vm15, %v3557_v12, %v3558_v3  ;;  %v3455_v49 = vpop.trf.xlu0 }
 0xc03   :  { %v3756_v31 = vrot.slane %v7919_v18, 1  ;;  %v3795_v37 = vrot.slane %v7919_v18, 2  ;;  %v3524_v48 = vrot.slane %v3455_v49, 6 }
 0xc05   :  { %v3757_v7 = vsel %vm240_vm1, %v3755_v44, %v3756_v31  ;;  %v3796_v22 = vsel %vm280_vm0, %v3794_v10, %v3795_v37  ;;  %v7941_v13 = vsel %vm2915_vm15, 0.0, %v3524_v48 }
 0xc06   :  { %3770 = vrot.lane.b32.xlu1 %v3757_v7, %s6148_s0  ;;  %v3584_v26 = vrot.slane %v7941_v13, 1  ;;  %v3623_v46 = vrot.slane %v7941_v13, 2 }
 0xc07   :  { %v3499_v47 = vpop.trf.xlu2 }
 0xc08   :  { %v3560_v9 = vrot.slane %v3499_v47, 6 }
 0xc0a   :  { %v7927_v45 = vsel %vm2915_vm15, %v3558_v3, %v3560_v9  ;;  %v3456_v36 = vpop.trf.xlu0 }
 0xc0b   :  { %v3525_v21 = vrot.slane %v3456_v36, 6  ;;  %v3758_v62 = vrot.slane %v7927_v45, 1  ;;  %v3797_v34 = vrot.slane %v7927_v45, 2 }
 0xc0d   :  { %v3759_v32 = vsel %vm240_vm1, %v3756_v31, %v3758_v62  ;;  %v7934_v35 = vsel %vm2915_vm15, %v3524_v48, %v3525_v21  ;;  %v3798_v23 = vsel %vm280_vm0, %v3795_v37, %v3797_v34 }
 0xc0e   :  { %3809 = vrot.lane.b32.xlu1 %v3796_v22, %s6149_s7  ;;  %3772 = vrot.lane.b32.xlu2 %v3759_v32, %s6148_s0  ;;  %v3585_v33 = vrot.slane %v7934_v35, 1  ;;  %v3624_v38 = vrot.slane %v7934_v35, 2 }
 0xc0f   :  { %v7938_v11 = vpop.trf.xlu2 }
 0xc10   :  { %v3586_v61 = vsel %vm240_vm1, %v3584_v26, %v3585_v33  ;;  %v3625_v60 = vsel %vm280_vm0, %v3623_v46, %v3624_v38  ;;  %v3562_v19 = vrot.slane %v7938_v11, 6  ;;  %v3514_v26 = vld [vmem:[%s9272_s27 + $0x8] sm:$0xf] }
 0xc11   :  { %5688 = vmatpush.msk.msra.mxu2 %vm3708_vm14, %v3514_v26  ;;  %5679 = vmatpush.msk.msra.mxu0 %vm3708_vm14, %v3514_v26 }
 0xc12   :  { %v3457_v53 = vpop.trf.xlu0  ;;  %v7980_v58 = vsel %vm2915_vm15, %v3560_v9, %v3562_v19 }
 0xc13   :  { %v3527_v55 = vrot.slane %v3457_v53, 6  ;;  %v3760_v0 = vrot.slane %v7980_v58, 1  ;;  %v3799_v14 = vrot.slane %v7980_v58, 2 }
 0xc15   :  { %v7946_v40 = vsel %vm2915_vm15, %v3525_v21, %v3527_v55  ;;  %v3761_v63 = vsel %vm240_vm1, %v3758_v62, %v3760_v0  ;;  %v3800_v27 = vsel %vm280_vm0, %v3797_v34, %v3799_v14 }
 0xc16   :  { %3599 = vrot.lane.b32.xlu1 %v3586_v61, %s6148_s0  ;;  %v3587_v20 = vrot.slane %v7946_v40, 1  ;;  %v3626_v15 = vrot.slane %v7946_v40, 2  ;;  %v3513_v61 = vld [vmem:[%s9272_s27] sm:$0xff] }
 0xc17   :  { %v7951_v59 = vpop.trf.xlu2  ;;  %3888 = vmatpush.msra.mxu2 %v3513_v61  ;;  %3727 = vmatpush.msra.mxu0 %v3513_v61 }
 0xc18   :  { %v3588_v43 = vsel %vm240_vm1, %v3585_v33, %v3587_v20  ;;  %v3627_v2 = vsel %vm280_vm0, %v3624_v38, %v3626_v15  ;;  %v3564_v10 = vrot.slane %v7951_v59, 6 }
 0xc19   :  { %3601 = vrot.lane.b32.xlu0 %v3588_v43, %s6148_s0 }
 0xc1a   :  { %v7956_v6 = vpop.trf.xlu0  ;;  %v8028_v62 = vsel %vm2915_vm15, %v3562_v19, %v3564_v10 }
 0xc1b   :  { %v3529_v30 = vrot.slane %v7956_v6, 6  ;;  %v3762_v48 = vrot.slane %v8028_v62, 1  ;;  %v3801_v32 = vrot.slane %v8028_v62, 2 }
 0xc1d   :  { %v8004_v49 = vsel %vm2915_vm15, %v3527_v55, %v3529_v30  ;;  %v3763_v22 = vsel %vm240_vm1, %v3760_v0, %v3762_v48  ;;  %v3802_v33 = vsel %vm280_vm0, %v3799_v14, %v3801_v32 }
 0xc1e   :  { %3638 = vrot.lane.b32.xlu1 %v3625_v60, %s6149_s7  ;;  %v3589_v47 = vrot.slane %v8004_v49, 1  ;;  %v3628_v36 = vrot.slane %v8004_v49, 2 }
 0xc1f   :  { %v7961_v4 = vpop.trf.xlu2 }
 0xc20   :  { %v3566_v56 = vrot.slane %v7961_v4, 6  ;;  %v3590_v9 = vsel %vm240_vm1, %v3587_v20, %v3589_v47  ;;  %v3629_v21 = vsel %vm280_vm0, %v3626_v15, %v3628_v36 }
 0xc22   :  { %v7964_v24 = vpop.trf.xlu0  ;;  %v8051_v38 = vsel %vm2915_vm15, %v3564_v10, %v3566_v56 }
 0xc23   :  { %v3531_v11 = vrot.slane %v7964_v24, 6  ;;  %v3764_v6 = vrot.slane %v8051_v38, 1  ;;  %v3803_v4 = vrot.slane %v8051_v38, 2 }
 0xc25   :  { %v8038_v53 = vsel %vm2915_vm15, %v3529_v30, %v3531_v11  ;;  %v3765_v60 = vsel %vm240_vm1, %v3762_v48, %v3764_v6  ;;  %v3804_v24 = vsel %vm280_vm0, %v3801_v32, %v3803_v4 }
 0xc26   :  { %3811 = vrot.lane.b32.xlu1 %v3798_v23, %s6149_s7  ;;  %v3591_v55 = vrot.slane %v8038_v53, 1  ;;  %v3630_v59 = vrot.slane %v8038_v53, 2 }
 0xc27   :  { %v3503_v17 = vpop.trf.xlu2 }
 0xc28   :  { %v3568_v57 = vrot.slane %v3503_v17, 6  ;;  %v3592_v20 = vsel %vm240_vm1, %v3589_v47, %v3591_v55  ;;  %v3631_v43 = vsel %vm280_vm0, %v3628_v36, %v3630_v59 }
 0xc2a   :  { %v7971_v1 = vpop.trf.xlu0  ;;  %v7976_v41 = vsel %vm2915_vm15, %v3566_v56, %v3568_v57 }
 0xc2b   :  { %v3533_v50 = vrot.slane %v7971_v1, 6  ;;  %v3766_v0 = vrot.slane %v7976_v41, 1  ;;  %v3805_v14 = vrot.slane %v7976_v41, 2 }
 0xc2d   :  { %v8064_v23 = vsel %vm2915_vm15, %v3531_v11, %v3533_v50 }
 0xc2e   :  { %3640 = vrot.lane.b32.xlu1 %v3627_v2, %s6149_s7  ;;  %v3632_v2 = vrot.slane %v8064_v23, 2 }
 0xc2f   :  { %v3504_v54 = vpop.trf.xlu2 }
 0xc30   :  { %v3570_v28 = vrot.slane %v3504_v54, 6  ;;  %v3633_v54 = vsel %vm280_vm0, %v3630_v59, %v3632_v2 }
 0xc32   :  { %v3461_v29 = vpop.trf.xlu0  ;;  %v3571_v52 = vsel %vm2915_vm15, %v3568_v57, %v3570_v28  ;;  %v3593_v57 = vrot.slane %v8064_v23, 1 }
 0xc33   :  { %v7986_v16 = vsel %vm280_vm0, %v3571_v52, 0.0  ;;  %v3535_v5 = vrot.slane %v3461_v29, 6 }
 0xc34   :  { %v3807_v25 = vrot.slane %v7986_v16, 2  ;;  %v3768_v37 = vrot.slane %v7986_v16, 1  ;;  %v3594_v19 = vsel %vm240_vm1, %v3591_v55, %v3593_v57 }
 0xc35   :  { %v7998_v51 = vsel %vm2915_vm15, %v3533_v50, %v3535_v5 }
 0xc36   :  { %3774 = vrot.lane.b32.xlu1 %v3761_v63, %s6148_s0  ;;  %3823 = vrot.lane.b32.xlu0 %v3807_v25, %s6149_s7  ;;  %v3595_v3 = vrot.slane %v7998_v51, 1  ;;  %v3767_v63 = vsel %vm240_vm1, %v3764_v6, %v3766_v0  ;;  %v3634_v47 = vrot.slane %v7998_v51, 2  ;;  %v3808_v48 = vsel %vm280_vm0, %v3805_v14, %v3807_v25 }
 0xc3a   :  { %v3462_v39 = vpop.trf.xlu0 }
 0xc3b   :  { %v3537_v42 = vrot.slane %v3462_v39, 6  ;;  %v3806_v39 = vsel %vm280_vm0, %v3803_v4, %v3805_v14 }
 0xc3d   :  { %v3538_v12 = vsel %vm2915_vm15, %v3535_v5, %v3537_v42 }
 0xc3e   :  { %v8007_v44 = vsel %vm280_vm0, %v3538_v12, 0.0  ;;  %3813 = vrot.lane.b32.xlu1 %v3800_v27, %s6149_s7 }
 0xc3f   :  { %v3597_v31 = vrot.slane %v8007_v44, 1  ;;  %v3636_v46 = vrot.slane %v8007_v44, 2 }
 0xc41   :  { %v3598_v7 = vsel %vm240_vm1, %v3595_v3, %v3597_v31 }
 0xc42   :  { %3611 = vrot.lane.b32.xlu2 %v3598_v7, %s6148_s0 }
 0xc46   :  { %3603 = vrot.lane.b32.xlu1 %v3590_v9, %s6148_s0  ;;  %v3635_v9 = vsel %vm280_vm0, %v3632_v2, %v3634_v47 }
 0xc4a   :  { %3784 = vrot.lane.b32.xlu2 %v3768_v37, %s6148_s0 }
 0xc4e   :  { %3642 = vrot.lane.b32.xlu1 %v3629_v21, %s6149_s7 }
 0xc52   :  { %3652 = vrot.lane.b32.xlu2 %v3636_v46, %s6149_s7 }
 0xc56   :  { %3776 = vrot.lane.b32.xlu1 %v3763_v22, %s6148_s0 }
 0xc5e   :  { %3815 = vrot.lane.b32.xlu1 %v3802_v33, %s6149_s7 }
 0xc66   :  { %3605 = vrot.lane.b32.xlu1 %v3592_v20, %s6148_s0 }
 0xc68   :  { %v3773_v52 = vpop.permute.xlu2 %3772 }
 0xc69   :  { %v3834_v50 = vsel %vm3662_vm7, %v7919_v18, %v3773_v52  ;;  %v3596_v18 = vsel %vm240_vm1, %v3593_v57, %v3595_v3  ;;  %v3769_v3 = vsel %vm240_vm1, %v3766_v0, %v3768_v37  ;;  %v3637_v37 = vsel %vm280_vm0, %v3634_v47, %v3636_v46 }
 0xc6e   :  { %3644 = vrot.lane.b32.xlu1 %v3631_v43, %s6149_s7 }
 0xc76   :  { %3778 = vrot.lane.b32.xlu1 %v3765_v60, %s6148_s0 }
 0xc78   :  { %v3771_v34 = vpop.permute.xlu1 %3770 }
 0xc79   :  { %v3833_v17 = vsel %vm3662_vm7, %v7916_v8, %v3771_v34 }
 0xc7e   :  { %3817 = vrot.lane.b32.xlu1 %v3804_v24, %s6149_s7 }
 0xc80   :  { %v3810_v56 = vpop.permute.xlu1 %3809 }
 0xc81   :  { %v3841_v15 = vsel %vm3671_vm13, %v3833_v17, %v3810_v56 }
 0xc82   :  { %5689 = vmatmul.msk.f32.vlgmr.msra.gmra.mxu2 %vm3683_vm8, %v3841_v15 }
 0xc86   :  { %3607 = vrot.lane.b32.xlu1 %v3594_v19, %s6148_s0 }
 0xc88   :  { %v3600_v1 = vpop.permute.xlu1 %3599 }
 0xc89   :  { %v3663_v8 = vsel %vm3662_vm7, %v7941_v13, %v3600_v1 }
 0xc8b   :  { %v3602_v30 = vpop.permute.xlu0 %3601 }
 0xc8c   :  { %v3664_v42 = vsel %vm3662_vm7, %v7934_v35, %v3602_v30 }
 0xc8e   :  { %3646 = vrot.lane.b32.xlu1 %v3633_v54, %s6149_s7 }
 0xc90   :  { %v3639_v28 = vpop.permute.xlu1 %3638 }
 0xc91   :  { %v3672_v29 = vsel %vm3671_vm13, %v3663_v8, %v3639_v28 }
 0xc92   :  { %5680 = vmatmul.msk.f32.vlgmr.msra.gmra.mxu0 %vm3683_vm8, %v3672_v29 }
 0xc96   :  { %3780 = vrot.lane.b32.xlu1 %v3767_v63, %s6148_s0 }
 0xc98   :  { %v3812_v5 = vpop.permute.xlu1 %3811 }
 0xc99   :  { %v3842_v13 = vsel %vm3671_vm13, %v3834_v50, %v3812_v5 }
 0xc9a   :  { %5690 = vmatmul.msk.f32.gmra.mxu2 %vm3683_vm8, %v3842_v13 }
 0xc9c   :  { %v3612_v19 = vpop.permute.xlu2 %3611 }
 0xc9e   :  { %3819 = vrot.lane.b32.xlu1 %v3806_v39, %s6149_s7 }
 0xca0   :  { %v3641_v12 = vpop.permute.xlu1 %3640 }
 0xca1   :  { %v3673_v27 = vsel %vm3671_vm13, %v3664_v42, %v3641_v12 }
 0xca2   :  { %5681 = vmatmul.msk.f32.gmra.mxu0 %vm3683_vm8, %v3673_v27 }
 0xca4   :  { %v3785_v54 = vpop.permute.xlu2 %3784 }
 0xca5   :  { %v3840_v28 = vsel %vm3662_vm7, %v7986_v16, %v3785_v54 }
 0xca6   :  { %3609 = vrot.lane.b32.xlu1 %v3596_v18, %s6148_s0 }
 0xca8   :  { %v3775_v7 = vpop.permute.xlu1 %3774  ;;  %v3824_v8 = vpop.permute.xlu0 %3823 }
 0xca9   :  { %v3835_v35 = vsel %vm3662_vm7, %v7927_v45, %v3775_v7  ;;  %v3848_v29 = vsel %vm3671_vm13, %v3840_v28, %v3824_v8  ;;  %v6003_v7 = vld [vmem:[%s9273_s10] ss:$0 sm:$0xff] }
 0xcac   :  { %v3653_v63 = vpop.permute.xlu2 %3652 }
 0xcae   :  { %3648 = vrot.lane.b32.xlu1 %v3635_v9, %s6149_s7 }
 0xcb0   :  { %v3814_v36 = vpop.permute.xlu1 %3813 }
 0xcb1   :  { %v3843_v10 = vsel %vm3671_vm13, %v3835_v35, %v3814_v36 }
 0xcb2   :  { %5691 = vmatmul.msk.f32.gmra.mxu2 %vm3683_vm8, %v3843_v10 }
 0xcb6   :  { %3782 = vrot.lane.b32.xlu1 %v3769_v3, %s6148_s0 }
 0xcb8   :  { %v3604_v21 = vpop.permute.xlu1 %3603 }
 0xcb9   :  { %v3665_v45 = vsel %vm3662_vm7, %v7946_v40, %v3604_v21 }
 0xcbe   :  { %3821 = vrot.lane.b32.xlu1 %v3808_v48, %s6149_s7 }
 0xcc0   :  { %v3643_v22 = vpop.permute.xlu1 %3642 }
 0xcc1   :  { %v3674_v32 = vsel %vm3671_vm13, %v3665_v45, %v3643_v22 }
 0xcc2   :  { %5682 = vmatmul.msk.f32.gmra.mxu0 %vm3683_vm8, %v3674_v32 }
 0xcc6   :  { %3650 = vrot.lane.b32.xlu1 %v3637_v37, %s6149_s7 }
 0xcc8   :  { %v3777_v11 = vpop.permute.xlu1 %3776 }
 0xcc9   :  { %v3836_v25 = vsel %vm3662_vm7, %v7980_v58, %v3777_v11 }
 0xcce   :  { %3613 = vrot.lane.b32.xlu1 %v3597_v31, %s6148_s0 }
 0xcd0   :  { %v3816_v40 = vpop.permute.xlu1 %3815 }
 0xcd1   :  { %v3844_v33 = vsel %vm3671_vm13, %v3836_v25, %v3816_v40 }
 0xcd2   :  { %5692 = vmatmul.msk.f32.gmra.mxu2 %vm3683_vm8, %v3844_v33 }
 0xcd8   :  { %v3606_v26 = vpop.permute.xlu1 %3605 }
 0xcd9   :  { %v3666_v55 = vsel %vm3662_vm7, %v8004_v49, %v3606_v26 }
 0xce0   :  { %v3645_v61 = vpop.permute.xlu1 %3644 }
 0xce1   :  { %v3675_v20 = vsel %vm3671_vm13, %v3666_v55, %v3645_v61 }
 0xce2   :  { %5683 = vmatmul.msk.f32.gmra.mxu0 %vm3683_vm8, %v3675_v20 }
 0xce8   :  { %v3779_v59 = vpop.permute.xlu1 %3778 }
 0xce9   :  { %v3837_v31 = vsel %vm3662_vm7, %v8028_v62, %v3779_v59 }
 0xcf0   :  { %v3818_v43 = vpop.permute.xlu1 %3817 }
 0xcf1   :  { %v3845_v58 = vsel %vm3671_vm13, %v3837_v31, %v3818_v43 }
 0xcf2   :  { %5693 = vmatmul.msk.f32.gmra.mxu2 %vm3683_vm8, %v3845_v58 }
 0xcf8   :  { %v3608_v6 = vpop.permute.xlu1 %3607 }
 0xcf9   :  { %v3667_v46 = vsel %vm3662_vm7, %v8038_v53, %v3608_v6 }
 0xd00   :  { %v3647_v60 = vpop.permute.xlu1 %3646 }
 0xd01   :  { %v3676_v49 = vsel %vm3671_vm13, %v3667_v46, %v3647_v60  ;;  %v6150_v60 = vmov 124.0  }
 0xd02   :  { %5684 = vmatmul.msk.f32.gmra.mxu0 %vm3683_vm8, %v3676_v49  ;;  %6029 = vrcp.f32 %v6150_v60 }
 0xd05   :  { %v3890_v16 = vpop.f32.mrf.mxu2 }
 0xd08   :  { %v3781_v34 = vpop.permute.xlu1 %3780 }
 0xd09   :  { %v3838_v4 = vsel %vm3662_vm7, %v8051_v38, %v3781_v34 }
 0xd0f   :  { %v3729_v5 = vpop.f32.mrf.mxu0 }
 0xd10   :  { %v3820_v24 = vpop.permute.xlu1 %3819  ;;  %v8178_v48 = vadd.f32 %v6003_v7, %v3729_v5 }
 0xd11   :  { %v3846_v62 = vsel %vm3671_vm13, %v3838_v4, %v3820_v24 }
 0xd12   :  { %5694 = vmatmul.msk.f32.gmra.mxu2 %vm3683_vm8, %v3846_v62  ;;  %v3916_v61 = vsel %vm579_vm5, %v8178_v48, 0.0 }
 0xd18   :  { %v3610_v17 = vpop.permute.xlu1 %3609 }
 0xd19   :  { %v3668_v56 = vsel %vm3662_vm7, %v8064_v23, %v3610_v17  ;;  %v3669_v23 = vsel %vm3662_vm7, %v7998_v51, %v3612_v19 }
 0xd1d   :  { %v3893_v14 = vpop.f32.mrf.mxu2 }
 0xd1e   :  { %v8166_v9 = vadd.f32 %v6003_v7, %v3893_v14 }
 0xd1f   :  { %v3732_v13 = vpop.f32.mrf.mxu0 }
 0xd20   :  { %v3649_v57 = vpop.permute.xlu1 %3648  ;;  %v8172_v10 = vadd.f32 %v6003_v7, %v3732_v13  ;;  %v3939_v3 = vsel %vm579_vm5, %v8166_v9, 0.0 }
 0xd21   :  { %v3677_v53 = vsel %vm3671_vm13, %v3668_v56, %v3649_v57 }
 0xd22   :  { %5685 = vmatmul.msk.f32.gmra.mxu0 %vm3683_vm8, %v3677_v53  ;;  %v3917_v25 = vsel %vm579_vm5, %v8172_v10, 0.0 }
 0xd23   :  { %v3918_v58 = vadd.f32 %v3917_v25, %v3916_v61 }
 0xd28   :  { %v3783_v15 = vpop.permute.xlu1 %3782 }
 0xd29   :  { %v3839_v1 = vsel %vm3662_vm7, %v7976_v41, %v3783_v15 }
 0xd30   :  { %v3822_v38 = vpop.permute.xlu1 %3821 }
 0xd31   :  { %v3847_v2 = vsel %vm3671_vm13, %v3839_v1, %v3822_v38 }
 0xd32   :  { %5695 = vmatmul.msk.f32.gmra.mxu2 %vm3683_vm8, %v3847_v2  ;;  %v6030_v2 = vpop.eup %6029 }
 0xd33   :  { %vm3965_vm6 = vweird.f32 %v6030_v2 }
 0xd35   :  { %v3896_v30 = vpop.f32.mrf.mxu2 }
 0xd36   :  { %v8170_v36 = vadd.f32 %v6003_v7, %v3896_v30 }
 0xd38   :  { %v3651_v0 = vpop.permute.xlu1 %3650  ;;  %v3941_v32 = vsel %vm579_vm5, %v8170_v36, 0.0 }
 0xd39   :  { %v3678_v52 = vsel %vm3671_vm13, %v3669_v23, %v3651_v0 }
 0xd3a   :  { %5686 = vmatmul.msk.f32.gmra.mxu0 %vm3683_vm8, %v3678_v52  ;;  %5696 = vmatmul.msk.f32.gmra.mxu2 %vm3683_vm8, %v3848_v29 }
 0xd3f   :  { %v3735_v39 = vpop.f32.mrf.mxu0 }
 0xd40   :  { %v3614_v41 = vpop.permute.xlu1 %3613  ;;  %v8180_v45 = vadd.f32 %v6003_v7, %v3735_v39 }
 0xd41   :  { %v3670_v50 = vsel %vm3662_vm7, %v8007_v44, %v3614_v41  ;;  %v8168_v44 = vadd.f32 %v6003_v7, %v3890_v16 }
 0xd42   :  { %v3679_v51 = vsel %vm3671_vm13, %v3670_v50, %v3653_v63  ;;  %v3919_v59 = vsel %vm579_vm5, %v8180_v45, 0.0  ;;  %v3961_v50 = vmul.f32 124.0, %v6030_v2 }
 0xd43   :  { %5687 = vmatmul.msk.f32.gmra.mxu0 %vm3683_vm8, %v3679_v51  ;;  %v3938_v22 = vsel %vm579_vm5, %v8168_v44, 0.0  ;;  %v3920_v24 = vadd.f32 %v3919_v59, %v3918_v58 }
 0xd44   :  { %v3940_v11 = vadd.f32 %v3939_v3, %v3938_v22  ;;  %v3962_v30 = vsub.f32 1.0, %v3961_v50 }
 0xd46   :  { %v3942_v20 = vadd.f32 %v3941_v32, %v3940_v11 }
 0xd55   :  { %v3899_v42 = vpop.f32.mrf.mxu2 }
 0xd56   :  { %v8176_v21 = vadd.f32 %v6003_v7, %v3899_v42 }
 0xd58   :  { %v3943_v26 = vsel %vm579_vm5, %v8176_v21, 0.0 }
 0xd59   :  { %v3944_v49 = vadd.f32 %v3943_v26, %v3942_v20 }
 0xd5f   :  { %v3738_v12 = vpop.f32.mrf.mxu0 }
 0xd60   :  { %v8190_v40 = vadd.f32 %v6003_v7, %v3738_v12 }
 0xd62   :  { %v3921_v34 = vsel %vm579_vm5, %v8190_v40, 0.0 }
 0xd63   :  { %v3922_v53 = vadd.f32 %v3921_v34, %v3920_v24 }
 0xd75   :  { %v3902_v27 = vpop.f32.mrf.mxu2 }
 0xd76   :  { %v8186_v37 = vadd.f32 %v6003_v7, %v3902_v27 }
 0xd78   :  { %v3945_v6 = vsel %vm579_vm5, %v8186_v37, 0.0 }
 0xd79   :  { %v3946_v17 = vadd.f32 %v3945_v6, %v3944_v49 }
 0xd7f   :  { %v3741_v18 = vpop.f32.mrf.mxu0 }
 0xd80   :  { %v8200_v31 = vadd.f32 %v6003_v7, %v3741_v18  ;;  %v3963_v18 = vmul.f32 %v6030_v2, %v3962_v30 }
 0xd82   :  { %v3923_v56 = vsel %vm579_vm5, %v8200_v31, 0.0  ;;  %v3964_v22 = vadd.f32 %v6030_v2, %v3963_v18 }
 0xd83   :  { %v3924_v54 = vadd.f32 %v3923_v56, %v3922_v53 }
 0xd84   :  { %v8230_v25 = vsel %vm3965_vm6, %v6030_v2, %v3964_v22 }
 0xd95   :  { %v3905_v47 = vpop.f32.mrf.mxu2 }
 0xd96   :  { %v8194_v55 = vadd.f32 %v6003_v7, %v3905_v47 }
 0xd98   :  { %v3947_v62 = vsel %vm579_vm5, %v8194_v55, 0.0 }
 0xd99   :  { %v3948_v19 = vadd.f32 %v3947_v62, %v3946_v17 }
 0xd9f   :  { %v3744_v35 = vpop.f32.mrf.mxu0 }
 0xda0   :  { %v8208_v4 = vadd.f32 %v6003_v7, %v3744_v35 }
 0xda2   :  { %v3925_v1 = vsel %vm579_vm5, %v8208_v4, 0.0 }
 0xda3   :  { %v3926_v0 = vadd.f32 %v3925_v1, %v3924_v54 }
 0xdb5   :  { %v3908_v33 = vpop.f32.mrf.mxu2 }
 0xdb6   :  { %v8204_v46 = vadd.f32 %v6003_v7, %v3908_v33 }
 0xdb7   :  { %v3747_v43 = vpop.f32.mrf.mxu0 }
 0xdb8   :  { %v8214_v57 = vadd.f32 %v6003_v7, %v3747_v43  ;;  %v3949_v15 = vsel %vm579_vm5, %v8204_v46, 0.0 }
 0xdb9   :  { %v3950_v23 = vadd.f32 %v3949_v15, %v3948_v19 }
 0xdba   :  { %v3927_v28 = vsel %vm579_vm5, %v8214_v57, 0.0 }
 0xdbb   :  { %v3928_v51 = vadd.f32 %v3927_v28, %v3926_v0 }
 0xdbd   :  { %v3911_v38 = vpop.f32.mrf.mxu2 }
 0xdbe   :  { %v8220_v8 = vadd.f32 %v6003_v7, %v3911_v38 }
 0xdc0   :  { %v3951_v29 = vsel %vm3929_vm11, %v8220_v8, 0.0  ;;  %v3750_v52 = vpop.f32.mrf.mxu0 }
 0xdc1   :  { %v3952_v41 = vadd.f32 %v3951_v29, %v3950_v23  ;;  %v8226_v63 = vadd.f32 %v6003_v7, %v3750_v52 }
 0xdc3   :  { %v3953_v16 = vrot.slane %v3952_v41, 4  ;;  %v3930_v5 = vsel %vm3929_vm11, %v8226_v63, 0.0 }
 0xdc4   :  { %v3931_v14 = vadd.f32 %v3930_v5, %v3928_v51 }
 0xdc5   :  { %v3954_v13 = vadd.f32 %v3953_v16, %v3952_v41 }
 0xdc6   :  { %v3932_v39 = vrot.slane %v3931_v14, 4 }
 0xdc7   :  { %v3955_v42 = vrot.slane %v3954_v13, 2 }
 0xdc8   :  { %v3933_v12 = vadd.f32 %v3932_v39, %v3931_v14 }
 0xdc9   :  { %v3956_v27 = vadd.f32 %v3955_v42, %v3954_v13 }
 0xdca   :  { %v3934_v47 = vrot.slane %v3933_v12, 2 }
 0xdcb   :  { %v3957_v35 = vrot.slane %v3956_v27, 1 }
 0xdcc   :  { %v3935_v3 = vadd.f32 %v3934_v47, %v3933_v12 }
 0xdcd   :  { %v3958_v32 = vadd.f32 %v3957_v35, %v3956_v27 }
 0xdce   :  { %v3936_v7 = vrot.slane %v3935_v3, 1 }
 0xdd0   :  { %v3937_v11 = vadd.f32 %v3936_v7, %v3935_v3 }
 0xdd2   :  { %v3959_v33 = vadd.f32 %v3958_v32, %v3937_v11 }
 0xdd4   :  { %v8233_v26 = vmul.f32 %v8230_v25, %v3959_v33 }
 0xdd6   :  { %v3968_v61 = vsub.f32 %v8178_v48, %v8233_v26  ;;  %v3969_v20 = vsub.f32 %v8172_v10, %v8233_v26  ;;  %v3970_v59 = vsub.f32 %v8180_v45, %v8233_v26  ;;  %v3971_v43 = vsub.f32 %v8190_v40, %v8233_v26 }
 0xdd7   :  { %v3972_v58 = vsub.f32 %v8200_v31, %v8233_v26  ;;  %v3973_v34 = vsub.f32 %v8208_v4, %v8233_v26  ;;  %v3974_v56 = vsub.f32 %v8214_v57, %v8233_v26  ;;  %v4005_v1 = vsub.f32 %v8168_v44, %v8233_v26 }
 0xdd8   :  { %v3976_v6 = vmul.f32 %v3968_v61, %v3968_v61  ;;  %v3977_v60 = vmul.f32 %v3969_v20, %v3969_v20  ;;  %v3978_v49 = vmul.f32 %v3970_v59, %v3970_v59  ;;  %v3979_v24 = vmul.f32 %v3971_v43, %v3971_v43 }
 0xdd9   :  { %v3980_v53 = vmul.f32 %v3972_v58, %v3972_v58  ;;  %v4006_v38 = vsub.f32 %v8166_v9, %v8233_v26  ;;  %v4007_v2 = vsub.f32 %v8170_v36, %v8233_v26  ;;  %v3975_v54 = vsub.f32 %v8226_v63, %v8233_v26 }
 0xdda   :  { %v3984_v62 = vsel %vm579_vm5, %v3976_v6, 0.0  ;;  %v3985_v17 = vsel %vm579_vm5, %v3977_v60, 0.0  ;;  %v3987_v19 = vsel %vm579_vm5, %v3978_v49, 0.0  ;;  %v4008_v28 = vsub.f32 %v8176_v21, %v8233_v26 }
 0xddb   :  { %v3986_v15 = vadd.f32 %v3985_v17, %v3984_v62  ;;  %v3981_v0 = vmul.f32 %v3973_v34, %v3973_v34  ;;  %v3989_v29 = vsel %vm579_vm5, %v3979_v24, 0.0  ;;  %v4013_v52 = vmul.f32 %v4005_v1, %v4005_v1 }
 0xddc   :  { %v4014_v41 = vmul.f32 %v4006_v38, %v4006_v38  ;;  %v4009_v51 = vsub.f32 %v8186_v37, %v8233_v26  ;;  %v4015_v16 = vmul.f32 %v4007_v2, %v4007_v2  ;;  %v3982_v5 = vmul.f32 %v3974_v56, %v3974_v56 }
 0xddd   :  { %v3988_v23 = vadd.f32 %v3987_v19, %v3986_v15  ;;  %v3991_v14 = vsel %vm579_vm5, %v3980_v53, 0.0  ;;  %v4021_v13 = vsel %vm579_vm5, %v4013_v52, 0.0  ;;  %v4010_v39 = vsub.f32 %v8194_v55, %v8233_v26 }
 0xdde   :  { %v4016_v42 = vmul.f32 %v4008_v28, %v4008_v28  ;;  %v4022_v12 = vsel %vm579_vm5, %v4014_v41, 0.0  ;;  %v3983_v27 = vmul.f32 %v3975_v54, %v3975_v54  ;;  %v3993_v18 = vsel %vm579_vm5, %v3981_v0, 0.0 }
 0xddf   :  { %v3990_v50 = vadd.f32 %v3989_v29, %v3988_v23  ;;  %v4023_v47 = vadd.f32 %v4022_v12, %v4021_v13  ;;  %v4011_v3 = vsub.f32 %v8204_v46, %v8233_v26  ;;  %v4017_v22 = vmul.f32 %v4009_v51, %v4009_v51 }
 0xde0   :  { %v4024_v7 = vsel %vm579_vm5, %v4015_v16, 0.0  ;;  %v3995_v32 = vsel %vm579_vm5, %v3982_v5, 0.0  ;;  %v4012_v61 = vsub.f32 %v8220_v8, %v8233_v26  ;;  %v4018_v20 = vmul.f32 %v4010_v39, %v4010_v39 }
 0xde1   :  { %v3992_v30 = vadd.f32 %v3991_v14, %v3990_v50  ;;  %v4025_v11 = vadd.f32 %v4024_v7, %v4023_v47  ;;  %v4026_v59 = vsel %vm579_vm5, %v4016_v42, 0.0  ;;  %v3997_v43 = vsel %vm3929_vm11, %v3983_v27, 0.0  ;;  %v3914_v27 = vld [vmem:[%s9274_s9] sm:$0x1] }
 0xde2   :  { %v4019_v60 = vmul.f32 %v4011_v3, %v4011_v3  ;;  %v4028_v49 = vsel %vm579_vm5, %v4017_v22, 0.0  ;;  %v4020_v62 = vmul.f32 %v4012_v61, %v4012_v61  ;;  %v4030_v17 = vsel %vm579_vm5, %v4018_v20, 0.0  ;;  %v3915_v3 = vld [vmem:[%s9275_s17] sm:$0x1] }
 0xde3   :  { %v3994_v35 = vadd.f32 %v3993_v18, %v3992_v30  ;;  %v4027_v58 = vadd.f32 %v4026_v59, %v4025_v11 }
 0xde4   :  { %v4032_v15 = vsel %vm579_vm5, %v4019_v60, 0.0  ;;  %v4034_v38 = vsel %vm3929_vm11, %v4020_v62, 0.0 }
 0xde5   :  { %v3996_v33 = vadd.f32 %v3995_v32, %v3994_v35  ;;  %v4029_v34 = vadd.f32 %v4028_v49, %v4027_v58 }
 0xde7   :  { %v3998_v6 = vadd.f32 %v3997_v43, %v3996_v33  ;;  %v4031_v56 = vadd.f32 %v4030_v17, %v4029_v34 }
 0xde9   :  { %v3999_v24 = vrot.slane %v3998_v6, 4  ;;  %v4033_v19 = vadd.f32 %v4032_v15, %v4031_v56 }
 0xdeb   :  { %v4000_v53 = vadd.f32 %v3999_v24, %v3998_v6  ;;  %v4035_v2 = vadd.f32 %v4034_v38, %v4033_v19 }
 0xded   :  { %v4001_v1 = vrot.slane %v4000_v53, 2  ;;  %v4036_v23 = vrot.slane %v4035_v2, 4 }
 0xdef   :  { %v4002_v54 = vadd.f32 %v4001_v1, %v4000_v53  ;;  %v4037_v28 = vadd.f32 %v4036_v23, %v4035_v2 }
 0xdf1   :  { %v4003_v0 = vrot.slane %v4002_v54, 1  ;;  %v4038_v29 = vrot.slane %v4037_v28, 2 }
 0xdf3   :  { %v4039_v52 = vadd.f32 %v4038_v29, %v4037_v28  ;;  %v4004_v41 = vadd.f32 %v4003_v0, %v4002_v54 }
 0xdf5   :  { %v4040_v50 = vrot.slane %v4039_v52, 1 }
 0xdf7   :  { %v4041_v51 = vadd.f32 %v4040_v50, %v4039_v52 }
 0xdf9   :  { %v4042_v16 = vadd.f32 %v4041_v51, %v4004_v41 }
 0xdfb   :  { %v4043_v5 = vmul.f32 %v4042_v16, %v8230_v25 }
 0xdfd   :  { %v4044_v14 = vadd.f32 1e-05, %v4043_v5 }
 0xdff   :  { %6031 = vrsqrt.f32 %v4044_v14  ;;  %vm4051_vm10 = vweird.f32 %v4044_v14 }
 0xe05   :  { %v6032_v13 = vpop.eup %6031 }
 0xe06   :  { %v4046_v30 = vmul.f32 %v6032_v13, %v4044_v14  ;;  %vm4052_vm9 = vweird.f32 %v6032_v13 }
 0xe07   :  { %vm4053_vm12 = vmor %vm4051_vm10, %vm4052_vm9 }
 0xe08   :  { %v4047_v39 = vmul.f32 %v6032_v13, %v4046_v30 }
 0xe0a   :  { %v4048_v42 = vmul.f32 0.5, %v4047_v39 }
 0xe0c   :  { %v4049_v12 = vsub.f32 1.5, %v4048_v42 }
 0xe0e   :  { %v4050_v18 = vmul.f32 %v6032_v13, %v4049_v12 }
 0xe10   :  { %v4054_v47 = vsel %vm4053_vm12, %v6032_v13, %v4050_v18 }
 0xe11   :  { %v4055_v35 = vmul.f32 %v4054_v47, %v3914_v27 }
 0xe13   :  { %v4056_v22 = vmul.f32 %v4055_v35, %v8233_v26  ;;  %v8287_v7 = vperm.slane %v4055_v35, 0 }
 0xe15   :  { %v4057_v25 = vsub.f32 %v3915_v3, %v4056_v22  ;;  %v4068_v32 = vmul.f32 %v8287_v7, %v8226_v63  ;;  %v4104_v33 = vmul.f32 %v8287_v7, %v8168_v44  ;;  %v4105_v61 = vmul.f32 %v8287_v7, %v8166_v9 }
 0xe16   :  { %v4061_v20 = vmul.f32 %v8287_v7, %v8178_v48  ;;  %v4062_v26 = vmul.f32 %v8287_v7, %v8172_v10  ;;  %v4063_v59 = vmul.f32 %v8287_v7, %v8180_v45  ;;  %v4064_v63 = vmul.f32 %v8287_v7, %v8190_v40 }
 0xe17   :  { %v8291_v11 = vperm.slane %v4057_v25, 0  ;;  %v4106_v45 = vmul.f32 %v8287_v7, %v8170_v36  ;;  %v4107_v12 = vmul.f32 %v8287_v7, %v8176_v21 }
 0xe19   :  { %v8306_v43 = vadd.f32 %v8291_v11, %v4068_v32  ;;  %v4112_v44 = vadd.f32 %v4104_v33, %v8291_v11  ;;  %v4113_v58 = vadd.f32 %v4105_v61, %v8291_v11  ;;  %v4072_v9 = vadd.f32 %v8291_v11, %v4061_v20 }
 0xe1a   :  { %v4073_v48 = vadd.f32 %v8291_v11, %v4062_v26  ;;  %v4074_v6 = vadd.f32 %v8291_v11, %v4063_v59  ;;  %v4075_v10 = vadd.f32 %v8291_v11, %v4064_v63  ;;  %v4114_v56 = vadd.f32 %v4106_v45, %v8291_v11 }
 0xe1b   :  { %vm4120_vm14 = vcmp.ge.f32.partialorder %v4112_v44, 0.0  ;;  %vm4121_vm13 = vcmp.ge.f32.partialorder %v4113_v58, 0.0  ;;  %v4128_v40 = vmul.f32 0.2, %v4112_v44  ;;  %v4129_v60 = vmul.f32 0.2, %v4113_v58 }
 0xe1c   :  { %vm4080_vm7 = vcmp.ge.f32.partialorder %v4072_v9, 0.0  ;;  %vm4081_vm8 = vcmp.ge.f32.partialorder %v4073_v48, 0.0  ;;  %v4088_v49 = vmul.f32 0.2, %v4072_v9  ;;  %v4089_v34 = vmul.f32 0.2, %v4073_v48 }
 0xe1d   :  { %vm4082_vm11 = vcmp.ge.f32.partialorder %v4074_v6, 0.0  ;;  %v4136_v24 = vsel %vm4120_vm14, %v4112_v44, %v4128_v40  ;;  %v4137_v62 = vsel %vm4121_vm13, %v4113_v58, %v4129_v60  ;;  %v4090_v17 = vmul.f32 0.2, %v4074_v6 }
 0xe1e   :  { %v4197_v53 = vrot.slane %v4136_v24, 6  ;;  %v4198_v15 = vrot.slane %v4137_v62, 6  ;;  %v4096_v19 = vsel %vm4080_vm7, %v4072_v9, %v4088_v49  ;;  %v4097_v1 = vsel %vm4081_vm8, %v4073_v48, %v4089_v34 }
 0xe1f   :  { %v4165_v38 = vrot.slane %v4096_v19, 6  ;;  %v4166_v2 = vrot.slane %v4097_v1, 6  ;;  %v4098_v54 = vsel %vm4082_vm11, %v4074_v6, %v4090_v17  ;;  %vm4083_vm6 = vcmp.ge.f32.partialorder %v4075_v10, 0.0 }
 0xe20   :  { %v8318_v36 = vsel %vm2915_vm15, %v4197_v53, %v4198_v15  ;;  %v8321_v23 = vsel %vm2915_vm15, 0.0, %v4197_v53  ;;  %v4168_v28 = vrot.slane %v4098_v54, 6  ;;  %v4091_v0 = vmul.f32 0.2, %v4075_v10 }
 0xe21   :  { %v4390_v29 = vrot.slane %v8321_v23, 1  ;;  %v4391_v52 = vrot.slane %v8318_v36, 1  ;;  %v8326_v41 = vsel %vm2915_vm15, %v4165_v38, %v4166_v2  ;;  %v8329_v50 = vsel %vm2915_vm15, 0.0, %v4165_v38 }
 0xe22   :  { %v4264_v51 = vrot.slane %v8329_v50, 2  ;;  %v4265_v16 = vrot.slane %v8326_v41, 2  ;;  %v4223_v5 = vrot.slane %v8329_v50, 1  ;;  %v4224_v14 = vrot.slane %v8326_v41, 1 }
 0xe23   :  { %v4392_v13 = vsel %vm240_vm1, %v4390_v29, %v4391_v52  ;;  %v8340_v42 = vsel %vm2915_vm15, %v4166_v2, %v4168_v28  ;;  %v8347_v27 = vsel %vm4083_vm6, %v4075_v10, %v4091_v0  ;;  %vm4122_vm9 = vcmp.ge.f32.partialorder %v4114_v56, 0.0 }
 0xe24   :  { %4406 = vrot.lane.b32.xlu2 %v4392_v13, %s6142_s5  ;;  %v4266_v30 = vsel %vm280_vm0, %v4264_v51, %v4265_v16  ;;  %v4225_v39 = vsel %vm240_vm1, %v4223_v5, %v4224_v14  ;;  %v4130_v18 = vmul.f32 0.2, %v4114_v56  ;;  %v4115_v47 = vadd.f32 %v4107_v12, %v8291_v11 }
 0xe25   :  { %4281 = vrot.lane.b32.xlu1 %v4266_v30, %s6143_s13  ;;  %4240 = vrot.lane.b32.xlu0 %v4225_v39, %s6142_s5  ;;  %v4267_v35 = vrot.slane %v8340_v42, 2  ;;  %v4226_v22 = vrot.slane %v8340_v42, 1  ;;  %v4430_v25 = vrot.slane %v8321_v23, 2  ;;  %v4431_v21 = vrot.slane %v8318_v36, 2 }
 0xe26   :  { %v4138_v3 = vsel %vm4122_vm9, %v4114_v56, %v4130_v18  ;;  %v4170_v32 = vrot.slane %v8347_v27, 6  ;;  %v4131_v61 = vmul.f32 0.2, %v4115_v47  ;;  %vm4123_vm10 = vcmp.ge.f32.partialorder %v4115_v47, 0.0 }
 0xe27   :  { %v4200_v33 = vrot.slane %v4138_v3, 6  ;;  %v4268_v20 = vsel %vm280_vm0, %v4265_v16, %v4267_v35  ;;  %v4108_v26 = vmul.f32 %v8287_v7, %v8186_v37  ;;  %v4227_v59 = vsel %vm240_vm1, %v4224_v14, %v4226_v22 }
 0xe28   :  { %v4432_v63 = vsel %vm280_vm0, %v4430_v25, %v4431_v21  ;;  %v8362_v44 = vsel %vm2915_vm15, %v4168_v28, %v4170_v32  ;;  %v4065_v58 = vmul.f32 %v8287_v7, %v8200_v31  ;;  %v4139_v37 = vsel %vm4123_vm10, %v4115_v47, %v4131_v61 }
 0xe29   :  { %v8369_v9 = vsel %vm2915_vm15, %v4198_v15, %v4200_v33  ;;  %v4116_v48 = vadd.f32 %v4108_v26, %v8291_v11  ;;  %v4228_v10 = vrot.slane %v8362_v44, 1  ;;  %v4202_v60 = vrot.slane %v4139_v37, 6 }
 0xe2a   :  { %v4076_v6 = vadd.f32 %v8291_v11, %v4065_v58  ;;  %v4433_v45 = vrot.slane %v8369_v9, 2  ;;  %v4393_v40 = vrot.slane %v8369_v9, 1  ;;  %v4066_v24 = vmul.f32 %v8287_v7, %v8208_v4 }
 0xe2b   :  { %v4132_v31 = vmul.f32 0.2, %v4116_v48  ;;  %vm4124_vm12 = vcmp.ge.f32.partialorder %v4116_v48, 0.0  ;;  %v4229_v34 = vsel %vm240_vm1, %v4226_v22, %v4228_v10  ;;  %v8383_v56 = vsel %vm2915_vm15, %v4200_v33, %v4202_v60 }
 0xe2c   :  { %4283 = vrot.lane.b32.xlu2 %v4268_v20, %s6143_s13  ;;  %v4092_v49 = vmul.f32 0.2, %v4076_v6  ;;  %vm4084_vm14 = vcmp.ge.f32.partialorder %v4076_v6, 0.0  ;;  %v4434_v62 = vsel %vm280_vm0, %v4431_v21, %v4433_v45  ;;  %v4394_v17 = vsel %vm240_vm1, %v4391_v52, %v4393_v40 }
 0xe2d   :  { %4242 = vrot.lane.b32.xlu1 %v4227_v59, %s6142_s5  ;;  %4446 = vrot.lane.b32.xlu0 %v4432_v63, %s6143_s13  ;;  %v4140_v53 = vsel %vm4124_vm12, %v4116_v48, %v4132_v31  ;;  %v4077_v15 = vadd.f32 %v8291_v11, %v4066_v24  ;;  %v4111_v4 = vmul.f32 %v8287_v7, %v8220_v8  ;;  %v4435_v1 = vrot.slane %v8383_v56, 2 }
 0xe2e   :  { %v4100_v19 = vsel %vm4084_vm14, %v4076_v6, %v4092_v49  ;;  %v4395_v38 = vrot.slane %v8383_v56, 1  ;;  %v4269_v2 = vrot.slane %v8362_v44, 2  ;;  %v4204_v54 = vrot.slane %v4140_v53, 6 }
 0xe2f   :  { %v8394_v28 = vadd.f32 %v4111_v4, %v8291_v11  ;;  %v4172_v0 = vrot.slane %v4100_v19, 6  ;;  %v4093_v29 = vmul.f32 0.2, %v4077_v15  ;;  %vm4085_vm13 = vcmp.ge.f32.partialorder %v4077_v15, 0.0 }
 0xe30   :  { %v4436_v52 = vsel %vm280_vm0, %v4433_v45, %v4435_v1  ;;  %v4067_v51 = vmul.f32 %v8287_v7, %v8214_v57  ;;  %v4396_v8 = vsel %vm240_vm1, %v4393_v40, %v4395_v38  ;;  %v4270_v16 = vsel %vm280_vm0, %v4267_v35, %v4269_v2 }
 0xe31   :  { %v8403_v5 = vsel %vm2915_vm15, %v4202_v60, %v4204_v54  ;;  %v4109_v14 = vmul.f32 %v8287_v7, %v8194_v55  ;;  %v8410_v13 = vsel %vm2915_vm15, %v4170_v32, %v4172_v0  ;;  %v4101_v57 = vsel %vm4085_vm13, %v4077_v15, %v4093_v29 }
 0xe32   :  { %v4078_v30 = vadd.f32 %v8291_v11, %v4067_v51  ;;  %v4397_v12 = vrot.slane %v8403_v5, 1  ;;  %v4271_v27 = vrot.slane %v8410_v13, 2  ;;  %v4230_v18 = vrot.slane %v8410_v13, 1 }
 0xe33   :  { %v4117_v39 = vadd.f32 %v4109_v14, %v8291_v11  ;;  %v4174_v47 = vrot.slane %v4101_v57, 6  ;;  %v4110_v22 = vmul.f32 %v8287_v7, %v8204_v46  ;;  %v4437_v7 = vrot.slane %v8403_v5, 2  ;;  %v4154_v14 = vld [vmem:[%s9276_s21 + $0x50] sm:$0xff] }
 0xe34   :  { %4244 = vrot.lane.b32.xlu2 %v4229_v34, %s6142_s5  ;;  %v4094_v55 = vmul.f32 0.2, %v4078_v30  ;;  %vm4086_vm7 = vcmp.ge.f32.partialorder %v4078_v30, 0.0  ;;  %v4398_v3 = vsel %vm240_vm1, %v4395_v38, %v4397_v12  ;;  %v4272_v25 = vsel %vm280_vm0, %v4269_v2, %v4271_v27 }
 0xe35   :  { %4448 = vrot.lane.b32.xlu1 %v4434_v62, %s6143_s13  ;;  %4408 = vrot.lane.b32.xlu0 %v4394_v17, %s6142_s5  ;;  %v4133_v35 = vmul.f32 0.2, %v4117_v39  ;;  %vm4125_vm8 = vcmp.ge.f32.partialorder %v4117_v39, 0.0  ;;  %v4231_v21 = vsel %vm240_vm1, %v4228_v10, %v4230_v18  ;;  %v8424_v32 = vsel %vm2915_vm15, %v4172_v0, %v4174_v47 }
 0xe36   :  { %v4102_v33 = vsel %vm4086_vm7, %v4078_v30, %v4094_v55  ;;  %v4118_v61 = vadd.f32 %v4110_v22, %v8291_v11  ;;  %v4273_v26 = vrot.slane %v8424_v32, 2  ;;  %v4232_v46 = vrot.slane %v8424_v32, 1  ;;  %v4151_v55 = vld [vmem:[%s9276_s21 + $0x38] sm:$0xff] }
 0xe37   :  { %v4141_v20 = vsel %vm4125_vm8, %v4117_v39, %v4133_v35  ;;  %v4176_v59 = vrot.slane %v4102_v33, 6  ;;  %v4438_v6 = vsel %vm280_vm0, %v4435_v1, %v4437_v7  ;;  %v4135_v34 = vmul.f32 0.2, %v8394_v28  ;;  %v4153_v39 = vld [vmem:[%s9276_s21 + $0x48] sm:$0xff] }
 0xe38   :  { %v4206_v63 = vrot.slane %v4141_v20, 6  ;;  %v4134_v58 = vmul.f32 0.2, %v4118_v61  ;;  %vm4126_vm11 = vcmp.ge.f32.partialorder %v4118_v61, 0.0  ;;  %v4274_v37 = vsel %vm280_vm0, %v4271_v27, %v4273_v26 }
 0xe39   :  { %v4233_v48 = vsel %vm240_vm1, %v4230_v18, %v4232_v46  ;;  %v8437_v11 = vsel %vm2915_vm15, %v4174_v47, %v4176_v59  ;;  %v4095_v24 = vmul.f32 0.2, %v8306_v43  ;;  %vm4127_vm6 = vcmp.ge.f32.partialorder %v8394_v28, 0.0  ;;  %v4152_v47 = vld [vmem:[%s9276_s21 + $0x40] sm:$0xff] }
 0xe3a   :  { %v8442_v10 = vsel %vm2915_vm15, %v4204_v54, %v4206_v63  ;;  %v4142_v45 = vsel %vm4126_vm11, %v4118_v61, %v4134_v58  ;;  %v4234_v40 = vrot.slane %v8437_v11, 1  ;;  %vm4087_vm9 = vcmp.ge.f32.partialorder %v8306_v43, 0.0  ;;  %v4149_v61 = vld [vmem:[%s9276_s21 + $0x28] sm:$0xff] }
 0xe3b   :  { %v4439_v60 = vrot.slane %v8442_v10, 2  ;;  %v4399_v31 = vrot.slane %v8442_v10, 1  ;;  %v4208_v49 = vrot.slane %v4142_v45, 6  ;;  %v4143_v19 = vsel %vm4127_vm6, %v8394_v28, %v4135_v34 }
 0xe3c   :  { %4450 = vrot.lane.b32.xlu2 %v4436_v52, %s6143_s13  ;;  %v4235_v62 = vsel %vm240_vm1, %v4232_v46, %v4234_v40  ;;  %v4103_v4 = vsel %vm4087_vm9, %v8306_v43, %v4095_v24  ;;  %v4275_v2 = vrot.slane %v8437_v11, 2  ;;  %v4210_v54 = vrot.slane %v4143_v19, 6  ;;  %v4148_v46 = vld [vmem:[%s9276_s21 + $0x20] sm:$0xff] }
 0xe3d   :  { %4410 = vrot.lane.b32.xlu1 %v4396_v8, %s6142_s5  ;;  %4285 = vrot.lane.b32.xlu0 %v4270_v16, %s6143_s13  ;;  %v4440_v17 = vsel %vm280_vm0, %v4437_v7, %v4439_v60  ;;  %v4400_v53 = vsel %vm240_vm1, %v4397_v12, %v4399_v31  ;;  %v8456_v15 = vsel %vm2915_vm15, %v4206_v63, %v4208_v49  ;;  %v4178_v0 = vrot.slane %v4103_v4, 6  ;;  %v4155_v16 = vld [vmem:[%s9276_s21 + $0x58] sm:$0xff]  ;;  %v4145_v63 = vld [vmem:[%s9276_s21 + $0x8] sm:$0xff] }
 0xe3e   :  { %v4441_v1 = vrot.slane %v8456_v15, 2  ;;  %v4401_v38 = vrot.slane %v8456_v15, 1  ;;  %v4276_v28 = vsel %vm280_vm0, %v4273_v26, %v4275_v2  ;;  %v8470_v43 = vsel %vm2915_vm15, %v4208_v49, %v4210_v54  ;;  %4352 = vmatpush.msrb.mxu3 %v4155_v16  ;;  %4514 = vmatpush.msrb.mxu1 %v4155_v16  ;;  %v4147_v7 = vld [vmem:[%s9276_s21 + $0x18] sm:$0xff] }
 0xe3f   :  { %v8475_v51 = vsel %vm2915_vm15, %v4176_v59, %v4178_v0  ;;  %v4403_v8 = vrot.slane %v8470_v43, 1  ;;  %v6151_v35 = vmov 0.0   ;;  %v4146_v59 = vld [vmem:[%s9276_s21 + $0x10] sm:$0xff] }
 0xe40   :  { %v4442_v29 = vsel %vm280_vm0, %v4439_v60, %v4441_v1  ;;  %v4402_v52 = vsel %vm240_vm1, %v4399_v31, %v4401_v38  ;;  %v4277_v57 = vrot.slane %v8475_v51, 2  ;;  %v4236_v30 = vrot.slane %v8475_v51, 1  ;;  %4353 = vmatpush.msrb.mxu3 %v4154_v14  ;;  %4515 = vmatpush.msrb.mxu1 %v4154_v14 }
 0xe41   :  { %v4404_v12 = vsel %vm240_vm1, %v4401_v38, %v4403_v8  ;;  %v4238_v22 = vrot.slane %v6151_v35, 1 }
 0xe42   :  { %v4278_v27 = vsel %vm280_vm0, %v4275_v2, %v4277_v57  ;;  %v4237_v18 = vsel %vm240_vm1, %v4234_v40, %v4236_v30  ;;  %4354 = vmatpush.msrb.mxu3 %v4153_v39  ;;  %4516 = vmatpush.msrb.mxu1 %v4153_v39 }
 0xe43   :  { %v4239_v20 = vsel %vm240_vm1, %v4236_v30, %v4238_v22 }
 0xe44   :  { %4412 = vrot.lane.b32.xlu2 %v4398_v3, %s6142_s5  ;;  %v4279_v3 = vrot.slane %v6151_v35, 2  ;;  %4355 = vmatpush.msrb.mxu3 %v4152_v47 }
 0xe45   :  { %4287 = vrot.lane.b32.xlu1 %v4272_v25, %s6143_s13  ;;  %4246 = vrot.lane.b32.xlu0 %v4231_v21, %s6142_s5  ;;  %v4443_v25 = vrot.slane %v8470_v43, 2  ;;  %v4150_v21 = vld [vmem:[%s9276_s21 + $0x30] sm:$0xff] }
 0xe46   :  { %4517 = vmatpush.msrb.mxu1 %v4152_v47  ;;  %4356 = vmatpush.msrb.mxu3 %v4151_v55  ;;  %v4280_v33 = vsel %vm280_vm0, %v4277_v57, %v4279_v3 }
 0xe47   :  { %v4444_v26 = vsel %vm280_vm0, %v4441_v1, %v4443_v25  ;;  %v4445_v58 = vsel %vm280_vm0, %v4443_v25, %v4279_v3 }
 0xe48   :  { %4518 = vmatpush.msrb.mxu1 %v4151_v55  ;;  %4357 = vmatpush.msrb.mxu3 %v4150_v21 }
 0xe4a   :  { %4519 = vmatpush.msrb.mxu1 %v4150_v21  ;;  %4358 = vmatpush.msrb.mxu3 %v4149_v61 }
 0xe4c   :  { %4289 = vrot.lane.b32.xlu2 %v4274_v37, %s6143_s13  ;;  %4520 = vmatpush.msrb.mxu1 %v4149_v61  ;;  %v4405_v37 = vsel %vm240_vm1, %v4403_v8, %v4238_v22 }
 0xe4d   :  { %4248 = vrot.lane.b32.xlu1 %v4233_v48, %s6142_s5  ;;  %4452 = vrot.lane.b32.xlu0 %v4438_v6, %s6143_s13  ;;  %v4144_v48 = vld [vmem:[%s9276_s21] sm:$0xff] }
 0xe4e   :  { %4359 = vmatpush.msrb.mxu3 %v4148_v46  ;;  %4521 = vmatpush.msrb.mxu1 %v4148_v46 }
 0xe50   :  { %4360 = vmatpush.msrb.mxu3 %v4147_v7  ;;  %4522 = vmatpush.msrb.mxu1 %v4147_v7 }
 0xe52   :  { %4361 = vmatpush.msrb.mxu3 %v4146_v59  ;;  %4523 = vmatpush.msrb.mxu1 %v4146_v59 }
 0xe54   :  { %4250 = vrot.lane.b32.xlu2 %v4235_v62, %s6142_s5  ;;  %4362 = vmatpush.msrb.mxu3 %v4145_v63 }
 0xe55   :  { %4454 = vrot.lane.b32.xlu1 %v4440_v17, %s6143_s13  ;;  %4414 = vrot.lane.b32.xlu0 %v4400_v53, %s6142_s5 }
 0xe56   :  { %4524 = vmatpush.msrb.mxu1 %v4145_v63  ;;  %4363 = vmatpush.msrb.mxu3 %v4144_v48 }
 0xe58   :  { %4525 = vmatpush.msrb.mxu1 %v4144_v48 }
 0xe5c   :  { %4456 = vrot.lane.b32.xlu2 %v4442_v29, %s6143_s13 }
 0xe5d   :  { %4416 = vrot.lane.b32.xlu1 %v4402_v52, %s6142_s5  ;;  %4291 = vrot.lane.b32.xlu0 %v4276_v28, %s6143_s13 }
 0xe64   :  { %4418 = vrot.lane.b32.xlu2 %v4404_v12, %s6142_s5 }
 0xe65   :  { %4293 = vrot.lane.b32.xlu1 %v4278_v27, %s6143_s13  ;;  %4252 = vrot.lane.b32.xlu0 %v4237_v18, %s6142_s5 }
 0xe6c   :  { %4295 = vrot.lane.b32.xlu2 %v4280_v33, %s6143_s13 }
 0xe6d   :  { %4254 = vrot.lane.b32.xlu1 %v4239_v20, %s6142_s5  ;;  %4458 = vrot.lane.b32.xlu0 %v4444_v26, %s6143_s13 }
 0xe75   :  { %4460 = vrot.lane.b32.xlu1 %v4445_v58, %s6143_s13  ;;  %4420 = vrot.lane.b32.xlu0 %v4405_v37, %s6142_s5 }
 0xe7e   :  { %v4407_v6 = vpop.permute.xlu2 %4406 }
 0xe7f   :  { %v4470_v24 = vsel %vm579_vm5, %v8321_v23, %v4407_v6 }
 0xe86   :  { %v4284_v45 = vpop.permute.xlu2 %4283 }
 0xe8e   :  { %v4245_v34 = vpop.permute.xlu2 %4244 }
 0xe97   :  { %v4282_v40 = vpop.permute.xlu1 %4281  ;;  %v4241_v60 = vpop.permute.xlu0 %4240 }
 0xe98   :  { %v4305_v31 = vsel %vm579_vm5, %v8329_v50, %v4241_v60  ;;  %v4451_v50 = vpop.permute.xlu2 %4450 }
 0xe99   :  { %v4313_v49 = vsel %vm908_vm3, %v4305_v31, %v4282_v40 }
 0xe9a   :  { %5697 = vmatmul.msk.f32.vlgmr.msrb.gmra.mxu3 %vm919_vm4, %v4313_v49 }
 0xe9f   :  { %v4243_v62 = vpop.permute.xlu1 %4242  ;;  %v4447_v17 = vpop.permute.xlu0 %4446 }
 0xea0   :  { %v4306_v53 = vsel %vm579_vm5, %v8326_v41, %v4243_v62  ;;  %v4478_v19 = vsel %vm908_vm3, %v4470_v24, %v4447_v17  ;;  %v4413_v54 = vpop.permute.xlu2 %4412  ;;  %v4307_v41 = vsel %vm579_vm5, %v8340_v42, %v4245_v34 }
 0xea1   :  { %5705 = vmatmul.msk.f32.vlgmr.msrb.gmra.mxu1 %vm919_vm4, %v4478_v19  ;;  %v4314_v4 = vsel %vm908_vm3, %v4306_v53, %v4284_v45  ;;  %v6004_v19 = vld [vmem:[%s9277_s25] ss:$0 sm:$0xff] }
 0xea2   :  { %5698 = vmatmul.msk.f32.gmra.mxu3 %vm919_vm4, %v4314_v4 }
 0xea7   :  { %v4449_v1 = vpop.permute.xlu1 %4448  ;;  %v4409_v38 = vpop.permute.xlu0 %4408 }
 0xea8   :  { %v4471_v2 = vsel %vm579_vm5, %v8318_v36, %v4409_v38  ;;  %v4290_v14 = vpop.permute.xlu2 %4289 }
 0xea9   :  { %v4479_v23 = vsel %vm908_vm3, %v4471_v2, %v4449_v1 }
 0xeaa   :  { %5706 = vmatmul.msk.f32.gmra.mxu1 %vm919_vm4, %v4479_v23 }
 0xeaf   :  { %v4411_v0 = vpop.permute.xlu1 %4410  ;;  %v4286_v29 = vpop.permute.xlu0 %4285 }
 0xeb0   :  { %v4472_v52 = vsel %vm579_vm5, %v8369_v9, %v4411_v0  ;;  %v4315_v28 = vsel %vm908_vm3, %v4307_v41, %v4286_v29  ;;  %v4473_v9 = vsel %vm579_vm5, %v8383_v56, %v4413_v54  ;;  %v4251_v47 = vpop.permute.xlu2 %4250 }
 0xeb1   :  { %5699 = vmatmul.msk.f32.gmra.mxu3 %vm919_vm4, %v4315_v28  ;;  %v4480_v8 = vsel %vm908_vm3, %v4472_v52, %v4451_v50 }
 0xeb2   :  { %5707 = vmatmul.msk.f32.gmra.mxu1 %vm919_vm4, %v4480_v8 }
 0xeb7   :  { %v4288_v36 = vpop.permute.xlu1 %4287  ;;  %v4247_v16 = vpop.permute.xlu0 %4246 }
 0xeb8   :  { %v4308_v57 = vsel %vm579_vm5, %v8362_v44, %v4247_v16  ;;  %v4457_v3 = vpop.permute.xlu2 %4456 }
 0xeb9   :  { %v4316_v42 = vsel %vm908_vm3, %v4308_v57, %v4288_v36 }
 0xeba   :  { %5700 = vmatmul.msk.f32.gmra.mxu3 %vm919_vm4, %v4316_v42 }
 0xebf   :  { %v4249_v30 = vpop.permute.xlu1 %4248  ;;  %v4453_v39 = vpop.permute.xlu0 %4452 }
 0xec0   :  { %v4309_v12 = vsel %vm579_vm5, %v8410_v13, %v4249_v30  ;;  %v4481_v27 = vsel %vm908_vm3, %v4473_v9, %v4453_v39  ;;  %v4310_v13 = vsel %vm579_vm5, %v8424_v32, %v4251_v47  ;;  %v6152_v47 = vmov 128.0  }
 0xec1   :  { %5708 = vmatmul.msk.f32.gmra.mxu1 %vm919_vm4, %v4481_v27  ;;  %v4317_v18 = vsel %vm908_vm3, %v4309_v12, %v4290_v14  ;;  %6033 = vrcp.f32 %v6152_v47 }
 0xec2   :  { %5701 = vmatmul.msk.f32.gmra.mxu3 %vm919_vm4, %v4317_v18 }
 0xec7   :  { %v4455_v44 = vpop.permute.xlu1 %4454  ;;  %v4415_v55 = vpop.permute.xlu0 %4414 }
 0xec8   :  { %v4474_v35 = vsel %vm579_vm5, %v8403_v5, %v4415_v55  ;;  %v4419_v5 = vpop.permute.xlu2 %4418 }
 0xec9   :  { %v4482_v56 = vsel %vm908_vm3, %v4474_v35, %v4455_v44 }
 0xeca   :  { %5709 = vmatmul.msk.f32.gmra.mxu1 %vm919_vm4, %v4482_v56 }
 0xecf   :  { %v4417_v22 = vpop.permute.xlu1 %4416  ;;  %v4292_v25 = vpop.permute.xlu0 %4291 }
 0xed0   :  { %v4475_v21 = vsel %vm579_vm5, %v8442_v10, %v4417_v22  ;;  %v4318_v33 = vsel %vm908_vm3, %v4310_v13, %v4292_v25  ;;  %v4476_v10 = vsel %vm579_vm5, %v8456_v15, %v4419_v5  ;;  %v4296_v63 = vpop.permute.xlu2 %4295 }
 0xed1   :  { %5702 = vmatmul.msk.f32.gmra.mxu3 %vm919_vm4, %v4318_v33  ;;  %v4483_v61 = vsel %vm908_vm3, %v4475_v21, %v4457_v3 }
 0xed2   :  { %5710 = vmatmul.msk.f32.gmra.mxu1 %vm919_vm4, %v4483_v61 }
 0xed7   :  { %v4294_v20 = vpop.permute.xlu1 %4293  ;;  %v4253_v26 = vpop.permute.xlu0 %4252 }
 0xed8   :  { %v4311_v46 = vsel %vm579_vm5, %v8437_v11, %v4253_v26  ;;  %v6034_v26 = vpop.eup %6033 }
 0xed9   :  { %v4319_v32 = vsel %vm908_vm3, %v4311_v46, %v4294_v20  ;;  %vm4601_vm15 = vweird.f32 %v6034_v26 }
 0xeda   :  { %5703 = vmatmul.msk.f32.gmra.mxu3 %vm919_vm4, %v4319_v32 }
 0xedf   :  { %v4255_v7 = vpop.permute.xlu1 %4254  ;;  %v4459_v59 = vpop.permute.xlu0 %4458 }
 0xee0   :  { %v4312_v58 = vsel %vm579_vm5, %v8475_v51, %v4255_v7  ;;  %v4484_v37 = vsel %vm908_vm3, %v4476_v10, %v4459_v59 }
 0xee1   :  { %5711 = vmatmul.msk.f32.gmra.mxu1 %vm919_vm4, %v4484_v37  ;;  %v4320_v48 = vsel %vm908_vm3, %v4312_v58, %v4296_v63 }
 0xee2   :  { %5704 = vmatmul.msk.f32.gmra.mxu3 %vm919_vm4, %v4320_v48 }
 0xee7   :  { %v4461_v11 = vpop.permute.xlu1 %4460  ;;  %v4421_v6 = vpop.permute.xlu0 %4420 }
 0xee8   :  { %v4477_v15 = vsel %vm579_vm5, %v8470_v43, %v4421_v6  ;;  %v4597_v6 = vmul.f32 128.0, %v6034_v26 }
 0xee9   :  { %v4485_v45 = vsel %vm908_vm3, %v4477_v15, %v4461_v11 }
 0xeea   :  { %5712 = vmatmul.msk.f32.gmra.mxu1 %vm919_vm4, %v4485_v45 }
 0xf1d   :  { %v4365_v40 = vpop.f32.mrf.mxu3 }
 0xf1e   :  { %v4527_v51 = vpop.f32.mrf.mxu1  ;;  %v8576_v43 = vadd.f32 %v6004_v19, %v4365_v40 }
 0xf1f   :  { %v8582_v23 = vadd.f32 %v6004_v19, %v4527_v51 }
 0xf20   :  { %v4553_v29 = vsel %vm579_vm5, %v8576_v43, 0.0 }
 0xf21   :  { %v4574_v16 = vsel %vm579_vm5, %v8582_v23, 0.0 }
 0xf25   :  { %v4368_v60 = vpop.f32.mrf.mxu3 }
 0xf26   :  { %v8574_v50 = vadd.f32 %v6004_v19, %v4368_v60 }
 0xf27   :  { %v4530_v31 = vpop.f32.mrf.mxu1 }
 0xf28   :  { %v8578_v38 = vadd.f32 %v6004_v19, %v4530_v31  ;;  %v4554_v54 = vsel %vm579_vm5, %v8574_v50, 0.0  ;;  %v4598_v31 = vsub.f32 1.0, %v4597_v6 }
 0xf29   :  { %v4555_v14 = vadd.f32 %v4554_v54, %v4553_v29 }
 0xf2a   :  { %v4575_v52 = vsel %vm579_vm5, %v8578_v38, 0.0 }
 0xf2b   :  { %v4576_v27 = vadd.f32 %v4575_v52, %v4574_v16 }
 0xf2f   :  { %v4533_v34 = vpop.f32.mrf.mxu1 }
 0xf30   :  { %v8586_v41 = vadd.f32 %v6004_v19, %v4533_v34 }
 0xf32   :  { %v4577_v42 = vsel %vm579_vm5, %v8586_v41, 0.0 }
 0xf33   :  { %v4578_v3 = vadd.f32 %v4577_v42, %v4576_v27 }
 0xf34   :  { %v4371_v49 = vpop.f32.mrf.mxu3 }
 0xf35   :  { %v8580_v2 = vadd.f32 %v6004_v19, %v4371_v49 }
 0xf37   :  { %v4556_v28 = vsel %vm579_vm5, %v8580_v2, 0.0 }
 0xf38   :  { %v4557_v18 = vadd.f32 %v4556_v28, %v4555_v14 }
 0xf3d   :  { %v4374_v24 = vpop.f32.mrf.mxu3 }
 0xf3e   :  { %v4536_v62 = vpop.f32.mrf.mxu1  ;;  %v8588_v0 = vadd.f32 %v6004_v19, %v4374_v24 }
 0xf3f   :  { %v8596_v8 = vadd.f32 %v6004_v19, %v4536_v62 }
 0xf40   :  { %v4558_v9 = vsel %vm579_vm5, %v8588_v0, 0.0 }
 0xf41   :  { %v4579_v44 = vsel %vm579_vm5, %v8596_v8, 0.0  ;;  %v4559_v13 = vadd.f32 %v4558_v9, %v4557_v18 }
 0xf42   :  { %v4580_v33 = vadd.f32 %v4579_v44, %v4578_v3 }
 0xf45   :  { %v4377_v17 = vpop.f32.mrf.mxu3 }
 0xf46   :  { %v8598_v36 = vadd.f32 %v6004_v19, %v4377_v17  ;;  %v4599_v17 = vmul.f32 %v6034_v26, %v4598_v31 }
 0xf47   :  { %v4539_v53 = vpop.f32.mrf.mxu1 }
 0xf48   :  { %v8606_v30 = vadd.f32 %v6004_v19, %v4539_v53  ;;  %v4560_v55 = vsel %vm579_vm5, %v8598_v36, 0.0 }
 0xf49   :  { %v4561_v61 = vadd.f32 %v4560_v55, %v4559_v13 }
 0xf4a   :  { %v4581_v22 = vsel %vm579_vm5, %v8606_v30, 0.0 }
 0xf4b   :  { %v4582_v46 = vadd.f32 %v4581_v22, %v4580_v33 }
 0xf4f   :  { %v4542_v1 = vpop.f32.mrf.mxu1 }
 0xf50   :  { %v8614_v35 = vadd.f32 %v6004_v19, %v4542_v1 }
 0xf52   :  { %v4583_v5 = vsel %vm579_vm5, %v8614_v35, 0.0 }
 0xf53   :  { %v4584_v63 = vadd.f32 %v4583_v5, %v4582_v46 }
 0xf54   :  { %v4380_v4 = vpop.f32.mrf.mxu3 }
 0xf55   :  { %v8608_v39 = vadd.f32 %v6004_v19, %v4380_v4 }
 0xf57   :  { %v4562_v25 = vsel %vm579_vm5, %v8608_v39, 0.0 }
 0xf58   :  { %v4563_v32 = vadd.f32 %v4562_v25, %v4561_v61 }
 0xf5d   :  { %v4383_v57 = vpop.f32.mrf.mxu3 }
 0xf5e   :  { %v4545_v12 = vpop.f32.mrf.mxu1  ;;  %v8616_v56 = vadd.f32 %v6004_v19, %v4383_v57 }
 0xf5f   :  { %v8622_v21 = vadd.f32 %v6004_v19, %v4545_v12 }
 0xf60   :  { %v4564_v20 = vsel %vm579_vm5, %v8616_v56, 0.0 }
 0xf61   :  { %v4585_v7 = vsel %vm579_vm5, %v8622_v21, 0.0  ;;  %v4565_v58 = vadd.f32 %v4564_v20, %v4563_v32 }
 0xf62   :  { %v4586_v15 = vadd.f32 %v4585_v7, %v4584_v63 }
 0xf65   :  { %v4386_v10 = vpop.f32.mrf.mxu3 }
 0xf66   :  { %v8630_v59 = vadd.f32 %v6004_v19, %v4386_v10 }
 0xf67   :  { %v4548_v37 = vpop.f32.mrf.mxu1 }
 0xf68   :  { %v4566_v48 = vsel %vm579_vm5, %v8630_v59, 0.0  ;;  %v8634_v11 = vadd.f32 %v6004_v19, %v4548_v37  ;;  %v4600_v19 = vadd.f32 %v6034_v26, %v4599_v17 }
 0xf69   :  { %v4567_v45 = vadd.f32 %v4566_v48, %v4565_v58 }
 0xf6a   :  { %v4587_v40 = vsel %vm579_vm5, %v8634_v11, 0.0  ;;  %v8638_v16 = vsel %vm4601_vm15, %v6034_v26, %v4600_v19 }
 0xf6b   :  { %v4568_v51 = vrot.slane %v4567_v45, 4  ;;  %v4588_v60 = vadd.f32 %v4587_v40, %v4586_v15 }
 0xf6d   :  { %v4569_v49 = vadd.f32 %v4568_v51, %v4567_v45  ;;  %v4589_v34 = vrot.slane %v4588_v60, 4 }
 0xf6f   :  { %v4570_v24 = vrot.slane %v4569_v49, 2  ;;  %v4590_v62 = vadd.f32 %v4589_v34, %v4588_v60 }
 0xf71   :  { %v4571_v53 = vadd.f32 %v4570_v24, %v4569_v49  ;;  %v4591_v4 = vrot.slane %v4590_v62, 2 }
 0xf73   :  { %v4572_v1 = vrot.slane %v4571_v53, 1  ;;  %v4592_v54 = vadd.f32 %v4591_v4, %v4590_v62 }
 0xf75   :  { %v4593_v29 = vrot.slane %v4592_v54, 1  ;;  %v4573_v52 = vadd.f32 %v4572_v1, %v4571_v53 }
 0xf77   :  { %v4594_v28 = vadd.f32 %v4593_v29, %v4592_v54 }
 0xf79   :  { %v4595_v14 = vadd.f32 %v4594_v28, %v4573_v52 }
 0xf7b   :  { %v8641_v57 = vmul.f32 %v8638_v16, %v4595_v14 }
 0xf7d   :  { %v4604_v42 = vsub.f32 %v8576_v43, %v8641_v57  ;;  %v4605_v9 = vsub.f32 %v8574_v50, %v8641_v57  ;;  %v4606_v12 = vsub.f32 %v8580_v2, %v8641_v57  ;;  %v4607_v27 = vsub.f32 %v8588_v0, %v8641_v57 }
 0xf7e   :  { %v4608_v18 = vsub.f32 %v8598_v36, %v8641_v57  ;;  %v4609_v3 = vsub.f32 %v8608_v39, %v8641_v57  ;;  %v4610_v33 = vsub.f32 %v8616_v56, %v8641_v57  ;;  %v4641_v26 = vsub.f32 %v8582_v23, %v8641_v57 }
 0xf7f   :  { %v4612_v47 = vmul.f32 %v4604_v42, %v4604_v42  ;;  %v4613_v44 = vmul.f32 %v4605_v9, %v4605_v9  ;;  %v4614_v55 = vmul.f32 %v4606_v12, %v4606_v12  ;;  %v4615_v13 = vmul.f32 %v4607_v27, %v4607_v27 }
 0xf80   :  { %v4616_v61 = vmul.f32 %v4608_v18, %v4608_v18  ;;  %v4642_v46 = vsub.f32 %v8578_v38, %v8641_v57  ;;  %v4643_v32 = vsub.f32 %v8586_v41, %v8641_v57  ;;  %v4611_v10 = vsub.f32 %v8630_v59, %v8641_v57 }
 0xf81   :  { %v4620_v22 = vsel %vm579_vm5, %v4612_v47, 0.0  ;;  %v4621_v25 = vsel %vm579_vm5, %v4613_v44, 0.0  ;;  %v4623_v20 = vsel %vm579_vm5, %v4614_v55, 0.0  ;;  %v4644_v63 = vsub.f32 %v8596_v8, %v8641_v57 }
 0xf82   :  { %v4622_v5 = vadd.f32 %v4621_v25, %v4620_v22  ;;  %v4617_v58 = vmul.f32 %v4609_v3, %v4609_v3  ;;  %v4625_v37 = vsel %vm579_vm5, %v4615_v13, 0.0  ;;  %v4649_v48 = vmul.f32 %v4641_v26, %v4641_v26 }
 0xf83   :  { %v4650_v6 = vmul.f32 %v4642_v46, %v4642_v46  ;;  %v4645_v45 = vsub.f32 %v8606_v30, %v8641_v57  ;;  %v4651_v40 = vmul.f32 %v4643_v32, %v4643_v32  ;;  %v4618_v51 = vmul.f32 %v4610_v33, %v4610_v33 }
 0xf84   :  { %v4624_v7 = vadd.f32 %v4623_v20, %v4622_v5  ;;  %v4627_v60 = vsel %vm579_vm5, %v4616_v61, 0.0  ;;  %v4657_v31 = vsel %vm579_vm5, %v4649_v48, 0.0  ;;  %v4646_v34 = vsub.f32 %v8614_v35, %v8641_v57 }
 0xf85   :  { %v4652_v24 = vmul.f32 %v4644_v63, %v4644_v63  ;;  %v4658_v62 = vsel %vm579_vm5, %v4650_v6, 0.0  ;;  %v4619_v17 = vmul.f32 %v4611_v10, %v4611_v10  ;;  %v4629_v53 = vsel %vm579_vm5, %v4617_v58, 0.0 }
 0xf86   :  { %v4626_v15 = vadd.f32 %v4625_v37, %v4624_v7  ;;  %v4659_v4 = vadd.f32 %v4658_v62, %v4657_v31  ;;  %v4647_v54 = vsub.f32 %v8622_v21, %v8641_v57  ;;  %v4653_v19 = vmul.f32 %v4645_v45, %v4645_v45 }
 0xf87   :  { %v4660_v29 = vsel %vm579_vm5, %v4651_v40, 0.0  ;;  %v4631_v52 = vsel %vm579_vm5, %v4618_v51, 0.0  ;;  %v4648_v42 = vsub.f32 %v8634_v11, %v8641_v57  ;;  %v4654_v9 = vmul.f32 %v4646_v34, %v4646_v34 }
 0xf88   :  { %v4628_v49 = vadd.f32 %v4627_v60, %v4626_v15  ;;  %v4661_v28 = vadd.f32 %v4660_v29, %v4659_v4  ;;  %v4662_v12 = vsel %vm579_vm5, %v4652_v24, 0.0  ;;  %v4633_v27 = vsel %vm579_vm5, %v4619_v17, 0.0  ;;  %v4551_v17 = vld [vmem:[%s9278_s29] sm:$0x1] }
 0xf89   :  { %v4655_v44 = vmul.f32 %v4647_v54, %v4647_v54  ;;  %v4664_v55 = vsel %vm579_vm5, %v4653_v19, 0.0  ;;  %v4656_v22 = vmul.f32 %v4648_v42, %v4648_v42  ;;  %v4666_v25 = vsel %vm579_vm5, %v4654_v9, 0.0  ;;  %v4552_v54 = vld [vmem:[%s9279_s3] sm:$0x1] }
 0xf8a   :  { %v4630_v1 = vadd.f32 %v4629_v53, %v4628_v49  ;;  %v4663_v18 = vadd.f32 %v4662_v12, %v4661_v28 }
 0xf8b   :  { %v4668_v5 = vsel %vm579_vm5, %v4655_v44, 0.0  ;;  %v4670_v46 = vsel %vm579_vm5, %v4656_v22, 0.0 }
 0xf8c   :  { %v4632_v14 = vadd.f32 %v4631_v52, %v4630_v1  ;;  %v4665_v3 = vadd.f32 %v4664_v55, %v4663_v18 }
 0xf8e   :  { %v4634_v47 = vadd.f32 %v4633_v27, %v4632_v14  ;;  %v4667_v33 = vadd.f32 %v4666_v25, %v4665_v3 }
 0xf90   :  { %v4635_v13 = vrot.slane %v4634_v47, 4  ;;  %v4669_v20 = vadd.f32 %v4668_v5, %v4667_v33 }
 0xf92   :  { %v4636_v61 = vadd.f32 %v4635_v13, %v4634_v47  ;;  %v4671_v32 = vadd.f32 %v4670_v46, %v4669_v20 }
 0xf94   :  { %v4637_v26 = vrot.slane %v4636_v61, 2  ;;  %v4672_v7 = vrot.slane %v4671_v32, 4 }
 0xf96   :  { %v4638_v10 = vadd.f32 %v4637_v26, %v4636_v61  ;;  %v4673_v63 = vadd.f32 %v4672_v7, %v4671_v32 }
 0xf98   :  { %v4639_v58 = vrot.slane %v4638_v10, 1  ;;  %v4674_v37 = vrot.slane %v4673_v63, 2 }
 0xf9a   :  { %v4675_v48 = vadd.f32 %v4674_v37, %v4673_v63  ;;  %v4640_v6 = vadd.f32 %v4639_v58, %v4638_v10 }
 0xf9c   :  { %v4676_v15 = vrot.slane %v4675_v48, 1 }
 0xf9e   :  { %v4677_v45 = vadd.f32 %v4676_v15, %v4675_v48 }
 0xfa0   :  { %v4678_v40 = vadd.f32 %v4677_v45, %v4640_v6 }
 0xfa2   :  { %v4679_v51 = vmul.f32 %v4678_v40, %v8638_v16 }
 0xfa4   :  { %v4680_v60 = vadd.f32 1e-05, %v4679_v51 }
 0xfa6   :  { %6035 = vrsqrt.f32 %v4680_v60  ;;  %vm4687_vm12 = vweird.f32 %v4680_v60 }
 0xfac   :  { %v6036_v31 = vpop.eup %6035 }
 0xfad   :  { %v4682_v49 = vmul.f32 %v6036_v31, %v4680_v60  ;;  %vm4688_vm10 = vweird.f32 %v6036_v31 }
 0xfae   :  { %vm4689_vm14 = vmor %vm4687_vm12, %vm4688_vm10 }
 0xfaf   :  { %v4683_v34 = vmul.f32 %v6036_v31, %v4682_v49 }
 0xfb1   :  { %v4684_v24 = vmul.f32 0.5, %v4683_v34 }
 0xfb3   :  { %v4685_v62 = vsub.f32 1.5, %v4684_v24 }
 0xfb5   :  { %v4686_v53 = vmul.f32 %v6036_v31, %v4685_v62 }
 0xfb7   :  { %v4690_v4 = vsel %vm4689_vm14, %v6036_v31, %v4686_v53 }
 0xfb8   :  { %v4691_v1 = vmul.f32 %v4690_v4, %v4551_v17 }
 0xfba   :  { %v4692_v19 = vmul.f32 %v4691_v1, %v8641_v57  ;;  %v8695_v29 = vperm.slane %v4691_v1, 0 }
 0xfbc   :  { %v4693_v16 = vsub.f32 %v4552_v54, %v4692_v19  ;;  %v4747_v52 = vmul.f32 %v8695_v29, %v8634_v11  ;;  %v4740_v14 = vmul.f32 %v8695_v29, %v8582_v23  ;;  %v4741_v42 = vmul.f32 %v8695_v29, %v8578_v38 }
 0xfbd   :  { %v4697_v9 = vmul.f32 %v8695_v29, %v8576_v43  ;;  %v4698_v57 = vmul.f32 %v8695_v29, %v8574_v50  ;;  %v4699_v12 = vmul.f32 %v8695_v29, %v8580_v2  ;;  %v4742_v11 = vmul.f32 %v8695_v29, %v8586_v41 }
 0xfbe   :  { %v8699_v28 = vperm.slane %v4693_v16, 0  ;;  %v4700_v63 = vmul.f32 %v8695_v29, %v8588_v0  ;;  %v4743_v49 = vmul.f32 %v8695_v29, %v8596_v8  ;;  %v4744_v54 = vmul.f32 %v8695_v29, %v8606_v30 }
 0xfbf   :  { %v4701_v16 = vmul.f32 %v8695_v29, %v8598_v36 }
 0xfc0   :  { %v8714_v27 = vadd.f32 %v4747_v52, %v8699_v28  ;;  %v4748_v23 = vadd.f32 %v4740_v14, %v8699_v28  ;;  %v4749_v18 = vadd.f32 %v4741_v42, %v8699_v28  ;;  %v4708_v38 = vadd.f32 %v8699_v28, %v4697_v9 }
 0xfc1   :  { %v4709_v43 = vadd.f32 %v8699_v28, %v4698_v57  ;;  %v4710_v47 = vadd.f32 %v8699_v28, %v4699_v12  ;;  %v4750_v50 = vadd.f32 %v4742_v11, %v8699_v28  ;;  %v4711_v15 = vadd.f32 %v8699_v28, %v4700_v63 }
 0xfc2   :  { %vm4756_vm13 = vcmp.ge.f32.partialorder %v4748_v23, 0.0  ;;  %vm4757_vm7 = vcmp.ge.f32.partialorder %v4749_v18, 0.0  ;;  %v4764_v2 = vmul.f32 0.2, %v4748_v23  ;;  %v4765_v44 = vmul.f32 0.2, %v4749_v18 }
 0xfc3   :  { %vm4716_vm8 = vcmp.ge.f32.partialorder %v4708_v38, 0.0  ;;  %vm4717_vm11 = vcmp.ge.f32.partialorder %v4709_v43, 0.0  ;;  %v4724_v41 = vmul.f32 0.2, %v4708_v38  ;;  %v4725_v55 = vmul.f32 0.2, %v4709_v43 }
 0xfc4   :  { %vm4718_vm6 = vcmp.ge.f32.partialorder %v4710_v47, 0.0  ;;  %vm4758_vm9 = vcmp.ge.f32.partialorder %v4750_v50, 0.0  ;;  %v8722_v3 = vsel %vm4756_vm13, %v4748_v23, %v4764_v2  ;;  %v8724_v13 = vsel %vm4757_vm7, %v4749_v18, %v4765_v44 }
 0xfc5   :  { %v4726_v22 = vmul.f32 0.2, %v4710_v47  ;;  %v4766_v25 = vmul.f32 0.2, %v4750_v50  ;;  %v4971_v33 = vrot.slane %v8722_v3, 1  ;;  %v4972_v61 = vrot.slane %v8724_v13, 1 }
 0xfc6   :  { %v8728_v5 = vsel %vm4716_vm8, %v4708_v38, %v4724_v41  ;;  %v8730_v20 = vsel %vm4717_vm11, %v4709_v43, %v4725_v55  ;;  %v5010_v40 = vrot.slane %v8722_v3, 2  ;;  %v5011_v51 = vrot.slane %v8724_v13, 2 }
 0xfc7   :  { %v4840_v26 = vrot.slane %v8728_v5, 2  ;;  %v4841_v46 = vrot.slane %v8730_v20, 2  ;;  %v4801_v32 = vrot.slane %v8728_v5, 1  ;;  %v4802_v10 = vrot.slane %v8730_v20, 1 }
 0xfc8   :  { %v4973_v7 = vsel %vm240_vm1, %v4971_v33, %v4972_v61  ;;  %v8743_v48 = vsel %vm4718_vm6, %v4710_v47, %v4726_v22  ;;  %v8748_v6 = vsel %vm4758_vm9, %v4750_v50, %v4766_v25  ;;  %v4727_v60 = vmul.f32 0.2, %v4711_v15 }
 0xfc9   :  { %4986 = vrot.lane.b32.xlu0 %v4973_v7, %s6142_s5  ;;  %v4842_v58 = vsel %vm280_vm0, %v4840_v26, %v4841_v46  ;;  %v4803_v37 = vsel %vm240_vm1, %v4801_v32, %v4802_v10  ;;  %v4804_v0 = vrot.slane %v8743_v48, 1  ;;  %v4974_v45 = vrot.slane %v8748_v6, 1 }
 0xfca   :  { %4855 = vrot.lane.b32.xlu1 %v4842_v58, %s6143_s13  ;;  %4816 = vrot.lane.b32.xlu2 %v4803_v37, %s6142_s5  ;;  %vm4719_vm15 = vcmp.ge.f32.partialorder %v4711_v15, 0.0  ;;  %v5012_v24 = vsel %vm280_vm0, %v5010_v40, %v5011_v51  ;;  %v4751_v17 = vadd.f32 %v4743_v49, %v8699_v28  ;;  %v5013_v53 = vrot.slane %v8748_v6, 2 }
 0xfcb   :  { %v4805_v31 = vsel %vm240_vm1, %v4802_v10, %v4804_v0  ;;  %v4975_v34 = vsel %vm240_vm1, %v4972_v61, %v4974_v45  ;;  %v8763_v62 = vsel %vm4719_vm15, %v4711_v15, %v4727_v60  ;;  %v4843_v8 = vrot.slane %v8743_v48, 2 }
 0xfcc   :  { %v4806_v4 = vrot.slane %v8763_v62, 1  ;;  %v4767_v1 = vmul.f32 0.2, %v4751_v17  ;;  %vm4759_vm10 = vcmp.ge.f32.partialorder %v4751_v17, 0.0  ;;  %v5014_v19 = vsel %vm280_vm0, %v5011_v51, %v5013_v53 }
 0xfcd   :  { %v4844_v14 = vsel %vm280_vm0, %v4841_v46, %v4843_v8  ;;  %v4752_v42 = vadd.f32 %v4744_v54, %v8699_v28  ;;  %v4712_v30 = vadd.f32 %v8699_v28, %v4701_v16  ;;  %v4704_v57 = vmul.f32 %v8695_v29, %v8630_v59 }
 0xfce   :  { %v4807_v52 = vsel %vm240_vm1, %v4804_v0, %v4806_v4  ;;  %v8780_v9 = vsel %vm4759_vm10, %v4751_v17, %v4767_v1  ;;  %v4845_v36 = vrot.slane %v8763_v62, 2  ;;  %v4702_v43 = vmul.f32 %v8695_v29, %v8608_v39 }
 0xfcf   :  { %v8787_v12 = vadd.f32 %v8699_v28, %v4704_v57  ;;  %v5015_v11 = vrot.slane %v8780_v9, 2  ;;  %v4976_v23 = vrot.slane %v8780_v9, 1  ;;  %v4768_v18 = vmul.f32 0.2, %v4752_v42 }
 0xfd0   :  { %vm4760_vm12 = vcmp.ge.f32.partialorder %v4752_v42, 0.0  ;;  %v4728_v38 = vmul.f32 0.2, %v4712_v30  ;;  %vm4720_vm14 = vcmp.ge.f32.partialorder %v4712_v30, 0.0  ;;  %v4846_v47 = vsel %vm280_vm0, %v4843_v8, %v4845_v36  ;;  %v4791_v8 = vld [vmem:[%s9280_s8 + $0x58] sm:$0xff] }
 0xfd1   :  { %4818 = vrot.lane.b32.xlu0 %v4805_v31, %s6142_s5  ;;  %v4745_v59 = vmul.f32 %v8695_v29, %v8614_v35  ;;  %v5016_v50 = vsel %vm280_vm0, %v5013_v53, %v5015_v11  ;;  %v4977_v2 = vsel %vm240_vm1, %v4974_v45, %v4976_v23  ;;  %v8799_v44 = vsel %vm4760_vm12, %v4752_v42, %v4768_v18 }
 0xfd2   :  { %4988 = vrot.lane.b32.xlu1 %v4975_v34, %s6142_s5  ;;  %5025 = vrot.lane.b32.xlu2 %v5012_v24, %s6143_s13  ;;  %v4713_v41 = vadd.f32 %v8699_v28, %v4702_v43  ;;  %v8804_v39 = vsel %vm4720_vm14, %v4712_v30, %v4728_v38  ;;  %v4978_v35 = vrot.slane %v8799_v44, 1  ;;  %v4703_v46 = vmul.f32 %v8695_v29, %v8616_v56  ;;  %v4790_v38 = vld [vmem:[%s9280_s8 + $0x50] sm:$0xff]  ;;  %v4789_v43 = vld [vmem:[%s9280_s8 + $0x48] sm:$0xff] }
 0xfd3   :  { %v4753_v55 = vadd.f32 %v4745_v59, %v8699_v28  ;;  %v4847_v22 = vrot.slane %v8804_v39, 2  ;;  %v4808_v25 = vrot.slane %v8804_v39, 1  ;;  %v5017_v15 = vrot.slane %v8799_v44, 2  ;;  %5093 = vmatpush.msrb.mxu2 %v4791_v8  ;;  %4926 = vmatpush.msrb.mxu0 %v4791_v8  ;;  %v4788_v59 = vld [vmem:[%s9280_s8 + $0x40] sm:$0xff] }
 0xfd4   :  { %v4729_v33 = vmul.f32 0.2, %v4713_v41  ;;  %vm4721_vm13 = vcmp.ge.f32.partialorder %v4713_v41, 0.0  ;;  %v4979_v26 = vsel %vm240_vm1, %v4976_v23, %v4978_v35  ;;  %v4714_v58 = vadd.f32 %v8699_v28, %v4703_v46 }
 0xfd5   :  { %v4769_v61 = vmul.f32 0.2, %v4753_v55  ;;  %vm4761_vm7 = vcmp.ge.f32.partialorder %v4753_v55, 0.0  ;;  %v4848_v32 = vsel %vm280_vm0, %v4845_v36, %v4847_v22  ;;  %v4809_v10 = vsel %vm240_vm1, %v4806_v4, %v4808_v25  ;;  %5094 = vmatpush.msrb.mxu2 %v4790_v38  ;;  %4927 = vmatpush.msrb.mxu0 %v4790_v38 }
 0xfd6   :  { %v8816_v7 = vsel %vm4721_vm13, %v4713_v41, %v4729_v33  ;;  %v4730_v0 = vmul.f32 0.2, %v4714_v58  ;;  %vm4722_vm8 = vcmp.ge.f32.partialorder %v4714_v58, 0.0  ;;  %v4746_v40 = vmul.f32 %v8695_v29, %v8622_v21  ;;  %v4786_v41 = vld [vmem:[%s9280_s8 + $0x30] sm:$0xff] }
 0xfd7   :  { %v8820_v63 = vsel %vm4761_vm7, %v4753_v55, %v4769_v61  ;;  %v4810_v37 = vrot.slane %v8816_v7, 1  ;;  %v5018_v60 = vsel %vm280_vm0, %v5015_v11, %v5017_v15  ;;  %v4849_v21 = vrot.slane %v8816_v7, 2  ;;  %4928 = vmatpush.msrb.mxu0 %v4789_v43  ;;  %5095 = vmatpush.msrb.mxu2 %v4789_v43  ;;  %v4785_v55 = vld [vmem:[%s9280_s8 + $0x28] sm:$0xff]  ;;  %v4782_v33 = vld [vmem:[%s9280_s8 + $0x10] sm:$0xff] }
 0xfd8   :  { %v4980_v56 = vrot.slane %v8820_v63, 1  ;;  %v8834_v31 = vsel %vm4722_vm8, %v4714_v58, %v4730_v0  ;;  %v4754_v49 = vadd.f32 %v4746_v40, %v8699_v28  ;;  %v5019_v34 = vrot.slane %v8820_v63, 2  ;;  %v4781_v61 = vld [vmem:[%s9280_s8 + $0x8] sm:$0xff] }
 0xfd9   :  { %5027 = vrot.lane.b32.xlu0 %v5014_v19, %s6143_s13  ;;  %v4811_v45 = vsel %vm240_vm1, %v4808_v25, %v4810_v37  ;;  %v4812_v24 = vrot.slane %v8834_v31, 1  ;;  %v4850_v4 = vsel %vm280_vm0, %v4847_v22, %v4849_v21  ;;  %v4851_v1 = vrot.slane %v8834_v31, 2  ;;  %4929 = vmatpush.msrb.mxu0 %v4788_v59  ;;  %v4784_v22 = vld [vmem:[%s9280_s8 + $0x20] sm:$0xff]  ;;  %v4783_v25 = vld [vmem:[%s9280_s8 + $0x18] sm:$0xff] }
 0xfda   :  { %4820 = vrot.lane.b32.xlu1 %v4807_v52, %s6142_s5  ;;  %4857 = vrot.lane.b32.xlu2 %v4844_v14, %s6143_s13  ;;  %v4981_v51 = vsel %vm240_vm1, %v4978_v35, %v4980_v56  ;;  %v4770_v29 = vmul.f32 0.2, %v4754_v49  ;;  %vm4762_vm11 = vcmp.ge.f32.partialorder %v4754_v49, 0.0  ;;  %v5020_v17 = vsel %vm280_vm0, %v5017_v15, %v5019_v34 }
 0xfdb   :  { %v4813_v53 = vsel %vm240_vm1, %v4810_v37, %v4812_v24  ;;  %v4771_v54 = vmul.f32 0.2, %v8714_v27  ;;  %vm4763_vm6 = vcmp.ge.f32.partialorder %v8714_v27, 0.0  ;;  %v4731_v52 = vmul.f32 0.2, %v8787_v12  ;;  %5096 = vmatpush.msrb.mxu2 %v4788_v59 }
 0xfdc   :  { %v8846_v28 = vsel %vm4762_vm11, %v4754_v49, %v4770_v29  ;;  %vm4723_vm9 = vcmp.ge.f32.partialorder %v8787_v12, 0.0  ;;  %v4852_v14 = vsel %vm280_vm0, %v4849_v21, %v4851_v1 }
 0xfdd   :  { %v5021_v19 = vrot.slane %v8846_v28, 2  ;;  %v4982_v16 = vrot.slane %v8846_v28, 1  ;;  %v8861_v57 = vsel %vm4763_vm6, %v8714_v27, %v4771_v54  ;;  %v8866_v36 = vsel %vm4723_vm9, %v8787_v12, %v4731_v52 }
 0xfde   :  { %v4984_v11 = vrot.slane %v8861_v57, 1  ;;  %v4853_v23 = vrot.slane %v8866_v36, 2  ;;  %v4814_v18 = vrot.slane %v8866_v36, 1 }
 0xfdf   :  { %v5022_v42 = vsel %vm280_vm0, %v5019_v34, %v5021_v19  ;;  %v4983_v30 = vsel %vm240_vm1, %v4980_v56, %v4982_v16 }
 0xfe0   :  { %v4985_v27 = vsel %vm240_vm1, %v4982_v16, %v4984_v11  ;;  %v4854_v12 = vsel %vm280_vm0, %v4851_v1, %v4853_v23 }
 0xfe1   :  { %4859 = vrot.lane.b32.xlu0 %v4846_v47, %s6143_s13  ;;  %v4815_v47 = vsel %vm240_vm1, %v4812_v24, %v4814_v18 }
 0xfe2   :  { %5029 = vrot.lane.b32.xlu1 %v5016_v50, %s6143_s13  ;;  %4990 = vrot.lane.b32.xlu2 %v4977_v2, %s6142_s5  ;;  %v4787_v50 = vld [vmem:[%s9280_s8 + $0x38] sm:$0xff]  ;;  %v5023_v2 = vrot.slane %v8861_v57, 2 }
 0xfe3   :  { %4930 = vmatpush.msrb.mxu0 %v4787_v50  ;;  %5097 = vmatpush.msrb.mxu2 %v4787_v50 }
 0xfe4   :  { %v5024_v35 = vsel %vm280_vm0, %v5021_v19, %v5023_v2 }
 0xfe5   :  { %4931 = vmatpush.msrb.mxu0 %v4786_v41  ;;  %5098 = vmatpush.msrb.mxu2 %v4786_v41 }
 0xfe7   :  { %4932 = vmatpush.msrb.mxu0 %v4785_v55  ;;  %5099 = vmatpush.msrb.mxu2 %v4785_v55 }
 0xfe9   :  { %4992 = vrot.lane.b32.xlu0 %v4979_v26, %s6142_s5  ;;  %4933 = vmatpush.msrb.mxu0 %v4784_v22  ;;  %v4780_v26 = vld [vmem:[%s9280_s8] sm:$0xff] }
 0xfea   :  { %4861 = vrot.lane.b32.xlu1 %v4848_v32, %s6143_s13  ;;  %4822 = vrot.lane.b32.xlu2 %v4809_v10, %s6142_s5 }
 0xfeb   :  { %5100 = vmatpush.msrb.mxu2 %v4784_v22  ;;  %4934 = vmatpush.msrb.mxu0 %v4783_v25 }
 0xfed   :  { %5101 = vmatpush.msrb.mxu2 %v4783_v25  ;;  %4935 = vmatpush.msrb.mxu0 %v4782_v33 }
 0xfef   :  { %5102 = vmatpush.msrb.mxu2 %v4782_v33  ;;  %4936 = vmatpush.msrb.mxu0 %v4781_v61 }
 0xff1   :  { %4824 = vrot.lane.b32.xlu0 %v4811_v45, %s6142_s5  ;;  %5103 = vmatpush.msrb.mxu2 %v4781_v61 }
 0xff2   :  { %4994 = vrot.lane.b32.xlu1 %v4981_v51, %s6142_s5  ;;  %5031 = vrot.lane.b32.xlu2 %v5018_v60, %s6143_s13 }
 0xff3   :  { %4937 = vmatpush.msrb.mxu0 %v4780_v26  ;;  %5104 = vmatpush.msrb.mxu2 %v4780_v26 }
 0xff9   :  { %5033 = vrot.lane.b32.xlu0 %v5020_v17, %s6143_s13 }
 0xffa   :  { %4826 = vrot.lane.b32.xlu1 %v4813_v53, %s6142_s5  ;;  %4863 = vrot.lane.b32.xlu2 %v4850_v4, %s6143_s13 }
0x1001   :  { %4865 = vrot.lane.b32.xlu0 %v4852_v14, %s6143_s13 }
0x1002   :  { %5035 = vrot.lane.b32.xlu1 %v5022_v42, %s6143_s13  ;;  %4996 = vrot.lane.b32.xlu2 %v4983_v30, %s6142_s5 }
0x1009   :  { %4998 = vrot.lane.b32.xlu0 %v4985_v27, %s6142_s5 }
0x100a   :  { %4867 = vrot.lane.b32.xlu1 %v4854_v12, %s6143_s13  ;;  %4828 = vrot.lane.b32.xlu2 %v4815_v47, %s6142_s5 }
0x1011   :  { %4830 = vrot.lane.b32.xlu0 %v4814_v18, %s6142_s5 }
0x1012   :  { %5000 = vrot.lane.b32.xlu1 %v4984_v11, %s6142_s5  ;;  %5037 = vrot.lane.b32.xlu2 %v5024_v35, %s6143_s13 }
0x1019   :  { %5039 = vrot.lane.b32.xlu0 %v5023_v2, %s6143_s13 }
0x101a   :  { %4869 = vrot.lane.b32.xlu2 %v4853_v23, %s6143_s13 }
0x1024   :  { %v4817_v46 = vpop.permute.xlu2 %4816 }
0x1025   :  { %v4879_v37 = vsel %vm579_vm5, %v8728_v5, %v4817_v46 }
0x102c   :  { %v5026_v32 = vpop.permute.xlu2 %5025 }
0x1034   :  { %v4858_v10 = vpop.permute.xlu2 %4857 }
0x103b   :  { %v4987_v58 = vpop.permute.xlu0 %4986 }
0x103c   :  { %v5049_v56 = vsel %vm579_vm5, %v8722_v3, %v4987_v58  ;;  %v4856_v15 = vpop.permute.xlu1 %4855  ;;  %v4991_v40 = vpop.permute.xlu2 %4990  ;;  %v8960_v58 = vld [vmem:[%s9281_s14] ss:$0 sm:$0xff] }
0x103d   :  { %v5057_v0 = vsel %vm908_vm3, %v5049_v56, %v5026_v32  ;;  %v4887_v45 = vsel %vm908_vm3, %v4879_v37, %v4856_v15  ;;  %v5051_v4 = vsel %vm579_vm5, %v8748_v6, %v4991_v40 }
0x103e   :  { %5713 = vmatmul.msk.f32.vlgmr.msrb.gmra.mxu0 %vm919_vm4, %v4887_v45  ;;  %5721 = vmatmul.msk.f32.vlgmr.msrb.gmra.mxu2 %vm919_vm4, %v5057_v0 }
0x1043   :  { %v4819_v51 = vpop.permute.xlu0 %4818 }
0x1044   :  { %v4880_v60 = vsel %vm579_vm5, %v8730_v20, %v4819_v51  ;;  %v4989_v49 = vpop.permute.xlu1 %4988  ;;  %v4823_v3 = vpop.permute.xlu2 %4822 }
0x1045   :  { %v4888_v5 = vsel %vm908_vm3, %v4880_v60, %v4858_v10  ;;  %v5050_v34 = vsel %vm579_vm5, %v8724_v13, %v4989_v49  ;;  %v4882_v19 = vsel %vm579_vm5, %v8763_v62, %v4823_v3 }
0x1046   :  { %5714 = vmatmul.msk.f32.gmra.mxu0 %vm919_vm4, %v4888_v5 }
0x104b   :  { %v5028_v24 = vpop.permute.xlu0 %5027 }
0x104c   :  { %v5058_v21 = vsel %vm908_vm3, %v5050_v34, %v5028_v24  ;;  %v4821_v29 = vpop.permute.xlu1 %4820  ;;  %v5032_v17 = vpop.permute.xlu2 %5031 }
0x104d   :  { %5722 = vmatmul.msk.f32.gmra.mxu2 %vm919_vm4, %v5058_v21  ;;  %v4881_v53 = vsel %vm579_vm5, %v8743_v48, %v4821_v29 }
0x1053   :  { %v4860_v20 = vpop.permute.xlu0 %4859 }
0x1054   :  { %v4889_v8 = vsel %vm908_vm3, %v4881_v53, %v4860_v20  ;;  %v5030_v1 = vpop.permute.xlu1 %5029  ;;  %v4864_v16 = vpop.permute.xlu2 %4863 }
0x1055   :  { %v5059_v54 = vsel %vm908_vm3, %v5051_v4, %v5030_v1  ;;  %5715 = vmatmul.msk.f32.gmra.mxu0 %vm919_vm4, %v4889_v8 }
0x1056   :  { %5723 = vmatmul.msk.f32.gmra.mxu2 %vm919_vm4, %v5059_v54 }
0x105b   :  { %v4993_v13 = vpop.permute.xlu0 %4992 }
0x105c   :  { %v5052_v48 = vsel %vm579_vm5, %v8780_v9, %v4993_v13  ;;  %v4862_v52 = vpop.permute.xlu1 %4861  ;;  %v4997_v23 = vpop.permute.xlu2 %4996 }
0x105d   :  { %v4890_v6 = vsel %vm908_vm3, %v4882_v19, %v4862_v52  ;;  %v5060_v14 = vsel %vm908_vm3, %v5052_v48, %v5032_v17  ;;  %v5054_v47 = vsel %vm579_vm5, %v8820_v63, %v4997_v23 }
0x105e   :  { %5716 = vmatmul.msk.f32.gmra.mxu0 %vm919_vm4, %v4890_v6  ;;  %5724 = vmatmul.msk.f32.gmra.mxu2 %vm919_vm4, %v5060_v14 }
0x1063   :  { %v4825_v42 = vpop.permute.xlu0 %4824 }
0x1064   :  { %v4883_v30 = vsel %vm579_vm5, %v8804_v39, %v4825_v42  ;;  %v4995_v11 = vpop.permute.xlu1 %4994  ;;  %v4829_v27 = vpop.permute.xlu2 %4828 }
0x1065   :  { %v4891_v62 = vsel %vm908_vm3, %v4883_v30, %v4864_v16  ;;  %v5053_v9 = vsel %vm579_vm5, %v8799_v44, %v4995_v11  ;;  %v4885_v55 = vsel %vm579_vm5, %v8834_v31, %v4829_v27 }
0x1066   :  { %5717 = vmatmul.msk.f32.gmra.mxu0 %vm919_vm4, %v4891_v62 }
0x106b   :  { %v5034_v18 = vpop.permute.xlu0 %5033 }
0x106c   :  { %v5061_v38 = vsel %vm908_vm3, %v5053_v9, %v5034_v18  ;;  %v4827_v43 = vpop.permute.xlu1 %4826  ;;  %v5038_v44 = vpop.permute.xlu2 %5037 }
0x106d   :  { %5725 = vmatmul.msk.f32.gmra.mxu2 %vm919_vm4, %v5061_v38  ;;  %v4884_v12 = vsel %vm579_vm5, %v8816_v7, %v4827_v43 }
0x1073   :  { %v4866_v39 = vpop.permute.xlu0 %4865 }
0x1074   :  { %v4892_v59 = vsel %vm908_vm3, %v4884_v12, %v4866_v39  ;;  %v5036_v50 = vpop.permute.xlu1 %5035  ;;  %v4870_v33 = vpop.permute.xlu2 %4869 }
0x1075   :  { %v5062_v2 = vsel %vm908_vm3, %v5054_v47, %v5036_v50  ;;  %5718 = vmatmul.msk.f32.gmra.mxu0 %vm919_vm4, %v4892_v59 }
0x1076   :  { %5726 = vmatmul.msk.f32.gmra.mxu2 %vm919_vm4, %v5062_v2 }
0x107b   :  { %v4999_v41 = vpop.permute.xlu0 %4998 }
0x107c   :  { %v5055_v7 = vsel %vm579_vm5, %v8846_v28, %v4999_v41  ;;  %v4868_v35 = vpop.permute.xlu1 %4867 }
0x107d   :  { %v4893_v63 = vsel %vm908_vm3, %v4885_v55, %v4868_v35  ;;  %v5063_v22 = vsel %vm908_vm3, %v5055_v7, %v5038_v44 }
0x107e   :  { %5719 = vmatmul.msk.f32.gmra.mxu0 %vm919_vm4, %v4893_v63  ;;  %5727 = vmatmul.msk.f32.gmra.mxu2 %vm919_vm4, %v5063_v22 }
0x1083   :  { %v4831_v25 = vpop.permute.xlu0 %4830 }
0x1084   :  { %v4886_v61 = vsel %vm579_vm5, %v8866_v36, %v4831_v25  ;;  %v5001_v28 = vpop.permute.xlu1 %5000 }
0x1085   :  { %v4894_v31 = vsel %vm908_vm3, %v4886_v61, %v4870_v33  ;;  %v5056_v26 = vsel %vm579_vm5, %v8861_v57, %v5001_v28 }
0x1086   :  { %5720 = vmatmul.msk.f32.gmra.mxu0 %vm919_vm4, %v4894_v31 }
0x108b   :  { %v5040_v46 = vpop.permute.xlu0 %5039 }
0x108c   :  { %v5064_v32 = vsel %vm908_vm3, %v5056_v26, %v5040_v46 }
0x108d   :  { %5728 = vmatmul.msk.f32.gmra.mxu2 %vm919_vm4, %v5064_v32 }
0x10bb   :  { %v4939_v10 = vpop.f32.mrf.mxu0 }
0x10bc   :  { %v8963_v37 = vadd.f32 %v8960_v58, %v4939_v10 }
0x10be   :  { %v5151_v15 = vrot.slane %v8963_v37, 1  ;;  %v5190_v0 = vrot.slane %v8963_v37, 2 }
0x10c1   :  { %v5106_v40 = vpop.f32.mrf.mxu2 }
0x10c2   :  { %v8977_v49 = vadd.f32 %v8960_v58, %v5106_v40 }
0x10c3   :  { %v4942_v36 = vpop.f32.mrf.mxu0 }
0x10c4   :  { %v8966_v56 = vadd.f32 %v8960_v58, %v4942_v36  ;;  %v5321_v34 = vrot.slane %v8977_v49, 1  ;;  %v5360_v21 = vrot.slane %v8977_v49, 2 }
0x10c6   :  { %v5152_v57 = vrot.slane %v8966_v56, 1  ;;  %v5191_v45 = vrot.slane %v8966_v56, 2 }
0x10c8   :  { %v5192_v51 = vsel %vm280_vm0, %v5190_v0, %v5191_v45  ;;  %v5153_v60 = vsel %vm240_vm1, %v5151_v15, %v5152_v57 }
0x10c9   :  { %5205 = vrot.lane.b32.xlu2 %v5192_v51, %s6143_s13  ;;  %5166 = vrot.lane.b32.xlu1 %v5153_v60, %s6142_s5 }
0x10d0   :  { %v5109_v5 = vpop.f32.mrf.mxu2 }
0x10d1   :  { %v8980_v3 = vadd.f32 %v8960_v58, %v5109_v5 }
0x10d2   :  { %v4945_v24 = vpop.f32.mrf.mxu0 }
0x10d3   :  { %v5322_v29 = vrot.slane %v8980_v3, 1  ;;  %v5361_v17 = vrot.slane %v8980_v3, 2  ;;  %v8987_v53 = vadd.f32 %v8960_v58, %v4945_v24 }
0x10d5   :  { %v5154_v20 = vrot.slane %v8987_v53, 1  ;;  %v5323_v4 = vsel %vm240_vm1, %v5321_v34, %v5322_v29  ;;  %v5362_v8 = vsel %vm280_vm0, %v5360_v21, %v5361_v17  ;;  %v5193_v54 = vrot.slane %v8987_v53, 2  ;;  %v5141_v21 = vld [vmem:[%s6382_s30 + $0x58] sm:$0xff] }
0x10d6   :  { %5336 = vrot.lane.b32.xlu0 %v5323_v4, %s6142_s5  ;;  %5375 = vrot.lane.b32.xlu1 %v5362_v8, %s6143_s13  ;;  %v5139_v4 = vld [vmem:[%s6382_s30 + $0x48] sm:$0xff] }
0x10d7   :  { %v5155_v1 = vsel %vm240_vm1, %v5152_v57, %v5154_v20  ;;  %v5194_v14 = vsel %vm280_vm0, %v5191_v45, %v5193_v54  ;;  %5276 = vmatpush.msra.mxu3 %v5141_v21  ;;  %5443 = vmatpush.msra.mxu1 %v5141_v21 }
0x10d8   :  { %5168 = vrot.lane.b32.xlu2 %v5155_v1, %s6142_s5 }
0x10d9   :  { %v5112_v13 = vpop.f32.mrf.mxu2 }
0x10da   :  { %v8998_v19 = vadd.f32 %v8960_v58, %v5112_v13  ;;  %v5138_v13 = vld [vmem:[%s6382_s30 + $0x40] sm:$0xff] }
0x10db   :  { %v4948_v16 = vpop.f32.mrf.mxu0 }
0x10dc   :  { %v5324_v48 = vrot.slane %v8998_v19, 1  ;;  %v5363_v52 = vrot.slane %v8998_v19, 2  ;;  %v9003_v6 = vadd.f32 %v8960_v58, %v4948_v16 }
0x10de   :  { %5207 = vrot.lane.b32.xlu0 %v5194_v14, %s6143_s13  ;;  %v5325_v42 = vsel %vm240_vm1, %v5322_v29, %v5324_v48  ;;  %v5364_v30 = vsel %vm280_vm0, %v5361_v17, %v5363_v52  ;;  %v5156_v11 = vrot.slane %v9003_v6, 1  ;;  %v5195_v23 = vrot.slane %v9003_v6, 2  ;;  %v5140_v29 = vld [vmem:[%s6382_s30 + $0x50] sm:$0xff] }
0x10df   :  { %5338 = vrot.lane.b32.xlu1 %v5325_v42, %s6142_s5  ;;  %5277 = vmatpush.msra.mxu3 %v5140_v29  ;;  %v5136_v42 = vld [vmem:[%s6382_s30 + $0x30] sm:$0xff] }
0x10e0   :  { %5377 = vrot.lane.b32.xlu2 %v5364_v30, %s6143_s13  ;;  %v5157_v43 = vsel %vm240_vm1, %v5154_v20, %v5156_v11  ;;  %v5196_v12 = vsel %vm280_vm0, %v5193_v54, %v5195_v23  ;;  %5444 = vmatpush.msra.mxu1 %v5140_v29 }
0x10e1   :  { %v5115_v62 = vpop.f32.mrf.mxu2  ;;  %5278 = vmatpush.msra.mxu3 %v5139_v4 }
0x10e2   :  { %v9014_v9 = vadd.f32 %v8960_v58, %v5115_v62  ;;  %5445 = vmatpush.msra.mxu1 %v5139_v4 }
0x10e3   :  { %v4951_v18 = vpop.f32.mrf.mxu0  ;;  %5279 = vmatpush.msra.mxu3 %v5138_v13 }
0x10e4   :  { %v5326_v38 = vrot.slane %v9014_v9, 1  ;;  %v9019_v27 = vadd.f32 %v8960_v58, %v4951_v18  ;;  %v5365_v47 = vrot.slane %v9014_v9, 2  ;;  %5446 = vmatpush.msra.mxu1 %v5138_v13 }
0x10e6   :  { %5170 = vrot.lane.b32.xlu0 %v5157_v43, %s6142_s5  ;;  %v5327_v39 = vsel %vm240_vm1, %v5324_v48, %v5326_v38  ;;  %v5158_v59 = vrot.slane %v9019_v27, 1  ;;  %v5197_v50 = vrot.slane %v9019_v27, 2  ;;  %v5366_v2 = vsel %vm280_vm0, %v5363_v52, %v5365_v47  ;;  %v5137_v48 = vld [vmem:[%s6382_s30 + $0x38] sm:$0xff] }
0x10e7   :  { %5209 = vrot.lane.b32.xlu1 %v5196_v12, %s6143_s13  ;;  %5280 = vmatpush.msra.mxu3 %v5137_v48  ;;  %v5135_v12 = vld [vmem:[%s6382_s30 + $0x28] sm:$0xff] }
0x10e8   :  { %5340 = vrot.lane.b32.xlu2 %v5327_v39, %s6142_s5  ;;  %v5159_v44 = vsel %vm240_vm1, %v5156_v11, %v5158_v59  ;;  %v5198_v41 = vsel %vm280_vm0, %v5195_v23, %v5197_v50  ;;  %5447 = vmatpush.msra.mxu1 %v5137_v48  ;;  %v5134_v39 = vld [vmem:[%s6382_s30 + $0x20] sm:$0xff] }
0x10e9   :  { %5281 = vmatpush.msra.mxu3 %v5136_v42 }
0x10ea   :  { %5448 = vmatpush.msra.mxu1 %v5136_v42 }
0x10eb   :  { %5282 = vmatpush.msra.mxu3 %v5135_v12 }
0x10ec   :  { %5449 = vmatpush.msra.mxu1 %v5135_v12 }
0x10ed   :  { %5283 = vmatpush.msra.mxu3 %v5134_v39 }
0x10ee   :  { %5379 = vrot.lane.b32.xlu0 %v5366_v2, %s6143_s13  ;;  %5450 = vmatpush.msra.mxu1 %v5134_v39  ;;  %v5131_v2 = vld [vmem:[%s6382_s30 + $0x8] sm:$0xff] }
0x10ef   :  { %5172 = vrot.lane.b32.xlu1 %v5159_v44, %s6142_s5  ;;  %v5130_v44 = vld [vmem:[%s6382_s30] sm:$0xff] }
0x10f0   :  { %v5118_v55 = vpop.f32.mrf.mxu2  ;;  %5211 = vrot.lane.b32.xlu2 %v5198_v41, %s6143_s13 }
0x10f1   :  { %v9036_v7 = vadd.f32 %v8960_v58, %v5118_v55 }
0x10f2   :  { %v4954_v35 = vpop.f32.mrf.mxu0 }
0x10f3   :  { %v5328_v63 = vrot.slane %v9036_v7, 1  ;;  %v5367_v22 = vrot.slane %v9036_v7, 2  ;;  %v9041_v25 = vadd.f32 %v8960_v58, %v4954_v35 }
0x10f5   :  { %v5160_v33 = vrot.slane %v9041_v25, 1  ;;  %v5329_v61 = vsel %vm240_vm1, %v5326_v38, %v5328_v63  ;;  %v5368_v31 = vsel %vm280_vm0, %v5365_v47, %v5367_v22  ;;  %v5199_v26 = vrot.slane %v9041_v25, 2 }
0x10f6   :  { %5342 = vrot.lane.b32.xlu0 %v5329_v61, %s6142_s5 }
0x10f7   :  { %5381 = vrot.lane.b32.xlu1 %v5368_v31, %s6143_s13  ;;  %v5161_v28 = vsel %vm240_vm1, %v5158_v59, %v5160_v33  ;;  %v5200_v57 = vsel %vm280_vm0, %v5197_v50, %v5199_v26  ;;  %v5133_v50 = vld [vmem:[%s6382_s30 + $0x18] sm:$0xff] }
0x10f8   :  { %5174 = vrot.lane.b32.xlu2 %v5161_v28, %s6142_s5  ;;  %5284 = vmatpush.msra.mxu3 %v5133_v50 }
0x10f9   :  { %v5121_v46 = vpop.f32.mrf.mxu2  ;;  %5451 = vmatpush.msra.mxu1 %v5133_v50 }
0x10fa   :  { %v9052_v32 = vadd.f32 %v8960_v58, %v5121_v46 }
0x10fb   :  { %v4957_v10 = vpop.f32.mrf.mxu0 }
0x10fc   :  { %v5330_v36 = vrot.slane %v9052_v32, 1  ;;  %v5369_v15 = vrot.slane %v9052_v32, 2  ;;  %v9057_v0 = vadd.f32 %v8960_v58, %v4957_v10 }
0x10fe   :  { %5213 = vrot.lane.b32.xlu0 %v5200_v57, %s6143_s13  ;;  %v5331_v45 = vsel %vm240_vm1, %v5328_v63, %v5330_v36  ;;  %v5370_v40 = vsel %vm280_vm0, %v5367_v22, %v5369_v15  ;;  %v5162_v51 = vrot.slane %v9057_v0, 1  ;;  %v5201_v5 = vrot.slane %v9057_v0, 2 }
0x10ff   :  { %5344 = vrot.lane.b32.xlu1 %v5331_v45, %s6142_s5 }
0x1100   :  { %5383 = vrot.lane.b32.xlu2 %v5370_v40, %s6143_s13  ;;  %v5163_v20 = vsel %vm240_vm1, %v5160_v33, %v5162_v51  ;;  %v5202_v1 = vsel %vm280_vm0, %v5199_v26, %v5201_v5 }
0x1101   :  { %v5124_v60 = vpop.f32.mrf.mxu2 }
0x1102   :  { %v9068_v34 = vadd.f32 %v8960_v58, %v5124_v60 }
0x1103   :  { %v4960_v24 = vpop.f32.mrf.mxu0 }
0x1104   :  { %v5332_v17 = vrot.slane %v9068_v34, 1  ;;  %v9076_v8 = vadd.f32 %v8960_v58, %v4960_v24  ;;  %v5371_v16 = vrot.slane %v9068_v34, 2 }
0x1106   :  { %5176 = vrot.lane.b32.xlu0 %v5163_v20, %s6142_s5  ;;  %v5333_v54 = vsel %vm240_vm1, %v5330_v36, %v5332_v17  ;;  %v5164_v52 = vrot.slane %v9076_v8, 1  ;;  %v5203_v14 = vrot.slane %v9076_v8, 2  ;;  %v5372_v30 = vsel %vm280_vm0, %v5369_v15, %v5371_v16 }
0x1107   :  { %5215 = vrot.lane.b32.xlu1 %v5202_v1, %s6143_s13 }
0x1108   :  { %5346 = vrot.lane.b32.xlu2 %v5333_v54, %s6142_s5  ;;  %v5165_v11 = vsel %vm240_vm1, %v5162_v51, %v5164_v52  ;;  %v5204_v62 = vsel %vm280_vm0, %v5201_v5, %v5203_v14 }
0x110e   :  { %5385 = vrot.lane.b32.xlu0 %v5372_v30, %s6143_s13 }
0x110f   :  { %5178 = vrot.lane.b32.xlu1 %v5165_v11, %s6142_s5 }
0x1110   :  { %v5127_v23 = vpop.f32.mrf.mxu2  ;;  %5217 = vrot.lane.b32.xlu2 %v5204_v62, %s6143_s13 }
0x1111   :  { %v9096_v18 = vadd.f32 %v8960_v58, %v5127_v23  ;;  %v5132_v58 = vld [vmem:[%s6382_s30 + $0x10] sm:$0xff]  ;;  %s5505_s30 = sshll.u32 %s6392_s6, 4  ;;  %s5506_s30 = int_to_ptr.hbm [resolvable:$true] %s5505_s30 }
0x1112   :  { %5285 = vmatpush.msra.mxu3 %v5132_v58  ;;  %5452 = vmatpush.msra.mxu1 %v5132_v58  ;;  %s6073_s19 = sshra.s32 %s5506_s30, 4  ;;  %s6074_s19 = int_to_ptr.hbm [resolvable:$true] %s6073_s19 }
0x1113   :  { %v5334_v38 = vrot.slane %v9096_v18, 1  ;;  %v5373_v43 = vrot.slane %v9096_v18, 2  ;;  %s6075_s24 = scalar_lea.hbm %s6074_s19, 2  ;;  %p6078_p6 = scmp.lt.s32.totalorder %s6074_s19, %s6392_s6 }
0x1114   :  { %5286 = vmatpush.msra.mxu3 %v5131_v2  ;;  %5453 = vmatpush.msra.mxu1 %v5131_v2  ;;  %p6076_p5 = scmp.ne.s32.totalorder %s6074_s19, %s6075_s24  ;;  %p6079_p7 = scmp.lt.s32.totalorder %s6077_s12, %s6075_s24 }
0x1115   :  { %v5335_v47 = vsel %vm240_vm1, %v5332_v17, %v5334_v38  ;;  %v5374_v59 = vsel %vm280_vm0, %v5371_v16, %v5373_v43 }
0x1116   :  { %5348 = vrot.lane.b32.xlu0 %v5335_v47, %s6142_s5  ;;  %5287 = vmatpush.msra.mxu3 %v5130_v44  ;;  %p6080_p8 = por %p6079_p7, %p6078_p6 }
0x1117   :  { %5387 = vrot.lane.b32.xlu1 %v5374_v59, %s6143_s13  ;;  %5454 = vmatpush.msra.mxu1 %v5130_v44 }
0x1118   :  { %5180 = vrot.lane.b32.xlu2 %v5164_v52, %s6142_s5  ;;  %p6081_p9 = pnand %p6080_p8, %p6076_p5 }
0x111e   :  { %5219 = vrot.lane.b32.xlu0 %v5203_v14, %s6143_s13 }
0x111f   :  { %5350 = vrot.lane.b32.xlu1 %v5334_v38, %s6142_s5  ;;  %s6153_s5 = smov [#allocation5]  }
0x1120   :  { %5389 = vrot.lane.b32.xlu2 %v5373_v43, %s6143_s13  ;;  %s5503_s13 = sshll.u32 %s6153_s5, 4  ;;  %s5504_s13 = int_to_ptr.vmem [resolvable:$true] %s5503_s13 }
0x1123   :  { %v5206_v41 = vpop.permute.xlu2 %5205 }
0x1132   :  { %v5169_v55 = vpop.permute.xlu2 %5168 }
0x1133   :  { %v5230_v10 = vsel %vm579_vm5, %v8966_v56, %v5169_v55 }
0x113a   :  { %v5378_v33 = vpop.permute.xlu2 %5377 }
0x113b   :  { %v5167_v35 = vpop.permute.xlu1 %5166 }
0x113c   :  { %v5229_v63 = vsel %vm579_vm5, %v8963_v37, %v5167_v35 }
0x113d   :  { %v5237_v22 = vsel %vm908_vm3, %v5229_v63, %v5206_v41 }
0x113e   :  { %5729 = vmatmul.msk.f32.vlgmr.msra.gmra.mxu3 %vm919_vm4, %v5237_v22 }
0x1142   :  { %v5341_v46 = vpop.permute.xlu2 %5340 }
0x1143   :  { %v5401_v5 = vsel %vm579_vm5, %v8998_v19, %v5341_v46 }
0x1148   :  { %v5337_v61 = vpop.permute.xlu0 %5336  ;;  %v5376_v31 = vpop.permute.xlu1 %5375 }
0x1149   :  { %v5399_v28 = vsel %vm579_vm5, %v8977_v49, %v5337_v61 }
0x114a   :  { %v5407_v26 = vsel %vm908_vm3, %v5399_v28, %v5376_v31  ;;  %v5212_v49 = vpop.permute.xlu2 %5211 }
0x114b   :  { %5737 = vmatmul.msk.f32.vlgmr.msra.gmra.mxu1 %vm919_vm4, %v5407_v26 }
0x1150   :  { %v5208_v36 = vpop.permute.xlu0 %5207 }
0x1151   :  { %v5238_v37 = vsel %vm908_vm3, %v5230_v10, %v5208_v36  ;;  %v5339_v15 = vpop.permute.xlu1 %5338 }
0x1152   :  { %v5400_v57 = vsel %vm579_vm5, %v8980_v3, %v5339_v15  ;;  %5730 = vmatmul.msk.f32.gmra.mxu3 %vm919_vm4, %v5238_v37  ;;  %v5175_v3 = vpop.permute.xlu2 %5174 }
0x1153   :  { %v5408_v45 = vsel %vm908_vm3, %v5400_v57, %v5378_v33  ;;  %v5233_v13 = vsel %vm579_vm5, %v9019_v27, %v5175_v3 }
0x1154   :  { %5738 = vmatmul.msk.f32.gmra.mxu1 %vm919_vm4, %v5408_v45 }
0x1158   :  { %v5171_v40 = vpop.permute.xlu0 %5170 }
0x1159   :  { %v5210_v51 = vpop.permute.xlu1 %5209  ;;  %v5231_v60 = vsel %vm579_vm5, %v8987_v53, %v5171_v40 }
0x115a   :  { %v5239_v56 = vsel %vm908_vm3, %v5231_v60, %v5210_v51  ;;  %v5384_v19 = vpop.permute.xlu2 %5383 }
0x115b   :  { %5731 = vmatmul.msk.f32.gmra.mxu3 %vm919_vm4, %v5239_v56 }
0x1160   :  { %v5380_v24 = vpop.permute.xlu0 %5379 }
0x1161   :  { %v5409_v21 = vsel %vm908_vm3, %v5401_v5, %v5380_v24  ;;  %v5173_v29 = vpop.permute.xlu1 %5172 }
0x1162   :  { %v5232_v17 = vsel %vm579_vm5, %v9003_v6, %v5173_v29  ;;  %5739 = vmatmul.msk.f32.gmra.mxu1 %vm919_vm4, %v5409_v21  ;;  %v5347_v14 = vpop.permute.xlu2 %5346 }
0x1163   :  { %v5240_v20 = vsel %vm908_vm3, %v5232_v17, %v5212_v49 }
0x1164   :  { %5732 = vmatmul.msk.f32.gmra.mxu3 %vm919_vm4, %v5240_v20 }
0x1168   :  { %v5343_v53 = vpop.permute.xlu0 %5342 }
0x1169   :  { %v5402_v4 = vsel %vm579_vm5, %v9014_v9, %v5343_v53  ;;  %v5382_v1 = vpop.permute.xlu1 %5381 }
0x116a   :  { %v5410_v54 = vsel %vm908_vm3, %v5402_v4, %v5382_v1  ;;  %v5218_v62 = vpop.permute.xlu2 %5217 }
0x116b   :  { %5740 = vmatmul.msk.f32.gmra.mxu1 %vm919_vm4, %v5410_v54 }
0x1170   :  { %v5214_v6 = vpop.permute.xlu0 %5213 }
0x1171   :  { %v5241_v16 = vsel %vm908_vm3, %v5233_v13, %v5214_v6  ;;  %v5345_v48 = vpop.permute.xlu1 %5344 }
0x1172   :  { %v5403_v52 = vsel %vm579_vm5, %v9036_v7, %v5345_v48  ;;  %5733 = vmatmul.msk.f32.gmra.mxu3 %vm919_vm4, %v5241_v16  ;;  %v5404_v7 = vsel %vm579_vm5, %v9052_v32, %v5347_v14 }
0x1173   :  { %v5411_v9 = vsel %vm908_vm3, %v5403_v52, %v5384_v19 }
0x1174   :  { %5741 = vmatmul.msk.f32.gmra.mxu1 %vm919_vm4, %v5411_v9 }
0x1178   :  { %v5177_v42 = vpop.permute.xlu0 %5176 }
0x1179   :  { %v5216_v30 = vpop.permute.xlu1 %5215  ;;  %v5234_v11 = vsel %vm579_vm5, %v9041_v25, %v5177_v42  ;;  %v5181_v25 = vpop.permute.xlu2 %5180 }
0x117a   :  { %v5242_v27 = vsel %vm908_vm3, %v5234_v11, %v5216_v30 }
0x117b   :  { %5734 = vmatmul.msk.f32.gmra.mxu3 %vm919_vm4, %v5242_v27 }
0x1180   :  { %v5386_v23 = vpop.permute.xlu0 %5385 }
0x1181   :  { %v5412_v38 = vsel %vm908_vm3, %v5404_v7, %v5386_v23  ;;  %v5179_v43 = vpop.permute.xlu1 %5178  ;;  %v5390_v41 = vpop.permute.xlu2 %5389 }
0x1182   :  { %v5235_v12 = vsel %vm579_vm5, %v9057_v0, %v5179_v43  ;;  %5742 = vmatmul.msk.f32.gmra.mxu1 %vm919_vm4, %v5412_v38  ;;  %v5236_v0 = vsel %vm579_vm5, %v9076_v8, %v5181_v25 }
0x1183   :  { %v5243_v39 = vsel %vm908_vm3, %v5235_v12, %v5218_v62 }
0x1184   :  { %5735 = vmatmul.msk.f32.gmra.mxu3 %vm919_vm4, %v5243_v39 }
0x1188   :  { %v5349_v47 = vpop.permute.xlu0 %5348 }
0x1189   :  { %v5405_v59 = vsel %vm579_vm5, %v9068_v34, %v5349_v47  ;;  %v5388_v32 = vpop.permute.xlu1 %5387 }
0x118a   :  { %v5413_v50 = vsel %vm908_vm3, %v5405_v59, %v5388_v32 }
0x118b   :  { %5743 = vmatmul.msk.f32.gmra.mxu1 %vm919_vm4, %v5413_v50 }
0x1190   :  { %v5220_v58 = vpop.permute.xlu0 %5219 }
0x1191   :  { %v5244_v2 = vsel %vm908_vm3, %v5236_v0, %v5220_v58  ;;  %v5351_v44 = vpop.permute.xlu1 %5350 }
0x1192   :  { %v5406_v55 = vsel %vm579_vm5, %v9096_v18, %v5351_v44  ;;  %5736 = vmatmul.msk.f32.gmra.mxu3 %vm919_vm4, %v5244_v2 }
0x1193   :  { %v5414_v34 = vsel %vm908_vm3, %v5406_v55, %v5390_v41 }
0x1194   :  { %5744 = vmatmul.msk.f32.gmra.mxu1 %vm919_vm4, %v5414_v34 }
0x1195   :  { %6084 = shalt.err (!%p6081_p9)
}
0x1196   :  { %5508 = dma.vmem_to_hbm [thread:$0]  %s5504_s13, 32, %s5506_s30, [#allocation4]   ;;  %v6006_v8 = vld [vmem:[%s6387_s4] ss:$0 sm:$0xff]  ;;  %vm5487_vm0 = vcmask 76800  }
0x11c1   :  { %v5289_v18 = vpop.f32.mrf.mxu3 }
0x11c2   :  { %v5290_v35 = vadd.f32 %v6006_v8, %v5289_v18 }
0x11c4   :  { %5480 = vst.msk [vmem:[%s6397_s20] sm:$0xff] %vm320_vm2, %v5290_v35 }
0x11c8   :  { %v5456_v63 = vpop.f32.mrf.mxu1 }
0x11c9   :  { %v5457_v22 = vadd.f32 %v6006_v8, %v5456_v63 }
0x11cb   :  { %5745 = vst.msk [vmem:[%s6397_s20 + $0x40] sm:$0xff] %vm320_vm2, %v5457_v22 }
0x11d1   :  { %v5459_v33 = vpop.f32.mrf.mxu1 }
0x11d2   :  { %v5460_v61 = vadd.f32 %v6006_v8, %v5459_v33 }
0x11d4   :  { %5746 = vst.msk [vmem:[%s6397_s20 + $0x48] sm:$0xff] %vm320_vm2, %v5460_v61 }
0x11d5   :  { %v5292_v31 = vpop.f32.mrf.mxu3 }
0x11d6   :  { %v5293_v28 = vadd.f32 %v6006_v8, %v5292_v31 }
0x11d8   :  { %5481 = vst.msk [vmem:[%s6397_s20 + $0x8] sm:$0xff] %vm320_vm2, %v5293_v28 }
0x11de   :  { %v5295_v26 = vpop.f32.mrf.mxu3 }
0x11df   :  { %v5296_v46 = vadd.f32 %v6006_v8, %v5295_v26  ;;  %v5462_v10 = vpop.f32.mrf.mxu1 }
0x11e0   :  { %v5463_v36 = vadd.f32 %v6006_v8, %v5462_v10 }
0x11e1   :  { %5482 = vst.msk [vmem:[%s6397_s20 + $0x10] sm:$0xff] %vm320_vm2, %v5296_v46 }
0x11e2   :  { %5747 = vst.msk [vmem:[%s6397_s20 + $0x50] sm:$0xff] %vm320_vm2, %v5463_v36 }
0x11e7   :  { %v5298_v37 = vpop.f32.mrf.mxu3 }
0x11e8   :  { %v5299_v15 = vadd.f32 %v6006_v8, %v5298_v37  ;;  %v5465_v57 = vpop.f32.mrf.mxu1 }
0x11e9   :  { %v5466_v45 = vadd.f32 %v6006_v8, %v5465_v57 }
0x11ea   :  { %5483 = vst.msk [vmem:[%s6397_s20 + $0x18] sm:$0xff] %vm320_vm2, %v5299_v15 }
0x11eb   :  { %5748 = vst.msk [vmem:[%s6397_s20 + $0x58] sm:$0xff] %vm320_vm2, %v5466_v45 }
0x11f1   :  { %v5468_v49 = vpop.f32.mrf.mxu1 }
0x11f2   :  { %v5469_v40 = vadd.f32 %v6006_v8, %v5468_v49 }
0x11f4   :  { %5749 = vst.msk [vmem:[%s6397_s20 + $0x60] sm:$0xff] %vm320_vm2, %v5469_v40 }
0x11f5   :  { %v5301_v51 = vpop.f32.mrf.mxu3 }
0x11f6   :  { %v5302_v60 = vadd.f32 %v6006_v8, %v5301_v51 }
0x11f8   :  { %5484 = vst.msk [vmem:[%s6397_s20 + $0x20] sm:$0xff] %vm320_vm2, %v5302_v60 }
0x11fe   :  { %v5304_v56 = vpop.f32.mrf.mxu3 }
0x11ff   :  { %v5305_v5 = vadd.f32 %v6006_v8, %v5304_v56  ;;  %v5471_v3 = vpop.f32.mrf.mxu1 }
0x1200   :  { %v5472_v24 = vadd.f32 %v6006_v8, %v5471_v3 }
0x1201   :  { %5485 = vst.msk [vmem:[%s6397_s20 + $0x28] sm:$0xff] %vm320_vm2, %v5305_v5 }
0x1202   :  { %5750 = vst.msk [vmem:[%s6397_s20 + $0x68] sm:$0xff] %vm320_vm2, %v5472_v24 }
0x1207   :  { %v5307_v21 = vpop.f32.mrf.mxu3 }
0x1208   :  { %v5308_v29 = vadd.f32 %v6006_v8, %v5307_v21  ;;  %v5474_v17 = vpop.f32.mrf.mxu1 }
0x1209   :  { %v5475_v20 = vadd.f32 %v6006_v8, %v5474_v17 }
0x120a   :  { %5486 = vst.msk [vmem:[%s6397_s20 + $0x30] sm:$0xff] %vm320_vm2, %v5308_v29 }
0x120b   :  { %5751 = vst.msk [vmem:[%s6397_s20 + $0x70] sm:$0xff] %vm320_vm2, %v5475_v20 }
0x1211   :  { %v5477_v53 = vpop.f32.mrf.mxu1 }
0x1212   :  { %v5478_v4 = vadd.f32 %v6006_v8, %v5477_v53 }
0x1214   :  { %5752 = vst.msk [vmem:[%s6397_s20 + $0x78] sm:$0xf] %vm5487_vm0, %v5478_v4 }
0x1215   :  { %v5310_v1 = vpop.f32.mrf.mxu3 }
0x1216   :  { %v5311_v19 = vadd.f32 %v6006_v8, %v5310_v1 }
0x1218   :  { %5488 = vst.msk [vmem:[%s6397_s20 + $0x38] sm:$0xf] %vm5487_vm0, %v5311_v19 }
0x1219   :  { %6087 = dma.done.wait [#allocation4], 32  }
0x121a   :  { %6088 = vsyncadd [#allocation4], 4294967264 }
0x121b   :  { %5517 = vsyncpa [#allocation3], 1 }
0x121c   :  { %5518 = vsyncpa [#allocation4], 1 }

</bundles_post_ra>
